<compile_context>
chip_gen: v7x
topology: tpu7x:2x2x1
jax: 0.10.0
libtpu: 0.0.40
codegen_flags: <defaults>
</compile_context>

<pallas_src>
import functools

import jax
import jax.numpy as jnp
from jax.experimental import pallas as pl
from jax.experimental.pallas import tpu as pltpu

# Keep the f32 (N, 1024) layer-3 slab + double-buffered inputs well inside the
# default scoped-VMEM budget (32 MiB on v7x, which has only 64 MiB physical).
MAX_TILE_N = 2048


# ----------------------------------------------------------------------------
# Fused 3-layer pointwise-MLP (1x1 convs, BN folded) + max-pool over points.
# The 4x4 input transform is pre-folded into the per-batch first-layer weight
# w1_eff = trans @ w1 (identity for the STN branch).
# Used twice: inside STN4d (ReLU on layer 3) and for the main feature branch
# (no ReLU on layer 3).
# ----------------------------------------------------------------------------
def _mlp_max_kernel(x_ref, w1_ref, b1_ref, w2_ref, b2_ref, w3_ref, b3_ref,
                    o_ref, *, relu_last):
    x = x_ref[0]                                               # (N, 4)  f32
    w1 = w1_ref[0]                                             # (4, 64) f32 (trans folded)
    h = jnp.dot(x, w1, preferred_element_type=jnp.float32) + b1_ref[...]
    h = jnp.maximum(h, 0.0)                                    # conv1+bn1+relu
    h = jnp.dot(h, w2_ref[...], preferred_element_type=jnp.float32) + b2_ref[...]
    h = jnp.maximum(h, 0.0)                                    # conv2+bn2+relu
    # Dominant matmul in bf16 (f32 accumulate); bias/relu/max stay in f32.
    h = jnp.dot(h.astype(jnp.bfloat16), w3_ref[...],
                preferred_element_type=jnp.float32) + b3_ref[...]
    if relu_last:
        h = jnp.maximum(h, 0.0)                                # conv3+bn3(+relu)
    o_ref[0] = jnp.max(h, axis=0, keepdims=True)               # maxpool over N -> (1, 1024)


def mlp_max(x_bnc, w1e, b1, w2, b2, w3_bf16, b3, *, relu_last):
    B, N, _ = x_bnc.shape
    assert N <= MAX_TILE_N, "raise vmem_limit_bytes / re-tile for very large N"
    kern = functools.partial(_mlp_max_kernel, relu_last=relu_last)
    out = pl.pallas_call(
        kern,
        out_shape=jax.ShapeDtypeStruct((B, 1, 1024), jnp.float32),
        grid_spec=pl.GridSpec(
            grid=(B,),
            in_specs=[
                pl.BlockSpec((1, N, 4), lambda b: (b, 0, 0)),     # points (per batch)
                pl.BlockSpec((1, 4, 64), lambda b: (b, 0, 0)),    # trans-folded w1 (per batch)
                pl.BlockSpec((1, 64), lambda b: (0, 0)),
                pl.BlockSpec((64, 128), lambda b: (0, 0)),
                pl.BlockSpec((1, 128), lambda b: (0, 0)),
                pl.BlockSpec((128, 1024), lambda b: (0, 0)),      # bf16
                pl.BlockSpec((1, 1024), lambda b: (0, 0)),
            ],
            out_specs=pl.BlockSpec((1, 1, 1024), lambda b: (b, 0, 0)),
        ),
        compiler_params=pltpu.CompilerParams(
            dimension_semantics=("parallel",)),   # B axis shards across v7x's 2 TCs
    )(x_bnc, w1e, b1, w2, b2, w3_bf16, b3)
    return out.reshape(B, 1024)


# ----------------------------------------------------------------------------
# STN4d fully-connected head: fc1+bn4+relu -> fc2+bn5+relu -> fc3 (+I folded
# into b6).  Small and HBM-BW bound, so one whole-array pallas_call (no grid);
# the big fc weights are bf16 to halve the byte stream.
# ----------------------------------------------------------------------------
def _stn_head_kernel(g_ref, w4_ref, b4_ref, w5_ref, b5_ref, w6_ref, b6_ref, o_ref):
    g = g_ref[...]                                             # (B, 1024) f32
    h = jnp.dot(g.astype(jnp.bfloat16), w4_ref[...],
                preferred_element_type=jnp.float32) + b4_ref[...]
    h = jnp.maximum(h, 0.0)                                    # fc1+bn4+relu
    h = jnp.dot(h.astype(jnp.bfloat16), w5_ref[...],
                preferred_element_type=jnp.float32) + b5_ref[...]
    h = jnp.maximum(h, 0.0)                                    # fc2+bn5+relu
    # fc3; the flattened 4x4 identity is pre-folded into b6.
    o_ref[...] = jnp.dot(h, w6_ref[...],
                         preferred_element_type=jnp.float32) + b6_ref[...]


def stn_head(g, w4, b4, w5, b5, w6, b6):
    B = g.shape[0]
    out = pl.pallas_call(
        _stn_head_kernel,
        out_shape=jax.ShapeDtypeStruct((B, 16), jnp.float32),
    )(g, w4, b4, w5, b5, w6, b6)
    return out.reshape(B, 4, 4)


# ----------------------------------------------------------------------------
# Parameter construction (deterministic) with BN folded into weights.
# ----------------------------------------------------------------------------
def fold_bn(w, b, gamma, beta, mean, var, eps=1e-5):
    scale = gamma / jnp.sqrt(var + eps)
    return w * scale[None, :], b * scale + (beta - mean * scale)


def make_params(key):
    keys = jax.random.split(key, 64)
    it = iter(keys)

    def nrm(shape, s):
        return s * jax.random.normal(next(it), shape, jnp.float32)

    def conv_bn(cin, cout):
        w = nrm((cin, cout), 0.1)
        b = nrm((1, cout), 0.01)
        gamma = 1.0 + nrm((cout,), 0.1)
        beta = nrm((cout,), 0.1)
        mean = nrm((cout,), 0.1)
        var = 1.0 + jnp.abs(nrm((cout,), 0.1))
        return fold_bn(w, b, gamma, beta, mean, var)

    def linear(cin, cout):
        return nrm((cin, cout), 0.1), nrm((1, cout), 0.01)

    stn = {}
    stn["w1"], stn["b1"] = conv_bn(4, 64)        # conv1 + bn1
    stn["w2"], stn["b2"] = conv_bn(64, 128)      # conv2 + bn2
    stn["w3"], stn["b3"] = conv_bn(128, 1024)    # conv3 + bn3
    stn["w4"], stn["b4"] = conv_bn(1024, 512)    # fc1 + bn4
    stn["w5"], stn["b5"] = conv_bn(512, 256)     # fc2 + bn5
    stn["w6"], stn["b6"] = linear(256, 16)       # fc3 (no BN)
    # bf16 storage for the big matmul weights (f32 accumulate in-kernel).
    stn["w3"] = stn["w3"].astype(jnp.bfloat16)
    stn["w4"] = stn["w4"].astype(jnp.bfloat16)
    stn["w5"] = stn["w5"].astype(jnp.bfloat16)
    # Fold the flattened 4x4 identity into the fc3 bias.
    stn["b6"] = stn["b6"] + jnp.eye(4, dtype=jnp.float32).reshape(1, 16)

    feat = {}
    feat["w1"], feat["b1"] = conv_bn(4, 64)      # conv1 + bn1
    feat["w2"], feat["b2"] = conv_bn(64, 128)    # conv2 + bn2
    feat["w3"], feat["b3"] = conv_bn(128, 1024)  # conv3 + bn3
    feat["w3"] = feat["w3"].astype(jnp.bfloat16)
    return {"stn": stn, "feat": feat}


# ----------------------------------------------------------------------------
# Full forward (global_feat=True): returns (global feature (B,1024), trans (B,4,4))
# ----------------------------------------------------------------------------
def pointnetfeat4d_forward(x_bcn, params):
    B, C, N = x_bcn.shape
    assert C == 4
    x_bnc = jnp.transpose(x_bcn, (0, 2, 1))                    # (B, N, 4)

    # ---- STN4d: identity transform -> pass w1 unchanged (broadcast over B) ----
    p = params["stn"]
    w1e_stn = jnp.broadcast_to(p["w1"][None], (B, 4, 64))
    g = mlp_max(x_bnc, w1e_stn, p["b1"], p["w2"], p["b2"],
                p["w3"], p["b3"], relu_last=True)              # (B, 1024)
    trans = stn_head(g, p["w4"], p["b4"], p["w5"], p["b5"],
                     p["w6"], p["b6"])                         # (B, 4, 4)

    # ---- main feature branch: fold bmm(x, trans) into the conv1 weight ----
    q = params["feat"]
    w1e = jnp.einsum("bij,jk->bik", trans, q["w1"])            # (B, 4, 64)
    gfeat = mlp_max(x_bnc, w1e, q["b1"], q["w2"], q["b2"],
                    q["w3"], q["b3"], relu_last=False)         # (B, 1024)
    return gfeat, trans


if __name__ == "__main__":
    B, C, N = 2, 4, 256  # num_points = N = 256
    root = jax.random.PRNGKey(0)
    k_params, k_x = jax.random.split(root)
    params = make_params(k_params)
    x = jax.random.normal(k_x, (B, C, N), dtype=jnp.float32)   # PyTorch NCW input

    fwd = jax.jit(functools.partial(pointnetfeat4d_forward, params=params))
    gfeat, trans = fwd(x)
    jax.block_until_ready((gfeat, trans))
    assert gfeat.shape == (B, 1024) and trans.shape == (B, 4, 4)
    print("KERNEL_OK")
</pallas_src>

<mosaic_0001>
module attributes {stable_mosaic.version = 11 : i64} {
  func.func @_mlp_max_kernel(%arg0: i32, %arg1: memref<1x256x4xf32, #tpu.memory_space<vmem>>, %arg2: memref<1x4x64xf32, #tpu.memory_space<vmem>>, %arg3: memref<1x64xf32, #tpu.memory_space<vmem>>, %arg4: memref<64x128xf32, #tpu.memory_space<vmem>>, %arg5: memref<1x128xf32, #tpu.memory_space<vmem>>, %arg6: memref<128x1024xbf16, #tpu.memory_space<vmem>>, %arg7: memref<1x1024xf32, #tpu.memory_space<vmem>>, %arg8: memref<1x1x1024xf32, #tpu.memory_space<vmem>>) attributes {dimension_semantics = [#tpu.dimension_semantics<parallel>], iteration_bounds = array<i64: 2>, scalar_prefetch = 0 : i64, scratch_operands = 0 : i64, tpu.core_type = #tpu.core_type<tc>, window_params = [{transform_indices = @transform_0, window_bounds = array<i64: 1, 256, 4>}, {transform_indices = @transform_1, window_bounds = array<i64: 1, 4, 64>}, {pipeline_mode = #tpu.pipeline_mode<synchronous>, transform_indices = @transform_2, window_bounds = array<i64: 1, 64>}, {pipeline_mode = #tpu.pipeline_mode<synchronous>, transform_indices = @transform_3, window_bounds = array<i64: 64, 128>}, {pipeline_mode = #tpu.pipeline_mode<synchronous>, transform_indices = @transform_4, window_bounds = array<i64: 1, 128>}, {pipeline_mode = #tpu.pipeline_mode<synchronous>, transform_indices = @transform_5, window_bounds = array<i64: 128, 1024>}, {pipeline_mode = #tpu.pipeline_mode<synchronous>, transform_indices = @transform_6, window_bounds = array<i64: 1, 1024>}, {transform_indices = @transform_7, window_bounds = array<i64: 1, 1, 1024>}]} {
    %c0 = arith.constant 0 : index
    %c0_0 = arith.constant 0 : index
    %c0_1 = arith.constant 0 : index
    %0 = vector.load %arg1[%c0, %c0_0, %c0_1] : memref<1x256x4xf32, #tpu.memory_space<vmem>>, vector<1x256x4xf32>
    %1 = vector.shape_cast %0 : vector<1x256x4xf32> to vector<256x4xf32>
    %c0_2 = arith.constant 0 : index
    %c0_3 = arith.constant 0 : index
    %c0_4 = arith.constant 0 : index
    %2 = vector.load %arg2[%c0_2, %c0_3, %c0_4] : memref<1x4x64xf32, #tpu.memory_space<vmem>>, vector<1x4x64xf32>
    %3 = vector.shape_cast %2 : vector<1x4x64xf32> to vector<4x64xf32>
    %cst = arith.constant dense<0.000000e+00> : vector<256x64xf32>
    %4 = tpu.matmul %1, %3, %cst {dimension_numbers = #tpu.dot_dimension_numbers<[1], [0], [0], [1], [0, 0, 1, 1], [], []>} : vector<256x4xf32>, vector<4x64xf32>, vector<256x64xf32> -> vector<256x64xf32>
    %c0_5 = arith.constant 0 : index
    %c0_6 = arith.constant 0 : index
    %5 = vector.load %arg3[%c0_5, %c0_6] : memref<1x64xf32, #tpu.memory_space<vmem>>, vector<1x64xf32>
    %6 = vector.broadcast %5 : vector<1x64xf32> to vector<256x64xf32>
    %7 = arith.addf %4, %6 : vector<256x64xf32>
    %cst_7 = arith.constant 0.000000e+00 : f32
    %8 = vector.broadcast %cst_7 : f32 to vector<256x64xf32>
    %9 = arith.maximumf %7, %8 : vector<256x64xf32>
    %c0_8 = arith.constant 0 : index
    %c0_9 = arith.constant 0 : index
    %10 = vector.load %arg4[%c0_8, %c0_9] : memref<64x128xf32, #tpu.memory_space<vmem>>, vector<64x128xf32>
    %cst_10 = arith.constant dense<0.000000e+00> : vector<256x128xf32>
    %11 = tpu.matmul %9, %10, %cst_10 {dimension_numbers = #tpu.dot_dimension_numbers<[1], [0], [0], [1], [0, 0, 1, 1], [], []>} : vector<256x64xf32>, vector<64x128xf32>, vector<256x128xf32> -> vector<256x128xf32>
    %c0_11 = arith.constant 0 : index
    %c0_12 = arith.constant 0 : index
    %12 = vector.load %arg5[%c0_11, %c0_12] : memref<1x128xf32, #tpu.memory_space<vmem>>, vector<1x128xf32>
    %13 = vector.broadcast %12 : vector<1x128xf32> to vector<256x128xf32>
    %14 = arith.addf %11, %13 : vector<256x128xf32>
    %cst_13 = arith.constant 0.000000e+00 : f32
    %15 = vector.broadcast %cst_13 : f32 to vector<256x128xf32>
    %16 = arith.maximumf %14, %15 : vector<256x128xf32>
    %17 = arith.truncf %16 : vector<256x128xf32> to vector<256x128xbf16>
    %c0_14 = arith.constant 0 : index
    %c0_15 = arith.constant 0 : index
    %18 = vector.load %arg6[%c0_14, %c0_15] : memref<128x1024xbf16, #tpu.memory_space<vmem>>, vector<128x1024xbf16>
    %cst_16 = arith.constant dense<0.000000e+00> : vector<256x1024xf32>
    %19 = tpu.matmul %17, %18, %cst_16 {dimension_numbers = #tpu.dot_dimension_numbers<[1], [0], [0], [1], [0, 0, 1, 1], [], []>} : vector<256x128xbf16>, vector<128x1024xbf16>, vector<256x1024xf32> -> vector<256x1024xf32>
    %c0_17 = arith.constant 0 : index
    %c0_18 = arith.constant 0 : index
    %20 = vector.load %arg7[%c0_17, %c0_18] : memref<1x1024xf32, #tpu.memory_space<vmem>>, vector<1x1024xf32>
    %21 = vector.broadcast %20 : vector<1x1024xf32> to vector<256x1024xf32>
    %22 = arith.addf %19, %21 : vector<256x1024xf32>
    %cst_19 = arith.constant 0.000000e+00 : f32
    %23 = vector.broadcast %cst_19 : f32 to vector<256x1024xf32>
    %24 = arith.maximumf %22, %23 : vector<256x1024xf32>
    %cst_20 = arith.constant dense<0xFF800000> : vector<1024xf32>
    %25 = vector.multi_reduction <maximumf>, %24, %cst_20 [0] : vector<256x1024xf32> to vector<1024xf32>
    %26 = vector.shape_cast %25 : vector<1024xf32> to vector<1x1024xf32>
    %c0_21 = arith.constant 0 : index
    %c0_22 = arith.constant 0 : index
    %c0_23 = arith.constant 0 : index
    %27 = vector.load %arg8[%c0_21, %c0_22, %c0_23] : memref<1x1x1024xf32, #tpu.memory_space<vmem>>, vector<1x1x1024xf32>
    %28 = vector.shape_cast %27 : vector<1x1x1024xf32> to vector<1x1024xf32>
    %29 = vector.shape_cast %26 : vector<1x1024xf32> to vector<1x1x1024xf32>
    tpu.vector_store %arg8[%c0_21, %c0_22, %c0_23], %29 {strides = array<i32>} : memref<1x1x1024xf32, #tpu.memory_space<vmem>>, vector<1x1x1024xf32>,
    return
  }
  func.func @transform_0(%arg0: i32) -> (i32, i32, i32) {
    %c0_i32 = arith.constant 0 : i32
    %c0_i32_0 = arith.constant 0 : i32
    %c0_i32_1 = arith.constant 0 : i32
    return %arg0, %c0_i32, %c0_i32_0 : i32, i32, i32
  }
  func.func @transform_1(%arg0: i32) -> (i32, i32, i32) {
    %c0_i32 = arith.constant 0 : i32
    %c0_i32_0 = arith.constant 0 : i32
    %c0_i32_1 = arith.constant 0 : i32
    return %arg0, %c0_i32, %c0_i32_0 : i32, i32, i32
  }
  func.func @transform_2(%arg0: i32) -> (i32, i32) {
    %c0_i32 = arith.constant 0 : i32
    %c0_i32_0 = arith.constant 0 : i32
    %c0_i32_1 = arith.constant 0 : i32
    return %c0_i32, %c0_i32_0 : i32, i32
  }
  func.func @transform_3(%arg0: i32) -> (i32, i32) {
    %c0_i32 = arith.constant 0 : i32
    %c0_i32_0 = arith.constant 0 : i32
    %c0_i32_1 = arith.constant 0 : i32
    return %c0_i32, %c0_i32_0 : i32, i32
  }
  func.func @transform_4(%arg0: i32) -> (i32, i32) {
    %c0_i32 = arith.constant 0 : i32
    %c0_i32_0 = arith.constant 0 : i32
    %c0_i32_1 = arith.constant 0 : i32
    return %c0_i32, %c0_i32_0 : i32, i32
  }
  func.func @transform_5(%arg0: i32) -> (i32, i32) {
    %c0_i32 = arith.constant 0 : i32
    %c0_i32_0 = arith.constant 0 : i32
    %c0_i32_1 = arith.constant 0 : i32
    return %c0_i32, %c0_i32_0 : i32, i32
  }
  func.func @transform_6(%arg0: i32) -> (i32, i32) {
    %c0_i32 = arith.constant 0 : i32
    %c0_i32_0 = arith.constant 0 : i32
    %c0_i32_1 = arith.constant 0 : i32
    return %c0_i32, %c0_i32_0 : i32, i32
  }
  func.func @transform_7(%arg0: i32) -> (i32, i32, i32) {
    %c0_i32 = arith.constant 0 : i32
    %c0_i32_0 = arith.constant 0 : i32
    %c0_i32_1 = arith.constant 0 : i32
    return %arg0, %c0_i32, %c0_i32_0 : i32, i32, i32
  }
}

module attributes {stable_mosaic.version = 11 : i64} {
  func.func @_stn_head_kernel(%arg0: memref<2x1024xf32, #tpu.memory_space<vmem>>, %arg1: memref<1024x512xbf16, #tpu.memory_space<vmem>>, %arg2: memref<1x512xf32, #tpu.memory_space<vmem>>, %arg3: memref<512x256xbf16, #tpu.memory_space<vmem>>, %arg4: memref<1x256xf32, #tpu.memory_space<vmem>>, %arg5: memref<256x16xf32, #tpu.memory_space<vmem>>, %arg6: memref<1x16xf32, #tpu.memory_space<vmem>>, %arg7: memref<2x16xf32, #tpu.memory_space<vmem>>) attributes {dimension_semantics = [], scalar_prefetch = 0 : i64, scratch_operands = 0 : i64, tpu.core_type = #tpu.core_type<tc>} {
    %c0 = arith.constant 0 : index
    %c0_0 = arith.constant 0 : index
    %0 = vector.load %arg0[%c0, %c0_0] : memref<2x1024xf32, #tpu.memory_space<vmem>>, vector<2x1024xf32>
    %1 = arith.truncf %0 : vector<2x1024xf32> to vector<2x1024xbf16>
    %c0_1 = arith.constant 0 : index
    %c0_2 = arith.constant 0 : index
    %2 = vector.load %arg1[%c0_1, %c0_2] : memref<1024x512xbf16, #tpu.memory_space<vmem>>, vector<1024x512xbf16>
    %cst = arith.constant dense<0.000000e+00> : vector<2x512xf32>
    %3 = tpu.matmul %1, %2, %cst {dimension_numbers = #tpu.dot_dimension_numbers<[1], [0], [0], [1], [0, 0, 1, 1], [], []>} : vector<2x1024xbf16>, vector<1024x512xbf16>, vector<2x512xf32> -> vector<2x512xf32>
    %c0_3 = arith.constant 0 : index
    %c0_4 = arith.constant 0 : index
    %4 = vector.load %arg2[%c0_3, %c0_4] : memref<1x512xf32, #tpu.memory_space<vmem>>, vector<1x512xf32>
    %5 = vector.broadcast %4 : vector<1x512xf32> to vector<2x512xf32>
    %6 = arith.addf %3, %5 : vector<2x512xf32>
    %cst_5 = arith.constant 0.000000e+00 : f32
    %7 = vector.broadcast %cst_5 : f32 to vector<2x512xf32>
    %8 = arith.maximumf %6, %7 : vector<2x512xf32>
    %9 = arith.truncf %8 : vector<2x512xf32> to vector<2x512xbf16>
    %c0_6 = arith.constant 0 : index
    %c0_7 = arith.constant 0 : index
    %10 = vector.load %arg3[%c0_6, %c0_7] : memref<512x256xbf16, #tpu.memory_space<vmem>>, vector<512x256xbf16>
    %cst_8 = arith.constant dense<0.000000e+00> : vector<2x256xf32>
    %11 = tpu.matmul %9, %10, %cst_8 {dimension_numbers = #tpu.dot_dimension_numbers<[1], [0], [0], [1], [0, 0, 1, 1], [], []>} : vector<2x512xbf16>, vector<512x256xbf16>, vector<2x256xf32> -> vector<2x256xf32>
    %c0_9 = arith.constant 0 : index
    %c0_10 = arith.constant 0 : index
    %12 = vector.load %arg4[%c0_9, %c0_10] : memref<1x256xf32, #tpu.memory_space<vmem>>, vector<1x256xf32>
    %13 = vector.broadcast %12 : vector<1x256xf32> to vector<2x256xf32>
    %14 = arith.addf %11, %13 : vector<2x256xf32>
    %cst_11 = arith.constant 0.000000e+00 : f32
    %15 = vector.broadcast %cst_11 : f32 to vector<2x256xf32>
    %16 = arith.maximumf %14, %15 : vector<2x256xf32>
    %c0_12 = arith.constant 0 : index
    %c0_13 = arith.constant 0 : index
    %17 = vector.load %arg5[%c0_12, %c0_13] : memref<256x16xf32, #tpu.memory_space<vmem>>, vector<256x16xf32>
    %cst_14 = arith.constant dense<0.000000e+00> : vector<2x16xf32>
    %18 = tpu.matmul %16, %17, %cst_14 {dimension_numbers = #tpu.dot_dimension_numbers<[1], [0], [0], [1], [0, 0, 1, 1], [], []>} : vector<2x256xf32>, vector<256x16xf32>, vector<2x16xf32> -> vector<2x16xf32>
    %c0_15 = arith.constant 0 : index
    %c0_16 = arith.constant 0 : index
    %19 = vector.load %arg6[%c0_15, %c0_16] : memref<1x16xf32, #tpu.memory_space<vmem>>, vector<1x16xf32>
    %20 = vector.broadcast %19 : vector<1x16xf32> to vector<2x16xf32>
    %21 = arith.addf %18, %20 : vector<2x16xf32>
    %c0_17 = arith.constant 0 : index
    %c0_18 = arith.constant 0 : index
    %22 = vector.load %arg7[%c0_17, %c0_18] : memref<2x16xf32, #tpu.memory_space<vmem>>, vector<2x16xf32>
    tpu.vector_store %arg7[%c0_17, %c0_18], %21 {strides = array<i32>} : memref<2x16xf32, #tpu.memory_space<vmem>>, vector<2x16xf32>,
    return
  }
}

module attributes {stable_mosaic.version = 11 : i64} {
  func.func @_mlp_max_kernel(%arg0: i32, %arg1: memref<1x256x4xf32, #tpu.memory_space<vmem>>, %arg2: memref<1x4x64xf32, #tpu.memory_space<vmem>>, %arg3: memref<1x64xf32, #tpu.memory_space<vmem>>, %arg4: memref<64x128xf32, #tpu.memory_space<vmem>>, %arg5: memref<1x128xf32, #tpu.memory_space<vmem>>, %arg6: memref<128x1024xbf16, #tpu.memory_space<vmem>>, %arg7: memref<1x1024xf32, #tpu.memory_space<vmem>>, %arg8: memref<1x1x1024xf32, #tpu.memory_space<vmem>>) attributes {dimension_semantics = [#tpu.dimension_semantics<parallel>], iteration_bounds = array<i64: 2>, scalar_prefetch = 0 : i64, scratch_operands = 0 : i64, tpu.core_type = #tpu.core_type<tc>, window_params = [{transform_indices = @transform_0, window_bounds = array<i64: 1, 256, 4>}, {transform_indices = @transform_1, window_bounds = array<i64: 1, 4, 64>}, {pipeline_mode = #tpu.pipeline_mode<synchronous>, transform_indices = @transform_2, window_bounds = array<i64: 1, 64>}, {pipeline_mode = #tpu.pipeline_mode<synchronous>, transform_indices = @transform_3, window_bounds = array<i64: 64, 128>}, {pipeline_mode = #tpu.pipeline_mode<synchronous>, transform_indices = @transform_4, window_bounds = array<i64: 1, 128>}, {pipeline_mode = #tpu.pipeline_mode<synchronous>, transform_indices = @transform_5, window_bounds = array<i64: 128, 1024>}, {pipeline_mode = #tpu.pipeline_mode<synchronous>, transform_indices = @transform_6, window_bounds = array<i64: 1, 1024>}, {transform_indices = @transform_7, window_bounds = array<i64: 1, 1, 1024>}]} {
    %c0 = arith.constant 0 : index
    %c0_0 = arith.constant 0 : index
    %c0_1 = arith.constant 0 : index
    %0 = vector.load %arg1[%c0, %c0_0, %c0_1] : memref<1x256x4xf32, #tpu.memory_space<vmem>>, vector<1x256x4xf32>
    %1 = vector.shape_cast %0 : vector<1x256x4xf32> to vector<256x4xf32>
    %c0_2 = arith.constant 0 : index
    %c0_3 = arith.constant 0 : index
    %c0_4 = arith.constant 0 : index
    %2 = vector.load %arg2[%c0_2, %c0_3, %c0_4] : memref<1x4x64xf32, #tpu.memory_space<vmem>>, vector<1x4x64xf32>
    %3 = vector.shape_cast %2 : vector<1x4x64xf32> to vector<4x64xf32>
    %cst = arith.constant dense<0.000000e+00> : vector<256x64xf32>
    %4 = tpu.matmul %1, %3, %cst {dimension_numbers = #tpu.dot_dimension_numbers<[1], [0], [0], [1], [0, 0, 1, 1], [], []>} : vector<256x4xf32>, vector<4x64xf32>, vector<256x64xf32> -> vector<256x64xf32>
    %c0_5 = arith.constant 0 : index
    %c0_6 = arith.constant 0 : index
    %5 = vector.load %arg3[%c0_5, %c0_6] : memref<1x64xf32, #tpu.memory_space<vmem>>, vector<1x64xf32>
    %6 = vector.broadcast %5 : vector<1x64xf32> to vector<256x64xf32>
    %7 = arith.addf %4, %6 : vector<256x64xf32>
    %cst_7 = arith.constant 0.000000e+00 : f32
    %8 = vector.broadcast %cst_7 : f32 to vector<256x64xf32>
    %9 = arith.maximumf %7, %8 : vector<256x64xf32>
    %c0_8 = arith.constant 0 : index
    %c0_9 = arith.constant 0 : index
    %10 = vector.load %arg4[%c0_8, %c0_9] : memref<64x128xf32, #tpu.memory_space<vmem>>, vector<64x128xf32>
    %cst_10 = arith.constant dense<0.000000e+00> : vector<256x128xf32>
    %11 = tpu.matmul %9, %10, %cst_10 {dimension_numbers = #tpu.dot_dimension_numbers<[1], [0], [0], [1], [0, 0, 1, 1], [], []>} : vector<256x64xf32>, vector<64x128xf32>, vector<256x128xf32> -> vector<256x128xf32>
    %c0_11 = arith.constant 0 : index
    %c0_12 = arith.constant 0 : index
    %12 = vector.load %arg5[%c0_11, %c0_12] : memref<1x128xf32, #tpu.memory_space<vmem>>, vector<1x128xf32>
    %13 = vector.broadcast %12 : vector<1x128xf32> to vector<256x128xf32>
    %14 = arith.addf %11, %13 : vector<256x128xf32>
    %cst_13 = arith.constant 0.000000e+00 : f32
    %15 = vector.broadcast %cst_13 : f32 to vector<256x128xf32>
    %16 = arith.maximumf %14, %15 : vector<256x128xf32>
    %17 = arith.truncf %16 : vector<256x128xf32> to vector<256x128xbf16>
    %c0_14 = arith.constant 0 : index
    %c0_15 = arith.constant 0 : index
    %18 = vector.load %arg6[%c0_14, %c0_15] : memref<128x1024xbf16, #tpu.memory_space<vmem>>, vector<128x1024xbf16>
    %cst_16 = arith.constant dense<0.000000e+00> : vector<256x1024xf32>
    %19 = tpu.matmul %17, %18, %cst_16 {dimension_numbers = #tpu.dot_dimension_numbers<[1], [0], [0], [1], [0, 0, 1, 1], [], []>} : vector<256x128xbf16>, vector<128x1024xbf16>, vector<256x1024xf32> -> vector<256x1024xf32>
    %c0_17 = arith.constant 0 : index
    %c0_18 = arith.constant 0 : index
    %20 = vector.load %arg7[%c0_17, %c0_18] : memref<1x1024xf32, #tpu.memory_space<vmem>>, vector<1x1024xf32>
    %21 = vector.broadcast %20 : vector<1x1024xf32> to vector<256x1024xf32>
    %22 = arith.addf %19, %21 : vector<256x1024xf32>
    %cst_19 = arith.constant dense<0xFF800000> : vector<1024xf32>
    %23 = vector.multi_reduction <maximumf>, %22, %cst_19 [0] : vector<256x1024xf32> to vector<1024xf32>
    %24 = vector.shape_cast %23 : vector<1024xf32> to vector<1x1024xf32>
    %c0_20 = arith.constant 0 : index
    %c0_21 = arith.constant 0 : index
    %c0_22 = arith.constant 0 : index
    %25 = vector.load %arg8[%c0_20, %c0_21, %c0_22] : memref<1x1x1024xf32, #tpu.memory_space<vmem>>, vector<1x1x1024xf32>
    %26 = vector.shape_cast %25 : vector<1x1x1024xf32> to vector<1x1024xf32>
    %27 = vector.shape_cast %24 : vector<1x1024xf32> to vector<1x1x1024xf32>
    tpu.vector_store %arg8[%c0_20, %c0_21, %c0_22], %27 {strides = array<i32>} : memref<1x1x1024xf32, #tpu.memory_space<vmem>>, vector<1x1x1024xf32>,
    return
  }
  func.func @transform_0(%arg0: i32) -> (i32, i32, i32) {
    %c0_i32 = arith.constant 0 : i32
    %c0_i32_0 = arith.constant 0 : i32
    %c0_i32_1 = arith.constant 0 : i32
    return %arg0, %c0_i32, %c0_i32_0 : i32, i32, i32
  }
  func.func @transform_1(%arg0: i32) -> (i32, i32, i32) {
    %c0_i32 = arith.constant 0 : i32
    %c0_i32_0 = arith.constant 0 : i32
    %c0_i32_1 = arith.constant 0 : i32
    return %arg0, %c0_i32, %c0_i32_0 : i32, i32, i32
  }
  func.func @transform_2(%arg0: i32) -> (i32, i32) {
    %c0_i32 = arith.constant 0 : i32
    %c0_i32_0 = arith.constant 0 : i32
    %c0_i32_1 = arith.constant 0 : i32
    return %c0_i32, %c0_i32_0 : i32, i32
  }
  func.func @transform_3(%arg0: i32) -> (i32, i32) {
    %c0_i32 = arith.constant 0 : i32
    %c0_i32_0 = arith.constant 0 : i32
    %c0_i32_1 = arith.constant 0 : i32
    return %c0_i32, %c0_i32_0 : i32, i32
  }
  func.func @transform_4(%arg0: i32) -> (i32, i32) {
    %c0_i32 = arith.constant 0 : i32
    %c0_i32_0 = arith.constant 0 : i32
    %c0_i32_1 = arith.constant 0 : i32
    return %c0_i32, %c0_i32_0 : i32, i32
  }
  func.func @transform_5(%arg0: i32) -> (i32, i32) {
    %c0_i32 = arith.constant 0 : i32
    %c0_i32_0 = arith.constant 0 : i32
    %c0_i32_1 = arith.constant 0 : i32
    return %c0_i32, %c0_i32_0 : i32, i32
  }
  func.func @transform_6(%arg0: i32) -> (i32, i32) {
    %c0_i32 = arith.constant 0 : i32
    %c0_i32_0 = arith.constant 0 : i32
    %c0_i32_1 = arith.constant 0 : i32
    return %c0_i32, %c0_i32_0 : i32, i32
  }
  func.func @transform_7(%arg0: i32) -> (i32, i32, i32) {
    %c0_i32 = arith.constant 0 : i32
    %c0_i32_0 = arith.constant 0 : i32
    %c0_i32_1 = arith.constant 0 : i32
    return %arg0, %c0_i32, %c0_i32_0 : i32, i32, i32
  }
}

</mosaic_0001>

<bundles_post_ra>
// kernel: pointnetfeat4d_forward.3
= control target key start
LH: loop header
LB: loop body
LE: loop exit
PB: predicated region body
PF: predicated region fallthrough
CT: control target
= control target key end

     0   :  { %12 = vsyncpa [#allocation3], 0  ;;  %s4455_s0 = inlined_call_operand.vmem [shape: f32[2,256,4], index: 0, kind: input, shape index: {}]   ;;  %s4456_s1 = inlined_call_operand.vmem [shape: f32[2,4,64], index: 1, kind: input, shape index: {}]   ;;  %s4457_s2 = inlined_call_operand.vmem [shape: f32[1,64], index: 2, kind: input, shape index: {}]   ;;  %s4458_s3 = inlined_call_operand.vmem [shape: f32[64,128], index: 3, kind: input, shape index: {}]   ;;  %s4459_s4 = inlined_call_operand.hbm [shape: f32[1,128], index: 4, kind: input, shape index: {}]   ;;  %s4460_s5 = inlined_call_operand.vmem [shape: bf16[128,1024], index: 5, kind: input, shape index: {}]   ;;  %s4461_s6 = inlined_call_operand.hbm [shape: f32[1,1024], index: 6, kind: input, shape index: {}]   ;;  %s4462_s7 = inlined_call_operand.vmem [shape: f32[2,1,1024], index: 7, kind: output, shape index: {}]  }
   0x1   :  { %13 = vsyncpa [#allocation5], 0  ;;  %s3498_s24 = smov 0  }
   0x2 LB: > { %s3504_s25 = sadd.s32 4294967295, %s3452_s24   ;;  %p3002_p0 = scmp.ge.s32.totalorder %s3452_s24, 1  ;;  %s3452_s24 = sphi %s3498_s24, %s19_s24  }
   0x3   : > { %p207_p1 = scmp.lt.s32.totalorder %s3452_s24, 3  ;;  %p4463_p2 = scmp.eq.s32.totalorder %s3504_s25, 0 }
   0x4   : > { %s3454_s27 = smov [#allocation2]   ;;  %s3455_s29 = smov [#allocation4]  }
   0x5   : > { %p3509_p3 = pnand %p3002_p0, %p207_p1  ;;  %s226_s28 = sshll.u32 %s3454_s27, 4  ;;  %s227_s28 = int_to_ptr.vmem [resolvable:$true] %s226_s28 }
   0x6   : > { %s240_s30 = sshll.u32 %s3455_s29, 4  ;;  %s3382_s11 = scalar_lea.hbm %s4459_s4, 16  ;;  %s3521_s30 = int_to_ptr.vmem [resolvable:$true] %s240_s30 }
   0x7   : > { %s4465_s26 = scalar_select %p3509_p3, 1, 0 }
   0x8   : > { %p3358_p4 = pneg %p3509_p3  ;;  %p3383_p6 = scmp.ne.s32.totalorder %s4459_s4, %s3382_s11 }
   0x9   : > { %p3389_p10 = scmp.lt.u32.totalorder %s3382_s11, %s4459_s4 }
   0xa   : > { %p3517_p5 = pnand %p4463_p2, %p3358_p4 }
   0xc   : > { %p3384_p7 = pneg %p3517_p5 }
   0xe   : > { %p3385_p8 = pnand %p3384_p7, %p3383_p6 }
  0x10   : > { %p3386_p9 = pneg %p3385_p8 }
  0x12   : > { %p3391_p11 = pnand %p3389_p10, %p3386_p9 }
  0x14   : > { %3394 = shalt.err (!%p3391_p11)
}
  0x15   : > { %s3395_s16 = scalar_lea.vmem %s227_s28, 16  ;;  %s3402_s17 = scalar_lea.vmem %s227_s28, 32 }
  0x16   : > { %p3396_p12 = scmp.ne.s32.totalorder %s227_s28, %s3395_s16  ;;  %p3403_p1 = scmp.lt.s32.totalorder %s227_s28, %s227_s28 }
  0x17   : > { %p3404_p4 = scmp.lt.s32.totalorder %s3402_s17, %s3395_s16 }
  0x18   : > { %p3398_p13 = pnand %p3396_p12, %p3384_p7 }
  0x19   : > { %p3405_p2 = por %p3404_p4, %p3403_p1 }
  0x1a   : > { %p3399_p0 = pneg %p3398_p13 }
  0x1c   : > { %p3406_p3 = pnand %p3405_p2, %p3399_p0 }
  0x1e   : > { %3409 = shalt.err (!%p3406_p3)
}
  0x1f   : > { %3361 = dma.hbm_to_vmem [thread:$0]  (!%p3517_p5), %s4459_s4, 16, %s227_s28, [#allocation3]  }
  0x20   : > { %s3410_s22 = scalar_lea.hbm %s4461_s6, 128 }
  0x21   : > { %p3411_p6 = scmp.ne.s32.totalorder %s4461_s6, %s3410_s22  ;;  %p3417_p3 = scmp.lt.u32.totalorder %s3410_s22, %s4461_s6 }
  0x23   : > { %p3413_p8 = pnand %p3411_p6, %p3384_p7 }
  0x25   : > { %p3414_p2 = pneg %p3413_p8 }
  0x27   : > { %p3419_p9 = pnand %p3417_p3, %p3414_p2 }
  0x29   : > { %3422 = shalt.err (!%p3419_p9)
}
  0x2a   : > { %s3423_s28 = scalar_lea.vmem %s3521_s30, 128  ;;  %p3431_p13 = scmp.lt.s32.totalorder %s3521_s30, %s3521_s30 }
  0x2b   : > { %p3424_p10 = scmp.ne.s32.totalorder %s3521_s30, %s3423_s28  ;;  %p3432_p0 = scmp.lt.s32.totalorder %s3423_s28, %s3423_s28 }
  0x2d   : > { %p3426_p11 = pnand %p3424_p10, %p3384_p7  ;;  %p3433_p1 = por %p3432_p0, %p3431_p13 }
  0x2f   : > { %p3427_p12 = pneg %p3426_p11 }
  0x31   : > { %p3434_p4 = pnand %p3433_p1, %p3427_p12 }
  0x33   : > { %3437 = shalt.err (!%p3434_p4)
}
  0x34   : > { %3364 = dma.hbm_to_vmem [thread:$0]  (!%p3517_p5), %s4461_s6, 128, %s3521_s30, [#allocation5]  }
  0x35   : > { %p4467_p6 = scmp.ne.s32.totalorder %s4465_s26, 0 }
  0x36   : > { %p4468_p8 = scmp.eq.s32.totalorder (!%p4467_p6), %s3504_s25, 0 }
  0x37   : > { %268 = sbr.rel (%p4467_p6) target bundleno = 1004 (0x3ec), region = 48 }
  0x3e   : > { %3443 = dma.done.wait (%p4468_p8), [#allocation3], 16   ;;  %p4469_p7 = pmov %p4468_p8 }
  0x40   : > { %3445 = vsyncadd (%p4469_p7), [#allocation3], 4294967280  ;;  %p4470_p2 = pmov %p4469_p7 }
  0x42   : > { %3447 = dma.done.wait (%p4470_p2), [#allocation5], 128   ;;  %p4471_p3 = pmov %p4470_p2 }
  0x43   : > { %p307_p9 = scmp.lt.s32.totalorder %s3504_s25, 1  ;;  %vm458_vm0 = vcmask 1043456   ;;  %vm361_vm1 = vcmask 31744   ;;  %v719_v8 = vld [vmem:[%s4458_s3] sm:$0xff]  ;;  %v720_v9 = vld [vmem:[%s4458_s3 + $0x8] sm:$0xff]  ;;  %v721_v10 = vld [vmem:[%s4458_s3 + $0x10] sm:$0xff] }
  0x44   : > { %3449 = vsyncadd (%p4471_p3), [#allocation5], 4294967168  ;;  %v3334_v12 = vpack.c.bf16 %v720_v9, %v719_v8  ;;  %v722_v13 = vld [vmem:[%s4458_s3 + $0x18] sm:$0xff]  ;;  %v723_v16 = vld [vmem:[%s4458_s3 + $0x20] sm:$0xff]  ;;  %vm734_vm2 = vcmask 523264  }
  0x45   : > { %s4473_s25 = smov (!%p307_p9, %s3504_s25), 1  ;;  %v3338_v15 = vpack.c.bf16 %v722_v13, %v721_v10  ;;  %v724_v17 = vld [vmem:[%s4458_s3 + $0x28] sm:$0xff]  ;;  %v725_v42 = vld [vmem:[%s4458_s3 + $0x30] sm:$0xff]  ;;  %v726_v43 = vld [vmem:[%s4458_s3 + $0x38] sm:$0xff] }
  0x46   : > { %s3146_s26 = sshll.u32 %s4473_s25, 8  ;;  %s3011_s30 = sshll.u32 %s4473_s25, 2  ;;  %3335 = vmatprep.subr.bf16.mxu1 %v3334_v12  ;;  %v3342_v19 = vpack.c.bf16 %v724_v17, %v723_v16  ;;  %v3346_v44 = vpack.c.bf16 %v726_v43, %v725_v42  ;;  %v1104_v45 = vld [vmem:[%s4460_s5] sm:$0xff]  ;;  %v3691_v47 = vld [vmem:[%s4460_s5 + $0x8] sm:$0xff] }
  0x47   : > { %s3589_s13 = scalar_lea.vmem %s4455_s0, %s3146_s26  ;;  %s315_s16 = scalar_lea.vmem %s4456_s1, %s3011_s30  ;;  %3337 = vmatpush3.bf16.msra.mxu1 %v3334_v12  ;;  %v1108_v46 = vld [vmem:[%s4460_s5 + $0x20] sm:$0xff]  ;;  %v3696_v50 = vld [vmem:[%s4460_s5 + $0x28] sm:$0xff] }
  0x48   : > { %v353_v0 = vld [vmem:[%s315_s16] sm:$0xf]  ;;  %v322_v2 = vld [vmem:[%s3589_s13 + $0x8] sm:$0xff]  ;;  %v323_v3 = vld [vmem:[%s3589_s13 + $0x10] sm:$0xff]  ;;  %3339 = vmatprep.subr.bf16.mxu1 %v3338_v15  ;;  %v3080_v48 = vcombine.low %v1104_v45, %v1108_v46  ;;  %v3081_v49 = vcombine.high %v1104_v45, %v1108_v46  ;;  %v3082_v53 = vcombine.low %v3691_v47, %v3696_v50  ;;  %v3083_v54 = vcombine.high %v3691_v47, %v3696_v50 }
  0x49   : > { %v321_v1 = vld [vmem:[%s3589_s13] sm:$0xff]  ;;  %3220 = vmatprep.subr.msk.mxu0 %vm458_vm0, %v353_v0  ;;  %v324_v4 = vld [vmem:[%s3589_s13 + $0x18] sm:$0xff]  ;;  %v326_v6 = vld [vmem:[%s3589_s13 + $0x28] sm:$0xff] }
  0x4a   : > { %3222 = vmatprep.mubr.msk.f32.mxu0 %vm361_vm1, %v321_v1  ;;  %3221 = vmatpush3.msk.msra.mxu0 %vm458_vm0, %v353_v0  ;;  %v325_v5 = vld [vmem:[%s3589_s13 + $0x20] sm:$0xff]  ;;  %v327_v7 = vld [vmem:[%s3589_s13 + $0x30] sm:$0xff]  ;;  %v328_v11 = vld [vmem:[%s3589_s13 + $0x38] sm:$0xff] }
  0x4b   : > { %3223 = vmatmul.mubr.msk.f32.vlgmr.msra.gmra.mrb[0].mxu0 %vm361_vm1, %v322_v2  ;;  %v329_v14 = vld [vmem:[%s3589_s13 + $0x40] sm:$0xff]  ;;  %v330_v18 = vld [vmem:[%s3589_s13 + $0x48] sm:$0xff]  ;;  %v331_v20 = vld [vmem:[%s3589_s13 + $0x50] sm:$0xff]  ;;  %3341 = vmatpush3.bf16.msra.mxu1 %v3338_v15 }
  0x4c   : > { %3225 = vmatprep.mubr.msk.f32.mxu0 %vm361_vm1, %v323_v3  ;;  %v332_v21 = vld [vmem:[%s3589_s13 + $0x58] sm:$0xff]  ;;  %3343 = vmatprep.subr.bf16.mxu1 %v3342_v19  ;;  %v333_v22 = vld [vmem:[%s3589_s13 + $0x60] sm:$0xff]  ;;  %v334_v23 = vld [vmem:[%s3589_s13 + $0x68] sm:$0xff] }
  0x4d   : > { %v335_v24 = vld [vmem:[%s3589_s13 + $0x70] sm:$0xff]  ;;  %v336_v25 = vld [vmem:[%s3589_s13 + $0x78] sm:$0xff]  ;;  %v337_v26 = vld [vmem:[%s3589_s13 + $0x80] sm:$0xff]  ;;  %1530 = vmatprep.subr.bf16.mxu0 %v3081_v49 }
  0x4e   : > { %v338_v27 = vld [vmem:[%s3589_s13 + $0x88] sm:$0xff]  ;;  %v339_v28 = vld [vmem:[%s3589_s13 + $0x90] sm:$0xff]  ;;  %v340_v29 = vld [vmem:[%s3589_s13 + $0x98] sm:$0xff]  ;;  %1531 = vmatpush1.bf16.msra.mxu0 %v3080_v48 }
  0x4f   : > { %3226 = vmatmul.mubr.msk.f32.gmra.mrb[2].mxu0 %vm361_vm1, %v324_v4  ;;  %3345 = vmatpush3.bf16.msra.mxu1 %v3342_v19  ;;  %v341_v30 = vld [vmem:[%s3589_s13 + $0xa0] sm:$0xff]  ;;  %v342_v31 = vld [vmem:[%s3589_s13 + $0xa8] sm:$0xff]  ;;  %v343_v32 = vld [vmem:[%s3589_s13 + $0xb0] sm:$0xff] }
  0x50   : > { %3228 = vmatprep.mubr.msk.f32.mxu0 %vm361_vm1, %v325_v5  ;;  %v344_v33 = vld [vmem:[%s3589_s13 + $0xb8] sm:$0xff]  ;;  %v345_v34 = vld [vmem:[%s3589_s13 + $0xc0] sm:$0xff]  ;;  %v346_v35 = vld [vmem:[%s3589_s13 + $0xc8] sm:$0xff]  ;;  %3347 = vmatprep.subr.bf16.mxu1 %v3346_v44 }
  0x51   : > { %v347_v36 = vld [vmem:[%s3589_s13 + $0xd0] sm:$0xff]  ;;  %v348_v37 = vld [vmem:[%s3589_s13 + $0xd8] sm:$0xff]  ;;  %v349_v38 = vld [vmem:[%s3589_s13 + $0xe0] sm:$0xff] }
  0x52   : > { %v350_v39 = vld [vmem:[%s3589_s13 + $0xe8] sm:$0xff]  ;;  %v351_v40 = vld [vmem:[%s3589_s13 + $0xf0] sm:$0xff]  ;;  %v352_v41 = vld [vmem:[%s3589_s13 + $0xf8] sm:$0xff]  ;;  %s3012_s13 = sshll.u32 %s4473_s25, 3 }
  0x53   : > { %3229 = vmatmul.mubr.msk.f32.gmra.mrb[4].mxu0 %vm361_vm1, %v326_v6  ;;  %3349 = vmatpush3.bf16.msra.mxu1 %v3346_v44  ;;  %v1112_v51 = vld [vmem:[%s4460_s5 + $0x40] sm:$0xff]  ;;  %v1133_v42 = vld [vmem:[%s4460_s5 + $0xe8] sm:$0xff]  ;;  %s319_s19 = scalar_lea.vmem %s4462_s7, %s3012_s13 }
  0x54   : > { %3231 = vmatprep.mubr.msk.f32.mxu0 %vm361_vm1, %v327_v7  ;;  %v1116_v52 = vld [vmem:[%s4460_s5 + $0x60] sm:$0xff]  ;;  %1723 = vmatprep.subr.bf16.mxu1 %v3083_v54 }
  0x55   : > { %v3089_v55 = vcombine.high %v1112_v51, %v1116_v52  ;;  %v1120_v56 = vld [vmem:[%s4460_s5 + $0x80] sm:$0xff]  ;;  %v3088_v58 = vcombine.low %v1112_v51, %v1116_v52  ;;  %v1137_v51 = vld [vmem:[%s4460_s5 + $0x108] sm:$0xff] }
  0x56   : > { %v1124_v57 = vld [vmem:[%s4460_s5 + $0xa0] sm:$0xff]  ;;  %v1141_v52 = vld [vmem:[%s4460_s5 + $0x128] sm:$0xff] }
  0x57   : > { %3232 = vmatmul.mubr.msk.f32.gmra.mrb[6].mxu0 %vm361_vm1, %v328_v11  ;;  %1532 = vmatprep.subr.bf16.mxu0 %v3089_v55  ;;  %v3097_v59 = vcombine.high %v1120_v56, %v1124_v57  ;;  %v1128_v60 = vld [vmem:[%s4460_s5 + $0xc0] sm:$0xff]  ;;  %v3096_v62 = vcombine.low %v1120_v56, %v1124_v57 }
  0x58   : > { %3234 = vmatprep.mubr.msk.f32.mxu0 %vm361_vm1, %v329_v14  ;;  %v1132_v61 = vld [vmem:[%s4460_s5 + $0xe0] sm:$0xff]  ;;  %1533 = vmatpush1.bf16.msra.mxu0 %v3088_v58 }
  0x59   : > { %1534 = vmatprep.subr.bf16.mxu0 %v3097_v59  ;;  %v3105_v63 = vcombine.high %v1128_v60, %v1132_v61  ;;  %v1136_v0 = vld [vmem:[%s4460_s5 + $0x100] sm:$0xff]  ;;  %v3104_v2 = vcombine.low %v1128_v60, %v1132_v61  ;;  %v3115_v59 = vcombine.high %v1137_v51, %v1141_v52  ;;  %v1145_v61 = vld [vmem:[%s4460_s5 + $0x148] sm:$0xff] }
  0x5a   : > { %v1140_v1 = vld [vmem:[%s4460_s5 + $0x120] sm:$0xff] }
  0x5b   : > { %3235 = vmatmul.mubr.msk.f32.gmra.mrb[8].mxu0 %vm361_vm1, %v330_v18  ;;  %v3113_v3 = vcombine.high %v1136_v0, %v1140_v1  ;;  %v1144_v4 = vld [vmem:[%s4460_s5 + $0x140] sm:$0xff]  ;;  %v3112_v6 = vcombine.low %v1136_v0, %v1140_v1 }
  0x5c   : > { %3237 = vmatprep.mubr.msk.f32.mxu0 %vm361_vm1, %v331_v20  ;;  %1535 = vmatpush1.bf16.msra.mxu0 %v3096_v62  ;;  %v1148_v5 = vld [vmem:[%s4460_s5 + $0x160] sm:$0xff]  ;;  %v1149_v62 = vld [vmem:[%s4460_s5 + $0x168] sm:$0xff] }
  0x5d   : > { %1536 = vmatprep.subr.bf16.mxu0 %v3105_v63  ;;  %v3121_v7 = vcombine.high %v1144_v4, %v1148_v5  ;;  %v1152_v8 = vld [vmem:[%s4460_s5 + $0x180] sm:$0xff]  ;;  %v3120_v10 = vcombine.low %v1144_v4, %v1148_v5  ;;  %v3123_v5 = vcombine.high %v1145_v61, %v1149_v62 }
  0x5e   : > { %v1156_v9 = vld [vmem:[%s4460_s5 + $0x1a0] sm:$0xff] }
  0x5f   : > { %3238 = vmatmul.mubr.msk.f32.gmra.mrb[10].mxu0 %vm361_vm1, %v332_v21  ;;  %v3129_v11 = vcombine.high %v1152_v8, %v1156_v9  ;;  %v1160_v12 = vld [vmem:[%s4460_s5 + $0x1c0] sm:$0xff]  ;;  %v3128_v14 = vcombine.low %v1152_v8, %v1156_v9  ;;  %v1157_v8 = vld [vmem:[%s4460_s5 + $0x1a8] sm:$0xff] }
  0x60   : > { %3240 = vmatprep.mubr.msk.f32.mxu0 %vm361_vm1, %v333_v22  ;;  %1537 = vmatpush1.bf16.msra.mxu0 %v3104_v2  ;;  %v1164_v13 = vld [vmem:[%s4460_s5 + $0x1e0] sm:$0xff]  ;;  %v1113_v22 = vld [vmem:[%s4460_s5 + $0x48] sm:$0xff]  ;;  %v3114_v2 = vcombine.low %v1137_v51, %v1141_v52 }
  0x61   : > { %1538 = vmatprep.subr.bf16.mxu0 %v3113_v3  ;;  %v3137_v15 = vcombine.high %v1160_v12, %v1164_v13  ;;  %v3136_v16 = vcombine.low %v1160_v12, %v1164_v13  ;;  %v3747_v17 = vld [vmem:[%s4457_s2] ss:$0 sm:$0xff]  ;;  %v3122_v12 = vcombine.low %v1145_v61, %v1149_v62 }
  0x63   : > { %3241 = vmatmul.mubr.msk.f32.gmra.mrb[12].mxu0 %vm361_vm1, %v334_v23  ;;  %v1117_v23 = vld [vmem:[%s4460_s5 + $0x68] sm:$0xff] }
  0x64   : > { %3243 = vmatprep.mubr.msk.f32.mxu0 %vm361_vm1, %v335_v24  ;;  %1539 = vmatpush1.bf16.msra.mxu0 %v3112_v6 }
  0x65   : > { %1540 = vmatprep.subr.bf16.mxu0 %v3121_v7  ;;  %v1153_v7 = vld [vmem:[%s4460_s5 + $0x188] sm:$0xff] }
  0x67   : > { %3244 = vmatmul.mubr.msk.f32.gmra.mrb[14].mxu0 %vm361_vm1, %v336_v25 }
  0x68   : > { %3246 = vmatprep.mubr.msk.f32.mxu0 %vm361_vm1, %v337_v26  ;;  %1541 = vmatpush1.bf16.msra.mxu0 %v3120_v10 }
  0x69   : > { %1542 = vmatprep.subr.bf16.mxu0 %v3129_v11 }
  0x6b   : > { %3247 = vmatmul.mubr.msk.f32.gmra.mrb[16].mxu0 %vm361_vm1, %v338_v27 }
  0x6c   : > { %3249 = vmatprep.mubr.msk.f32.mxu0 %vm361_vm1, %v339_v28  ;;  %1543 = vmatpush1.bf16.msra.mxu0 %v3128_v14 }
  0x6d   : > { %1544 = vmatprep.subr.bf16.mxu0 %v3137_v15  ;;  %v3131_v15 = vcombine.high %v1153_v7, %v1157_v8 }
  0x6f   : > { %3250 = vmatmul.mubr.msk.f32.gmra.mrb[18].mxu0 %vm361_vm1, %v340_v29  ;;  %v3091_v29 = vcombine.high %v1113_v22, %v1117_v23 }
  0x70   : > { %3252 = vmatprep.mubr.msk.f32.mxu0 %vm361_vm1, %v341_v30  ;;  %1545 = vmatpush1.bf16.msra.mxu0 %v3136_v16 }
  0x73   : > { %3253 = vmatmul.mubr.msk.f32.gmra.mrb[20].mxu0 %vm361_vm1, %v342_v31  ;;  %v1121_v31 = vld [vmem:[%s4460_s5 + $0x88] sm:$0xff] }
  0x74   : > { %3255 = vmatprep.mubr.msk.f32.mxu0 %vm361_vm1, %v343_v32  ;;  %v1125_v32 = vld [vmem:[%s4460_s5 + $0xa8] sm:$0xff] }
  0x75   : > { %v3098_v46 = vcombine.low %v1121_v31, %v1125_v32 }
  0x77   : > { %3256 = vmatmul.mubr.msk.f32.gmra.mrb[22].mxu0 %vm361_vm1, %v344_v33 }
  0x78   : > { %3258 = vmatprep.mubr.msk.f32.mxu0 %vm361_vm1, %v345_v34 }
  0x7b   : > { %3259 = vmatmul.mubr.msk.f32.gmra.mrb[24].mxu0 %vm361_vm1, %v346_v35 }
  0x7c   : > { %3261 = vmatprep.mubr.msk.f32.mxu0 %vm361_vm1, %v347_v36  ;;  %v3090_v36 = vcombine.low %v1113_v22, %v1117_v23  ;;  %v3130_v23 = vcombine.low %v1153_v7, %v1157_v8 }
  0x7f   : > { %3262 = vmatmul.mubr.msk.f32.gmra.mrb[26].mxu0 %vm361_vm1, %v348_v37 }
  0x80   : > { %3264 = vmatprep.mubr.msk.f32.mxu0 %vm361_vm1, %v349_v38 }
  0x83   : > { %3265 = vmatmul.mubr.msk.f32.gmra.mrb[28].mxu0 %vm361_vm1, %v350_v39  ;;  %v3099_v39 = vcombine.high %v1121_v31, %v1125_v32 }
  0x84   : > { %3267 = vmatprep.mubr.msk.f32.mxu0 %vm361_vm1, %v351_v40 }
  0x87   : > { %3268 = vmatmul.mubr.msk.f32.gmra.mrb[30].mxu0 %vm361_vm1, %v352_v41  ;;  %v1129_v41 = vld [vmem:[%s4460_s5 + $0xc8] sm:$0xff] }
  0x88   : > { %v3107_v49 = vcombine.high %v1129_v41, %v1133_v42  ;;  %v3106_v56 = vcombine.low %v1129_v41, %v1133_v42 }
 0x11e   : > { %v3224_v18 = vpop.f32.mrb[0].mxu0 }
 0x11f   : > { %v534_v19 = vadd.f32 %v3224_v18, %v3747_v17  ;;  %v528_v20 = vpop.f32.mrb[1].mxu0  ;;  %v1161_v18 = vld [vmem:[%s4460_s5 + $0x1c8] sm:$0xff] }
 0x120   : > { %v529_v21 = vadd.f32 %v3747_v17, %v528_v20 }
 0x121   : > { %v688_v26 = vmax.f32 %v534_v19, 0.0  ;;  %v1165_v19 = vld [vmem:[%s4460_s5 + $0x1e8] sm:$0xff] }
 0x122   : > { %v687_v24 = vmax.f32 %v529_v21, 0.0  ;;  %v3227_v25 = vpop.f32.mrb[2].mxu0  ;;  %v3138_v31 = vcombine.low %v1161_v18, %v1165_v19 }
 0x123   : > { %v544_v27 = vadd.f32 %v3227_v25, %v3747_v17  ;;  %v538_v28 = vpop.f32.mrb[3].mxu0 }
 0x124   : > { %v539_v30 = vadd.f32 %v3747_v17, %v538_v28  ;;  %3286 = vmatprep.mubr.msk.f32.mxu1 %vm734_vm2, %v687_v24 }
 0x125   : > { %v690_v33 = vmax.f32 %v544_v27, 0.0  ;;  %3287 = vmatmul.mubr.msk.f32.vlgmr.msra.gmra.mrb[0].mxu1 %vm734_vm2, %v688_v26  ;;  %v3139_v26 = vcombine.high %v1161_v18, %v1165_v19  ;;  %v1107_v18 = vld [vmem:[%s4460_s5 + $0x18] sm:$0xff] }
 0x126   : > { %v689_v34 = vmax.f32 %v539_v30, 0.0  ;;  %v3230_v35 = vpop.f32.mrb[4].mxu0  ;;  %1724 = vmatpush1.bf16.msra.mxu1 %v3082_v53 }
 0x127   : > { %v554_v37 = vadd.f32 %v3230_v35, %v3747_v17  ;;  %v548_v38 = vpop.f32.mrb[5].mxu0  ;;  %1725 = vmatprep.subr.bf16.mxu1 %v3091_v29 }
 0x128   : > { %3289 = vmatprep.mubr.msk.f32.mxu1 %vm734_vm2, %v689_v34  ;;  %v549_v40 = vadd.f32 %v3747_v17, %v548_v38 }
 0x129   : > { %3290 = vmatmul.mubr.msk.f32.gmra.mrb[2].mxu1 %vm734_vm2, %v690_v33  ;;  %v692_v43 = vmax.f32 %v554_v37, 0.0 }
 0x12a   : > { %v691_v44 = vmax.f32 %v549_v40, 0.0  ;;  %v3233_v45 = vpop.f32.mrb[6].mxu0  ;;  %1726 = vmatpush1.bf16.msra.mxu1 %v3090_v36 }
 0x12b   : > { %v564_v47 = vadd.f32 %v3233_v45, %v3747_v17  ;;  %v558_v48 = vpop.f32.mrb[7].mxu0  ;;  %1727 = vmatprep.subr.bf16.mxu1 %v3099_v39 }
 0x12c   : > { %3292 = vmatprep.mubr.msk.f32.mxu1 %vm734_vm2, %v691_v44  ;;  %v559_v50 = vadd.f32 %v3747_v17, %v558_v48 }
 0x12d   : > { %3293 = vmatmul.mubr.msk.f32.gmra.mrb[4].mxu1 %vm734_vm2, %v692_v43  ;;  %v694_v53 = vmax.f32 %v564_v47, 0.0 }
 0x12e   : > { %v693_v54 = vmax.f32 %v559_v50, 0.0  ;;  %v3236_v55 = vpop.f32.mrb[8].mxu0  ;;  %1728 = vmatpush1.bf16.msra.mxu1 %v3098_v46 }
 0x12f   : > { %v574_v57 = vadd.f32 %v3236_v55, %v3747_v17  ;;  %v568_v58 = vpop.f32.mrb[9].mxu0  ;;  %1729 = vmatprep.subr.bf16.mxu1 %v3107_v49 }
 0x130   : > { %3295 = vmatprep.mubr.msk.f32.mxu1 %vm734_vm2, %v693_v54  ;;  %v569_v60 = vadd.f32 %v3747_v17, %v568_v58 }
 0x131   : > { %3296 = vmatmul.mubr.msk.f32.gmra.mrb[6].mxu1 %vm734_vm2, %v694_v53  ;;  %v696_v63 = vmax.f32 %v574_v57, 0.0 }
 0x132   : > { %v695_v0 = vmax.f32 %v569_v60, 0.0  ;;  %v3239_v1 = vpop.f32.mrb[10].mxu0  ;;  %1730 = vmatpush1.bf16.msra.mxu1 %v3106_v56 }
 0x133   : > { %v584_v3 = vadd.f32 %v3239_v1, %v3747_v17  ;;  %v578_v4 = vpop.f32.mrb[11].mxu0  ;;  %1731 = vmatprep.subr.bf16.mxu1 %v3115_v59 }
 0x134   : > { %3298 = vmatprep.mubr.msk.f32.mxu1 %vm734_vm2, %v695_v0  ;;  %v579_v6 = vadd.f32 %v3747_v17, %v578_v4 }
 0x135   : > { %3299 = vmatmul.mubr.msk.f32.gmra.mrb[8].mxu1 %vm734_vm2, %v696_v63  ;;  %v698_v9 = vmax.f32 %v584_v3, 0.0 }
 0x136   : > { %v697_v10 = vmax.f32 %v579_v6, 0.0  ;;  %v3242_v11 = vpop.f32.mrb[12].mxu0  ;;  %1732 = vmatpush1.bf16.msra.mxu1 %v3114_v2 }
 0x137   : > { %v594_v13 = vadd.f32 %v3242_v11, %v3747_v17  ;;  %v588_v14 = vpop.f32.mrb[13].mxu0  ;;  %1733 = vmatprep.subr.bf16.mxu1 %v3123_v5 }
 0x138   : > { %3301 = vmatprep.mubr.msk.f32.mxu1 %vm734_vm2, %v697_v10  ;;  %v589_v16 = vadd.f32 %v3747_v17, %v588_v14 }
 0x139   : > { %3302 = vmatmul.mubr.msk.f32.gmra.mrb[10].mxu1 %vm734_vm2, %v698_v9  ;;  %v700_v20 = vmax.f32 %v594_v13, 0.0 }
 0x13a   : > { %v699_v21 = vmax.f32 %v589_v16, 0.0  ;;  %v3245_v22 = vpop.f32.mrb[14].mxu0  ;;  %1734 = vmatpush1.bf16.msra.mxu1 %v3122_v12  ;;  %v1106_v16 = vld [vmem:[%s4460_s5 + $0x10] sm:$0xff] }
 0x13b   : > { %v604_v24 = vadd.f32 %v3245_v22, %v3747_v17  ;;  %v598_v25 = vpop.f32.mrb[15].mxu0  ;;  %1735 = vmatprep.subr.bf16.mxu1 %v3131_v15  ;;  %v3456_v15 = vmov 0  }
 0x13c   : > { %3304 = vmatprep.mubr.msk.f32.mxu1 %vm734_vm2, %v699_v21  ;;  %v599_v27 = vadd.f32 %v3747_v17, %v598_v25  ;;  %1562 = vmatprep.mubr.bf16.mxu0 %v3456_v15  ;;  %v1111_v21 = vld [vmem:[%s4460_s5 + $0x38] sm:$0xff] }
 0x13d   : > { %3305 = vmatmul.mubr.msk.f32.gmra.mrb[12].mxu1 %vm734_vm2, %v700_v20  ;;  %v702_v28 = vmax.f32 %v604_v24, 0.0  ;;  %v3086_v22 = vcombine.low %v1107_v18, %v1111_v21  ;;  %v3872_v24 = vld [vmem:[#allocation2] ss:$0 sm:$0xff] }
 0x13e   : > { %v701_v29 = vmax.f32 %v599_v27, 0.0  ;;  %v3248_v30 = vpop.f32.mrb[16].mxu0  ;;  %1736 = vmatpush1.bf16.msra.mxu1 %v3130_v23  ;;  %v3087_v23 = vcombine.high %v1107_v18, %v1111_v21 }
 0x13f   : > { %v614_v32 = vadd.f32 %v3248_v30, %v3747_v17  ;;  %v608_v33 = vpop.f32.mrb[17].mxu0  ;;  %1737 = vmatprep.subr.bf16.mxu1 %v3139_v26  ;;  %v1114_v30 = vld [vmem:[%s4460_s5 + $0x50] sm:$0xff] }
 0x140   : > { %3307 = vmatprep.mubr.msk.f32.mxu1 %vm734_vm2, %v701_v29  ;;  %v609_v34 = vadd.f32 %v3747_v17, %v608_v33  ;;  %v1118_v33 = vld [vmem:[%s4460_s5 + $0x70] sm:$0xff] }
 0x141   : > { %3308 = vmatmul.mubr.msk.f32.gmra.mrb[14].mxu1 %vm734_vm2, %v702_v28  ;;  %v704_v35 = vmax.f32 %v614_v32, 0.0 }
 0x142   : > { %v703_v36 = vmax.f32 %v609_v34, 0.0  ;;  %v3251_v37 = vpop.f32.mrb[18].mxu0  ;;  %1738 = vmatpush1.bf16.msra.mxu1 %v3138_v31  ;;  %v1115_v34 = vld [vmem:[%s4460_s5 + $0x58] sm:$0xff] }
 0x143   : > { %v624_v38 = vadd.f32 %v3251_v37, %v3747_v17  ;;  %v618_v39 = vpop.f32.mrb[19].mxu0  ;;  %2109 = vmatprep.subr.bf16.mxu1 %v3087_v23 }
 0x144   : > { %3310 = vmatprep.mubr.msk.f32.mxu1 %vm734_vm2, %v703_v36  ;;  %v619_v40 = vadd.f32 %v3747_v17, %v618_v39 }
 0x145   : > { %3311 = vmatmul.mubr.msk.f32.gmra.mrb[16].mxu1 %vm734_vm2, %v704_v35  ;;  %v706_v41 = vmax.f32 %v624_v38, 0.0  ;;  %v1119_v35 = vld [vmem:[%s4460_s5 + $0x78] sm:$0xff] }
 0x146   : > { %v705_v42 = vmax.f32 %v619_v40, 0.0  ;;  %v3254_v43 = vpop.f32.mrb[20].mxu0  ;;  %v1122_v40 = vld [vmem:[%s4460_s5 + $0x90] sm:$0xff] }
 0x147   : > { %v634_v44 = vadd.f32 %v3254_v43, %v3747_v17  ;;  %v628_v45 = vpop.f32.mrb[21].mxu0  ;;  %v3093_v43 = vcombine.high %v1114_v30, %v1118_v33 }
 0x148   : > { %3313 = vmatprep.mubr.msk.f32.mxu1 %vm734_vm2, %v705_v42  ;;  %v629_v46 = vadd.f32 %v3747_v17, %v628_v45  ;;  %v1123_v45 = vld [vmem:[%s4460_s5 + $0x98] sm:$0xff] }
 0x149   : > { %3314 = vmatmul.mubr.msk.f32.gmra.mrb[18].mxu1 %vm734_vm2, %v706_v41  ;;  %v708_v47 = vmax.f32 %v634_v44, 0.0  ;;  %v1126_v41 = vld [vmem:[%s4460_s5 + $0xb0] sm:$0xff]  ;;  %v3095_v44 = vcombine.high %v1115_v34, %v1119_v35 }
 0x14a   : > { %v707_v48 = vmax.f32 %v629_v46, 0.0  ;;  %v3257_v49 = vpop.f32.mrb[22].mxu0  ;;  %v1127_v46 = vld [vmem:[%s4460_s5 + $0xb8] sm:$0xff] }
 0x14b   : > { %v644_v50 = vadd.f32 %v3257_v49, %v3747_v17  ;;  %v638_v51 = vpop.f32.mrb[23].mxu0  ;;  %v3092_v49 = vcombine.low %v1114_v30, %v1118_v33  ;;  %v1147_v30 = vld [vmem:[%s4460_s5 + $0x158] sm:$0xff] }
 0x14c   : > { %3316 = vmatprep.mubr.msk.f32.mxu1 %vm734_vm2, %v707_v48  ;;  %v639_v52 = vadd.f32 %v3747_v17, %v638_v51 }
 0x14d   : > { %3317 = vmatmul.mubr.msk.f32.gmra.mrb[20].mxu1 %vm734_vm2, %v708_v47  ;;  %v710_v53 = vmax.f32 %v644_v50, 0.0 }
 0x14e   : > { %v709_v54 = vmax.f32 %v639_v52, 0.0  ;;  %v3260_v55 = vpop.f32.mrb[24].mxu0  ;;  %v3094_v52 = vcombine.low %v1115_v34, %v1119_v35 }
 0x14f   : > { %v654_v56 = vadd.f32 %v3260_v55, %v3747_v17  ;;  %v648_v57 = vpop.f32.mrb[25].mxu0 }
 0x150   : > { %3319 = vmatprep.mubr.msk.f32.mxu1 %vm734_vm2, %v709_v54  ;;  %v649_v58 = vadd.f32 %v3747_v17, %v648_v57 }
 0x151   : > { %3320 = vmatmul.mubr.msk.f32.gmra.mrb[22].mxu1 %vm734_vm2, %v710_v53  ;;  %v712_v59 = vmax.f32 %v654_v56, 0.0  ;;  %v3101_v53 = vcombine.high %v1122_v40, %v1126_v41  ;;  %v3103_v56 = vcombine.high %v1123_v45, %v1127_v46 }
 0x152   : > { %v711_v60 = vmax.f32 %v649_v58, 0.0  ;;  %v3263_v61 = vpop.f32.mrb[26].mxu0  ;;  %v1130_v58 = vld [vmem:[%s4460_s5 + $0xd0] sm:$0xff] }
 0x153   : > { %v664_v62 = vadd.f32 %v3263_v61, %v3747_v17  ;;  %v658_v63 = vpop.f32.mrb[27].mxu0  ;;  %v1134_v61 = vld [vmem:[%s4460_s5 + $0xf0] sm:$0xff] }
 0x154   : > { %3322 = vmatprep.mubr.msk.f32.mxu1 %vm734_vm2, %v711_v60  ;;  %v659_v0 = vadd.f32 %v3747_v17, %v658_v63  ;;  %v1135_v63 = vld [vmem:[%s4460_s5 + $0xf8] sm:$0xff]  ;;  %v3108_v18 = vcombine.low %v1130_v58, %v1134_v61 }
 0x155   : > { %3323 = vmatmul.mubr.msk.f32.gmra.mrb[24].mxu1 %vm734_vm2, %v712_v59  ;;  %v714_v1 = vmax.f32 %v664_v62, 0.0  ;;  %v1131_v62 = vld [vmem:[%s4460_s5 + $0xd8] sm:$0xff] }
 0x156   : > { %v713_v2 = vmax.f32 %v659_v0, 0.0  ;;  %v3266_v3 = vpop.f32.mrb[28].mxu0  ;;  %v3110_v21 = vcombine.low %v1131_v62, %v1135_v63 }
 0x157   : > { %v674_v4 = vadd.f32 %v3266_v3, %v3747_v17  ;;  %v668_v5 = vpop.f32.mrb[29].mxu0 }
 0x158   : > { %3325 = vmatprep.mubr.msk.f32.mxu1 %vm734_vm2, %v713_v2  ;;  %v669_v6 = vadd.f32 %v3747_v17, %v668_v5  ;;  %v3100_v2 = vcombine.low %v1122_v40, %v1126_v41  ;;  %v3102_v5 = vcombine.low %v1123_v45, %v1127_v46  ;;  %v1158_v45 = vld [vmem:[%s4460_s5 + $0x1b0] sm:$0xff]  ;;  %v1155_v46 = vld [vmem:[%s4460_s5 + $0x198] sm:$0xff] }
 0x159   : > { %3326 = vmatmul.mubr.msk.f32.gmra.mrb[26].mxu1 %vm734_vm2, %v714_v1  ;;  %v716_v7 = vmax.f32 %v674_v4, 0.0 }
 0x15a   : > { %v715_v8 = vmax.f32 %v669_v6, 0.0  ;;  %v3269_v9 = vpop.f32.mrb[30].mxu0 }
 0x15b   : > { %v684_v10 = vadd.f32 %v3269_v9, %v3747_v17  ;;  %v678_v11 = vpop.f32.mrb[31].mxu0  ;;  %v1138_v9 = vld [vmem:[%s4460_s5 + $0x110] sm:$0xff] }
 0x15c   : > { %3328 = vmatprep.mubr.msk.f32.mxu1 %vm734_vm2, %v715_v8  ;;  %v679_v12 = vadd.f32 %v3747_v17, %v678_v11  ;;  %v1110_v17 = vld [vmem:[%s4460_s5 + $0x30] sm:$0xff]  ;;  %v3111_v8 = vcombine.high %v1131_v62, %v1135_v63  ;;  %v1163_v62 = vld [vmem:[%s4460_s5 + $0x1d8] sm:$0xff] }
 0x15d   : > { %3329 = vmatmul.mubr.msk.f32.gmra.mrb[28].mxu1 %vm734_vm2, %v716_v7  ;;  %v718_v13 = vmax.f32 %v684_v10, 0.0  ;;  %v3084_v19 = vcombine.low %v1106_v16, %v1110_v17  ;;  %v3085_v20 = vcombine.high %v1106_v16, %v1110_v17  ;;  %v3109_v7 = vcombine.high %v1130_v58, %v1134_v61  ;;  %v1162_v58 = vld [vmem:[%s4460_s5 + $0x1d0] sm:$0xff]  ;;  %v1167_v63 = vld [vmem:[%s4460_s5 + $0x1f8] sm:$0xff] }
 0x15e   : > { %v717_v14 = vmax.f32 %v679_v12, 0.0  ;;  %v1142_v12 = vld [vmem:[%s4460_s5 + $0x130] sm:$0xff] }
 0x15f   : > { %1916 = vmatprep.subr.bf16.mxu0 %v3085_v20  ;;  %v3117_v23 = vcombine.high %v1138_v9, %v1142_v12  ;;  %v3116_v34 = vcombine.low %v1138_v9, %v1142_v12  ;;  %v1166_v61 = vld [vmem:[%s4460_s5 + $0x1f0] sm:$0xff]  ;;  %v3143_v9 = vcombine.high %v1163_v62, %v1167_v63 }
 0x160   : > { %3331 = vmatprep.mubr.msk.f32.mxu1 %vm734_vm2, %v717_v14  ;;  %v1143_v14 = vld [vmem:[%s4460_s5 + $0x138] sm:$0xff] }
 0x161   : > { %3332 = vmatmul.mubr.msk.f32.gmra.mrb[30].mxu1 %vm734_vm2, %v718_v13  ;;  %v1139_v13 = vld [vmem:[%s4460_s5 + $0x118] sm:$0xff] }
 0x162   : > { %1755 = vmatprep.mubr.bf16.mxu1 %v3456_v15 }
 0x1f8   : > { %v3288_v25 = vpop.f32.mrb[0].mxu1 }
 0x1f9   : > { %v903_v26 = vadd.f32 %v3288_v25, %v3872_v24  ;;  %v897_v27 = vpop.f32.mrb[1].mxu1  ;;  %v3119_v25 = vcombine.high %v1139_v13, %v1143_v14 }
 0x1fa   : > { %v898_v28 = vadd.f32 %v3872_v24, %v897_v27 }
 0x1fb   : > { %v1057_v29 = vmax.f32 %v903_v26, 0.0  ;;  %v1146_v26 = vld [vmem:[%s4460_s5 + $0x150] sm:$0xff] }
 0x1fc   : > { %v1056_v31 = vmax.f32 %v898_v28, 0.0  ;;  %v3291_v32 = vpop.f32.mrb[2].mxu1 }
 0x1fd   : > { %v913_v36 = vadd.f32 %v3291_v32, %v3872_v24  ;;  %v907_v37 = vpop.f32.mrb[3].mxu1 }
 0x1fe   : > { %v3889_v38 = vpack.c.bf16 %v1057_v29, %v1056_v31  ;;  %v908_v39 = vadd.f32 %v3872_v24, %v907_v37  ;;  %v1150_v29 = vld [vmem:[%s4460_s5 + $0x170] sm:$0xff]  ;;  %v1151_v31 = vld [vmem:[%s4460_s5 + $0x178] sm:$0xff]  ;;  %v3118_v37 = vcombine.low %v1139_v13, %v1143_v14  ;;  %v3140_v14 = vcombine.low %v1162_v58, %v1166_v61 }
 0x1ff   : > { %v1059_v42 = vmax.f32 %v913_v36, 0.0  ;;  %v3125_v40 = vcombine.high %v1146_v26, %v1150_v29  ;;  %v3127_v41 = vcombine.high %v1147_v30, %v1151_v31 }
 0x200   : > { %v1058_v47 = vmax.f32 %v908_v39, 0.0  ;;  %1563 = vmatmul.mubr.bf16.vlgmr.msra.gmra.mrb[32].mxu0 %v3889_v38  ;;  %1756 = vmatmul.mubr.bf16.vlgmr.msra.gmra.mrb[32].mxu1 %v3889_v38  ;;  %v3294_v48 = vpop.f32.mrb[4].mxu1 }
 0x201   : > { %1917 = vmatpush1.bf16.msra.mxu0 %v3084_v19  ;;  %2110 = vmatpush1.bf16.msra.mxu1 %v3086_v22  ;;  %v923_v50 = vadd.f32 %v3294_v48, %v3872_v24  ;;  %v917_v51 = vpop.f32.mrb[5].mxu1 }
 0x202   : > { %v3907_v54 = vpack.c.bf16 %v1059_v42, %v1058_v47  ;;  %v918_v55 = vadd.f32 %v3872_v24, %v917_v51  ;;  %1572 = vmatprep.mubr.bf16.mxu0 %v3456_v15  ;;  %1765 = vmatprep.mubr.bf16.mxu1 %v3456_v15  ;;  %v1154_v42 = vld [vmem:[%s4460_s5 + $0x190] sm:$0xff]  ;;  %v1159_v47 = vld [vmem:[%s4460_s5 + $0x1b8] sm:$0xff] }
 0x203   : > { %v1061_v57 = vmax.f32 %v923_v50, 0.0  ;;  %1918 = vmatprep.subr.bf16.mxu0 %v3093_v43  ;;  %2111 = vmatprep.subr.bf16.mxu1 %v3095_v44  ;;  %v3124_v50 = vcombine.low %v1146_v26, %v1150_v29 }
 0x204   : > { %v1060_v59 = vmax.f32 %v918_v55, 0.0  ;;  %v3297_v60 = vpop.f32.mrb[6].mxu1 }
 0x205   : > { %v933_v0 = vadd.f32 %v3297_v60, %v3872_v24  ;;  %v927_v1 = vpop.f32.mrb[7].mxu1  ;;  %1919 = vmatpush1.bf16.msra.mxu0 %v3092_v49  ;;  %2112 = vmatpush1.bf16.msra.mxu1 %v3094_v52 }
 0x206   : > { %v3925_v3 = vpack.c.bf16 %v1061_v57, %v1060_v59  ;;  %v928_v4 = vadd.f32 %v3872_v24, %v927_v1  ;;  %1920 = vmatprep.subr.bf16.mxu0 %v3101_v53  ;;  %2113 = vmatprep.subr.bf16.mxu1 %v3103_v56  ;;  %v3126_v53 = vcombine.low %v1147_v30, %v1151_v31 }
 0x207   : > { %v1063_v6 = vmax.f32 %v933_v0, 0.0  ;;  %v3133_v56 = vcombine.high %v1154_v42, %v1158_v45  ;;  %v3135_v57 = vcombine.high %v1155_v46, %v1159_v47 }
 0x208   : > { %1573 = vmatmul.mubr.bf16.gmra.mrb[36].mxu0 %v3907_v54  ;;  %1766 = vmatmul.mubr.bf16.gmra.mrb[36].mxu1 %v3907_v54  ;;  %v1062_v10 = vmax.f32 %v928_v4, 0.0  ;;  %v3300_v11 = vpop.f32.mrb[8].mxu1 }
 0x209   : > { %1582 = vmatprep.mubr.bf16.mxu0 %v3456_v15  ;;  %1775 = vmatprep.mubr.bf16.mxu1 %v3456_v15  ;;  %v943_v16 = vadd.f32 %v3300_v11, %v3872_v24  ;;  %v937_v17 = vpop.f32.mrb[9].mxu1 }
 0x20a   : > { %v3945_v19 = vpack.c.bf16 %v1063_v6, %v1062_v10  ;;  %v938_v20 = vadd.f32 %v3872_v24, %v937_v17  ;;  %1921 = vmatpush1.bf16.msra.mxu0 %v3100_v2  ;;  %2114 = vmatpush1.bf16.msra.mxu1 %v3102_v5  ;;  %v3132_v2 = vcombine.low %v1154_v42, %v1158_v45 }
 0x20b   : > { %v1065_v22 = vmax.f32 %v943_v16, 0.0  ;;  %1922 = vmatprep.subr.bf16.mxu0 %v3109_v7  ;;  %2115 = vmatprep.subr.bf16.mxu1 %v3111_v8  ;;  %v3134_v6 = vcombine.low %v1155_v46, %v1159_v47  ;;  %v3141_v8 = vcombine.high %v1162_v58, %v1166_v61 }
 0x20c   : > { %v1064_v27 = vmax.f32 %v938_v20, 0.0  ;;  %v3303_v28 = vpop.f32.mrb[10].mxu1 }
 0x20d   : > { %v953_v32 = vadd.f32 %v3303_v28, %v3872_v24  ;;  %v947_v33 = vpop.f32.mrb[11].mxu1 }
 0x20e   : > { %v3961_v35 = vpack.c.bf16 %v1065_v22, %v1064_v27  ;;  %v948_v36 = vadd.f32 %v3872_v24, %v947_v33  ;;  %1923 = vmatpush1.bf16.msra.mxu0 %v3108_v18  ;;  %2116 = vmatpush1.bf16.msra.mxu1 %v3110_v21  ;;  %v3142_v18 = vcombine.low %v1163_v62, %v1167_v63 }
 0x20f   : > { %v1067_v39 = vmax.f32 %v953_v32, 0.0  ;;  %1924 = vmatprep.subr.bf16.mxu0 %v3117_v23  ;;  %2117 = vmatprep.subr.bf16.mxu1 %v3119_v25 }
 0x210   : > { %1583 = vmatmul.mubr.bf16.gmra.mrb[40].mxu0 %v3925_v3  ;;  %1776 = vmatmul.mubr.bf16.gmra.mrb[40].mxu1 %v3925_v3  ;;  %v1066_v43 = vmax.f32 %v948_v36, 0.0  ;;  %v3306_v44 = vpop.f32.mrb[12].mxu1 }
 0x211   : > { %1592 = vmatprep.mubr.bf16.mxu0 %v3456_v15  ;;  %1785 = vmatprep.mubr.bf16.mxu1 %v3456_v15  ;;  %v963_v48 = vadd.f32 %v3306_v44, %v3872_v24  ;;  %v957_v49 = vpop.f32.mrb[13].mxu1 }
 0x212   : > { %v3981_v51 = vpack.c.bf16 %v1067_v39, %v1066_v43  ;;  %v958_v52 = vadd.f32 %v3872_v24, %v957_v49  ;;  %1925 = vmatpush1.bf16.msra.mxu0 %v3116_v34  ;;  %2118 = vmatpush1.bf16.msra.mxu1 %v3118_v37 }
 0x213   : > { %v1069_v55 = vmax.f32 %v963_v48, 0.0  ;;  %1926 = vmatprep.subr.bf16.mxu0 %v3125_v40  ;;  %2119 = vmatprep.subr.bf16.mxu1 %v3127_v41 }
 0x214   : > { %v1068_v59 = vmax.f32 %v958_v52, 0.0  ;;  %v3309_v60 = vpop.f32.mrb[14].mxu1 }
 0x215   : > { %v973_v0 = vadd.f32 %v3309_v60, %v3872_v24  ;;  %v967_v1 = vpop.f32.mrb[15].mxu1 }
 0x216   : > { %v3997_v4 = vpack.c.bf16 %v1069_v55, %v1068_v59  ;;  %v968_v5 = vadd.f32 %v3872_v24, %v967_v1  ;;  %1927 = vmatpush1.bf16.msra.mxu0 %v3124_v50  ;;  %2120 = vmatpush1.bf16.msra.mxu1 %v3126_v53 }
 0x217   : > { %v1071_v7 = vmax.f32 %v973_v0, 0.0  ;;  %1928 = vmatprep.subr.bf16.mxu0 %v3133_v56  ;;  %2121 = vmatprep.subr.bf16.mxu1 %v3135_v57 }
 0x218   : > { %1593 = vmatmul.mubr.bf16.gmra.mrb[44].mxu0 %v3945_v19  ;;  %1786 = vmatmul.mubr.bf16.gmra.mrb[44].mxu1 %v3945_v19  ;;  %v1070_v10 = vmax.f32 %v968_v5, 0.0  ;;  %v3312_v11 = vpop.f32.mrb[16].mxu1 }
 0x219   : > { %1602 = vmatprep.mubr.bf16.mxu0 %v3456_v15  ;;  %1795 = vmatprep.mubr.bf16.mxu1 %v3456_v15  ;;  %v983_v12 = vadd.f32 %v3312_v11, %v3872_v24  ;;  %v977_v13 = vpop.f32.mrb[17].mxu1 }
 0x21a   : > { %v4005_v16 = vpack.c.bf16 %v1071_v7, %v1070_v10  ;;  %v978_v17 = vadd.f32 %v3872_v24, %v977_v13  ;;  %1929 = vmatpush1.bf16.msra.mxu0 %v3132_v2  ;;  %2122 = vmatpush1.bf16.msra.mxu1 %v3134_v6 }
 0x21b   : > { %v1073_v20 = vmax.f32 %v983_v12, 0.0  ;;  %1930 = vmatprep.subr.bf16.mxu0 %v3141_v8  ;;  %2123 = vmatprep.subr.bf16.mxu1 %v3143_v9 }
 0x21c   : > { %v1072_v21 = vmax.f32 %v978_v17, 0.0  ;;  %v3315_v22 = vpop.f32.mrb[18].mxu1 }
 0x21d   : > { %v993_v23 = vadd.f32 %v3315_v22, %v3872_v24  ;;  %v987_v25 = vpop.f32.mrb[19].mxu1 }
 0x21e   : > { %v4009_v26 = vpack.c.bf16 %v1073_v20, %v1072_v21  ;;  %v988_v27 = vadd.f32 %v3872_v24, %v987_v25  ;;  %1931 = vmatpush1.bf16.msra.mxu0 %v3140_v14  ;;  %2124 = vmatpush1.bf16.msra.mxu1 %v3142_v18 }
 0x21f   : > { %v1075_v28 = vmax.f32 %v993_v23, 0.0 }
 0x220   : > { %1603 = vmatmul.mubr.bf16.gmra.mrb[48].mxu0 %v3961_v35  ;;  %1796 = vmatmul.mubr.bf16.gmra.mrb[48].mxu1 %v3961_v35  ;;  %v1074_v29 = vmax.f32 %v988_v27, 0.0  ;;  %v3318_v30 = vpop.f32.mrb[20].mxu1 }
 0x221   : > { %1612 = vmatprep.mubr.bf16.mxu0 %v3456_v15  ;;  %1805 = vmatprep.mubr.bf16.mxu1 %v3456_v15  ;;  %v1003_v31 = vadd.f32 %v3318_v30, %v3872_v24  ;;  %v997_v32 = vpop.f32.mrb[21].mxu1 }
 0x222   : > { %v4017_v33 = vpack.c.bf16 %v1075_v28, %v1074_v29  ;;  %v998_v34 = vadd.f32 %v3872_v24, %v997_v32 }
 0x223   : > { %v1077_v36 = vmax.f32 %v1003_v31, 0.0 }
 0x224   : > { %v1076_v37 = vmax.f32 %v998_v34, 0.0  ;;  %v3321_v39 = vpop.f32.mrb[22].mxu1 }
 0x225   : > { %v1013_v40 = vadd.f32 %v3321_v39, %v3872_v24  ;;  %v1007_v41 = vpop.f32.mrb[23].mxu1 }
 0x226   : > { %v4021_v42 = vpack.c.bf16 %v1077_v36, %v1076_v37  ;;  %v1008_v43 = vadd.f32 %v3872_v24, %v1007_v41 }
 0x227   : > { %v1079_v44 = vmax.f32 %v1013_v40, 0.0 }
 0x228   : > { %1613 = vmatmul.mubr.bf16.gmra.mrb[52].mxu0 %v3981_v51  ;;  %1806 = vmatmul.mubr.bf16.gmra.mrb[52].mxu1 %v3981_v51  ;;  %v1078_v45 = vmax.f32 %v1008_v43, 0.0  ;;  %v3324_v46 = vpop.f32.mrb[24].mxu1 }
 0x229   : > { %1622 = vmatprep.mubr.bf16.mxu0 %v3456_v15  ;;  %1815 = vmatprep.mubr.bf16.mxu1 %v3456_v15  ;;  %v1023_v47 = vadd.f32 %v3324_v46, %v3872_v24  ;;  %v1017_v48 = vpop.f32.mrb[25].mxu1 }
 0x22a   : > { %v4029_v49 = vpack.c.bf16 %v1079_v44, %v1078_v45  ;;  %v1018_v50 = vadd.f32 %v3872_v24, %v1017_v48 }
 0x22b   : > { %v1081_v52 = vmax.f32 %v1023_v47, 0.0 }
 0x22c   : > { %v1080_v53 = vmax.f32 %v1018_v50, 0.0  ;;  %v3327_v55 = vpop.f32.mrb[26].mxu1 }
 0x22d   : > { %v1033_v56 = vadd.f32 %v3327_v55, %v3872_v24  ;;  %v1027_v57 = vpop.f32.mrb[27].mxu1 }
 0x22e   : > { %v4033_v58 = vpack.c.bf16 %v1081_v52, %v1080_v53  ;;  %v1028_v59 = vadd.f32 %v3872_v24, %v1027_v57 }
 0x22f   : > { %v1083_v60 = vmax.f32 %v1033_v56, 0.0 }
 0x230   : > { %1623 = vmatmul.mubr.bf16.gmra.mrb[56].mxu0 %v3997_v4  ;;  %1816 = vmatmul.mubr.bf16.gmra.mrb[56].mxu1 %v3997_v4  ;;  %v1082_v61 = vmax.f32 %v1028_v59, 0.0  ;;  %v3330_v62 = vpop.f32.mrb[28].mxu1 }
 0x231   : > { %1632 = vmatprep.mubr.bf16.mxu0 %v3456_v15  ;;  %1825 = vmatprep.mubr.bf16.mxu1 %v3456_v15  ;;  %v1043_v63 = vadd.f32 %v3330_v62, %v3872_v24  ;;  %v1037_v0 = vpop.f32.mrb[29].mxu1 }
 0x232   : > { %v4041_v1 = vpack.c.bf16 %v1083_v60, %v1082_v61  ;;  %v1038_v2 = vadd.f32 %v3872_v24, %v1037_v0 }
 0x233   : > { %v1085_v5 = vmax.f32 %v1043_v63, 0.0 }
 0x234   : > { %v1084_v6 = vmax.f32 %v1038_v2, 0.0  ;;  %v3333_v7 = vpop.f32.mrb[30].mxu1 }
 0x235   : > { %v1053_v8 = vadd.f32 %v3333_v7, %v3872_v24  ;;  %v1047_v9 = vpop.f32.mrb[31].mxu1 }
 0x236   : > { %v4045_v10 = vpack.c.bf16 %v1085_v5, %v1084_v6  ;;  %v1048_v11 = vadd.f32 %v3872_v24, %v1047_v9  ;;  %v1170_v24 = vlaneseq }
 0x237   : > { %v1087_v12 = vmax.f32 %v1053_v8, 0.0 }
 0x238   : > { %1633 = vmatmul.mubr.bf16.gmra.mrb[60].mxu0 %v4005_v16  ;;  %1826 = vmatmul.mubr.bf16.gmra.mrb[60].mxu1 %v4005_v16  ;;  %v1086_v13 = vmax.f32 %v1048_v11, 0.0 }
 0x239   : > { %1642 = vmatprep.mubr.bf16.mxu0 %v3456_v15  ;;  %1835 = vmatprep.mubr.bf16.mxu1 %v3456_v15 }
 0x23a   : > { %v4052_v14 = vpack.c.bf16 %v1087_v12, %v1086_v13 }
 0x240   : > { %1643 = vmatmul.mubr.bf16.gmra.mrb[64].mxu0 %v4009_v26  ;;  %1836 = vmatmul.mubr.bf16.gmra.mrb[64].mxu1 %v4009_v26 }
 0x241   : > { %1652 = vmatprep.mubr.bf16.mxu0 %v3456_v15  ;;  %1845 = vmatprep.mubr.bf16.mxu1 %v3456_v15 }
 0x248   : > { %1653 = vmatmul.mubr.bf16.gmra.mrb[68].mxu0 %v4017_v33  ;;  %1846 = vmatmul.mubr.bf16.gmra.mrb[68].mxu1 %v4017_v33 }
 0x249   : > { %1662 = vmatprep.mubr.bf16.mxu0 %v3456_v15  ;;  %1855 = vmatprep.mubr.bf16.mxu1 %v3456_v15 }
 0x250   : > { %1663 = vmatmul.mubr.bf16.gmra.mrb[72].mxu0 %v4021_v42  ;;  %1856 = vmatmul.mubr.bf16.gmra.mrb[72].mxu1 %v4021_v42 }
 0x251   : > { %1672 = vmatprep.mubr.bf16.mxu0 %v3456_v15  ;;  %1865 = vmatprep.mubr.bf16.mxu1 %v3456_v15 }
 0x258   : > { %1673 = vmatmul.mubr.bf16.gmra.mrb[76].mxu0 %v4029_v49  ;;  %1866 = vmatmul.mubr.bf16.gmra.mrb[76].mxu1 %v4029_v49 }
 0x259   : > { %1682 = vmatprep.mubr.bf16.mxu0 %v3456_v15  ;;  %1875 = vmatprep.mubr.bf16.mxu1 %v3456_v15 }
 0x260   : > { %1683 = vmatmul.mubr.bf16.gmra.mrb[80].mxu0 %v4033_v58  ;;  %1876 = vmatmul.mubr.bf16.gmra.mrb[80].mxu1 %v4033_v58 }
 0x261   : > { %1692 = vmatprep.mubr.bf16.mxu0 %v3456_v15  ;;  %1885 = vmatprep.mubr.bf16.mxu1 %v3456_v15 }
 0x268   : > { %1693 = vmatmul.mubr.bf16.gmra.mrb[84].mxu0 %v4041_v1  ;;  %1886 = vmatmul.mubr.bf16.gmra.mrb[84].mxu1 %v4041_v1 }
 0x269   : > { %1702 = vmatprep.mubr.bf16.mxu0 %v3456_v15  ;;  %1895 = vmatprep.mubr.bf16.mxu1 %v3456_v15 }
 0x270   : > { %1703 = vmatmul.mubr.bf16.gmra.mrb[88].mxu0 %v4045_v10  ;;  %1896 = vmatmul.mubr.bf16.gmra.mrb[88].mxu1 %v4045_v10 }
 0x271   : > { %1712 = vmatprep.mubr.bf16.mxu0 %v3456_v15  ;;  %1905 = vmatprep.mubr.bf16.mxu1 %v3456_v15 }
 0x278   : > { %1713 = vmatmul.mubr.bf16.gmra.mrb[92].mxu0 %v4052_v14  ;;  %1906 = vmatmul.mubr.bf16.gmra.mrb[92].mxu1 %v4052_v14 }
 0x279   : > { %1948 = vmatprep.mubr.bf16.mxu0 %v3456_v15  ;;  %2141 = vmatprep.mubr.bf16.mxu1 %v3456_v15 }
 0x280   : > { %1949 = vmatmul.mubr.bf16.vlgmr.msra.gmra.mrb[96].mxu0 %v3889_v38  ;;  %2142 = vmatmul.mubr.bf16.vlgmr.msra.gmra.mrb[96].mxu1 %v3889_v38  ;;  %v4124_v38 = vshrl.u32 %v1170_v24, 7 }
 0x281   : > { %1958 = vmatprep.mubr.bf16.mxu0 %v3456_v15  ;;  %2151 = vmatprep.mubr.bf16.mxu1 %v3456_v15 }
 0x288   : > { %1959 = vmatmul.mubr.bf16.gmra.mrb[100].mxu0 %v3907_v54  ;;  %2152 = vmatmul.mubr.bf16.gmra.mrb[100].mxu1 %v3907_v54  ;;  %v1172_v54 = vsub.s32 0, %v4124_v38 }
 0x289   : > { %1968 = vmatprep.mubr.bf16.mxu0 %v3456_v15  ;;  %2161 = vmatprep.mubr.bf16.mxu1 %v3456_v15 }
 0x290   : > { %1969 = vmatmul.mubr.bf16.gmra.mrb[104].mxu0 %v3925_v3  ;;  %2162 = vmatmul.mubr.bf16.gmra.mrb[104].mxu1 %v3925_v3  ;;  %v1180_v3 = vsub.s32 2, %v4124_v38 }
 0x291   : > { %1978 = vmatprep.mubr.bf16.mxu0 %v3456_v15  ;;  %2171 = vmatprep.mubr.bf16.mxu1 %v3456_v15 }
 0x298   : > { %1979 = vmatmul.mubr.bf16.gmra.mrb[108].mxu0 %v3945_v19  ;;  %2172 = vmatmul.mubr.bf16.gmra.mrb[108].mxu1 %v3945_v19  ;;  %v1168_v19 = vld [vmem:[#allocation4] sm:$0xff] }
 0x299   : > { %1988 = vmatprep.mubr.bf16.mxu0 %v3456_v15  ;;  %2181 = vmatprep.mubr.bf16.mxu1 %v3456_v15 }
 0x2a0   : > { %1989 = vmatmul.mubr.bf16.gmra.mrb[112].mxu0 %v3961_v35  ;;  %2182 = vmatmul.mubr.bf16.gmra.mrb[112].mxu1 %v3961_v35  ;;  %v1176_v35 = vsub.s32 1, %v4124_v38 }
 0x2a1   : > { %1998 = vmatprep.mubr.bf16.mxu0 %v3456_v15  ;;  %2191 = vmatprep.mubr.bf16.mxu1 %v3456_v15 }
 0x2a2   : > { %v4138_v17 = vrot.slane %v1168_v19, %v1176_v35 }
 0x2a8   : > { %1999 = vmatmul.mubr.bf16.gmra.mrb[116].mxu0 %v3981_v51  ;;  %2192 = vmatmul.mubr.bf16.gmra.mrb[116].mxu1 %v3981_v51  ;;  %v1184_v51 = vsub.s32 3, %v4124_v38 }
 0x2a9   : > { %2008 = vmatprep.mubr.bf16.mxu0 %v3456_v15  ;;  %2201 = vmatprep.mubr.bf16.mxu1 %v3456_v15 }
 0x2aa   : > { %v4140_v18 = vrot.slane %v1168_v19, %v1184_v51 }
 0x2b0   : > { %2009 = vmatmul.mubr.bf16.gmra.mrb[120].mxu0 %v3997_v4  ;;  %2202 = vmatmul.mubr.bf16.gmra.mrb[120].mxu1 %v3997_v4  ;;  %v4134_v4 = vrot.slane %v1168_v19, %v1172_v54 }
 0x2b1   : > { %2018 = vmatprep.mubr.bf16.mxu0 %v3456_v15  ;;  %2211 = vmatprep.mubr.bf16.mxu1 %v3456_v15 }
 0x2b8   : > { %2019 = vmatmul.mubr.bf16.gmra.mrb[124].mxu0 %v4005_v16  ;;  %2212 = vmatmul.mubr.bf16.gmra.mrb[124].mxu1 %v4005_v16  ;;  %v4136_v16 = vrot.slane %v1168_v19, %v1180_v3 }
 0x2b9   : > { %2028 = vmatprep.mubr.bf16.mxu0 %v3456_v15  ;;  %2221 = vmatprep.mubr.bf16.mxu1 %v3456_v15 }
 0x2c0   : > { %2029 = vmatmul.mubr.bf16.gmra.mrb[128].mxu0 %v4009_v26  ;;  %2222 = vmatmul.mubr.bf16.gmra.mrb[128].mxu1 %v4009_v26 }
 0x2c1   : > { %2038 = vmatprep.mubr.bf16.mxu0 %v3456_v15  ;;  %2231 = vmatprep.mubr.bf16.mxu1 %v3456_v15 }
 0x2c8   : > { %2039 = vmatmul.mubr.bf16.gmra.mrb[132].mxu0 %v4017_v33  ;;  %2232 = vmatmul.mubr.bf16.gmra.mrb[132].mxu1 %v4017_v33 }
 0x2c9   : > { %2048 = vmatprep.mubr.bf16.mxu0 %v3456_v15  ;;  %2241 = vmatprep.mubr.bf16.mxu1 %v3456_v15 }
 0x2d0   : > { %2049 = vmatmul.mubr.bf16.gmra.mrb[136].mxu0 %v4021_v42  ;;  %2242 = vmatmul.mubr.bf16.gmra.mrb[136].mxu1 %v4021_v42 }
 0x2d1   : > { %2058 = vmatprep.mubr.bf16.mxu0 %v3456_v15  ;;  %2251 = vmatprep.mubr.bf16.mxu1 %v3456_v15 }
 0x2d3   : > { %v1564_v20 = vpop.f32.mrb[32].mxu0  ;;  %v1757_v21 = vpop.f32.mrb[32].mxu1 }
 0x2d4   : > { %v1565_v22 = vadd.f32 %v1564_v20, %v4134_v4  ;;  %v1758_v23 = vadd.f32 %v1757_v21, %v4136_v16  ;;  %v1566_v25 = vpop.f32.mrb[33].mxu0  ;;  %v1759_v26 = vpop.f32.mrb[33].mxu1 }
 0x2d5   : > { %v1567_v27 = vadd.f32 %v1566_v25, %v4138_v17  ;;  %v1760_v28 = vadd.f32 %v1759_v26, %v4140_v18  ;;  %v1568_v29 = vpop.f32.mrb[34].mxu0  ;;  %v1761_v30 = vpop.f32.mrb[34].mxu1 }
 0x2d6   : > { %v1569_v31 = vadd.f32 %v1568_v29, %v4134_v4  ;;  %v1762_v32 = vadd.f32 %v1761_v30, %v4136_v16  ;;  %v1570_v33 = vpop.f32.mrb[35].mxu0  ;;  %v1763_v34 = vpop.f32.mrb[35].mxu1  ;;  %v2302_v39 = vmax.f32 %v1565_v22, 0.0  ;;  %v2304_v40 = vmax.f32 %v1758_v23, 0.0 }
 0x2d7   : > { %v1571_v36 = vadd.f32 %v1570_v33, %v4138_v17  ;;  %v1764_v37 = vadd.f32 %v1763_v34, %v4140_v18  ;;  %v2303_v43 = vmax.f32 %v1567_v27, 0.0  ;;  %v2305_v44 = vmax.f32 %v1760_v28, 0.0 }
 0x2d8   : > { %v2310_v41 = vmax.f32 %v1569_v31, 0.0  ;;  %v2312_v42 = vmax.f32 %v1762_v32, 0.0  ;;  %2059 = vmatmul.mubr.bf16.gmra.mrb[140].mxu0 %v4029_v49  ;;  %2252 = vmatmul.mubr.bf16.gmra.mrb[140].mxu1 %v4029_v49 }
 0x2d9   : > { %v2311_v45 = vmax.f32 %v1571_v36, 0.0  ;;  %v2313_v46 = vmax.f32 %v1764_v37, 0.0  ;;  %2068 = vmatprep.mubr.bf16.mxu0 %v3456_v15  ;;  %2261 = vmatprep.mubr.bf16.mxu1 %v3456_v15 }
 0x2da   : > { %v2558_v47 = vmax.f32 %v2302_v39, %v2310_v41  ;;  %v2632_v48 = vmax.f32 %v2304_v40, %v2312_v42 }
 0x2db   : > { %v2595_v50 = vmax.f32 %v2303_v43, %v2311_v45  ;;  %v2669_v52 = vmax.f32 %v2305_v44, %v2313_v46  ;;  %v1574_v53 = vpop.f32.mrb[36].mxu0  ;;  %v1767_v55 = vpop.f32.mrb[36].mxu1 }
 0x2dc   : > { %v1575_v56 = vadd.f32 %v1574_v53, %v4134_v4  ;;  %v1768_v57 = vadd.f32 %v1767_v55, %v4136_v16  ;;  %v1576_v59 = vpop.f32.mrb[37].mxu0  ;;  %v1769_v49 = vpop.f32.mrb[37].mxu1 }
 0x2dd   : > { %v1577_v60 = vadd.f32 %v1576_v59, %v4138_v17  ;;  %v1770_v61 = vadd.f32 %v1769_v49, %v4140_v18  ;;  %v1578_v62 = vpop.f32.mrb[38].mxu0  ;;  %v1771_v63 = vpop.f32.mrb[38].mxu1 }
 0x2de   : > { %v2318_v0 = vmax.f32 %v1575_v56, 0.0  ;;  %v2320_v2 = vmax.f32 %v1768_v57, 0.0  ;;  %v1579_v5 = vadd.f32 %v1578_v62, %v4134_v4  ;;  %v1772_v6 = vadd.f32 %v1771_v63, %v4136_v16  ;;  %v1580_v7 = vpop.f32.mrb[39].mxu0  ;;  %v1773_v8 = vpop.f32.mrb[39].mxu1 }
 0x2df   : > { %v2319_v9 = vmax.f32 %v1577_v60, 0.0  ;;  %v2321_v11 = vmax.f32 %v1770_v61, 0.0  ;;  %v1581_v12 = vadd.f32 %v1580_v7, %v4138_v17  ;;  %v1774_v13 = vadd.f32 %v1773_v8, %v4140_v18 }
 0x2e0   : > { %v2559_v24 = vmax.f32 %v2558_v47, %v2318_v0  ;;  %v2633_v54 = vmax.f32 %v2632_v48, %v2320_v2  ;;  %v2326_v3 = vmax.f32 %v1579_v5, 0.0  ;;  %v2328_v19 = vmax.f32 %v1772_v6, 0.0  ;;  %2069 = vmatmul.mubr.bf16.gmra.mrb[144].mxu0 %v4033_v58  ;;  %2262 = vmatmul.mubr.bf16.gmra.mrb[144].mxu1 %v4033_v58 }
 0x2e1   : > { %v2596_v35 = vmax.f32 %v2595_v50, %v2319_v9  ;;  %v2670_v51 = vmax.f32 %v2669_v52, %v2321_v11  ;;  %v2327_v20 = vmax.f32 %v1581_v12, 0.0  ;;  %v2329_v21 = vmax.f32 %v1774_v13, 0.0  ;;  %2078 = vmatprep.mubr.bf16.mxu0 %v3456_v15  ;;  %2271 = vmatprep.mubr.bf16.mxu1 %v3456_v15 }
 0x2e2   : > { %v2560_v22 = vmax.f32 %v2559_v24, %v2326_v3  ;;  %v2634_v23 = vmax.f32 %v2633_v54, %v2328_v19 }
 0x2e3   : > { %v2597_v25 = vmax.f32 %v2596_v35, %v2327_v20  ;;  %v2671_v26 = vmax.f32 %v2670_v51, %v2329_v21  ;;  %v1584_v27 = vpop.f32.mrb[40].mxu0  ;;  %v1777_v28 = vpop.f32.mrb[40].mxu1 }
 0x2e4   : > { %v1585_v29 = vadd.f32 %v1584_v27, %v4134_v4  ;;  %v1778_v30 = vadd.f32 %v1777_v28, %v4136_v16  ;;  %v1586_v31 = vpop.f32.mrb[41].mxu0  ;;  %v1779_v58 = vpop.f32.mrb[41].mxu1 }
 0x2e5   : > { %v1587_v32 = vadd.f32 %v1586_v31, %v4138_v17  ;;  %v1780_v33 = vadd.f32 %v1779_v58, %v4140_v18  ;;  %v1588_v34 = vpop.f32.mrb[42].mxu0  ;;  %v1781_v36 = vpop.f32.mrb[42].mxu1 }
 0x2e6   : > { %v2334_v37 = vmax.f32 %v1585_v29, 0.0  ;;  %v2336_v39 = vmax.f32 %v1778_v30, 0.0  ;;  %v1589_v40 = vadd.f32 %v1588_v34, %v4134_v4  ;;  %v1782_v41 = vadd.f32 %v1781_v36, %v4136_v16  ;;  %v1590_v42 = vpop.f32.mrb[43].mxu0  ;;  %v1783_v43 = vpop.f32.mrb[43].mxu1 }
 0x2e7   : > { %v2335_v44 = vmax.f32 %v1587_v32, 0.0  ;;  %v2337_v45 = vmax.f32 %v1780_v33, 0.0  ;;  %v1591_v46 = vadd.f32 %v1590_v42, %v4138_v17  ;;  %v1784_v47 = vadd.f32 %v1783_v43, %v4140_v18 }
 0x2e8   : > { %v2561_v48 = vmax.f32 %v2560_v22, %v2334_v37  ;;  %v2635_v50 = vmax.f32 %v2634_v23, %v2336_v39  ;;  %v2342_v52 = vmax.f32 %v1589_v40, 0.0  ;;  %v2344_v53 = vmax.f32 %v1782_v41, 0.0  ;;  %2079 = vmatmul.mubr.bf16.gmra.mrb[148].mxu0 %v4041_v1  ;;  %2272 = vmatmul.mubr.bf16.gmra.mrb[148].mxu1 %v4041_v1 }
 0x2e9   : > { %v2598_v55 = vmax.f32 %v2597_v25, %v2335_v44  ;;  %v2672_v56 = vmax.f32 %v2671_v26, %v2337_v45  ;;  %v2343_v57 = vmax.f32 %v1591_v46, 0.0  ;;  %v2345_v59 = vmax.f32 %v1784_v47, 0.0  ;;  %2088 = vmatprep.mubr.bf16.mxu0 %v3456_v15  ;;  %2281 = vmatprep.mubr.bf16.mxu1 %v3456_v15 }
 0x2ea   : > { %v2562_v49 = vmax.f32 %v2561_v48, %v2342_v52  ;;  %v2636_v60 = vmax.f32 %v2635_v50, %v2344_v53 }
 0x2eb   : > { %v2599_v61 = vmax.f32 %v2598_v55, %v2343_v57  ;;  %v2673_v62 = vmax.f32 %v2672_v56, %v2345_v59  ;;  %v1594_v63 = vpop.f32.mrb[44].mxu0  ;;  %v1787_v0 = vpop.f32.mrb[44].mxu1 }
 0x2ec   : > { %v1595_v2 = vadd.f32 %v1594_v63, %v4134_v4  ;;  %v1788_v5 = vadd.f32 %v1787_v0, %v4136_v16  ;;  %v1596_v6 = vpop.f32.mrb[45].mxu0  ;;  %v1789_v1 = vpop.f32.mrb[45].mxu1 }
 0x2ed   : > { %v1597_v7 = vadd.f32 %v1596_v6, %v4138_v17  ;;  %v1790_v8 = vadd.f32 %v1789_v1, %v4140_v18  ;;  %v1598_v9 = vpop.f32.mrb[46].mxu0  ;;  %v1791_v11 = vpop.f32.mrb[46].mxu1 }
 0x2ee   : > { %v2350_v12 = vmax.f32 %v1595_v2, 0.0  ;;  %v2352_v13 = vmax.f32 %v1788_v5, 0.0  ;;  %v1599_v24 = vadd.f32 %v1598_v9, %v4134_v4  ;;  %v1792_v54 = vadd.f32 %v1791_v11, %v4136_v16  ;;  %v1600_v3 = vpop.f32.mrb[47].mxu0  ;;  %v1793_v19 = vpop.f32.mrb[47].mxu1 }
 0x2ef   : > { %v2351_v35 = vmax.f32 %v1597_v7, 0.0  ;;  %v2353_v51 = vmax.f32 %v1790_v8, 0.0  ;;  %v1601_v20 = vadd.f32 %v1600_v3, %v4138_v17  ;;  %v1794_v21 = vadd.f32 %v1793_v19, %v4140_v18 }
 0x2f0   : > { %v2563_v22 = vmax.f32 %v2562_v49, %v2350_v12  ;;  %v2637_v23 = vmax.f32 %v2636_v60, %v2352_v13  ;;  %v2358_v25 = vmax.f32 %v1599_v24, 0.0  ;;  %v2360_v26 = vmax.f32 %v1792_v54, 0.0  ;;  %2089 = vmatmul.mubr.bf16.gmra.mrb[152].mxu0 %v4045_v10  ;;  %2282 = vmatmul.mubr.bf16.gmra.mrb[152].mxu1 %v4045_v10 }
 0x2f1   : > { %v2600_v27 = vmax.f32 %v2599_v61, %v2351_v35  ;;  %v2674_v28 = vmax.f32 %v2673_v62, %v2353_v51  ;;  %v2359_v29 = vmax.f32 %v1601_v20, 0.0  ;;  %v2361_v30 = vmax.f32 %v1794_v21, 0.0  ;;  %2098 = vmatprep.mubr.bf16.mxu0 %v3456_v15  ;;  %2291 = vmatprep.mubr.bf16.mxu1 %v3456_v15 }
 0x2f2   : > { %v2564_v31 = vmax.f32 %v2563_v22, %v2358_v25  ;;  %v2638_v58 = vmax.f32 %v2637_v23, %v2360_v26 }
 0x2f3   : > { %v2601_v32 = vmax.f32 %v2600_v27, %v2359_v29  ;;  %v2675_v33 = vmax.f32 %v2674_v28, %v2361_v30  ;;  %v1604_v34 = vpop.f32.mrb[48].mxu0  ;;  %v1797_v36 = vpop.f32.mrb[48].mxu1 }
 0x2f4   : > { %v1605_v37 = vadd.f32 %v1604_v34, %v4134_v4  ;;  %v1798_v39 = vadd.f32 %v1797_v36, %v4136_v16  ;;  %v1606_v40 = vpop.f32.mrb[49].mxu0  ;;  %v1799_v10 = vpop.f32.mrb[49].mxu1 }
 0x2f5   : > { %v1607_v41 = vadd.f32 %v1606_v40, %v4138_v17  ;;  %v1800_v42 = vadd.f32 %v1799_v10, %v4140_v18  ;;  %v1608_v43 = vpop.f32.mrb[50].mxu0  ;;  %v1801_v44 = vpop.f32.mrb[50].mxu1 }
 0x2f6   : > { %v2366_v45 = vmax.f32 %v1605_v37, 0.0  ;;  %v2368_v15 = vmax.f32 %v1798_v39, 0.0  ;;  %v1609_v46 = vadd.f32 %v1608_v43, %v4134_v4  ;;  %v1802_v47 = vadd.f32 %v1801_v44, %v4136_v16  ;;  %v1610_v48 = vpop.f32.mrb[51].mxu0  ;;  %v1803_v50 = vpop.f32.mrb[51].mxu1 }
 0x2f7   : > { %v2367_v52 = vmax.f32 %v1607_v41, 0.0  ;;  %v2369_v53 = vmax.f32 %v1800_v42, 0.0  ;;  %v1611_v55 = vadd.f32 %v1610_v48, %v4138_v17  ;;  %v1804_v56 = vadd.f32 %v1803_v50, %v4140_v18 }
 0x2f8   : > { %v2565_v57 = vmax.f32 %v2564_v31, %v2366_v45  ;;  %v2639_v59 = vmax.f32 %v2638_v58, %v2368_v15  ;;  %v2374_v49 = vmax.f32 %v1609_v46, 0.0  ;;  %v2376_v60 = vmax.f32 %v1802_v47, 0.0  ;;  %2099 = vmatmul.mubr.bf16.gmra.mrb[156].mxu0 %v4052_v14  ;;  %2292 = vmatmul.mubr.bf16.gmra.mrb[156].mxu1 %v4052_v14 }
 0x2f9   : > { %v2602_v61 = vmax.f32 %v2601_v32, %v2367_v52  ;;  %v2676_v62 = vmax.f32 %v2675_v33, %v2369_v53  ;;  %v2375_v63 = vmax.f32 %v1611_v55, 0.0  ;;  %v2377_v0 = vmax.f32 %v1804_v56, 0.0 }
 0x2fa   : > { %v2566_v2 = vmax.f32 %v2565_v57, %v2374_v49  ;;  %v2640_v5 = vmax.f32 %v2639_v59, %v2376_v60 }
 0x2fb   : > { %v2603_v6 = vmax.f32 %v2602_v61, %v2375_v63  ;;  %v2677_v1 = vmax.f32 %v2676_v62, %v2377_v0  ;;  %v1614_v7 = vpop.f32.mrb[52].mxu0  ;;  %v1807_v8 = vpop.f32.mrb[52].mxu1 }
 0x2fc   : > { %v1615_v9 = vadd.f32 %v1614_v7, %v4134_v4  ;;  %v1808_v11 = vadd.f32 %v1807_v8, %v4136_v16  ;;  %v1616_v12 = vpop.f32.mrb[53].mxu0  ;;  %v1809_v13 = vpop.f32.mrb[53].mxu1 }
 0x2fd   : > { %v1617_v24 = vadd.f32 %v1616_v12, %v4138_v17  ;;  %v1810_v14 = vadd.f32 %v1809_v13, %v4140_v18  ;;  %v1618_v54 = vpop.f32.mrb[54].mxu0  ;;  %v1811_v3 = vpop.f32.mrb[54].mxu1 }
 0x2fe   : > { %v2382_v19 = vmax.f32 %v1615_v9, 0.0  ;;  %v2384_v35 = vmax.f32 %v1808_v11, 0.0  ;;  %v1619_v51 = vadd.f32 %v1618_v54, %v4134_v4  ;;  %v1812_v20 = vadd.f32 %v1811_v3, %v4136_v16  ;;  %v1620_v21 = vpop.f32.mrb[55].mxu0  ;;  %v1813_v22 = vpop.f32.mrb[55].mxu1 }
 0x2ff   : > { %v2383_v23 = vmax.f32 %v1617_v24, 0.0  ;;  %v2385_v25 = vmax.f32 %v1810_v14, 0.0  ;;  %v1621_v26 = vadd.f32 %v1620_v21, %v4138_v17  ;;  %v1814_v27 = vadd.f32 %v1813_v22, %v4140_v18 }
 0x300   : > { %v2567_v28 = vmax.f32 %v2566_v2, %v2382_v19  ;;  %v2641_v29 = vmax.f32 %v2640_v5, %v2384_v35  ;;  %v2390_v30 = vmax.f32 %v1619_v51, 0.0  ;;  %v2392_v31 = vmax.f32 %v1812_v20, 0.0 }
 0x301   : > { %v2604_v58 = vmax.f32 %v2603_v6, %v2383_v23  ;;  %v2678_v32 = vmax.f32 %v2677_v1, %v2385_v25  ;;  %v2391_v33 = vmax.f32 %v1621_v26, 0.0  ;;  %v2393_v34 = vmax.f32 %v1814_v27, 0.0 }
 0x302   : > { %v2568_v36 = vmax.f32 %v2567_v28, %v2390_v30  ;;  %v2642_v37 = vmax.f32 %v2641_v29, %v2392_v31 }
 0x303   : > { %v2605_v39 = vmax.f32 %v2604_v58, %v2391_v33  ;;  %v2679_v40 = vmax.f32 %v2678_v32, %v2393_v34  ;;  %v1624_v10 = vpop.f32.mrb[56].mxu0  ;;  %v1817_v41 = vpop.f32.mrb[56].mxu1 }
 0x304   : > { %v1625_v42 = vadd.f32 %v1624_v10, %v4134_v4  ;;  %v1818_v43 = vadd.f32 %v1817_v41, %v4136_v16  ;;  %v1626_v44 = vpop.f32.mrb[57].mxu0  ;;  %v1819_v45 = vpop.f32.mrb[57].mxu1 }
 0x305   : > { %v1627_v15 = vadd.f32 %v1626_v44, %v4138_v17  ;;  %v1820_v46 = vadd.f32 %v1819_v45, %v4140_v18  ;;  %v1628_v47 = vpop.f32.mrb[58].mxu0  ;;  %v1821_v48 = vpop.f32.mrb[58].mxu1 }
 0x306   : > { %v2398_v50 = vmax.f32 %v1625_v42, 0.0  ;;  %v2400_v52 = vmax.f32 %v1818_v43, 0.0  ;;  %v1629_v53 = vadd.f32 %v1628_v47, %v4134_v4  ;;  %v1822_v55 = vadd.f32 %v1821_v48, %v4136_v16  ;;  %v1630_v56 = vpop.f32.mrb[59].mxu0  ;;  %v1823_v57 = vpop.f32.mrb[59].mxu1 }
 0x307   : > { %v2399_v59 = vmax.f32 %v1627_v15, 0.0  ;;  %v2401_v49 = vmax.f32 %v1820_v46, 0.0  ;;  %v1631_v60 = vadd.f32 %v1630_v56, %v4138_v17  ;;  %v1824_v61 = vadd.f32 %v1823_v57, %v4140_v18 }
 0x308   : > { %v2569_v62 = vmax.f32 %v2568_v36, %v2398_v50  ;;  %v2643_v63 = vmax.f32 %v2642_v37, %v2400_v52  ;;  %v2406_v0 = vmax.f32 %v1629_v53, 0.0  ;;  %v2408_v2 = vmax.f32 %v1822_v55, 0.0 }
 0x309   : > { %v2606_v5 = vmax.f32 %v2605_v39, %v2399_v59  ;;  %v2680_v6 = vmax.f32 %v2679_v40, %v2401_v49  ;;  %v2407_v1 = vmax.f32 %v1631_v60, 0.0  ;;  %v2409_v7 = vmax.f32 %v1824_v61, 0.0 }
 0x30a   : > { %v2570_v8 = vmax.f32 %v2569_v62, %v2406_v0  ;;  %v2644_v9 = vmax.f32 %v2643_v63, %v2408_v2 }
 0x30b   : > { %v2607_v11 = vmax.f32 %v2606_v5, %v2407_v1  ;;  %v2681_v12 = vmax.f32 %v2680_v6, %v2409_v7  ;;  %v1634_v13 = vpop.f32.mrb[60].mxu0  ;;  %v1827_v24 = vpop.f32.mrb[60].mxu1 }
 0x30c   : > { %v1635_v14 = vadd.f32 %v1634_v13, %v4134_v4  ;;  %v1828_v54 = vadd.f32 %v1827_v24, %v4136_v16  ;;  %v1636_v3 = vpop.f32.mrb[61].mxu0  ;;  %v1829_v19 = vpop.f32.mrb[61].mxu1 }
 0x30d   : > { %v1637_v35 = vadd.f32 %v1636_v3, %v4138_v17  ;;  %v1830_v51 = vadd.f32 %v1829_v19, %v4140_v18  ;;  %v1638_v20 = vpop.f32.mrb[62].mxu0  ;;  %v1831_v21 = vpop.f32.mrb[62].mxu1 }
 0x30e   : > { %v2414_v22 = vmax.f32 %v1635_v14, 0.0  ;;  %v2416_v23 = vmax.f32 %v1828_v54, 0.0  ;;  %v1639_v25 = vadd.f32 %v1638_v20, %v4134_v4  ;;  %v1832_v26 = vadd.f32 %v1831_v21, %v4136_v16  ;;  %v1640_v27 = vpop.f32.mrb[63].mxu0  ;;  %v1833_v28 = vpop.f32.mrb[63].mxu1 }
 0x30f   : > { %v2415_v29 = vmax.f32 %v1637_v35, 0.0  ;;  %v2417_v30 = vmax.f32 %v1830_v51, 0.0  ;;  %v1641_v31 = vadd.f32 %v1640_v27, %v4138_v17  ;;  %v1834_v58 = vadd.f32 %v1833_v28, %v4140_v18 }
 0x310   : > { %v2571_v32 = vmax.f32 %v2570_v8, %v2414_v22  ;;  %v2645_v33 = vmax.f32 %v2644_v9, %v2416_v23  ;;  %v2422_v34 = vmax.f32 %v1639_v25, 0.0  ;;  %v2424_v36 = vmax.f32 %v1832_v26, 0.0 }
 0x311   : > { %v2608_v37 = vmax.f32 %v2607_v11, %v2415_v29  ;;  %v2682_v39 = vmax.f32 %v2681_v12, %v2417_v30  ;;  %v2423_v40 = vmax.f32 %v1641_v31, 0.0  ;;  %v2425_v10 = vmax.f32 %v1834_v58, 0.0 }
 0x312   : > { %v2572_v41 = vmax.f32 %v2571_v32, %v2422_v34  ;;  %v2646_v42 = vmax.f32 %v2645_v33, %v2424_v36 }
 0x313   : > { %v2609_v43 = vmax.f32 %v2608_v37, %v2423_v40  ;;  %v2683_v44 = vmax.f32 %v2682_v39, %v2425_v10  ;;  %v1644_v45 = vpop.f32.mrb[64].mxu0  ;;  %v1837_v15 = vpop.f32.mrb[64].mxu1 }
 0x314   : > { %v1645_v46 = vadd.f32 %v1644_v45, %v4134_v4  ;;  %v1838_v47 = vadd.f32 %v1837_v15, %v4136_v16  ;;  %v1646_v48 = vpop.f32.mrb[65].mxu0  ;;  %v1839_v50 = vpop.f32.mrb[65].mxu1 }
 0x315   : > { %v1647_v52 = vadd.f32 %v1646_v48, %v4138_v17  ;;  %v1840_v53 = vadd.f32 %v1839_v50, %v4140_v18  ;;  %v1648_v55 = vpop.f32.mrb[66].mxu0  ;;  %v1841_v56 = vpop.f32.mrb[66].mxu1 }
 0x316   : > { %v2430_v57 = vmax.f32 %v1645_v46, 0.0  ;;  %v2432_v59 = vmax.f32 %v1838_v47, 0.0  ;;  %v1649_v49 = vadd.f32 %v1648_v55, %v4134_v4  ;;  %v1842_v60 = vadd.f32 %v1841_v56, %v4136_v16  ;;  %v1650_v61 = vpop.f32.mrb[67].mxu0  ;;  %v1843_v62 = vpop.f32.mrb[67].mxu1 }
 0x317   : > { %v2431_v63 = vmax.f32 %v1647_v52, 0.0  ;;  %v2433_v0 = vmax.f32 %v1840_v53, 0.0  ;;  %v1651_v2 = vadd.f32 %v1650_v61, %v4138_v17  ;;  %v1844_v5 = vadd.f32 %v1843_v62, %v4140_v18 }
 0x318   : > { %v2573_v6 = vmax.f32 %v2572_v41, %v2430_v57  ;;  %v2647_v1 = vmax.f32 %v2646_v42, %v2432_v59  ;;  %v2438_v7 = vmax.f32 %v1649_v49, 0.0  ;;  %v2440_v8 = vmax.f32 %v1842_v60, 0.0 }
 0x319   : > { %v2610_v9 = vmax.f32 %v2609_v43, %v2431_v63  ;;  %v2684_v11 = vmax.f32 %v2683_v44, %v2433_v0  ;;  %v2439_v12 = vmax.f32 %v1651_v2, 0.0  ;;  %v2441_v13 = vmax.f32 %v1844_v5, 0.0 }
 0x31a   : > { %v2574_v24 = vmax.f32 %v2573_v6, %v2438_v7  ;;  %v2648_v14 = vmax.f32 %v2647_v1, %v2440_v8 }
 0x31b   : > { %v2611_v54 = vmax.f32 %v2610_v9, %v2439_v12  ;;  %v2685_v3 = vmax.f32 %v2684_v11, %v2441_v13  ;;  %v1654_v19 = vpop.f32.mrb[68].mxu0  ;;  %v1847_v35 = vpop.f32.mrb[68].mxu1 }
 0x31c   : > { %v1655_v51 = vadd.f32 %v1654_v19, %v4134_v4  ;;  %v1848_v20 = vadd.f32 %v1847_v35, %v4136_v16  ;;  %v1656_v21 = vpop.f32.mrb[69].mxu0  ;;  %v1849_v22 = vpop.f32.mrb[69].mxu1 }
 0x31d   : > { %v1657_v23 = vadd.f32 %v1656_v21, %v4138_v17  ;;  %v1850_v25 = vadd.f32 %v1849_v22, %v4140_v18  ;;  %v1658_v26 = vpop.f32.mrb[70].mxu0  ;;  %v1851_v27 = vpop.f32.mrb[70].mxu1 }
 0x31e   : > { %v2446_v28 = vmax.f32 %v1655_v51, 0.0  ;;  %v2448_v29 = vmax.f32 %v1848_v20, 0.0  ;;  %v1659_v30 = vadd.f32 %v1658_v26, %v4134_v4  ;;  %v1852_v31 = vadd.f32 %v1851_v27, %v4136_v16  ;;  %v1660_v58 = vpop.f32.mrb[71].mxu0  ;;  %v1853_v32 = vpop.f32.mrb[71].mxu1 }
 0x31f   : > { %v2447_v33 = vmax.f32 %v1657_v23, 0.0  ;;  %v2449_v34 = vmax.f32 %v1850_v25, 0.0  ;;  %v1661_v36 = vadd.f32 %v1660_v58, %v4138_v17  ;;  %v1854_v37 = vadd.f32 %v1853_v32, %v4140_v18 }
 0x320   : > { %v2575_v39 = vmax.f32 %v2574_v24, %v2446_v28  ;;  %v2649_v40 = vmax.f32 %v2648_v14, %v2448_v29  ;;  %v2454_v10 = vmax.f32 %v1659_v30, 0.0  ;;  %v2456_v41 = vmax.f32 %v1852_v31, 0.0 }
 0x321   : > { %v2612_v42 = vmax.f32 %v2611_v54, %v2447_v33  ;;  %v2686_v43 = vmax.f32 %v2685_v3, %v2449_v34  ;;  %v2455_v44 = vmax.f32 %v1661_v36, 0.0  ;;  %v2457_v45 = vmax.f32 %v1854_v37, 0.0 }
 0x322   : > { %v2576_v15 = vmax.f32 %v2575_v39, %v2454_v10  ;;  %v2650_v46 = vmax.f32 %v2649_v40, %v2456_v41 }
 0x323   : > { %v2613_v47 = vmax.f32 %v2612_v42, %v2455_v44  ;;  %v2687_v48 = vmax.f32 %v2686_v43, %v2457_v45  ;;  %v1664_v50 = vpop.f32.mrb[72].mxu0  ;;  %v1857_v52 = vpop.f32.mrb[72].mxu1 }
 0x324   : > { %v1665_v53 = vadd.f32 %v1664_v50, %v4134_v4  ;;  %v1858_v55 = vadd.f32 %v1857_v52, %v4136_v16  ;;  %v1666_v56 = vpop.f32.mrb[73].mxu0  ;;  %v1859_v57 = vpop.f32.mrb[73].mxu1 }
 0x325   : > { %v1667_v59 = vadd.f32 %v1666_v56, %v4138_v17  ;;  %v1860_v49 = vadd.f32 %v1859_v57, %v4140_v18  ;;  %v1668_v60 = vpop.f32.mrb[74].mxu0  ;;  %v1861_v61 = vpop.f32.mrb[74].mxu1 }
 0x326   : > { %v2462_v62 = vmax.f32 %v1665_v53, 0.0  ;;  %v2464_v63 = vmax.f32 %v1858_v55, 0.0  ;;  %v1669_v0 = vadd.f32 %v1668_v60, %v4134_v4  ;;  %v1862_v2 = vadd.f32 %v1861_v61, %v4136_v16  ;;  %v1670_v5 = vpop.f32.mrb[75].mxu0  ;;  %v1863_v6 = vpop.f32.mrb[75].mxu1 }
 0x327   : > { %v2463_v1 = vmax.f32 %v1667_v59, 0.0  ;;  %v2465_v7 = vmax.f32 %v1860_v49, 0.0  ;;  %v1671_v8 = vadd.f32 %v1670_v5, %v4138_v17  ;;  %v1864_v9 = vadd.f32 %v1863_v6, %v4140_v18 }
 0x328   : > { %v2577_v11 = vmax.f32 %v2576_v15, %v2462_v62  ;;  %v2651_v12 = vmax.f32 %v2650_v46, %v2464_v63  ;;  %v2470_v13 = vmax.f32 %v1669_v0, 0.0  ;;  %v2472_v24 = vmax.f32 %v1862_v2, 0.0 }
 0x329   : > { %v2614_v14 = vmax.f32 %v2613_v47, %v2463_v1  ;;  %v2688_v54 = vmax.f32 %v2687_v48, %v2465_v7  ;;  %v2471_v3 = vmax.f32 %v1671_v8, 0.0  ;;  %v2473_v19 = vmax.f32 %v1864_v9, 0.0 }
 0x32a   : > { %v2578_v35 = vmax.f32 %v2577_v11, %v2470_v13  ;;  %v2652_v51 = vmax.f32 %v2651_v12, %v2472_v24 }
 0x32b   : > { %v2615_v20 = vmax.f32 %v2614_v14, %v2471_v3  ;;  %v2689_v21 = vmax.f32 %v2688_v54, %v2473_v19  ;;  %v1674_v22 = vpop.f32.mrb[76].mxu0  ;;  %v1867_v23 = vpop.f32.mrb[76].mxu1 }
 0x32c   : > { %v1675_v25 = vadd.f32 %v1674_v22, %v4134_v4  ;;  %v1868_v26 = vadd.f32 %v1867_v23, %v4136_v16  ;;  %v1676_v27 = vpop.f32.mrb[77].mxu0  ;;  %v1869_v28 = vpop.f32.mrb[77].mxu1 }
 0x32d   : > { %v1677_v29 = vadd.f32 %v1676_v27, %v4138_v17  ;;  %v1870_v30 = vadd.f32 %v1869_v28, %v4140_v18  ;;  %v1678_v31 = vpop.f32.mrb[78].mxu0  ;;  %v1871_v58 = vpop.f32.mrb[78].mxu1 }
 0x32e   : > { %v2478_v32 = vmax.f32 %v1675_v25, 0.0  ;;  %v2480_v33 = vmax.f32 %v1868_v26, 0.0  ;;  %v1679_v34 = vadd.f32 %v1678_v31, %v4134_v4  ;;  %v1872_v36 = vadd.f32 %v1871_v58, %v4136_v16  ;;  %v1680_v37 = vpop.f32.mrb[79].mxu0  ;;  %v1873_v39 = vpop.f32.mrb[79].mxu1 }
 0x32f   : > { %v2479_v40 = vmax.f32 %v1677_v29, 0.0  ;;  %v2481_v10 = vmax.f32 %v1870_v30, 0.0  ;;  %v1681_v41 = vadd.f32 %v1680_v37, %v4138_v17  ;;  %v1874_v42 = vadd.f32 %v1873_v39, %v4140_v18 }
 0x330   : > { %v2579_v43 = vmax.f32 %v2578_v35, %v2478_v32  ;;  %v2653_v44 = vmax.f32 %v2652_v51, %v2480_v33  ;;  %v2486_v45 = vmax.f32 %v1679_v34, 0.0  ;;  %v2488_v15 = vmax.f32 %v1872_v36, 0.0 }
 0x331   : > { %v2616_v46 = vmax.f32 %v2615_v20, %v2479_v40  ;;  %v2690_v47 = vmax.f32 %v2689_v21, %v2481_v10  ;;  %v2487_v48 = vmax.f32 %v1681_v41, 0.0  ;;  %v2489_v50 = vmax.f32 %v1874_v42, 0.0 }
 0x332   : > { %v2580_v52 = vmax.f32 %v2579_v43, %v2486_v45  ;;  %v2654_v53 = vmax.f32 %v2653_v44, %v2488_v15 }
 0x333   : > { %v2617_v55 = vmax.f32 %v2616_v46, %v2487_v48  ;;  %v2691_v56 = vmax.f32 %v2690_v47, %v2489_v50  ;;  %v1684_v57 = vpop.f32.mrb[80].mxu0  ;;  %v1877_v59 = vpop.f32.mrb[80].mxu1 }
 0x334   : > { %v1685_v49 = vadd.f32 %v1684_v57, %v4134_v4  ;;  %v1878_v60 = vadd.f32 %v1877_v59, %v4136_v16  ;;  %v1686_v61 = vpop.f32.mrb[81].mxu0  ;;  %v1879_v62 = vpop.f32.mrb[81].mxu1 }
 0x335   : > { %v1687_v63 = vadd.f32 %v1686_v61, %v4138_v17  ;;  %v1880_v0 = vadd.f32 %v1879_v62, %v4140_v18  ;;  %v1688_v2 = vpop.f32.mrb[82].mxu0  ;;  %v1881_v5 = vpop.f32.mrb[82].mxu1 }
 0x336   : > { %v2494_v6 = vmax.f32 %v1685_v49, 0.0  ;;  %v2496_v1 = vmax.f32 %v1878_v60, 0.0  ;;  %v1689_v7 = vadd.f32 %v1688_v2, %v4134_v4  ;;  %v1882_v8 = vadd.f32 %v1881_v5, %v4136_v16  ;;  %v1690_v9 = vpop.f32.mrb[83].mxu0  ;;  %v1883_v11 = vpop.f32.mrb[83].mxu1 }
 0x337   : > { %v2495_v12 = vmax.f32 %v1687_v63, 0.0  ;;  %v2497_v13 = vmax.f32 %v1880_v0, 0.0  ;;  %v1691_v24 = vadd.f32 %v1690_v9, %v4138_v17  ;;  %v1884_v14 = vadd.f32 %v1883_v11, %v4140_v18 }
 0x338   : > { %v2581_v54 = vmax.f32 %v2580_v52, %v2494_v6  ;;  %v2655_v3 = vmax.f32 %v2654_v53, %v2496_v1  ;;  %v2502_v19 = vmax.f32 %v1689_v7, 0.0  ;;  %v2504_v35 = vmax.f32 %v1882_v8, 0.0 }
 0x339   : > { %v2618_v51 = vmax.f32 %v2617_v55, %v2495_v12  ;;  %v2692_v20 = vmax.f32 %v2691_v56, %v2497_v13  ;;  %v2503_v21 = vmax.f32 %v1691_v24, 0.0  ;;  %v2505_v22 = vmax.f32 %v1884_v14, 0.0 }
 0x33a   : > { %v2582_v23 = vmax.f32 %v2581_v54, %v2502_v19  ;;  %v2656_v25 = vmax.f32 %v2655_v3, %v2504_v35  ;;  %v1188_v0 = vsub.s32 4, %v4124_v38  ;;  %v1196_v7 = vsub.s32 6, %v4124_v38 }
 0x33b   : > { %v2619_v26 = vmax.f32 %v2618_v51, %v2503_v21  ;;  %v2693_v27 = vmax.f32 %v2692_v20, %v2505_v22  ;;  %v1694_v28 = vpop.f32.mrb[84].mxu0  ;;  %v1887_v29 = vpop.f32.mrb[84].mxu1  ;;  %v1192_v8 = vsub.s32 5, %v4124_v38  ;;  %v3457_v24 = vmov 1966171168  }
 0x33c   : > { %v1695_v30 = vadd.f32 %v1694_v28, %v4134_v4  ;;  %v1888_v31 = vadd.f32 %v1887_v29, %v4136_v16  ;;  %v1696_v58 = vpop.f32.mrb[85].mxu0  ;;  %v1889_v32 = vpop.f32.mrb[85].mxu1  ;;  %v2867_v14 = vunpack.c.l.s4 %v3457_v24  ;;  %v1200_v54 = vsub.s32 7, %v4124_v38 }
 0x33d   : > { %v1697_v33 = vadd.f32 %v1696_v58, %v4138_v17  ;;  %v1890_v34 = vadd.f32 %v1889_v32, %v4140_v18  ;;  %v1698_v36 = vpop.f32.mrb[86].mxu0  ;;  %v1891_v37 = vpop.f32.mrb[86].mxu1 }
 0x33e   : > { %v2510_v39 = vmax.f32 %v1695_v30, 0.0  ;;  %v2512_v40 = vmax.f32 %v1888_v31, 0.0  ;;  %v1699_v10 = vadd.f32 %v1698_v36, %v4134_v4  ;;  %v1892_v41 = vadd.f32 %v1891_v37, %v4136_v16  ;;  %v1700_v42 = vpop.f32.mrb[87].mxu0  ;;  %v1893_v43 = vpop.f32.mrb[87].mxu1 }
 0x33f   : > { %v2511_v44 = vmax.f32 %v1697_v33, 0.0  ;;  %v2513_v45 = vmax.f32 %v1890_v34, 0.0  ;;  %v1701_v15 = vadd.f32 %v1700_v42, %v4138_v17  ;;  %v1894_v46 = vadd.f32 %v1893_v43, %v4140_v18 }
 0x340   : > { %v2583_v47 = vmax.f32 %v2582_v23, %v2510_v39  ;;  %v2657_v48 = vmax.f32 %v2656_v25, %v2512_v40  ;;  %v2518_v50 = vmax.f32 %v1699_v10, 0.0  ;;  %v2520_v52 = vmax.f32 %v1892_v41, 0.0  ;;  %v3381_v41 = vld [vmem:[#allocation4] sm:$0xff] }
 0x341   : > { %v2620_v53 = vmax.f32 %v2619_v26, %v2511_v44  ;;  %v2694_v55 = vmax.f32 %v2693_v27, %v2513_v45  ;;  %v2519_v56 = vmax.f32 %v1701_v15, 0.0  ;;  %v2521_v57 = vmax.f32 %v1894_v46, 0.0 }
 0x342   : > { %v2584_v59 = vmax.f32 %v2583_v47, %v2518_v50  ;;  %v2658_v49 = vmax.f32 %v2657_v48, %v2520_v52  ;;  %v4286_v42 = vrot.slane %v3381_v41, %v1188_v0  ;;  %v4290_v46 = vrot.slane %v3381_v41, %v1196_v7 }
 0x343   : > { %v2621_v60 = vmax.f32 %v2620_v53, %v2519_v56  ;;  %v2695_v61 = vmax.f32 %v2694_v55, %v2521_v57  ;;  %v1704_v62 = vpop.f32.mrb[88].mxu0  ;;  %v1897_v63 = vpop.f32.mrb[88].mxu1  ;;  %v4292_v47 = vrot.slane %v3381_v41, %v1192_v8  ;;  %v2868_v55 = vunpack.c.0.s8 %v2867_v14 }
 0x344   : > { %v1705_v2 = vadd.f32 %v1704_v62, %v4134_v4  ;;  %v1898_v5 = vadd.f32 %v1897_v63, %v4136_v16  ;;  %v1706_v6 = vpop.f32.mrb[89].mxu0  ;;  %v1899_v1 = vpop.f32.mrb[89].mxu1  ;;  %v4296_v56 = vrot.slane %v3381_v41, %v1200_v54 }
 0x345   : > { %v1707_v9 = vadd.f32 %v1706_v6, %v4138_v17  ;;  %v1900_v11 = vadd.f32 %v1899_v1, %v4140_v18  ;;  %v1708_v12 = vpop.f32.mrb[90].mxu0  ;;  %v1901_v13 = vpop.f32.mrb[90].mxu1 }
 0x346   : > { %v2526_v3 = vmax.f32 %v1705_v2, 0.0  ;;  %v2528_v19 = vmax.f32 %v1898_v5, 0.0  ;;  %v1709_v35 = vadd.f32 %v1708_v12, %v4134_v4  ;;  %v1902_v51 = vadd.f32 %v1901_v13, %v4136_v16  ;;  %v1710_v20 = vpop.f32.mrb[91].mxu0  ;;  %v1903_v21 = vpop.f32.mrb[91].mxu1 }
 0x347   : > { %v2527_v22 = vmax.f32 %v1707_v9, 0.0  ;;  %v2529_v23 = vmax.f32 %v1900_v11, 0.0  ;;  %v1711_v25 = vadd.f32 %v1710_v20, %v4138_v17  ;;  %v1904_v26 = vadd.f32 %v1903_v21, %v4140_v18 }
 0x348   : > { %v2585_v27 = vmax.f32 %v2584_v59, %v2526_v3  ;;  %v2659_v28 = vmax.f32 %v2658_v49, %v2528_v19  ;;  %v2534_v29 = vmax.f32 %v1709_v35, 0.0  ;;  %v2536_v30 = vmax.f32 %v1902_v51, 0.0 }
 0x349   : > { %v2622_v31 = vmax.f32 %v2621_v60, %v2527_v22  ;;  %v2696_v58 = vmax.f32 %v2695_v61, %v2529_v23  ;;  %v2535_v32 = vmax.f32 %v1711_v25, 0.0  ;;  %v2537_v33 = vmax.f32 %v1904_v26, 0.0 }
 0x34a   : > { %v2586_v34 = vmax.f32 %v2585_v27, %v2534_v29  ;;  %v2660_v36 = vmax.f32 %v2659_v28, %v2536_v30 }
 0x34b   : > { %v2623_v37 = vmax.f32 %v2622_v31, %v2535_v32  ;;  %v2697_v39 = vmax.f32 %v2696_v58, %v2537_v33  ;;  %v1714_v40 = vpop.f32.mrb[92].mxu0  ;;  %v1907_v10 = vpop.f32.mrb[92].mxu1 }
 0x34c   : > { %v1715_v43 = vadd.f32 %v1714_v40, %v4134_v4  ;;  %v1908_v44 = vadd.f32 %v1907_v10, %v4136_v16  ;;  %v1716_v45 = vpop.f32.mrb[93].mxu0  ;;  %v1909_v15 = vpop.f32.mrb[93].mxu1 }
 0x34d   : > { %v1717_v48 = vadd.f32 %v1716_v45, %v4138_v17  ;;  %v1910_v50 = vadd.f32 %v1909_v15, %v4140_v18  ;;  %v1718_v52 = vpop.f32.mrb[94].mxu0  ;;  %v1911_v53 = vpop.f32.mrb[94].mxu1 }
 0x34e   : > { %v2542_v57 = vmax.f32 %v1715_v43, 0.0  ;;  %v2544_v59 = vmax.f32 %v1908_v44, 0.0  ;;  %v1719_v49 = vadd.f32 %v1718_v52, %v4134_v4  ;;  %v1912_v60 = vadd.f32 %v1911_v53, %v4136_v16  ;;  %v1720_v61 = vpop.f32.mrb[95].mxu0  ;;  %v1913_v62 = vpop.f32.mrb[95].mxu1 }
 0x34f   : > { %v2543_v63 = vmax.f32 %v1717_v48, 0.0  ;;  %v2545_v0 = vmax.f32 %v1910_v50, 0.0  ;;  %v1721_v2 = vadd.f32 %v1720_v61, %v4138_v17  ;;  %v1914_v5 = vadd.f32 %v1913_v62, %v4140_v18 }
 0x350   : > { %v2587_v6 = vmax.f32 %v2586_v34, %v2542_v57  ;;  %v2661_v1 = vmax.f32 %v2660_v36, %v2544_v59  ;;  %v2550_v7 = vmax.f32 %v1719_v49, 0.0  ;;  %v2552_v8 = vmax.f32 %v1912_v60, 0.0 }
 0x351   : > { %v2624_v9 = vmax.f32 %v2623_v37, %v2543_v63  ;;  %v2698_v11 = vmax.f32 %v2697_v39, %v2545_v0  ;;  %v2551_v12 = vmax.f32 %v1721_v2, 0.0  ;;  %v2553_v13 = vmax.f32 %v1914_v5, 0.0 }
 0x352   : > { %v2588_v24 = vmax.f32 %v2587_v6, %v2550_v7  ;;  %v2662_v4 = vmax.f32 %v2661_v1, %v2552_v8  ;;  %v4303_v16 = vsub.s32 %v2868_v55, %v4124_v38 }
 0x353   : > { %v2625_v14 = vmax.f32 %v2624_v9, %v2551_v12  ;;  %v2699_v54 = vmax.f32 %v2698_v11, %v2553_v13  ;;  %v1950_v3 = vpop.f32.mrb[96].mxu0  ;;  %v2143_v19 = vpop.f32.mrb[96].mxu1 }
 0x354   : > { %v2589_v17 = vrot.slane %v2588_v24, 4  ;;  %v2663_v35 = vrot.slane %v2662_v4, 4  ;;  %v1951_v18 = vadd.f32 %v1950_v3, %v4286_v42  ;;  %v2144_v51 = vadd.f32 %v2143_v19, %v4290_v46  ;;  %v1952_v20 = vpop.f32.mrb[97].mxu0  ;;  %v2145_v21 = vpop.f32.mrb[97].mxu1 }
 0x355   : > { %v2626_v22 = vrot.slane %v2625_v14, 4  ;;  %v2700_v23 = vrot.slane %v2699_v54, 4  ;;  %v1953_v25 = vadd.f32 %v1952_v20, %v4292_v47  ;;  %v2146_v26 = vadd.f32 %v2145_v21, %v4296_v56  ;;  %v1954_v27 = vpop.f32.mrb[98].mxu0  ;;  %v2147_v38 = vpop.f32.mrb[98].mxu1 }
 0x356   : > { %v2590_v28 = vmax.f32 %v2588_v24, %v2589_v17  ;;  %v2664_v29 = vmax.f32 %v2662_v4, %v2663_v35  ;;  %v2306_v30 = vmax.f32 %v1951_v18, 0.0  ;;  %v2308_v31 = vmax.f32 %v2144_v51, 0.0  ;;  %v1956_v58 = vpop.f32.mrb[99].mxu0  ;;  %v2149_v32 = vpop.f32.mrb[99].mxu1 }
 0x357   : > { %v2627_v33 = vmax.f32 %v2625_v14, %v2626_v22  ;;  %v2701_v34 = vmax.f32 %v2699_v54, %v2700_v23  ;;  %v2307_v36 = vmax.f32 %v1953_v25, 0.0  ;;  %v2309_v37 = vmax.f32 %v2146_v26, 0.0 }
 0x358   : > { %v2591_v39 = vrot.slane %v2590_v28, 2  ;;  %v2665_v40 = vrot.slane %v2664_v29, 2  ;;  %v1955_v10 = vadd.f32 %v1954_v27, %v4286_v42  ;;  %v2148_v41 = vadd.f32 %v2147_v38, %v4290_v46 }
 0x359   : > { %v2628_v43 = vrot.slane %v2627_v33, 2  ;;  %v2702_v44 = vrot.slane %v2701_v34, 2  ;;  %v1957_v45 = vadd.f32 %v1956_v58, %v4292_v47  ;;  %v2150_v15 = vadd.f32 %v2149_v32, %v4296_v56 }
 0x35a   : > { %v2592_v48 = vmax.f32 %v2590_v28, %v2591_v39  ;;  %v2666_v50 = vmax.f32 %v2664_v29, %v2665_v40  ;;  %v2314_v52 = vmax.f32 %v1955_v10, 0.0  ;;  %v2316_v53 = vmax.f32 %v2148_v41, 0.0 }
 0x35b   : > { %v2629_v55 = vmax.f32 %v2627_v33, %v2628_v43  ;;  %v2703_v57 = vmax.f32 %v2701_v34, %v2702_v44  ;;  %v2315_v59 = vmax.f32 %v1957_v45, 0.0  ;;  %v2317_v49 = vmax.f32 %v2150_v15, 0.0  ;;  %v1960_v60 = vpop.f32.mrb[100].mxu0  ;;  %v2153_v61 = vpop.f32.mrb[100].mxu1 }
 0x35c   : > { %v2593_v62 = vrot.slane %v2592_v48, 1  ;;  %v2667_v63 = vrot.slane %v2666_v50, 1  ;;  %v2706_v0 = vmax.f32 %v2306_v30, %v2314_v52  ;;  %v2780_v2 = vmax.f32 %v2308_v31, %v2316_v53  ;;  %v1962_v5 = vpop.f32.mrb[101].mxu0  ;;  %v2155_v6 = vpop.f32.mrb[101].mxu1 }
 0x35d   : > { %v2630_v1 = vrot.slane %v2629_v55, 1  ;;  %v2704_v7 = vrot.slane %v2703_v57, 1  ;;  %v2743_v8 = vmax.f32 %v2307_v36, %v2315_v59  ;;  %v2817_v9 = vmax.f32 %v2309_v37, %v2317_v49  ;;  %v1964_v11 = vpop.f32.mrb[102].mxu0  ;;  %v2157_v12 = vpop.f32.mrb[102].mxu1 }
 0x35e   : > { %v2594_v13 = vmax.f32 %v2592_v48, %v2593_v62  ;;  %v2668_v24 = vmax.f32 %v2666_v50, %v2667_v63  ;;  %v1961_v4 = vadd.f32 %v1960_v60, %v4286_v42  ;;  %v2154_v14 = vadd.f32 %v2153_v61, %v4290_v46  ;;  %v1966_v54 = vpop.f32.mrb[103].mxu0  ;;  %v2159_v3 = vpop.f32.mrb[103].mxu1 }
 0x35f   : > { %v2631_v19 = vmax.f32 %v2629_v55, %v2630_v1  ;;  %v2705_v17 = vmax.f32 %v2703_v57, %v2704_v7  ;;  %v1963_v35 = vadd.f32 %v1962_v5, %v4292_v47  ;;  %v2156_v18 = vadd.f32 %v2155_v6, %v4296_v56 }
 0x360   : > { %v2322_v51 = vmax.f32 %v1961_v4, 0.0  ;;  %v2324_v20 = vmax.f32 %v2154_v14, 0.0  ;;  %v1965_v21 = vadd.f32 %v1964_v11, %v4286_v42  ;;  %v2158_v22 = vadd.f32 %v2157_v12, %v4290_v46 }
 0x361   : > { %v2862_v23 = vcombine.low %v2594_v13, %v2631_v19  ;;  %v2863_v25 = vcombine.low %v2668_v24, %v2705_v17  ;;  %v2323_v26 = vmax.f32 %v1963_v35, 0.0  ;;  %v2325_v27 = vmax.f32 %v2156_v18, 0.0 }
 0x362   : > { %v2707_v38 = vmax.f32 %v2706_v0, %v2322_v51  ;;  %v2781_v28 = vmax.f32 %v2780_v2, %v2324_v20  ;;  %v2330_v29 = vmax.f32 %v1965_v21, 0.0  ;;  %v2332_v30 = vmax.f32 %v2158_v22, 0.0 }
 0x363   : > { %v4320_v31 = vrot.slane %v2862_v23, %v4303_v16  ;;  %v4323_v58 = vrot.slane %v2863_v25, %v4303_v16  ;;  %v2744_v32 = vmax.f32 %v2743_v8, %v2323_v26  ;;  %v2818_v33 = vmax.f32 %v2817_v9, %v2325_v27  ;;  %v1970_v34 = vpop.f32.mrb[104].mxu0  ;;  %v2163_v36 = vpop.f32.mrb[104].mxu1 }
 0x364   : > { %v2708_v37 = vmax.f32 %v2707_v38, %v2330_v29  ;;  %v2782_v39 = vmax.f32 %v2781_v28, %v2332_v30  ;;  %v1967_v40 = vadd.f32 %v1966_v54, %v4292_v47  ;;  %v2160_v10 = vadd.f32 %v2159_v3, %v4296_v56  ;;  %v1972_v41 = vpop.f32.mrb[105].mxu0  ;;  %v2165_v43 = vpop.f32.mrb[105].mxu1 }
 0x365   : > { %v2894_v44 = vcombine.low %v4320_v31, %v4323_v58  ;;  %v1971_v45 = vadd.f32 %v1970_v34, %v4286_v42  ;;  %v2164_v15 = vadd.f32 %v2163_v36, %v4290_v46  ;;  %v1973_v48 = vadd.f32 %v1972_v41, %v4292_v47  ;;  %v1974_v50 = vpop.f32.mrb[106].mxu0  ;;  %v2167_v52 = vpop.f32.mrb[106].mxu1 }
 0x366   : > { %v2331_v53 = vmax.f32 %v1967_v40, 0.0  ;;  %v2333_v55 = vmax.f32 %v2160_v10, 0.0  ;;  %v2166_v57 = vadd.f32 %v2165_v43, %v4296_v56  ;;  %v1975_v59 = vadd.f32 %v1974_v50, %v4286_v42  ;;  %v1976_v49 = vpop.f32.mrb[107].mxu0  ;;  %v2169_v60 = vpop.f32.mrb[107].mxu1 }
 0x367   : > { %v2338_v61 = vmax.f32 %v1971_v45, 0.0  ;;  %v2340_v62 = vmax.f32 %v2164_v15, 0.0  ;;  %v2339_v63 = vmax.f32 %v1973_v48, 0.0  ;;  %v2168_v8 = vadd.f32 %v2167_v52, %v4290_v46 }
 0x368   : > { %v2745_v0 = vmax.f32 %v2744_v32, %v2331_v53  ;;  %v2819_v2 = vmax.f32 %v2818_v33, %v2333_v55  ;;  %v2341_v5 = vmax.f32 %v2166_v57, 0.0  ;;  %v2346_v6 = vmax.f32 %v1975_v59, 0.0 }
 0x369   : > { %v2709_v1 = vmax.f32 %v2708_v37, %v2338_v61  ;;  %v2783_v7 = vmax.f32 %v2782_v39, %v2340_v62  ;;  %v1977_v9 = vadd.f32 %v1976_v49, %v4292_v47  ;;  %v2170_v13 = vadd.f32 %v2169_v60, %v4296_v56 }
 0x36a   : > { %v2746_v11 = vmax.f32 %v2745_v0, %v2339_v63  ;;  %v2820_v12 = vmax.f32 %v2819_v2, %v2341_v5  ;;  %v2348_v4 = vmax.f32 %v2168_v8, 0.0 }
 0x36b   : > { %v2710_v24 = vmax.f32 %v2709_v1, %v2346_v6  ;;  %v2347_v14 = vmax.f32 %v1977_v9, 0.0  ;;  %v1980_v54 = vpop.f32.mrb[108].mxu0  ;;  %v2173_v3 = vpop.f32.mrb[108].mxu1  ;;  %v2349_v19 = vmax.f32 %v2170_v13, 0.0 }
 0x36c   : > { %v1981_v17 = vadd.f32 %v1980_v54, %v4286_v42  ;;  %v2174_v35 = vadd.f32 %v2173_v3, %v4290_v46  ;;  %v1982_v18 = vpop.f32.mrb[109].mxu0  ;;  %v2175_v51 = vpop.f32.mrb[109].mxu1  ;;  %v2784_v20 = vmax.f32 %v2783_v7, %v2348_v4 }
 0x36d   : > { %v2747_v21 = vmax.f32 %v2746_v11, %v2347_v14  ;;  %v1983_v22 = vadd.f32 %v1982_v18, %v4292_v47  ;;  %v2176_v23 = vadd.f32 %v2175_v51, %v4296_v56  ;;  %v1984_v25 = vpop.f32.mrb[110].mxu0  ;;  %v2177_v26 = vpop.f32.mrb[110].mxu1  ;;  %v2821_v27 = vmax.f32 %v2820_v12, %v2349_v19 }
 0x36e   : > { %v2354_v38 = vmax.f32 %v1981_v17, 0.0  ;;  %v2356_v28 = vmax.f32 %v2174_v35, 0.0  ;;  %v1985_v29 = vadd.f32 %v1984_v25, %v4286_v42  ;;  %v1986_v30 = vpop.f32.mrb[111].mxu0  ;;  %v2179_v32 = vpop.f32.mrb[111].mxu1  ;;  %v2178_v36 = vadd.f32 %v2177_v26, %v4290_v46 }
 0x36f   : > { %v2355_v33 = vmax.f32 %v1983_v22, 0.0  ;;  %v2357_v34 = vmax.f32 %v2176_v23, 0.0  ;;  %v1987_v37 = vadd.f32 %v1986_v30, %v4292_v47  ;;  %v2180_v41 = vadd.f32 %v2179_v32, %v4296_v56 }
 0x370   : > { %v2711_v39 = vmax.f32 %v2710_v24, %v2354_v38  ;;  %v2785_v40 = vmax.f32 %v2784_v20, %v2356_v28  ;;  %v2362_v10 = vmax.f32 %v1985_v29, 0.0  ;;  %v2364_v15 = vmax.f32 %v2178_v36, 0.0 }
 0x371   : > { %v2748_v43 = vmax.f32 %v2747_v21, %v2355_v33  ;;  %v2822_v45 = vmax.f32 %v2821_v27, %v2357_v34  ;;  %v2363_v48 = vmax.f32 %v1987_v37, 0.0  ;;  %v2365_v52 = vmax.f32 %v2180_v41, 0.0 }
 0x372   : > { %v2712_v50 = vmax.f32 %v2711_v39, %v2362_v10  ;;  %v2786_v53 = vmax.f32 %v2785_v40, %v2364_v15 }
 0x373   : > { %v2749_v55 = vmax.f32 %v2748_v43, %v2363_v48  ;;  %v1990_v57 = vpop.f32.mrb[112].mxu0  ;;  %v2183_v59 = vpop.f32.mrb[112].mxu1  ;;  %v2823_v49 = vmax.f32 %v2822_v45, %v2365_v52 }
 0x374   : > { %v1991_v60 = vadd.f32 %v1990_v57, %v4286_v42  ;;  %v2184_v61 = vadd.f32 %v2183_v59, %v4290_v46  ;;  %v1992_v62 = vpop.f32.mrb[113].mxu0  ;;  %v2185_v63 = vpop.f32.mrb[113].mxu1 }
 0x375   : > { %v1993_v0 = vadd.f32 %v1992_v62, %v4292_v47  ;;  %v2186_v2 = vadd.f32 %v2185_v63, %v4296_v56  ;;  %v1994_v5 = vpop.f32.mrb[114].mxu0  ;;  %v2187_v6 = vpop.f32.mrb[114].mxu1 }
 0x376   : > { %v2370_v1 = vmax.f32 %v1991_v60, 0.0  ;;  %v2372_v7 = vmax.f32 %v2184_v61, 0.0  ;;  %v1995_v8 = vadd.f32 %v1994_v5, %v4286_v42  ;;  %v2188_v9 = vadd.f32 %v2187_v6, %v4290_v46  ;;  %v1996_v11 = vpop.f32.mrb[115].mxu0  ;;  %v2189_v12 = vpop.f32.mrb[115].mxu1 }
 0x377   : > { %v2371_v13 = vmax.f32 %v1993_v0, 0.0  ;;  %v2373_v24 = vmax.f32 %v2186_v2, 0.0  ;;  %v1997_v4 = vadd.f32 %v1996_v11, %v4292_v47  ;;  %v2190_v14 = vadd.f32 %v2189_v12, %v4296_v56 }
 0x378   : > { %v2713_v54 = vmax.f32 %v2712_v50, %v2370_v1  ;;  %v2787_v3 = vmax.f32 %v2786_v53, %v2372_v7  ;;  %v2378_v19 = vmax.f32 %v1995_v8, 0.0  ;;  %v2380_v17 = vmax.f32 %v2188_v9, 0.0 }
 0x379   : > { %v2750_v35 = vmax.f32 %v2749_v55, %v2371_v13  ;;  %v2824_v18 = vmax.f32 %v2823_v49, %v2373_v24  ;;  %v2379_v51 = vmax.f32 %v1997_v4, 0.0  ;;  %v2381_v20 = vmax.f32 %v2190_v14, 0.0 }
 0x37a   : > { %v2714_v21 = vmax.f32 %v2713_v54, %v2378_v19  ;;  %v2788_v22 = vmax.f32 %v2787_v3, %v2380_v17 }
 0x37b   : > { %v2751_v23 = vmax.f32 %v2750_v35, %v2379_v51  ;;  %v2825_v25 = vmax.f32 %v2824_v18, %v2381_v20  ;;  %v2000_v26 = vpop.f32.mrb[116].mxu0  ;;  %v2193_v27 = vpop.f32.mrb[116].mxu1 }
 0x37c   : > { %v2001_v38 = vadd.f32 %v2000_v26, %v4286_v42  ;;  %v2194_v28 = vadd.f32 %v2193_v27, %v4290_v46  ;;  %v2002_v29 = vpop.f32.mrb[117].mxu0  ;;  %v2195_v30 = vpop.f32.mrb[117].mxu1 }
 0x37d   : > { %v2003_v32 = vadd.f32 %v2002_v29, %v4292_v47  ;;  %v2196_v33 = vadd.f32 %v2195_v30, %v4296_v56  ;;  %v2004_v34 = vpop.f32.mrb[118].mxu0  ;;  %v2197_v36 = vpop.f32.mrb[118].mxu1 }
 0x37e   : > { %v2386_v37 = vmax.f32 %v2001_v38, 0.0  ;;  %v2388_v39 = vmax.f32 %v2194_v28, 0.0  ;;  %v2005_v40 = vadd.f32 %v2004_v34, %v4286_v42  ;;  %v2198_v10 = vadd.f32 %v2197_v36, %v4290_v46  ;;  %v2006_v41 = vpop.f32.mrb[119].mxu0  ;;  %v2199_v43 = vpop.f32.mrb[119].mxu1 }
 0x37f   : > { %v2387_v45 = vmax.f32 %v2003_v32, 0.0  ;;  %v2389_v15 = vmax.f32 %v2196_v33, 0.0  ;;  %v2007_v48 = vadd.f32 %v2006_v41, %v4292_v47  ;;  %v2200_v50 = vadd.f32 %v2199_v43, %v4296_v56 }
 0x380   : > { %v2715_v52 = vmax.f32 %v2714_v21, %v2386_v37  ;;  %v2789_v53 = vmax.f32 %v2788_v22, %v2388_v39  ;;  %v2394_v55 = vmax.f32 %v2005_v40, 0.0  ;;  %v2396_v57 = vmax.f32 %v2198_v10, 0.0 }
 0x381   : > { %v2752_v59 = vmax.f32 %v2751_v23, %v2387_v45  ;;  %v2826_v49 = vmax.f32 %v2825_v25, %v2389_v15  ;;  %v2395_v60 = vmax.f32 %v2007_v48, 0.0  ;;  %v2397_v61 = vmax.f32 %v2200_v50, 0.0 }
 0x382   : > { %v2716_v62 = vmax.f32 %v2715_v52, %v2394_v55  ;;  %v2790_v63 = vmax.f32 %v2789_v53, %v2396_v57 }
 0x383   : > { %v2753_v0 = vmax.f32 %v2752_v59, %v2395_v60  ;;  %v2827_v2 = vmax.f32 %v2826_v49, %v2397_v61  ;;  %v2010_v5 = vpop.f32.mrb[120].mxu0  ;;  %v2203_v6 = vpop.f32.mrb[120].mxu1 }
 0x384   : > { %v2011_v1 = vadd.f32 %v2010_v5, %v4286_v42  ;;  %v2204_v7 = vadd.f32 %v2203_v6, %v4290_v46  ;;  %v2012_v8 = vpop.f32.mrb[121].mxu0  ;;  %v2205_v9 = vpop.f32.mrb[121].mxu1 }
 0x385   : > { %v2013_v11 = vadd.f32 %v2012_v8, %v4292_v47  ;;  %v2206_v12 = vadd.f32 %v2205_v9, %v4296_v56  ;;  %v2014_v13 = vpop.f32.mrb[122].mxu0  ;;  %v2207_v24 = vpop.f32.mrb[122].mxu1 }
 0x386   : > { %v2402_v4 = vmax.f32 %v2011_v1, 0.0  ;;  %v2404_v14 = vmax.f32 %v2204_v7, 0.0  ;;  %v2015_v54 = vadd.f32 %v2014_v13, %v4286_v42  ;;  %v2208_v3 = vadd.f32 %v2207_v24, %v4290_v46  ;;  %v2016_v19 = vpop.f32.mrb[123].mxu0  ;;  %v2209_v17 = vpop.f32.mrb[123].mxu1 }
 0x387   : > { %v2403_v35 = vmax.f32 %v2013_v11, 0.0  ;;  %v2405_v18 = vmax.f32 %v2206_v12, 0.0  ;;  %v2017_v51 = vadd.f32 %v2016_v19, %v4292_v47  ;;  %v2210_v20 = vadd.f32 %v2209_v17, %v4296_v56 }
 0x388   : > { %v2717_v21 = vmax.f32 %v2716_v62, %v2402_v4  ;;  %v2791_v22 = vmax.f32 %v2790_v63, %v2404_v14  ;;  %v2410_v23 = vmax.f32 %v2015_v54, 0.0  ;;  %v2412_v25 = vmax.f32 %v2208_v3, 0.0 }
 0x389   : > { %v2754_v26 = vmax.f32 %v2753_v0, %v2403_v35  ;;  %v2828_v27 = vmax.f32 %v2827_v2, %v2405_v18  ;;  %v2411_v38 = vmax.f32 %v2017_v51, 0.0  ;;  %v2413_v28 = vmax.f32 %v2210_v20, 0.0 }
 0x38a   : > { %v2718_v29 = vmax.f32 %v2717_v21, %v2410_v23  ;;  %v2792_v30 = vmax.f32 %v2791_v22, %v2412_v25 }
 0x38b   : > { %v2755_v32 = vmax.f32 %v2754_v26, %v2411_v38  ;;  %v2829_v33 = vmax.f32 %v2828_v27, %v2413_v28  ;;  %v2020_v34 = vpop.f32.mrb[124].mxu0  ;;  %v2213_v36 = vpop.f32.mrb[124].mxu1 }
 0x38c   : > { %v2021_v37 = vadd.f32 %v2020_v34, %v4286_v42  ;;  %v2214_v39 = vadd.f32 %v2213_v36, %v4290_v46  ;;  %v2022_v40 = vpop.f32.mrb[125].mxu0  ;;  %v2215_v10 = vpop.f32.mrb[125].mxu1 }
 0x38d   : > { %v2023_v41 = vadd.f32 %v2022_v40, %v4292_v47  ;;  %v2216_v43 = vadd.f32 %v2215_v10, %v4296_v56  ;;  %v2024_v45 = vpop.f32.mrb[126].mxu0  ;;  %v2217_v15 = vpop.f32.mrb[126].mxu1 }
 0x38e   : > { %v2418_v48 = vmax.f32 %v2021_v37, 0.0  ;;  %v2420_v50 = vmax.f32 %v2214_v39, 0.0  ;;  %v2025_v52 = vadd.f32 %v2024_v45, %v4286_v42  ;;  %v2218_v53 = vadd.f32 %v2217_v15, %v4290_v46  ;;  %v2026_v55 = vpop.f32.mrb[127].mxu0  ;;  %v2219_v57 = vpop.f32.mrb[127].mxu1 }
 0x38f   : > { %v2419_v59 = vmax.f32 %v2023_v41, 0.0  ;;  %v2421_v49 = vmax.f32 %v2216_v43, 0.0  ;;  %v2027_v60 = vadd.f32 %v2026_v55, %v4292_v47  ;;  %v2220_v61 = vadd.f32 %v2219_v57, %v4296_v56 }
 0x390   : > { %v2719_v62 = vmax.f32 %v2718_v29, %v2418_v48  ;;  %v2793_v63 = vmax.f32 %v2792_v30, %v2420_v50  ;;  %v2426_v0 = vmax.f32 %v2025_v52, 0.0  ;;  %v2428_v2 = vmax.f32 %v2218_v53, 0.0 }
 0x391   : > { %v2756_v5 = vmax.f32 %v2755_v32, %v2419_v59  ;;  %v2830_v6 = vmax.f32 %v2829_v33, %v2421_v49  ;;  %v2427_v1 = vmax.f32 %v2027_v60, 0.0  ;;  %v2429_v7 = vmax.f32 %v2220_v61, 0.0 }
 0x392   : > { %v2720_v8 = vmax.f32 %v2719_v62, %v2426_v0  ;;  %v2794_v9 = vmax.f32 %v2793_v63, %v2428_v2 }
 0x393   : > { %v2757_v11 = vmax.f32 %v2756_v5, %v2427_v1  ;;  %v2831_v12 = vmax.f32 %v2830_v6, %v2429_v7  ;;  %v2030_v13 = vpop.f32.mrb[128].mxu0  ;;  %v2223_v24 = vpop.f32.mrb[128].mxu1 }
 0x394   : > { %v2031_v4 = vadd.f32 %v2030_v13, %v4286_v42  ;;  %v2224_v14 = vadd.f32 %v2223_v24, %v4290_v46  ;;  %v2032_v54 = vpop.f32.mrb[129].mxu0  ;;  %v2225_v3 = vpop.f32.mrb[129].mxu1 }
 0x395   : > { %v2033_v19 = vadd.f32 %v2032_v54, %v4292_v47  ;;  %v2226_v17 = vadd.f32 %v2225_v3, %v4296_v56  ;;  %v2034_v35 = vpop.f32.mrb[130].mxu0  ;;  %v2227_v18 = vpop.f32.mrb[130].mxu1 }
 0x396   : > { %v2434_v51 = vmax.f32 %v2031_v4, 0.0  ;;  %v2436_v20 = vmax.f32 %v2224_v14, 0.0  ;;  %v2035_v21 = vadd.f32 %v2034_v35, %v4286_v42  ;;  %v2228_v22 = vadd.f32 %v2227_v18, %v4290_v46  ;;  %v2036_v23 = vpop.f32.mrb[131].mxu0  ;;  %v2229_v25 = vpop.f32.mrb[131].mxu1 }
 0x397   : > { %v2435_v26 = vmax.f32 %v2033_v19, 0.0  ;;  %v2437_v27 = vmax.f32 %v2226_v17, 0.0  ;;  %v2037_v38 = vadd.f32 %v2036_v23, %v4292_v47  ;;  %v2230_v28 = vadd.f32 %v2229_v25, %v4296_v56 }
 0x398   : > { %v2721_v29 = vmax.f32 %v2720_v8, %v2434_v51  ;;  %v2795_v30 = vmax.f32 %v2794_v9, %v2436_v20  ;;  %v2442_v32 = vmax.f32 %v2035_v21, 0.0  ;;  %v2444_v33 = vmax.f32 %v2228_v22, 0.0 }
 0x399   : > { %v2758_v34 = vmax.f32 %v2757_v11, %v2435_v26  ;;  %v2832_v36 = vmax.f32 %v2831_v12, %v2437_v27  ;;  %v2443_v37 = vmax.f32 %v2037_v38, 0.0  ;;  %v2445_v39 = vmax.f32 %v2230_v28, 0.0 }
 0x39a   : > { %v2722_v40 = vmax.f32 %v2721_v29, %v2442_v32  ;;  %v2796_v10 = vmax.f32 %v2795_v30, %v2444_v33 }
 0x39b   : > { %v2759_v41 = vmax.f32 %v2758_v34, %v2443_v37  ;;  %v2833_v43 = vmax.f32 %v2832_v36, %v2445_v39  ;;  %v2040_v45 = vpop.f32.mrb[132].mxu0  ;;  %v2233_v15 = vpop.f32.mrb[132].mxu1 }
 0x39c   : > { %v2041_v48 = vadd.f32 %v2040_v45, %v4286_v42  ;;  %v2234_v50 = vadd.f32 %v2233_v15, %v4290_v46  ;;  %v2042_v52 = vpop.f32.mrb[133].mxu0  ;;  %v2235_v53 = vpop.f32.mrb[133].mxu1 }
 0x39d   : > { %v2043_v55 = vadd.f32 %v2042_v52, %v4292_v47  ;;  %v2236_v57 = vadd.f32 %v2235_v53, %v4296_v56  ;;  %v2044_v59 = vpop.f32.mrb[134].mxu0  ;;  %v2237_v49 = vpop.f32.mrb[134].mxu1 }
 0x39e   : > { %v2450_v60 = vmax.f32 %v2041_v48, 0.0  ;;  %v2452_v61 = vmax.f32 %v2234_v50, 0.0  ;;  %v2045_v62 = vadd.f32 %v2044_v59, %v4286_v42  ;;  %v2238_v63 = vadd.f32 %v2237_v49, %v4290_v46  ;;  %v2046_v0 = vpop.f32.mrb[135].mxu0  ;;  %v2239_v2 = vpop.f32.mrb[135].mxu1 }
 0x39f   : > { %v2451_v5 = vmax.f32 %v2043_v55, 0.0  ;;  %v2453_v6 = vmax.f32 %v2236_v57, 0.0  ;;  %v2047_v1 = vadd.f32 %v2046_v0, %v4292_v47  ;;  %v2240_v7 = vadd.f32 %v2239_v2, %v4296_v56 }
 0x3a0   : > { %v2723_v8 = vmax.f32 %v2722_v40, %v2450_v60  ;;  %v2797_v9 = vmax.f32 %v2796_v10, %v2452_v61  ;;  %v2458_v11 = vmax.f32 %v2045_v62, 0.0  ;;  %v2460_v12 = vmax.f32 %v2238_v63, 0.0 }
 0x3a1   : > { %v2760_v13 = vmax.f32 %v2759_v41, %v2451_v5  ;;  %v2834_v24 = vmax.f32 %v2833_v43, %v2453_v6  ;;  %v2459_v4 = vmax.f32 %v2047_v1, 0.0  ;;  %v2461_v14 = vmax.f32 %v2240_v7, 0.0 }
 0x3a2   : > { %v2724_v54 = vmax.f32 %v2723_v8, %v2458_v11  ;;  %v2798_v3 = vmax.f32 %v2797_v9, %v2460_v12 }
 0x3a3   : > { %v2761_v19 = vmax.f32 %v2760_v13, %v2459_v4  ;;  %v2835_v17 = vmax.f32 %v2834_v24, %v2461_v14  ;;  %v2050_v35 = vpop.f32.mrb[136].mxu0  ;;  %v2243_v18 = vpop.f32.mrb[136].mxu1 }
 0x3a4   : > { %v2051_v51 = vadd.f32 %v2050_v35, %v4286_v42  ;;  %v2244_v20 = vadd.f32 %v2243_v18, %v4290_v46  ;;  %v2052_v21 = vpop.f32.mrb[137].mxu0  ;;  %v2245_v22 = vpop.f32.mrb[137].mxu1 }
 0x3a5   : > { %v2053_v23 = vadd.f32 %v2052_v21, %v4292_v47  ;;  %v2246_v25 = vadd.f32 %v2245_v22, %v4296_v56  ;;  %v2054_v26 = vpop.f32.mrb[138].mxu0  ;;  %v2247_v27 = vpop.f32.mrb[138].mxu1 }
 0x3a6   : > { %v2466_v38 = vmax.f32 %v2051_v51, 0.0  ;;  %v2468_v28 = vmax.f32 %v2244_v20, 0.0  ;;  %v2055_v29 = vadd.f32 %v2054_v26, %v4286_v42  ;;  %v2248_v30 = vadd.f32 %v2247_v27, %v4290_v46  ;;  %v2056_v32 = vpop.f32.mrb[139].mxu0  ;;  %v2249_v33 = vpop.f32.mrb[139].mxu1 }
 0x3a7   : > { %v2467_v34 = vmax.f32 %v2053_v23, 0.0  ;;  %v2469_v36 = vmax.f32 %v2246_v25, 0.0  ;;  %v2057_v37 = vadd.f32 %v2056_v32, %v4292_v47  ;;  %v2250_v39 = vadd.f32 %v2249_v33, %v4296_v56 }
 0x3a8   : > { %v2725_v40 = vmax.f32 %v2724_v54, %v2466_v38  ;;  %v2799_v10 = vmax.f32 %v2798_v3, %v2468_v28  ;;  %v2474_v41 = vmax.f32 %v2055_v29, 0.0  ;;  %v2476_v43 = vmax.f32 %v2248_v30, 0.0 }
 0x3a9   : > { %v2762_v45 = vmax.f32 %v2761_v19, %v2467_v34  ;;  %v2836_v15 = vmax.f32 %v2835_v17, %v2469_v36  ;;  %v2475_v48 = vmax.f32 %v2057_v37, 0.0  ;;  %v2477_v50 = vmax.f32 %v2250_v39, 0.0 }
 0x3aa   : > { %v2726_v52 = vmax.f32 %v2725_v40, %v2474_v41  ;;  %v2800_v53 = vmax.f32 %v2799_v10, %v2476_v43 }
 0x3ab   : > { %v2763_v55 = vmax.f32 %v2762_v45, %v2475_v48  ;;  %v2837_v57 = vmax.f32 %v2836_v15, %v2477_v50  ;;  %v2060_v59 = vpop.f32.mrb[140].mxu0  ;;  %v2253_v49 = vpop.f32.mrb[140].mxu1 }
 0x3ac   : > { %v2061_v60 = vadd.f32 %v2060_v59, %v4286_v42  ;;  %v2254_v61 = vadd.f32 %v2253_v49, %v4290_v46  ;;  %v2062_v62 = vpop.f32.mrb[141].mxu0  ;;  %v2255_v63 = vpop.f32.mrb[141].mxu1 }
 0x3ad   : > { %v2063_v0 = vadd.f32 %v2062_v62, %v4292_v47  ;;  %v2256_v2 = vadd.f32 %v2255_v63, %v4296_v56  ;;  %v2064_v5 = vpop.f32.mrb[142].mxu0  ;;  %v2257_v6 = vpop.f32.mrb[142].mxu1 }
 0x3ae   : > { %v2482_v1 = vmax.f32 %v2061_v60, 0.0  ;;  %v2484_v7 = vmax.f32 %v2254_v61, 0.0  ;;  %v2065_v8 = vadd.f32 %v2064_v5, %v4286_v42  ;;  %v2258_v9 = vadd.f32 %v2257_v6, %v4290_v46  ;;  %v2066_v11 = vpop.f32.mrb[143].mxu0  ;;  %v2259_v12 = vpop.f32.mrb[143].mxu1 }
 0x3af   : > { %v2483_v13 = vmax.f32 %v2063_v0, 0.0  ;;  %v2485_v24 = vmax.f32 %v2256_v2, 0.0  ;;  %v2067_v4 = vadd.f32 %v2066_v11, %v4292_v47  ;;  %v2260_v14 = vadd.f32 %v2259_v12, %v4296_v56 }
 0x3b0   : > { %v2727_v54 = vmax.f32 %v2726_v52, %v2482_v1  ;;  %v2801_v3 = vmax.f32 %v2800_v53, %v2484_v7  ;;  %v2490_v19 = vmax.f32 %v2065_v8, 0.0  ;;  %v2492_v17 = vmax.f32 %v2258_v9, 0.0 }
 0x3b1   : > { %v2764_v35 = vmax.f32 %v2763_v55, %v2483_v13  ;;  %v2838_v18 = vmax.f32 %v2837_v57, %v2485_v24  ;;  %v2491_v51 = vmax.f32 %v2067_v4, 0.0  ;;  %v2493_v20 = vmax.f32 %v2260_v14, 0.0 }
 0x3b2   : > { %v2728_v21 = vmax.f32 %v2727_v54, %v2490_v19  ;;  %v2802_v22 = vmax.f32 %v2801_v3, %v2492_v17 }
 0x3b3   : > { %v2765_v23 = vmax.f32 %v2764_v35, %v2491_v51  ;;  %v2839_v25 = vmax.f32 %v2838_v18, %v2493_v20  ;;  %v2070_v26 = vpop.f32.mrb[144].mxu0  ;;  %v2263_v27 = vpop.f32.mrb[144].mxu1 }
 0x3b4   : > { %v2071_v38 = vadd.f32 %v2070_v26, %v4286_v42  ;;  %v2264_v28 = vadd.f32 %v2263_v27, %v4290_v46  ;;  %v2072_v29 = vpop.f32.mrb[145].mxu0  ;;  %v2265_v30 = vpop.f32.mrb[145].mxu1 }
 0x3b5   : > { %v2073_v32 = vadd.f32 %v2072_v29, %v4292_v47  ;;  %v2266_v33 = vadd.f32 %v2265_v30, %v4296_v56  ;;  %v2074_v34 = vpop.f32.mrb[146].mxu0  ;;  %v2267_v36 = vpop.f32.mrb[146].mxu1 }
 0x3b6   : > { %v2498_v37 = vmax.f32 %v2071_v38, 0.0  ;;  %v2500_v39 = vmax.f32 %v2264_v28, 0.0  ;;  %v2075_v40 = vadd.f32 %v2074_v34, %v4286_v42  ;;  %v2268_v10 = vadd.f32 %v2267_v36, %v4290_v46  ;;  %v2076_v41 = vpop.f32.mrb[147].mxu0  ;;  %v2269_v43 = vpop.f32.mrb[147].mxu1 }
 0x3b7   : > { %v2499_v45 = vmax.f32 %v2073_v32, 0.0  ;;  %v2501_v15 = vmax.f32 %v2266_v33, 0.0  ;;  %v2077_v48 = vadd.f32 %v2076_v41, %v4292_v47  ;;  %v2270_v50 = vadd.f32 %v2269_v43, %v4296_v56 }
 0x3b8   : > { %v2729_v52 = vmax.f32 %v2728_v21, %v2498_v37  ;;  %v2803_v53 = vmax.f32 %v2802_v22, %v2500_v39  ;;  %v2506_v55 = vmax.f32 %v2075_v40, 0.0  ;;  %v2508_v57 = vmax.f32 %v2268_v10, 0.0 }
 0x3b9   : > { %v2766_v59 = vmax.f32 %v2765_v23, %v2499_v45  ;;  %v2840_v49 = vmax.f32 %v2839_v25, %v2501_v15  ;;  %v2507_v60 = vmax.f32 %v2077_v48, 0.0  ;;  %v2509_v61 = vmax.f32 %v2270_v50, 0.0 }
 0x3ba   : > { %v2730_v62 = vmax.f32 %v2729_v52, %v2506_v55  ;;  %v2804_v63 = vmax.f32 %v2803_v53, %v2508_v57 }
 0x3bb   : > { %v2767_v0 = vmax.f32 %v2766_v59, %v2507_v60  ;;  %v2841_v2 = vmax.f32 %v2840_v49, %v2509_v61  ;;  %v2080_v5 = vpop.f32.mrb[148].mxu0  ;;  %v2273_v6 = vpop.f32.mrb[148].mxu1 }
 0x3bc   : > { %v2081_v1 = vadd.f32 %v2080_v5, %v4286_v42  ;;  %v2274_v7 = vadd.f32 %v2273_v6, %v4290_v46  ;;  %v2082_v8 = vpop.f32.mrb[149].mxu0  ;;  %v2275_v9 = vpop.f32.mrb[149].mxu1 }
 0x3bd   : > { %v2083_v11 = vadd.f32 %v2082_v8, %v4292_v47  ;;  %v2276_v12 = vadd.f32 %v2275_v9, %v4296_v56  ;;  %v2084_v13 = vpop.f32.mrb[150].mxu0  ;;  %v2277_v24 = vpop.f32.mrb[150].mxu1 }
 0x3be   : > { %v2514_v4 = vmax.f32 %v2081_v1, 0.0  ;;  %v2516_v14 = vmax.f32 %v2274_v7, 0.0  ;;  %v2085_v54 = vadd.f32 %v2084_v13, %v4286_v42  ;;  %v2278_v3 = vadd.f32 %v2277_v24, %v4290_v46  ;;  %v2086_v19 = vpop.f32.mrb[151].mxu0  ;;  %v2279_v17 = vpop.f32.mrb[151].mxu1 }
 0x3bf   : > { %v2515_v35 = vmax.f32 %v2083_v11, 0.0  ;;  %v2517_v18 = vmax.f32 %v2276_v12, 0.0  ;;  %v2087_v51 = vadd.f32 %v2086_v19, %v4292_v47  ;;  %v2280_v20 = vadd.f32 %v2279_v17, %v4296_v56 }
 0x3c0   : > { %v2731_v21 = vmax.f32 %v2730_v62, %v2514_v4  ;;  %v2805_v22 = vmax.f32 %v2804_v63, %v2516_v14  ;;  %v2522_v23 = vmax.f32 %v2085_v54, 0.0  ;;  %v2524_v25 = vmax.f32 %v2278_v3, 0.0 }
 0x3c1   : > { %v2768_v26 = vmax.f32 %v2767_v0, %v2515_v35  ;;  %v2842_v27 = vmax.f32 %v2841_v2, %v2517_v18  ;;  %v2523_v38 = vmax.f32 %v2087_v51, 0.0  ;;  %v2525_v28 = vmax.f32 %v2280_v20, 0.0 }
 0x3c2   : > { %v2732_v29 = vmax.f32 %v2731_v21, %v2522_v23  ;;  %v2806_v30 = vmax.f32 %v2805_v22, %v2524_v25 }
 0x3c3   : > { %v2769_v32 = vmax.f32 %v2768_v26, %v2523_v38  ;;  %v2843_v33 = vmax.f32 %v2842_v27, %v2525_v28  ;;  %v2090_v34 = vpop.f32.mrb[152].mxu0  ;;  %v2283_v36 = vpop.f32.mrb[152].mxu1 }
 0x3c4   : > { %v2091_v37 = vadd.f32 %v2090_v34, %v4286_v42  ;;  %v2284_v39 = vadd.f32 %v2283_v36, %v4290_v46  ;;  %v2092_v40 = vpop.f32.mrb[153].mxu0  ;;  %v2285_v10 = vpop.f32.mrb[153].mxu1 }
 0x3c5   : > { %v2093_v41 = vadd.f32 %v2092_v40, %v4292_v47  ;;  %v2286_v43 = vadd.f32 %v2285_v10, %v4296_v56  ;;  %v2094_v45 = vpop.f32.mrb[154].mxu0  ;;  %v2287_v15 = vpop.f32.mrb[154].mxu1 }
 0x3c6   : > { %v2530_v48 = vmax.f32 %v2091_v37, 0.0  ;;  %v2532_v50 = vmax.f32 %v2284_v39, 0.0  ;;  %v2095_v52 = vadd.f32 %v2094_v45, %v4286_v42  ;;  %v2288_v53 = vadd.f32 %v2287_v15, %v4290_v46  ;;  %v2096_v55 = vpop.f32.mrb[155].mxu0  ;;  %v2289_v57 = vpop.f32.mrb[155].mxu1 }
 0x3c7   : > { %v2531_v59 = vmax.f32 %v2093_v41, 0.0  ;;  %v2533_v49 = vmax.f32 %v2286_v43, 0.0  ;;  %v2097_v60 = vadd.f32 %v2096_v55, %v4292_v47  ;;  %v2290_v61 = vadd.f32 %v2289_v57, %v4296_v56 }
 0x3c8   : > { %v2733_v62 = vmax.f32 %v2732_v29, %v2530_v48  ;;  %v2807_v63 = vmax.f32 %v2806_v30, %v2532_v50  ;;  %v2538_v0 = vmax.f32 %v2095_v52, 0.0  ;;  %v2540_v2 = vmax.f32 %v2288_v53, 0.0 }
 0x3c9   : > { %v2770_v5 = vmax.f32 %v2769_v32, %v2531_v59  ;;  %v2844_v6 = vmax.f32 %v2843_v33, %v2533_v49  ;;  %v2539_v1 = vmax.f32 %v2097_v60, 0.0  ;;  %v2541_v7 = vmax.f32 %v2290_v61, 0.0 }
 0x3ca   : > { %v2734_v8 = vmax.f32 %v2733_v62, %v2538_v0  ;;  %v2808_v9 = vmax.f32 %v2807_v63, %v2540_v2 }
 0x3cb   : > { %v2771_v11 = vmax.f32 %v2770_v5, %v2539_v1  ;;  %v2845_v12 = vmax.f32 %v2844_v6, %v2541_v7  ;;  %v2100_v13 = vpop.f32.mrb[156].mxu0  ;;  %v2293_v24 = vpop.f32.mrb[156].mxu1 }
 0x3cc   : > { %v2101_v4 = vadd.f32 %v2100_v13, %v4286_v42  ;;  %v2294_v14 = vadd.f32 %v2293_v24, %v4290_v46  ;;  %v2102_v54 = vpop.f32.mrb[157].mxu0  ;;  %v2295_v3 = vpop.f32.mrb[157].mxu1  ;;  %v2902_v24 = vrot.slane %v2894_v44, %v4303_v16 }
 0x3cd   : > { %v2103_v19 = vadd.f32 %v2102_v54, %v4292_v47  ;;  %v2296_v17 = vadd.f32 %v2295_v3, %v4296_v56  ;;  %v2104_v35 = vpop.f32.mrb[158].mxu0  ;;  %v2297_v18 = vpop.f32.mrb[158].mxu1 }
 0x3ce   : > { %v2546_v51 = vmax.f32 %v2101_v4, 0.0  ;;  %v2548_v20 = vmax.f32 %v2294_v14, 0.0  ;;  %v2105_v21 = vadd.f32 %v2104_v35, %v4286_v42  ;;  %v2298_v22 = vadd.f32 %v2297_v18, %v4290_v46  ;;  %v2106_v23 = vpop.f32.mrb[159].mxu0  ;;  %v2299_v25 = vpop.f32.mrb[159].mxu1 }
 0x3cf   : > { %v2547_v26 = vmax.f32 %v2103_v19, 0.0  ;;  %v2549_v27 = vmax.f32 %v2296_v17, 0.0  ;;  %v2107_v38 = vadd.f32 %v2106_v23, %v4292_v47  ;;  %v2300_v28 = vadd.f32 %v2299_v25, %v4296_v56 }
 0x3d0   : > { %v2735_v29 = vmax.f32 %v2734_v8, %v2546_v51  ;;  %v2809_v30 = vmax.f32 %v2808_v9, %v2548_v20  ;;  %v2554_v32 = vmax.f32 %v2105_v21, 0.0  ;;  %v2556_v33 = vmax.f32 %v2298_v22, 0.0 }
 0x3d1   : > { %v2772_v34 = vmax.f32 %v2771_v11, %v2547_v26  ;;  %v2846_v36 = vmax.f32 %v2845_v12, %v2549_v27  ;;  %v2555_v37 = vmax.f32 %v2107_v38, 0.0  ;;  %v2557_v39 = vmax.f32 %v2300_v28, 0.0 }
 0x3d2   : > { %v2736_v40 = vmax.f32 %v2735_v29, %v2554_v32  ;;  %v2810_v42 = vmax.f32 %v2809_v30, %v2556_v33 }
 0x3d3   : > { %v2773_v10 = vmax.f32 %v2772_v34, %v2555_v37  ;;  %v2847_v46 = vmax.f32 %v2846_v36, %v2557_v39 }
 0x3d4   : > { %v2737_v41 = vrot.slane %v2736_v40, 4  ;;  %v2811_v43 = vrot.slane %v2810_v42, 4 }
 0x3d5   : > { %v2774_v45 = vrot.slane %v2773_v10, 4  ;;  %v2848_v15 = vrot.slane %v2847_v46, 4 }
 0x3d6   : > { %v2738_v48 = vmax.f32 %v2736_v40, %v2737_v41  ;;  %v2812_v47 = vmax.f32 %v2810_v42, %v2811_v43 }
 0x3d7   : > { %v2775_v50 = vmax.f32 %v2773_v10, %v2774_v45  ;;  %v2849_v56 = vmax.f32 %v2847_v46, %v2848_v15 }
 0x3d8   : > { %v2739_v52 = vrot.slane %v2738_v48, 2  ;;  %v2813_v53 = vrot.slane %v2812_v47, 2 }
 0x3d9   : > { %v2776_v55 = vrot.slane %v2775_v50, 2  ;;  %v2850_v57 = vrot.slane %v2849_v56, 2 }
 0x3da   : > { %v2740_v59 = vmax.f32 %v2738_v48, %v2739_v52  ;;  %v2814_v49 = vmax.f32 %v2812_v47, %v2813_v53 }
 0x3db   : > { %v2777_v60 = vmax.f32 %v2775_v50, %v2776_v55  ;;  %v2851_v61 = vmax.f32 %v2849_v56, %v2850_v57 }
 0x3dc   : > { %v2741_v62 = vrot.slane %v2740_v59, 1  ;;  %v2815_v63 = vrot.slane %v2814_v49, 1 }
 0x3dd   : > { %v2778_v0 = vrot.slane %v2777_v60, 1  ;;  %v2852_v2 = vrot.slane %v2851_v61, 1 }
 0x3de   : > { %v2742_v5 = vmax.f32 %v2740_v59, %v2741_v62  ;;  %v2816_v6 = vmax.f32 %v2814_v49, %v2815_v63 }
 0x3df   : > { %v2779_v1 = vmax.f32 %v2777_v60, %v2778_v0  ;;  %v2853_v7 = vmax.f32 %v2851_v61, %v2852_v2 }
 0x3e1   : > { %v2864_v8 = vcombine.low %v2742_v5, %v2779_v1  ;;  %v2865_v9 = vcombine.low %v2816_v6, %v2853_v7 }
 0x3e3   : > { %v2886_v11 = vrot.slane %v2864_v8, %v4303_v16  ;;  %v2893_v12 = vrot.slane %v2865_v9, %v4303_v16 }
 0x3e5   : > { %v2895_v13 = vcombine.low %v2886_v11, %v2893_v12 }
 0x3e7   : > { %v2909_v4 = vrot.slane %v2895_v13, %v4303_v16 }
 0x3e9   : > { %v2910_v14 = vcombine.low %v2902_v24, %v2909_v4 }
 0x3eb   : > { %2912 = vst [vmem:[%s319_s19] sm:$0xff] %v2910_v14 }
 0x3ec PF: > { %s19_s24 = sadd.s32 1, %s3452_s24  }
 0x3ed   : > { %p16_p5 = scmp.ge.s32.totalorder %s19_s24, 4  }
 0x3ef   :  { %18 = sbr.rel (!%p16_p5) target bundleno = 2 (0x2), region = 90 }
 0x3f6   :  { %2932 = vsyncpa [#allocation3], 1 }
 0x3f7   :  { %2934 = vsyncpa [#allocation3 + $0x1], 1 }
 0x3f8   :  { %2935 = vsyncpa [#allocation5], 1 }

// kernel: pointnetfeat4d_forward.4
= control target key start
LH: loop header
LB: loop body
LE: loop exit
PB: predicated region body
PF: predicated region fallthrough
CT: control target
= control target key end

     0   :  { %v3472_v36 = vmov 1983009808   ;;  %v34_v38 = vlaneseq  ;;  %vm2563_vm0 = vcmask 123904   ;;  %s4659_s1 = inlined_call_operand.vmem [shape: bf16[1024,512], index: 1, kind: input, shape index: {}]   ;;  %s4660_s0 = inlined_call_operand.vmem [shape: f32[2,1024], index: 0, kind: input, shape index: {}]   ;;  %s4661_s3 = inlined_call_operand.vmem [shape: bf16[512,256], index: 3, kind: input, shape index: {}]   ;;  %s4662_s2 = inlined_call_operand.vmem [shape: f32[1,512], index: 2, kind: input, shape index: {}]   ;;  %s4663_s5 = inlined_call_operand.vmem [shape: f32[256,16], index: 5, kind: input, shape index: {}]   ;;  %s4664_s4 = inlined_call_operand.vmem [shape: f32[1,256], index: 4, kind: input, shape index: {}]   ;;  %s4665_s6 = inlined_call_operand.vmem [shape: f32[1,16], index: 6, kind: input, shape index: {}]   ;;  %s4666_s7 = inlined_call_operand.vmem [shape: f32[2,16], index: 7, kind: output, shape index: {}]  }
   0x1   :  { %v2990_v0 = vld [vmem:[%s4659_s1 + $0x4] ss:$16 sps:$4 sm:$0xff]   ;;  %v2994_v2 = vld [vmem:[%s4659_s1] ss:$16 sps:$4 sm:$0xff]   ;;  %v32_v37 = vunpack.c.l.s4 %v3472_v36 }
   0x2   :  { %v2992_v1 = vld [vmem:[%s4659_s1 + $0x204] ss:$16 sps:$4 sm:$0xff]   ;;  %1638 = vmatprep.subr.bf16.mxu1 %v2990_v0  ;;  %v2995_v3 = vld [vmem:[%s4659_s1 + $0x200] ss:$16 sps:$4 sm:$0xff]   ;;  %v3630_v43 = vshrl.u32 %v34_v38, 7 }
   0x3   :  { %1679 = vmatprep.subr.bf16.mxu0 %v2992_v1  ;;  %v2996_v4 = vld [vmem:[%s4659_s1 + $0x24] ss:$16 sps:$4 sm:$0xff]   ;;  %1639 = vmatpush1.bf16.msra.mxu1 %v2994_v2  ;;  %v3000_v6 = vld [vmem:[%s4659_s1 + $0x20] ss:$16 sps:$4 sm:$0xff]   ;;  %v33_v42 = vunpack.c.0.s8 %v32_v37  ;;  %v3117_v37 = vld [vmem:[%s4659_s1 + $0x8c] ss:$16 sps:$4 sm:$0xff]  }
   0x4   :  { %1680 = vmatpush1.bf16.msra.mxu0 %v2995_v3  ;;  %v2998_v5 = vld [vmem:[%s4659_s1 + $0x224] ss:$16 sps:$4 sm:$0xff]   ;;  %1640 = vmatprep.subr.bf16.mxu1 %v2996_v4  ;;  %v3001_v7 = vld [vmem:[%s4659_s1 + $0x220] ss:$16 sps:$4 sm:$0xff]  }
   0x5   :  { %1681 = vmatprep.subr.bf16.mxu0 %v2998_v5  ;;  %v3002_v8 = vld [vmem:[%s4659_s1 + $0x44] ss:$16 sps:$4 sm:$0xff]   ;;  %v3006_v10 = vld [vmem:[%s4659_s1 + $0x40] ss:$16 sps:$4 sm:$0xff]   ;;  %v3648_v49 = vsub.s32 %v33_v42, %v3630_v43 }
   0x6   :  { %v3004_v9 = vld [vmem:[%s4659_s1 + $0x244] ss:$16 sps:$4 sm:$0xff]   ;;  %v3007_v11 = vld [vmem:[%s4659_s1 + $0x240] ss:$16 sps:$4 sm:$0xff]  }
   0x7   :  { %1641 = vmatpush1.bf16.msra.mxu1 %v3000_v6  ;;  %v3008_v12 = vld [vmem:[%s4659_s1 + $0x64] ss:$16 sps:$4 sm:$0xff]   ;;  %v3012_v14 = vld [vmem:[%s4659_s1 + $0x60] ss:$16 sps:$4 sm:$0xff]  }
   0x8   :  { %1682 = vmatpush1.bf16.msra.mxu0 %v3001_v7  ;;  %1642 = vmatprep.subr.bf16.mxu1 %v3002_v8  ;;  %v3010_v13 = vld [vmem:[%s4659_s1 + $0x264] ss:$16 sps:$4 sm:$0xff]   ;;  %v3013_v15 = vld [vmem:[%s4659_s1 + $0x260] ss:$16 sps:$4 sm:$0xff]   ;;  %v3703_v8 = vld [vmem:[%s4660_s0 + $0x8] sm:$0xff] }
   0x9   :  { %1683 = vmatprep.subr.bf16.mxu0 %v3004_v9  ;;  %v3014_v16 = vld [vmem:[%s4659_s1 + $0x84] ss:$16 sps:$4 sm:$0xff]   ;;  %v3018_v18 = vld [vmem:[%s4659_s1 + $0x80] ss:$16 sps:$4 sm:$0xff]  }
   0xa   :  { %v3016_v17 = vld [vmem:[%s4659_s1 + $0x284] ss:$16 sps:$4 sm:$0xff]   ;;  %v3019_v19 = vld [vmem:[%s4659_s1 + $0x280] ss:$16 sps:$4 sm:$0xff]  }
   0xb   :  { %1643 = vmatpush1.bf16.msra.mxu1 %v3006_v10  ;;  %v3020_v20 = vld [vmem:[%s4659_s1 + $0xa4] ss:$16 sps:$4 sm:$0xff]   ;;  %v3024_v22 = vld [vmem:[%s4659_s1 + $0xa0] ss:$16 sps:$4 sm:$0xff]  }
   0xc   :  { %1684 = vmatpush1.bf16.msra.mxu0 %v3007_v11  ;;  %1644 = vmatprep.subr.bf16.mxu1 %v3008_v12  ;;  %v3022_v21 = vld [vmem:[%s4659_s1 + $0x2a4] ss:$16 sps:$4 sm:$0xff]   ;;  %v3025_v23 = vld [vmem:[%s4659_s1 + $0x2a0] ss:$16 sps:$4 sm:$0xff]  }
   0xd   :  { %1685 = vmatprep.subr.bf16.mxu0 %v3010_v13  ;;  %v3026_v24 = vld [vmem:[%s4659_s1 + $0xc4] ss:$16 sps:$4 sm:$0xff]   ;;  %v3030_v26 = vld [vmem:[%s4659_s1 + $0xc0] ss:$16 sps:$4 sm:$0xff]   ;;  %v3719_v13 = vrot.slane %v3703_v8, %v3648_v49 }
   0xe   :  { %v3028_v25 = vld [vmem:[%s4659_s1 + $0x2c4] ss:$16 sps:$4 sm:$0xff]   ;;  %v3031_v27 = vld [vmem:[%s4659_s1 + $0x2c0] ss:$16 sps:$4 sm:$0xff]  }
   0xf   :  { %1645 = vmatpush1.bf16.msra.mxu1 %v3012_v14  ;;  %v3032_v28 = vld [vmem:[%s4659_s1 + $0xe4] ss:$16 sps:$4 sm:$0xff]   ;;  %v3036_v30 = vld [vmem:[%s4659_s1 + $0xe0] ss:$16 sps:$4 sm:$0xff]  }
  0x10   :  { %1686 = vmatpush1.bf16.msra.mxu0 %v3013_v15  ;;  %1646 = vmatprep.subr.bf16.mxu1 %v3014_v16  ;;  %v3034_v29 = vld [vmem:[%s4659_s1 + $0x2e4] ss:$16 sps:$4 sm:$0xff]   ;;  %v3037_v31 = vld [vmem:[%s4659_s1 + $0x2e0] ss:$16 sps:$4 sm:$0xff]  }
  0x11   :  { %1687 = vmatprep.subr.bf16.mxu0 %v3016_v17  ;;  %v3038_v32 = vld [vmem:[%s4659_s1 + $0x104] ss:$16 sps:$4 sm:$0xff]   ;;  %v3042_v34 = vld [vmem:[%s4659_s1 + $0x100] ss:$16 sps:$4 sm:$0xff]   ;;  %v3093_v17 = vld [vmem:[%s4659_s1 + $0xc] ss:$16 sps:$4 sm:$0xff]  }
  0x12   :  { %v3040_v33 = vld [vmem:[%s4659_s1 + $0x304] ss:$16 sps:$4 sm:$0xff]   ;;  %v3043_v35 = vld [vmem:[%s4659_s1 + $0x300] ss:$16 sps:$4 sm:$0xff]  }
  0x13   :  { %1647 = vmatpush1.bf16.msra.mxu1 %v3018_v18  ;;  %v3044_v39 = vld [vmem:[%s4659_s1 + $0x124] ss:$16 sps:$4 sm:$0xff]   ;;  %v3048_v41 = vld [vmem:[%s4659_s1 + $0x120] ss:$16 sps:$4 sm:$0xff]   ;;  %v62_v18 = vcombine.high %v3719_v13, %v3719_v13 }
  0x14   :  { %1688 = vmatpush1.bf16.msra.mxu0 %v3019_v19  ;;  %1648 = vmatprep.subr.bf16.mxu1 %v3020_v20  ;;  %v3046_v40 = vld [vmem:[%s4659_s1 + $0x324] ss:$16 sps:$4 sm:$0xff]   ;;  %v3049_v44 = vld [vmem:[%s4659_s1 + $0x320] ss:$16 sps:$4 sm:$0xff]  }
  0x15   :  { %1689 = vmatprep.subr.bf16.mxu0 %v3022_v21  ;;  %v3050_v45 = vld [vmem:[%s4659_s1 + $0x144] ss:$16 sps:$4 sm:$0xff]   ;;  %v3054_v47 = vld [vmem:[%s4659_s1 + $0x140] ss:$16 sps:$4 sm:$0xff]  }
  0x16   :  { %v3052_v46 = vld [vmem:[%s4659_s1 + $0x344] ss:$16 sps:$4 sm:$0xff]   ;;  %v3055_v48 = vld [vmem:[%s4659_s1 + $0x340] ss:$16 sps:$4 sm:$0xff]  }
  0x17   :  { %1649 = vmatpush1.bf16.msra.mxu1 %v3024_v22  ;;  %v3056_v50 = vld [vmem:[%s4659_s1 + $0x164] ss:$16 sps:$4 sm:$0xff]   ;;  %v3060_v55 = vld [vmem:[%s4659_s1 + $0x160] ss:$16 sps:$4 sm:$0xff]   ;;  %v3091_v22 = vld [vmem:[%s4659_s1 + $0x8] ss:$16 sps:$4 sm:$0xff]  }
  0x18   :  { %1690 = vmatpush1.bf16.msra.mxu0 %v3025_v23  ;;  %1650 = vmatprep.subr.bf16.mxu1 %v3026_v24  ;;  %v3058_v51 = vld [vmem:[%s4659_s1 + $0x364] ss:$16 sps:$4 sm:$0xff]   ;;  %v3061_v56 = vld [vmem:[%s4659_s1 + $0x360] ss:$16 sps:$4 sm:$0xff]   ;;  %v3099_v24 = vld [vmem:[%s4659_s1 + $0x2c] ss:$16 sps:$4 sm:$0xff]  }
  0x19   :  { %1691 = vmatprep.subr.bf16.mxu0 %v3028_v25  ;;  %v26_v52 = vld [vmem:[%s4660_s0] sm:$0xff]  ;;  %v3751_v25 = vpack.c.bf16 %v62_v18, %v62_v18  ;;  %v3177_v18 = vld [vmem:[%s4659_s1 + $0x1cc] ss:$16 sps:$4 sm:$0xff]  }
  0x1a   :  { %v37_v53 = vrot.slane %v26_v52, %v3648_v49  ;;  %v30_v54 = vcombine.high %v26_v52, %v26_v52  ;;  %v3062_v57 = vld [vmem:[%s4659_s1 + $0x184] ss:$16 sps:$4 sm:$0xff]   ;;  %v3066_v63 = vld [vmem:[%s4659_s1 + $0x180] ss:$16 sps:$4 sm:$0xff]  }
  0x1b   :  { %1651 = vmatpush1.bf16.msra.mxu1 %v3030_v26  ;;  %v3064_v58 = vld [vmem:[%s4659_s1 + $0x384] ss:$16 sps:$4 sm:$0xff]   ;;  %v3067_v0 = vld [vmem:[%s4659_s1 + $0x380] ss:$16 sps:$4 sm:$0xff]  }
  0x1c   :  { %1692 = vmatpush1.bf16.msra.mxu0 %v3031_v27  ;;  %1652 = vmatprep.subr.bf16.mxu1 %v3032_v28  ;;  %v45_v59 = vcombine.high %v37_v53, %v37_v53  ;;  %v44_v60 = vrot.slane %v30_v54, %v3648_v49  ;;  %v3068_v1 = vld [vmem:[%s4659_s1 + $0x1a4] ss:$16 sps:$4 sm:$0xff]   ;;  %v3072_v4 = vld [vmem:[%s4659_s1 + $0x1a0] ss:$16 sps:$4 sm:$0xff]   ;;  %v3735_v19 = vpack.c.bf16 %v37_v53, %v37_v53  ;;  %v3097_v27 = vld [vmem:[%s4659_s1 + $0x28] ss:$16 sps:$4 sm:$0xff]  }
  0x1d   :  { %1693 = vmatprep.subr.bf16.mxu0 %v3034_v29  ;;  %v3070_v2 = vld [vmem:[%s4659_s1 + $0x3a4] ss:$16 sps:$4 sm:$0xff]   ;;  %v3073_v5 = vld [vmem:[%s4659_s1 + $0x3a0] ss:$16 sps:$4 sm:$0xff]   ;;  %v3105_v29 = vld [vmem:[%s4659_s1 + $0x4c] ss:$16 sps:$4 sm:$0xff]  }
  0x1e   :  { %v73_v61 = vpack.c.bf16 %v45_v59, %v45_v59  ;;  %v46_v62 = vcombine.high %v44_v60, %v44_v60  ;;  %v3074_v6 = vld [vmem:[%s4659_s1 + $0x1c4] ss:$16 sps:$4 sm:$0xff]   ;;  %v3078_v9 = vld [vmem:[%s4659_s1 + $0x1c0] ss:$16 sps:$4 sm:$0xff]   ;;  %v3737_v20 = vpack.c.bf16 %v44_v60, %v44_v60  ;;  %v3133_v53 = vld [vmem:[%s4659_s1 + $0xe8] ss:$16 sps:$4 sm:$0xff]  }
  0x1f   :  { %1653 = vmatpush1.bf16.msra.mxu1 %v3036_v30  ;;  %v3076_v7 = vld [vmem:[%s4659_s1 + $0x3c4] ss:$16 sps:$4 sm:$0xff]   ;;  %v3079_v10 = vld [vmem:[%s4659_s1 + $0x3c0] ss:$16 sps:$4 sm:$0xff]   ;;  %v3147_v59 = vld [vmem:[%s4659_s1 + $0x12c] ss:$16 sps:$4 sm:$0xff]  }
  0x20   :  { %1694 = vmatpush1.bf16.msra.mxu0 %v3037_v31  ;;  %1654 = vmatprep.subr.bf16.mxu1 %v3038_v32  ;;  %v3685_v3 = vpack.c.bf16 %v46_v62, %v46_v62  ;;  %v3080_v11 = vld [vmem:[%s4659_s1 + $0x1e4] ss:$16 sps:$4 sm:$0xff]   ;;  %v3084_v14 = vld [vmem:[%s4659_s1 + $0x1e0] ss:$16 sps:$4 sm:$0xff]   ;;  %v3103_v31 = vld [vmem:[%s4659_s1 + $0x48] ss:$16 sps:$4 sm:$0xff]  }
  0x21   :  { %1695 = vmatprep.subr.bf16.mxu0 %v3040_v33  ;;  %1670 = vmatprep.mubr.bf16.mxu1 %v73_v61  ;;  %v3082_v12 = vld [vmem:[%s4659_s1 + $0x3e4] ss:$16 sps:$4 sm:$0xff]   ;;  %v3085_v15 = vld [vmem:[%s4659_s1 + $0x3e0] ss:$16 sps:$4 sm:$0xff]   ;;  %v3111_v33 = vld [vmem:[%s4659_s1 + $0x6c] ss:$16 sps:$4 sm:$0xff]  }
  0x22   :  { %1711 = vmatprep.mubr.bf16.mxu0 %v3685_v3  ;;  %v3090_v16 = vld [vmem:[%s4659_s1 + $0x404] ss:$16 sps:$4 sm:$0xff]   ;;  %v3088_v21 = vld [vmem:[%s4659_s1 + $0x400] ss:$16 sps:$4 sm:$0xff]  }
  0x23   :  { %1655 = vmatpush1.bf16.msra.mxu1 %v3042_v34  ;;  %v3096_v23 = vld [vmem:[%s4659_s1 + $0x424] ss:$16 sps:$4 sm:$0xff]   ;;  %v3094_v26 = vld [vmem:[%s4659_s1 + $0x420] ss:$16 sps:$4 sm:$0xff]  }
  0x24   :  { %1696 = vmatpush1.bf16.msra.mxu0 %v3043_v35  ;;  %1656 = vmatprep.subr.bf16.mxu1 %v3044_v39  ;;  %v3102_v28 = vld [vmem:[%s4659_s1 + $0x444] ss:$16 sps:$4 sm:$0xff]   ;;  %v3100_v30 = vld [vmem:[%s4659_s1 + $0x440] ss:$16 sps:$4 sm:$0xff]   ;;  %v3109_v35 = vld [vmem:[%s4659_s1 + $0x68] ss:$16 sps:$4 sm:$0xff]  }
  0x25   :  { %1697 = vmatprep.subr.bf16.mxu0 %v3046_v40  ;;  %v3108_v32 = vld [vmem:[%s4659_s1 + $0x464] ss:$16 sps:$4 sm:$0xff]   ;;  %v3106_v34 = vld [vmem:[%s4659_s1 + $0x460] ss:$16 sps:$4 sm:$0xff]   ;;  %v3115_v39 = vld [vmem:[%s4659_s1 + $0x88] ss:$16 sps:$4 sm:$0xff]  }
  0x26   :  { %v3114_v36 = vld [vmem:[%s4659_s1 + $0x484] ss:$16 sps:$4 sm:$0xff]   ;;  %v3112_v38 = vld [vmem:[%s4659_s1 + $0x480] ss:$16 sps:$4 sm:$0xff]  }
  0x27   :  { %1657 = vmatpush1.bf16.msra.mxu1 %v3048_v41  ;;  %v3120_v40 = vld [vmem:[%s4659_s1 + $0x4a4] ss:$16 sps:$4 sm:$0xff]   ;;  %v3123_v41 = vld [vmem:[%s4659_s1 + $0xac] ss:$16 sps:$4 sm:$0xff]   ;;  %v3118_v42 = vld [vmem:[%s4659_s1 + $0x4a0] ss:$16 sps:$4 sm:$0xff]  }
  0x28   :  { %1698 = vmatpush1.bf16.msra.mxu0 %v3049_v44  ;;  %1658 = vmatprep.subr.bf16.mxu1 %v3050_v45  ;;  %v3121_v44 = vld [vmem:[%s4659_s1 + $0xa8] ss:$16 sps:$4 sm:$0xff]   ;;  %v3126_v45 = vld [vmem:[%s4659_s1 + $0x4c4] ss:$16 sps:$4 sm:$0xff]   ;;  %v3130_v52 = vld [vmem:[%s4659_s1 + $0x4e0] ss:$16 sps:$4 sm:$0xff]  }
  0x29   :  { %1699 = vmatprep.subr.bf16.mxu0 %v3052_v46  ;;  %v3129_v46 = vld [vmem:[%s4659_s1 + $0xcc] ss:$16 sps:$4 sm:$0xff]   ;;  %v3138_v54 = vld [vmem:[%s4659_s1 + $0x504] ss:$16 sps:$4 sm:$0xff]   ;;  %v3142_v60 = vld [vmem:[%s4659_s1 + $0x520] ss:$16 sps:$4 sm:$0xff]  }
  0x2a   :  { %v3150_v62 = vld [vmem:[%s4659_s1 + $0x544] ss:$16 sps:$4 sm:$0xff]  }
  0x2b   :  { %1659 = vmatpush1.bf16.msra.mxu1 %v3054_v47  ;;  %v3124_v47 = vld [vmem:[%s4659_s1 + $0x4c0] ss:$16 sps:$4 sm:$0xff]  }
  0x2c   :  { %1700 = vmatpush1.bf16.msra.mxu0 %v3055_v48  ;;  %1660 = vmatprep.subr.bf16.mxu1 %v3056_v50  ;;  %v3127_v48 = vld [vmem:[%s4659_s1 + $0xc8] ss:$16 sps:$4 sm:$0xff]   ;;  %v3132_v50 = vld [vmem:[%s4659_s1 + $0x4e4] ss:$16 sps:$4 sm:$0xff]  }
  0x2d   :  { %1701 = vmatprep.subr.bf16.mxu0 %v3058_v51  ;;  %v3135_v51 = vld [vmem:[%s4659_s1 + $0xec] ss:$16 sps:$4 sm:$0xff]  }
  0x2f   :  { %1661 = vmatpush1.bf16.msra.mxu1 %v3060_v55  ;;  %v3141_v55 = vld [vmem:[%s4659_s1 + $0x10c] ss:$16 sps:$4 sm:$0xff]  }
  0x30   :  { %1702 = vmatpush1.bf16.msra.mxu0 %v3061_v56  ;;  %1662 = vmatprep.subr.bf16.mxu1 %v3062_v57  ;;  %v3136_v56 = vld [vmem:[%s4659_s1 + $0x500] ss:$16 sps:$4 sm:$0xff]   ;;  %v3139_v57 = vld [vmem:[%s4659_s1 + $0x108] ss:$16 sps:$4 sm:$0xff]  }
  0x31   :  { %1703 = vmatprep.subr.bf16.mxu0 %v3064_v58  ;;  %v3144_v58 = vld [vmem:[%s4659_s1 + $0x524] ss:$16 sps:$4 sm:$0xff]  }
  0x33   :  { %1663 = vmatpush1.bf16.msra.mxu1 %v3066_v63  ;;  %v3153_v63 = vld [vmem:[%s4659_s1 + $0x14c] ss:$16 sps:$4 sm:$0xff]  }
  0x34   :  { %1704 = vmatpush1.bf16.msra.mxu0 %v3067_v0  ;;  %1664 = vmatprep.subr.bf16.mxu1 %v3068_v1  ;;  %v3148_v0 = vld [vmem:[%s4659_s1 + $0x540] ss:$16 sps:$4 sm:$0xff]   ;;  %v3151_v1 = vld [vmem:[%s4659_s1 + $0x148] ss:$16 sps:$4 sm:$0xff]  }
  0x35   :  { %1705 = vmatprep.subr.bf16.mxu0 %v3070_v2  ;;  %v3156_v2 = vld [vmem:[%s4659_s1 + $0x564] ss:$16 sps:$4 sm:$0xff]  }
  0x37   :  { %1665 = vmatpush1.bf16.msra.mxu1 %v3072_v4  ;;  %v3159_v4 = vld [vmem:[%s4659_s1 + $0x16c] ss:$16 sps:$4 sm:$0xff]  }
  0x38   :  { %1706 = vmatpush1.bf16.msra.mxu0 %v3073_v5  ;;  %1666 = vmatprep.subr.bf16.mxu1 %v3074_v6  ;;  %v3154_v5 = vld [vmem:[%s4659_s1 + $0x560] ss:$16 sps:$4 sm:$0xff]   ;;  %v3157_v6 = vld [vmem:[%s4659_s1 + $0x168] ss:$16 sps:$4 sm:$0xff]  }
  0x39   :  { %1707 = vmatprep.subr.bf16.mxu0 %v3076_v7  ;;  %v3162_v7 = vld [vmem:[%s4659_s1 + $0x584] ss:$16 sps:$4 sm:$0xff]  }
  0x3b   :  { %1667 = vmatpush1.bf16.msra.mxu1 %v3078_v9  ;;  %v3165_v9 = vld [vmem:[%s4659_s1 + $0x18c] ss:$16 sps:$4 sm:$0xff]  }
  0x3c   :  { %1708 = vmatpush1.bf16.msra.mxu0 %v3079_v10  ;;  %1668 = vmatprep.subr.bf16.mxu1 %v3080_v11  ;;  %v3160_v10 = vld [vmem:[%s4659_s1 + $0x580] ss:$16 sps:$4 sm:$0xff]   ;;  %v3163_v11 = vld [vmem:[%s4659_s1 + $0x188] ss:$16 sps:$4 sm:$0xff]  }
  0x3d   :  { %1709 = vmatprep.subr.bf16.mxu0 %v3082_v12  ;;  %v3168_v12 = vld [vmem:[%s4659_s1 + $0x5a4] ss:$16 sps:$4 sm:$0xff]  }
  0x3f   :  { %1669 = vmatpush1.bf16.msra.mxu1 %v3084_v14  ;;  %v3171_v14 = vld [vmem:[%s4659_s1 + $0x1ac] ss:$16 sps:$4 sm:$0xff]  }
  0x40   :  { %1710 = vmatpush1.bf16.msra.mxu0 %v3085_v15  ;;  %1802 = vmatprep.subr.bf16.mxu1 %v3093_v17  ;;  %v3166_v15 = vld [vmem:[%s4659_s1 + $0x5a0] ss:$16 sps:$4 sm:$0xff]   ;;  %v3174_v17 = vld [vmem:[%s4659_s1 + $0x5c4] ss:$16 sps:$4 sm:$0xff]  }
  0x41   :  { %1720 = vmatprep.subr.bf16.mxu0 %v3090_v16  ;;  %v3169_v16 = vld [vmem:[%s4659_s1 + $0x1a8] ss:$16 sps:$4 sm:$0xff]  }
  0x42   :  { %1671 = vmatmul.mubr.bf16.vlgmr.msra.gmra.mrb[0].mxu1 %v3735_v19 }
  0x43   :  { %1712 = vmatmul.mubr.bf16.vlgmr.msra.gmra.mrb[0].mxu0 %v3737_v20  ;;  %1803 = vmatpush1.bf16.msra.mxu1 %v3091_v22  ;;  %v3172_v22 = vld [vmem:[%s4659_s1 + $0x5c0] ss:$16 sps:$4 sm:$0xff]  }
  0x44   :  { %1721 = vmatpush1.bf16.msra.mxu0 %v3088_v21  ;;  %1804 = vmatprep.subr.bf16.mxu1 %v3099_v24  ;;  %v47_v21 = vcombine.high %v3703_v8, %v3703_v8  ;;  %v3180_v24 = vld [vmem:[%s4659_s1 + $0x5e4] ss:$16 sps:$4 sm:$0xff]   ;;  %v3183_v8 = vld [vmem:[%s4659_s1 + $0x1ec] ss:$16 sps:$4 sm:$0xff]  }
  0x45   :  { %1722 = vmatprep.subr.bf16.mxu0 %v3096_v23  ;;  %1752 = vmatprep.mubr.bf16.mxu0 %v3751_v25  ;;  %v3175_v23 = vld [vmem:[%s4659_s1 + $0x1c8] ss:$16 sps:$4 sm:$0xff]  }
  0x46   :  { %1834 = vmatprep.mubr.bf16.mxu1 %v73_v61  ;;  %v3145_v61 = vld [vmem:[%s4659_s1 + $0x128] ss:$16 sps:$4 sm:$0xff]  }
  0x47   :  { %1805 = vmatpush1.bf16.msra.mxu1 %v3097_v27  ;;  %v3178_v27 = vld [vmem:[%s4659_s1 + $0x5e0] ss:$16 sps:$4 sm:$0xff]  }
  0x48   :  { %1723 = vmatpush1.bf16.msra.mxu0 %v3094_v26  ;;  %1806 = vmatprep.subr.bf16.mxu1 %v3105_v29  ;;  %v3927_v26 = vrot.slane %v47_v21, %v3648_v49  ;;  %v3186_v29 = vld [vmem:[%s4659_s1 + $0x604] ss:$16 sps:$4 sm:$0xff]   ;;  %v3189_v49 = vld [vmem:[%s4659_s1 + $0x20c] ss:$16 sps:$4 sm:$0xff]   ;;  %v3256_v21 = vld [vmem:[%s4659_s1 + $0x780] ss:$16 sps:$4 sm:$0xff]  }
  0x49   :  { %1724 = vmatprep.subr.bf16.mxu0 %v3102_v28  ;;  %v3181_v28 = vld [vmem:[%s4659_s1 + $0x1e8] ss:$16 sps:$4 sm:$0xff]  }
  0x4b   :  { %1807 = vmatpush1.bf16.msra.mxu1 %v3103_v31  ;;  %v3945_v31 = vpack.c.bf16 %v3719_v13, %v3719_v13  ;;  %v3195_v13 = vld [vmem:[%s4659_s1 + $0x22c] ss:$16 sps:$4 sm:$0xff]  }
  0x4c   :  { %1725 = vmatpush1.bf16.msra.mxu0 %v3100_v30  ;;  %1808 = vmatprep.subr.bf16.mxu1 %v3111_v33  ;;  %v63_v30 = vcombine.high %v3927_v26, %v3927_v26  ;;  %v3187_v33 = vld [vmem:[%s4659_s1 + $0x208] ss:$16 sps:$4 sm:$0xff]  }
  0x4d   :  { %1726 = vmatprep.subr.bf16.mxu0 %v3108_v32  ;;  %v3184_v32 = vld [vmem:[%s4659_s1 + $0x600] ss:$16 sps:$4 sm:$0xff]  }
  0x4f   :  { %1809 = vmatpush1.bf16.msra.mxu1 %v3109_v35  ;;  %v3959_v35 = vpack.c.bf16 %v63_v30, %v63_v30  ;;  %v3271_v30 = vld [vmem:[%s4659_s1 + $0x3c8] ss:$16 sps:$4 sm:$0xff]  }
  0x50   :  { %1727 = vmatpush1.bf16.msra.mxu0 %v3106_v34  ;;  %1810 = vmatprep.subr.bf16.mxu1 %v3117_v37  ;;  %v3192_v34 = vld [vmem:[%s4659_s1 + $0x624] ss:$16 sps:$4 sm:$0xff]   ;;  %v3193_v37 = vld [vmem:[%s4659_s1 + $0x228] ss:$16 sps:$4 sm:$0xff]  }
  0x51   :  { %1728 = vmatprep.subr.bf16.mxu0 %v3114_v36  ;;  %v3190_v36 = vld [vmem:[%s4659_s1 + $0x620] ss:$16 sps:$4 sm:$0xff]  }
  0x53   :  { %1811 = vmatpush1.bf16.msra.mxu1 %v3115_v39  ;;  %v3196_v39 = vld [vmem:[%s4659_s1 + $0x640] ss:$16 sps:$4 sm:$0xff]  }
  0x54   :  { %1729 = vmatpush1.bf16.msra.mxu0 %v3112_v38  ;;  %1812 = vmatprep.subr.bf16.mxu1 %v3123_v41  ;;  %v3198_v38 = vld [vmem:[%s4659_s1 + $0x644] ss:$16 sps:$4 sm:$0xff]  }
  0x55   :  { %1730 = vmatprep.subr.bf16.mxu0 %v3120_v40  ;;  %v3199_v40 = vld [vmem:[%s4659_s1 + $0x248] ss:$16 sps:$4 sm:$0xff]   ;;  %v3204_v41 = vld [vmem:[%s4659_s1 + $0x664] ss:$16 sps:$4 sm:$0xff]  }
  0x57   :  { %1813 = vmatpush1.bf16.msra.mxu1 %v3121_v44  ;;  %v3205_v44 = vld [vmem:[%s4659_s1 + $0x268] ss:$16 sps:$4 sm:$0xff]  }
  0x58   :  { %1731 = vmatpush1.bf16.msra.mxu0 %v3118_v42  ;;  %1814 = vmatprep.subr.bf16.mxu1 %v3129_v46  ;;  %v3202_v42 = vld [vmem:[%s4659_s1 + $0x660] ss:$16 sps:$4 sm:$0xff]   ;;  %v3213_v46 = vld [vmem:[%s4659_s1 + $0x28c] ss:$16 sps:$4 sm:$0xff]  }
  0x59   :  { %1732 = vmatprep.subr.bf16.mxu0 %v3126_v45  ;;  %v3210_v45 = vld [vmem:[%s4659_s1 + $0x684] ss:$16 sps:$4 sm:$0xff]  }
  0x5b   :  { %1815 = vmatpush1.bf16.msra.mxu1 %v3127_v48  ;;  %v3211_v48 = vld [vmem:[%s4659_s1 + $0x288] ss:$16 sps:$4 sm:$0xff]  }
  0x5c   :  { %1733 = vmatpush1.bf16.msra.mxu0 %v3124_v47  ;;  %1816 = vmatprep.subr.bf16.mxu1 %v3135_v51  ;;  %v3208_v47 = vld [vmem:[%s4659_s1 + $0x680] ss:$16 sps:$4 sm:$0xff]   ;;  %v3219_v51 = vld [vmem:[%s4659_s1 + $0x2ac] ss:$16 sps:$4 sm:$0xff]  }
  0x5d   :  { %1734 = vmatprep.subr.bf16.mxu0 %v3132_v50  ;;  %v3216_v50 = vld [vmem:[%s4659_s1 + $0x6a4] ss:$16 sps:$4 sm:$0xff]  }
  0x5f   :  { %1817 = vmatpush1.bf16.msra.mxu1 %v3133_v53  ;;  %v3217_v53 = vld [vmem:[%s4659_s1 + $0x2a8] ss:$16 sps:$4 sm:$0xff]  }
  0x60   :  { %1735 = vmatpush1.bf16.msra.mxu0 %v3130_v52  ;;  %1818 = vmatprep.subr.bf16.mxu1 %v3141_v55  ;;  %v3214_v52 = vld [vmem:[%s4659_s1 + $0x6a0] ss:$16 sps:$4 sm:$0xff]   ;;  %v3225_v55 = vld [vmem:[%s4659_s1 + $0x2cc] ss:$16 sps:$4 sm:$0xff]  }
  0x61   :  { %1736 = vmatprep.subr.bf16.mxu0 %v3138_v54  ;;  %v3222_v54 = vld [vmem:[%s4659_s1 + $0x6c4] ss:$16 sps:$4 sm:$0xff]  }
  0x63   :  { %1819 = vmatpush1.bf16.msra.mxu1 %v3139_v57  ;;  %v3223_v57 = vld [vmem:[%s4659_s1 + $0x2c8] ss:$16 sps:$4 sm:$0xff]  }
  0x64   :  { %1737 = vmatpush1.bf16.msra.mxu0 %v3136_v56  ;;  %1820 = vmatprep.subr.bf16.mxu1 %v3147_v59  ;;  %v3220_v56 = vld [vmem:[%s4659_s1 + $0x6c0] ss:$16 sps:$4 sm:$0xff]   ;;  %v3231_v59 = vld [vmem:[%s4659_s1 + $0x2ec] ss:$16 sps:$4 sm:$0xff]  }
  0x65   :  { %1738 = vmatprep.subr.bf16.mxu0 %v3144_v58  ;;  %v3228_v58 = vld [vmem:[%s4659_s1 + $0x6e4] ss:$16 sps:$4 sm:$0xff]  }
  0x67   :  { %1821 = vmatpush1.bf16.msra.mxu1 %v3145_v61  ;;  %v3229_v61 = vld [vmem:[%s4659_s1 + $0x2e8] ss:$16 sps:$4 sm:$0xff]  }
  0x68   :  { %1739 = vmatpush1.bf16.msra.mxu0 %v3142_v60  ;;  %1822 = vmatprep.subr.bf16.mxu1 %v3153_v63  ;;  %v3226_v60 = vld [vmem:[%s4659_s1 + $0x6e0] ss:$16 sps:$4 sm:$0xff]   ;;  %v3237_v63 = vld [vmem:[%s4659_s1 + $0x30c] ss:$16 sps:$4 sm:$0xff]  }
  0x69   :  { %1740 = vmatprep.subr.bf16.mxu0 %v3150_v62  ;;  %v3234_v62 = vld [vmem:[%s4659_s1 + $0x704] ss:$16 sps:$4 sm:$0xff]  }
  0x6b   :  { %1823 = vmatpush1.bf16.msra.mxu1 %v3151_v1  ;;  %v3235_v1 = vld [vmem:[%s4659_s1 + $0x308] ss:$16 sps:$4 sm:$0xff]  }
  0x6c   :  { %1741 = vmatpush1.bf16.msra.mxu0 %v3148_v0  ;;  %1824 = vmatprep.subr.bf16.mxu1 %v3159_v4  ;;  %v3232_v0 = vld [vmem:[%s4659_s1 + $0x700] ss:$16 sps:$4 sm:$0xff]   ;;  %v3243_v4 = vld [vmem:[%s4659_s1 + $0x32c] ss:$16 sps:$4 sm:$0xff]  }
  0x6d   :  { %1742 = vmatprep.subr.bf16.mxu0 %v3156_v2  ;;  %v3240_v2 = vld [vmem:[%s4659_s1 + $0x724] ss:$16 sps:$4 sm:$0xff]  }
  0x6f   :  { %1825 = vmatpush1.bf16.msra.mxu1 %v3157_v6  ;;  %v3241_v6 = vld [vmem:[%s4659_s1 + $0x328] ss:$16 sps:$4 sm:$0xff]  }
  0x70   :  { %1743 = vmatpush1.bf16.msra.mxu0 %v3154_v5  ;;  %1826 = vmatprep.subr.bf16.mxu1 %v3165_v9  ;;  %v3238_v5 = vld [vmem:[%s4659_s1 + $0x720] ss:$16 sps:$4 sm:$0xff]   ;;  %v3249_v9 = vld [vmem:[%s4659_s1 + $0x34c] ss:$16 sps:$4 sm:$0xff]  }
  0x71   :  { %1744 = vmatprep.subr.bf16.mxu0 %v3162_v7  ;;  %v3246_v7 = vld [vmem:[%s4659_s1 + $0x744] ss:$16 sps:$4 sm:$0xff]  }
  0x73   :  { %1827 = vmatpush1.bf16.msra.mxu1 %v3163_v11  ;;  %v3247_v11 = vld [vmem:[%s4659_s1 + $0x348] ss:$16 sps:$4 sm:$0xff]  }
  0x74   :  { %1745 = vmatpush1.bf16.msra.mxu0 %v3160_v10  ;;  %1828 = vmatprep.subr.bf16.mxu1 %v3171_v14  ;;  %v3244_v10 = vld [vmem:[%s4659_s1 + $0x740] ss:$16 sps:$4 sm:$0xff]   ;;  %v3255_v14 = vld [vmem:[%s4659_s1 + $0x36c] ss:$16 sps:$4 sm:$0xff]  }
  0x75   :  { %1746 = vmatprep.subr.bf16.mxu0 %v3168_v12  ;;  %v3252_v12 = vld [vmem:[%s4659_s1 + $0x764] ss:$16 sps:$4 sm:$0xff]  }
  0x77   :  { %1829 = vmatpush1.bf16.msra.mxu1 %v3169_v16  ;;  %v3253_v16 = vld [vmem:[%s4659_s1 + $0x368] ss:$16 sps:$4 sm:$0xff]  }
  0x78   :  { %1747 = vmatpush1.bf16.msra.mxu0 %v3166_v15  ;;  %1830 = vmatprep.subr.bf16.mxu1 %v3177_v18  ;;  %v3250_v15 = vld [vmem:[%s4659_s1 + $0x760] ss:$16 sps:$4 sm:$0xff]   ;;  %v3261_v18 = vld [vmem:[%s4659_s1 + $0x38c] ss:$16 sps:$4 sm:$0xff]  }
  0x79   :  { %1748 = vmatprep.subr.bf16.mxu0 %v3174_v17  ;;  %v3258_v17 = vld [vmem:[%s4659_s1 + $0x784] ss:$16 sps:$4 sm:$0xff]  }
  0x7b   :  { %1831 = vmatpush1.bf16.msra.mxu1 %v3175_v23  ;;  %v3264_v23 = vld [vmem:[%s4659_s1 + $0x7a4] ss:$16 sps:$4 sm:$0xff]  }
  0x7c   :  { %1749 = vmatpush1.bf16.msra.mxu0 %v3172_v22  ;;  %1832 = vmatprep.subr.bf16.mxu1 %v3183_v8  ;;  %v3259_v22 = vld [vmem:[%s4659_s1 + $0x388] ss:$16 sps:$4 sm:$0xff]   ;;  %v3262_v8 = vld [vmem:[%s4659_s1 + $0x7a0] ss:$16 sps:$4 sm:$0xff]  }
  0x7d   :  { %1750 = vmatprep.subr.bf16.mxu0 %v3180_v24  ;;  %v3267_v24 = vld [vmem:[%s4659_s1 + $0x3ac] ss:$16 sps:$4 sm:$0xff]  }
  0x7f   :  { %1833 = vmatpush1.bf16.msra.mxu1 %v3181_v28  ;;  %v3270_v28 = vld [vmem:[%s4659_s1 + $0x7c4] ss:$16 sps:$4 sm:$0xff]  }
  0x80   :  { %1751 = vmatpush1.bf16.msra.mxu0 %v3178_v27  ;;  %1843 = vmatprep.subr.bf16.mxu1 %v3189_v49  ;;  %v3265_v27 = vld [vmem:[%s4659_s1 + $0x3a8] ss:$16 sps:$4 sm:$0xff]   ;;  %v3268_v49 = vld [vmem:[%s4659_s1 + $0x7c0] ss:$16 sps:$4 sm:$0xff]  }
  0x81   :  { %1761 = vmatprep.subr.bf16.mxu0 %v3186_v29  ;;  %v3273_v29 = vld [vmem:[%s4659_s1 + $0x3cc] ss:$16 sps:$4 sm:$0xff]  }
  0x82   :  { %1835 = vmatmul.mubr.bf16.vlgmr.msra.gmra.mrb[4].mxu1 %v3735_v19  ;;  %v3201_v19 = vld [vmem:[%s4659_s1 + $0x24c] ss:$16 sps:$4 sm:$0xff]  }
  0x83   :  { %1753 = vmatmul.mubr.bf16.vlgmr.msra.gmra.mrb[0].mxu0 %v3945_v31  ;;  %1844 = vmatpush1.bf16.msra.mxu1 %v3187_v33  ;;  %v3279_v33 = vld [vmem:[%s4659_s1 + $0x3ec] ss:$16 sps:$4 sm:$0xff]  }
  0x84   :  { %1762 = vmatpush1.bf16.msra.mxu0 %v3184_v32  ;;  %1845 = vmatprep.subr.bf16.mxu1 %v3195_v13  ;;  %v3276_v32 = vld [vmem:[%s4659_s1 + $0x7e4] ss:$16 sps:$4 sm:$0xff]   ;;  %v3277_v13 = vld [vmem:[%s4659_s1 + $0x3e8] ss:$16 sps:$4 sm:$0xff]  }
  0x85   :  { %1763 = vmatprep.subr.bf16.mxu0 %v3192_v34  ;;  %1793 = vmatprep.mubr.bf16.mxu0 %v3959_v35  ;;  %v3274_v34 = vld [vmem:[%s4659_s1 + $0x7e0] ss:$16 sps:$4 sm:$0xff]  }
  0x86   :  { %1875 = vmatprep.mubr.bf16.mxu1 %v3685_v3  ;;  %v3207_v3 = vld [vmem:[%s4659_s1 + $0x26c] ss:$16 sps:$4 sm:$0xff]  }
  0x87   :  { %1846 = vmatpush1.bf16.msra.mxu1 %v3193_v37  ;;  %v4144_v37 = vpack.c.bf16 %v3927_v26, %v3927_v26  ;;  %v3283_v26 = vld [vmem:[%s4659_s1 + $0x428] ss:$16 sps:$4 sm:$0xff]  }
  0x88   :  { %1764 = vmatpush1.bf16.msra.mxu0 %v3190_v36  ;;  %1847 = vmatprep.subr.bf16.mxu1 %v3201_v19  ;;  %v3282_v36 = vld [vmem:[%s4659_s1 + $0x40c] ss:$16 sps:$4 sm:$0xff]  }
  0x89   :  { %1765 = vmatprep.subr.bf16.mxu0 %v3198_v38  ;;  %v3280_v38 = vld [vmem:[%s4659_s1 + $0x408] ss:$16 sps:$4 sm:$0xff]   ;;  %v3285_v19 = vld [vmem:[%s4659_s1 + $0x42c] ss:$16 sps:$4 sm:$0xff]  }
  0x8b   :  { %1848 = vmatpush1.bf16.msra.mxu1 %v3199_v40  ;;  %v3376_v40 = vld [vmem:[%s4661_s3] ss:$8 sps:$4 sm:$0xff]  }
  0x8c   :  { %1766 = vmatpush1.bf16.msra.mxu0 %v3196_v39  ;;  %1849 = vmatprep.subr.bf16.mxu1 %v3207_v3  ;;  %v3288_v39 = vld [vmem:[%s4659_s1 + $0x44c] ss:$16 sps:$4 sm:$0xff]   ;;  %v3286_v3 = vld [vmem:[%s4659_s1 + $0x448] ss:$16 sps:$4 sm:$0xff]  }
  0x8d   :  { %1767 = vmatprep.subr.bf16.mxu0 %v3204_v41  ;;  %v3381_v41 = vld [vmem:[%s4661_s3 + $0x14] ss:$8 sps:$4 sm:$0xff]  }
  0x8f   :  { %1850 = vmatpush1.bf16.msra.mxu1 %v3205_v44  ;;  %v3384_v44 = vld [vmem:[%s4661_s3 + $0x24] ss:$8 sps:$4 sm:$0xff]  }
  0x90   :  { %1768 = vmatpush1.bf16.msra.mxu0 %v3202_v42  ;;  %1851 = vmatprep.subr.bf16.mxu1 %v3213_v46  ;;  %v3379_v42 = vld [vmem:[%s4661_s3 + $0x10] ss:$8 sps:$4 sm:$0xff]   ;;  %v3294_v46 = vld [vmem:[%s4659_s1 + $0x48c] ss:$16 sps:$4 sm:$0xff]  }
  0x91   :  { %1769 = vmatprep.subr.bf16.mxu0 %v3210_v45  ;;  %v3289_v45 = vld [vmem:[%s4659_s1 + $0x468] ss:$16 sps:$4 sm:$0xff]  }
  0x93   :  { %1852 = vmatpush1.bf16.msra.mxu1 %v3211_v48  ;;  %v3387_v48 = vld [vmem:[%s4661_s3 + $0x34] ss:$8 sps:$4 sm:$0xff]  }
  0x94   :  { %1770 = vmatpush1.bf16.msra.mxu0 %v3208_v47  ;;  %1853 = vmatprep.subr.bf16.mxu1 %v3219_v51  ;;  %v3382_v47 = vld [vmem:[%s4661_s3 + $0x20] ss:$8 sps:$4 sm:$0xff]   ;;  %v3297_v51 = vld [vmem:[%s4659_s1 + $0x4ac] ss:$16 sps:$4 sm:$0xff]  }
  0x95   :  { %1771 = vmatprep.subr.bf16.mxu0 %v3216_v50  ;;  %v3292_v50 = vld [vmem:[%s4659_s1 + $0x488] ss:$16 sps:$4 sm:$0xff]  }
  0x97   :  { %1854 = vmatpush1.bf16.msra.mxu1 %v3217_v53  ;;  %v3390_v53 = vld [vmem:[%s4661_s3 + $0x44] ss:$8 sps:$4 sm:$0xff]  }
  0x98   :  { %1772 = vmatpush1.bf16.msra.mxu0 %v3214_v52  ;;  %1855 = vmatprep.subr.bf16.mxu1 %v3225_v55  ;;  %v3385_v52 = vld [vmem:[%s4661_s3 + $0x30] ss:$8 sps:$4 sm:$0xff]   ;;  %v3300_v55 = vld [vmem:[%s4659_s1 + $0x4cc] ss:$16 sps:$4 sm:$0xff]  }
  0x99   :  { %1773 = vmatprep.subr.bf16.mxu0 %v3222_v54  ;;  %v3295_v54 = vld [vmem:[%s4659_s1 + $0x4a8] ss:$16 sps:$4 sm:$0xff]  }
  0x9b   :  { %1856 = vmatpush1.bf16.msra.mxu1 %v3223_v57  ;;  %v3393_v57 = vld [vmem:[%s4661_s3 + $0x54] ss:$8 sps:$4 sm:$0xff]  }
  0x9c   :  { %1774 = vmatpush1.bf16.msra.mxu0 %v3220_v56  ;;  %1857 = vmatprep.subr.bf16.mxu1 %v3231_v59  ;;  %v3388_v56 = vld [vmem:[%s4661_s3 + $0x40] ss:$8 sps:$4 sm:$0xff]   ;;  %v3391_v59 = vld [vmem:[%s4661_s3 + $0x50] ss:$8 sps:$4 sm:$0xff]  }
  0x9d   :  { %1775 = vmatprep.subr.bf16.mxu0 %v3228_v58  ;;  %v3298_v58 = vld [vmem:[%s4659_s1 + $0x4c8] ss:$16 sps:$4 sm:$0xff]  }
  0x9f   :  { %1858 = vmatpush1.bf16.msra.mxu1 %v3229_v61  ;;  %v3396_v61 = vld [vmem:[%s4661_s3 + $0x64] ss:$8 sps:$4 sm:$0xff]  }
  0xa0   :  { %1776 = vmatpush1.bf16.msra.mxu0 %v3226_v60  ;;  %1859 = vmatprep.subr.bf16.mxu1 %v3237_v63  ;;  %v3303_v60 = vld [vmem:[%s4659_s1 + $0x4ec] ss:$16 sps:$4 sm:$0xff]   ;;  %v3394_v63 = vld [vmem:[%s4661_s3 + $0x60] ss:$8 sps:$4 sm:$0xff]  }
  0xa1   :  { %1777 = vmatprep.subr.bf16.mxu0 %v3234_v62  ;;  %v3301_v62 = vld [vmem:[%s4659_s1 + $0x4e8] ss:$16 sps:$4 sm:$0xff]  }
  0xa3   :  { %1860 = vmatpush1.bf16.msra.mxu1 %v3235_v1  ;;  %v3399_v1 = vld [vmem:[%s4661_s3 + $0x74] ss:$8 sps:$4 sm:$0xff]  }
  0xa4   :  { %1778 = vmatpush1.bf16.msra.mxu0 %v3232_v0  ;;  %1861 = vmatprep.subr.bf16.mxu1 %v3243_v4  ;;  %v3306_v0 = vld [vmem:[%s4659_s1 + $0x50c] ss:$16 sps:$4 sm:$0xff]   ;;  %v3397_v4 = vld [vmem:[%s4661_s3 + $0x70] ss:$8 sps:$4 sm:$0xff]  }
  0xa5   :  { %1779 = vmatprep.subr.bf16.mxu0 %v3240_v2  ;;  %v3304_v2 = vld [vmem:[%s4659_s1 + $0x508] ss:$16 sps:$4 sm:$0xff]  }
  0xa7   :  { %1862 = vmatpush1.bf16.msra.mxu1 %v3241_v6  ;;  %v3402_v6 = vld [vmem:[%s4661_s3 + $0x84] ss:$8 sps:$4 sm:$0xff]  }
  0xa8   :  { %1780 = vmatpush1.bf16.msra.mxu0 %v3238_v5  ;;  %1863 = vmatprep.subr.bf16.mxu1 %v3249_v9  ;;  %v3309_v5 = vld [vmem:[%s4659_s1 + $0x52c] ss:$16 sps:$4 sm:$0xff]   ;;  %v3400_v9 = vld [vmem:[%s4661_s3 + $0x80] ss:$8 sps:$4 sm:$0xff]  }
  0xa9   :  { %1781 = vmatprep.subr.bf16.mxu0 %v3246_v7  ;;  %v3307_v7 = vld [vmem:[%s4659_s1 + $0x528] ss:$16 sps:$4 sm:$0xff]  }
  0xab   :  { %1864 = vmatpush1.bf16.msra.mxu1 %v3247_v11  ;;  %v3405_v11 = vld [vmem:[%s4661_s3 + $0x94] ss:$8 sps:$4 sm:$0xff]  }
  0xac   :  { %1782 = vmatpush1.bf16.msra.mxu0 %v3244_v10  ;;  %1865 = vmatprep.subr.bf16.mxu1 %v3255_v14  ;;  %v3312_v10 = vld [vmem:[%s4659_s1 + $0x54c] ss:$16 sps:$4 sm:$0xff]   ;;  %v3403_v14 = vld [vmem:[%s4661_s3 + $0x90] ss:$8 sps:$4 sm:$0xff]  }
  0xad   :  { %1783 = vmatprep.subr.bf16.mxu0 %v3252_v12  ;;  %v3310_v12 = vld [vmem:[%s4659_s1 + $0x548] ss:$16 sps:$4 sm:$0xff]  }
  0xaf   :  { %1866 = vmatpush1.bf16.msra.mxu1 %v3253_v16  ;;  %v3408_v16 = vld [vmem:[%s4661_s3 + $0xa4] ss:$8 sps:$4 sm:$0xff]  }
  0xb0   :  { %1784 = vmatpush1.bf16.msra.mxu0 %v3250_v15  ;;  %1867 = vmatprep.subr.bf16.mxu1 %v3261_v18  ;;  %v3315_v15 = vld [vmem:[%s4659_s1 + $0x56c] ss:$16 sps:$4 sm:$0xff]   ;;  %v3406_v18 = vld [vmem:[%s4661_s3 + $0xa0] ss:$8 sps:$4 sm:$0xff]  }
  0xb1   :  { %1785 = vmatprep.subr.bf16.mxu0 %v3258_v17  ;;  %v3313_v17 = vld [vmem:[%s4659_s1 + $0x568] ss:$16 sps:$4 sm:$0xff]  }
  0xb3   :  { %1868 = vmatpush1.bf16.msra.mxu1 %v3259_v22  ;;  %v3411_v22 = vld [vmem:[%s4661_s3 + $0xb4] ss:$8 sps:$4 sm:$0xff]  }
  0xb4   :  { %1786 = vmatpush1.bf16.msra.mxu0 %v3256_v21  ;;  %1869 = vmatprep.subr.bf16.mxu1 %v3267_v24  ;;  %v3318_v21 = vld [vmem:[%s4659_s1 + $0x58c] ss:$16 sps:$4 sm:$0xff]   ;;  %v3409_v24 = vld [vmem:[%s4661_s3 + $0xb0] ss:$8 sps:$4 sm:$0xff]  }
  0xb5   :  { %1787 = vmatprep.subr.bf16.mxu0 %v3264_v23  ;;  %v3316_v23 = vld [vmem:[%s4659_s1 + $0x588] ss:$16 sps:$4 sm:$0xff]  }
  0xb7   :  { %1870 = vmatpush1.bf16.msra.mxu1 %v3265_v27  ;;  %v3414_v27 = vld [vmem:[%s4661_s3 + $0xc4] ss:$8 sps:$4 sm:$0xff]  }
  0xb8   :  { %1788 = vmatpush1.bf16.msra.mxu0 %v3262_v8  ;;  %1871 = vmatprep.subr.bf16.mxu1 %v3273_v29  ;;  %v3321_v8 = vld [vmem:[%s4659_s1 + $0x5ac] ss:$16 sps:$4 sm:$0xff]   ;;  %v3412_v29 = vld [vmem:[%s4661_s3 + $0xc0] ss:$8 sps:$4 sm:$0xff]  }
  0xb9   :  { %1789 = vmatprep.subr.bf16.mxu0 %v3270_v28  ;;  %v3319_v28 = vld [vmem:[%s4659_s1 + $0x5a8] ss:$16 sps:$4 sm:$0xff]  }
  0xbb   :  { %1872 = vmatpush1.bf16.msra.mxu1 %v3271_v30  ;;  %v3417_v30 = vld [vmem:[%s4661_s3 + $0xd4] ss:$8 sps:$4 sm:$0xff]  }
  0xbc   :  { %1790 = vmatpush1.bf16.msra.mxu0 %v3268_v49  ;;  %1873 = vmatprep.subr.bf16.mxu1 %v3279_v33  ;;  %v3324_v49 = vld [vmem:[%s4659_s1 + $0x5cc] ss:$16 sps:$4 sm:$0xff]   ;;  %v3415_v33 = vld [vmem:[%s4661_s3 + $0xd0] ss:$8 sps:$4 sm:$0xff]  }
  0xbd   :  { %1791 = vmatprep.subr.bf16.mxu0 %v3276_v32  ;;  %v3322_v32 = vld [vmem:[%s4659_s1 + $0x5c8] ss:$16 sps:$4 sm:$0xff]  }
  0xbf   :  { %1874 = vmatpush1.bf16.msra.mxu1 %v3277_v13  ;;  %v3325_v13 = vld [vmem:[%s4659_s1 + $0x5e8] ss:$16 sps:$4 sm:$0xff]  }
  0xc0   :  { %1792 = vmatpush1.bf16.msra.mxu0 %v3274_v34  ;;  %1884 = vmatprep.subr.bf16.mxu1 %v3282_v36  ;;  %v3327_v34 = vld [vmem:[%s4659_s1 + $0x5ec] ss:$16 sps:$4 sm:$0xff]  }
  0xc1   :  { %v3330_v36 = vld [vmem:[%s4659_s1 + $0x60c] ss:$16 sps:$4 sm:$0xff]  }
  0xc2   :  { %1876 = vmatmul.mubr.bf16.vlgmr.msra.gmra.mrb[4].mxu1 %v3737_v20  ;;  %v3378_v20 = vld [vmem:[%s4661_s3 + $0x4] ss:$8 sps:$4 sm:$0xff]  }
  0xc3   :  { %1794 = vmatmul.mubr.bf16.vlgmr.msra.gmra.mrb[0].mxu0 %v4144_v37  ;;  %1885 = vmatpush1.bf16.msra.mxu1 %v3280_v38  ;;  %v3328_v38 = vld [vmem:[%s4659_s1 + $0x608] ss:$16 sps:$4 sm:$0xff]  }
  0xc4   :  { %1916 = vmatprep.mubr.bf16.mxu1 %v3751_v25  ;;  %1886 = vmatprep.subr.bf16.mxu1 %v3285_v19  ;;  %v3291_v25 = vld [vmem:[%s4659_s1 + $0x46c] ss:$16 sps:$4 sm:$0xff]  }
  0xc5   :  { %2370 = vmatprep.subr.bf16.mxu0 %v3378_v20  ;;  %v3333_v19 = vld [vmem:[%s4659_s1 + $0x62c] ss:$16 sps:$4 sm:$0xff]  }
  0xc6   :  { %2371 = vmatpush1.bf16.msra.mxu0 %v3376_v40  ;;  %v3334_v40 = vld [vmem:[%s4659_s1 + $0x648] ss:$16 sps:$4 sm:$0xff]   ;;  %v3342_v20 = vld [vmem:[%s4659_s1 + $0x68c] ss:$16 sps:$4 sm:$0xff]  }
  0xc7   :  { %1887 = vmatpush1.bf16.msra.mxu1 %v3283_v26  ;;  %2372 = vmatprep.subr.bf16.mxu0 %v3381_v41  ;;  %v3331_v26 = vld [vmem:[%s4659_s1 + $0x628] ss:$16 sps:$4 sm:$0xff]  }
  0xc8   :  { %1888 = vmatprep.subr.bf16.mxu1 %v3288_v39  ;;  %v3336_v39 = vld [vmem:[%s4659_s1 + $0x64c] ss:$16 sps:$4 sm:$0xff]   ;;  %v3340_v41 = vld [vmem:[%s4659_s1 + $0x688] ss:$16 sps:$4 sm:$0xff]  }
  0xca   :  { %2373 = vmatpush1.bf16.msra.mxu0 %v3379_v42  ;;  %v3348_v42 = vld [vmem:[%s4659_s1 + $0x6cc] ss:$16 sps:$4 sm:$0xff]  }
  0xcb   :  { %1889 = vmatpush1.bf16.msra.mxu1 %v3286_v3  ;;  %2374 = vmatprep.subr.bf16.mxu0 %v3384_v44  ;;  %v3345_v3 = vld [vmem:[%s4659_s1 + $0x6ac] ss:$16 sps:$4 sm:$0xff]  }
  0xcc   :  { %1890 = vmatprep.subr.bf16.mxu1 %v3291_v25  ;;  %v3343_v25 = vld [vmem:[%s4659_s1 + $0x6a8] ss:$16 sps:$4 sm:$0xff]   ;;  %v3420_v44 = vld [vmem:[%s4661_s3 + $0xe4] ss:$8 sps:$4 sm:$0xff]  }
  0xce   :  { %2375 = vmatpush1.bf16.msra.mxu0 %v3382_v47 }
  0xcf   :  { %1891 = vmatpush1.bf16.msra.mxu1 %v3289_v45  ;;  %2376 = vmatprep.subr.bf16.mxu0 %v3387_v48 }
  0xd0   :  { %1892 = vmatprep.subr.bf16.mxu1 %v3294_v46  ;;  %v3418_v46 = vld [vmem:[%s4661_s3 + $0xe0] ss:$8 sps:$4 sm:$0xff]  }
  0xd2   :  { %2377 = vmatpush1.bf16.msra.mxu0 %v3385_v52  ;;  %v3351_v52 = vld [vmem:[%s4659_s1 + $0x6ec] ss:$16 sps:$4 sm:$0xff]  }
  0xd3   :  { %1893 = vmatpush1.bf16.msra.mxu1 %v3292_v50  ;;  %2378 = vmatprep.subr.bf16.mxu0 %v3390_v53  ;;  %v3346_v50 = vld [vmem:[%s4659_s1 + $0x6c8] ss:$16 sps:$4 sm:$0xff]   ;;  %v3423_v53 = vld [vmem:[%s4661_s3 + $0xf4] ss:$8 sps:$4 sm:$0xff]  }
  0xd4   :  { %1894 = vmatprep.subr.bf16.mxu1 %v3297_v51 }
  0xd6   :  { %2379 = vmatpush1.bf16.msra.mxu0 %v3388_v56  ;;  %v3354_v56 = vld [vmem:[%s4659_s1 + $0x70c] ss:$16 sps:$4 sm:$0xff]  }
  0xd7   :  { %1895 = vmatpush1.bf16.msra.mxu1 %v3295_v54  ;;  %2380 = vmatprep.subr.bf16.mxu0 %v3393_v57  ;;  %v3421_v54 = vld [vmem:[%s4661_s3 + $0xf0] ss:$8 sps:$4 sm:$0xff]   ;;  %v3426_v57 = vld [vmem:[%s4661_s3 + $0x104] ss:$8 sps:$4 sm:$0xff]  }
  0xd8   :  { %1896 = vmatprep.subr.bf16.mxu1 %v3300_v55  ;;  %v3349_v55 = vld [vmem:[%s4659_s1 + $0x6e8] ss:$16 sps:$4 sm:$0xff]  }
  0xda   :  { %2381 = vmatpush1.bf16.msra.mxu0 %v3391_v59  ;;  %v3357_v59 = vld [vmem:[%s4659_s1 + $0x72c] ss:$16 sps:$4 sm:$0xff]  }
  0xdb   :  { %1897 = vmatpush1.bf16.msra.mxu1 %v3298_v58  ;;  %2382 = vmatprep.subr.bf16.mxu0 %v3396_v61  ;;  %v3352_v58 = vld [vmem:[%s4659_s1 + $0x708] ss:$16 sps:$4 sm:$0xff]   ;;  %v3360_v61 = vld [vmem:[%s4659_s1 + $0x74c] ss:$16 sps:$4 sm:$0xff]  }
  0xdc   :  { %1898 = vmatprep.subr.bf16.mxu1 %v3303_v60  ;;  %v3355_v60 = vld [vmem:[%s4659_s1 + $0x728] ss:$16 sps:$4 sm:$0xff]  }
  0xde   :  { %2383 = vmatpush1.bf16.msra.mxu0 %v3394_v63  ;;  %v3363_v63 = vld [vmem:[%s4659_s1 + $0x76c] ss:$16 sps:$4 sm:$0xff]  }
  0xdf   :  { %1899 = vmatpush1.bf16.msra.mxu1 %v3301_v62  ;;  %2384 = vmatprep.subr.bf16.mxu0 %v3399_v1  ;;  %v3358_v62 = vld [vmem:[%s4659_s1 + $0x748] ss:$16 sps:$4 sm:$0xff]   ;;  %v3366_v1 = vld [vmem:[%s4659_s1 + $0x78c] ss:$16 sps:$4 sm:$0xff]  }
  0xe0   :  { %1900 = vmatprep.subr.bf16.mxu1 %v3306_v0  ;;  %v3361_v0 = vld [vmem:[%s4659_s1 + $0x768] ss:$16 sps:$4 sm:$0xff]  }
  0xe2   :  { %2385 = vmatpush1.bf16.msra.mxu0 %v3397_v4  ;;  %v3369_v4 = vld [vmem:[%s4659_s1 + $0x7ac] ss:$16 sps:$4 sm:$0xff]  }
  0xe3   :  { %1901 = vmatpush1.bf16.msra.mxu1 %v3304_v2  ;;  %2386 = vmatprep.subr.bf16.mxu0 %v3402_v6  ;;  %v3364_v2 = vld [vmem:[%s4659_s1 + $0x788] ss:$16 sps:$4 sm:$0xff]   ;;  %v3372_v6 = vld [vmem:[%s4659_s1 + $0x7cc] ss:$16 sps:$4 sm:$0xff]  }
  0xe4   :  { %1902 = vmatprep.subr.bf16.mxu1 %v3309_v5  ;;  %v3367_v5 = vld [vmem:[%s4659_s1 + $0x7a8] ss:$16 sps:$4 sm:$0xff]  }
  0xe6   :  { %2387 = vmatpush1.bf16.msra.mxu0 %v3400_v9  ;;  %v3375_v9 = vld [vmem:[%s4659_s1 + $0x7ec] ss:$16 sps:$4 sm:$0xff]  }
  0xe7   :  { %1903 = vmatpush1.bf16.msra.mxu1 %v3307_v7  ;;  %2388 = vmatprep.subr.bf16.mxu0 %v3405_v11  ;;  %v3370_v7 = vld [vmem:[%s4659_s1 + $0x7c8] ss:$16 sps:$4 sm:$0xff]   ;;  %v340_v11 = vsub.s32 0, %v3630_v43 }
  0xe8   :  { %1904 = vmatprep.subr.bf16.mxu1 %v3312_v10  ;;  %v3373_v10 = vld [vmem:[%s4659_s1 + $0x7e8] ss:$16 sps:$4 sm:$0xff]  }
  0xea   :  { %2389 = vmatpush1.bf16.msra.mxu0 %v3403_v14  ;;  %v344_v14 = vsub.s32 1, %v3630_v43 }
  0xeb   :  { %1905 = vmatpush1.bf16.msra.mxu1 %v3310_v12  ;;  %2390 = vmatprep.subr.bf16.mxu0 %v3408_v16  ;;  %v4444_v12 = vld [vmem:[%s4662_s2] sm:$0xf] }
  0xec   :  { %1906 = vmatprep.subr.bf16.mxu1 %v3315_v15  ;;  %v341_v15 = vrot.slane %v4444_v12, %v340_v11  ;;  %v345_v16 = vrot.slane %v4444_v12, %v344_v14 }
  0xee   :  { %2391 = vmatpush1.bf16.msra.mxu0 %v3406_v18 }
  0xef   :  { %1907 = vmatpush1.bf16.msra.mxu1 %v3313_v17  ;;  %2392 = vmatprep.subr.bf16.mxu0 %v3411_v22 }
  0xf0   :  { %1908 = vmatprep.subr.bf16.mxu1 %v3318_v21 }
  0xf2   :  { %2393 = vmatpush1.bf16.msra.mxu0 %v3409_v24 }
  0xf3   :  { %1909 = vmatpush1.bf16.msra.mxu1 %v3316_v23  ;;  %2394 = vmatprep.subr.bf16.mxu0 %v3414_v27 }
  0xf4   :  { %1910 = vmatprep.subr.bf16.mxu1 %v3321_v8 }
  0xf6   :  { %2395 = vmatpush1.bf16.msra.mxu0 %v3412_v29 }
  0xf7   :  { %1911 = vmatpush1.bf16.msra.mxu1 %v3319_v28  ;;  %2396 = vmatprep.subr.bf16.mxu0 %v3417_v30 }
  0xf8   :  { %1912 = vmatprep.subr.bf16.mxu1 %v3324_v49  ;;  %v3424_v49 = vld [vmem:[%s4661_s3 + $0x100] ss:$8 sps:$4 sm:$0xff]  }
  0xfa   :  { %2397 = vmatpush1.bf16.msra.mxu0 %v3415_v33  ;;  %v3427_v33 = vld [vmem:[%s4661_s3 + $0x110] ss:$8 sps:$4 sm:$0xff]  }
  0xfb   :  { %1913 = vmatpush1.bf16.msra.mxu1 %v3322_v32  ;;  %2398 = vmatprep.subr.bf16.mxu0 %v3420_v44  ;;  %v3429_v32 = vld [vmem:[%s4661_s3 + $0x114] ss:$8 sps:$4 sm:$0xff]  }
  0xfc   :  { %1914 = vmatprep.subr.bf16.mxu1 %v3327_v34  ;;  %v3432_v34 = vld [vmem:[%s4661_s3 + $0x124] ss:$8 sps:$4 sm:$0xff]  }
  0xfe   :  { %2399 = vmatpush1.bf16.msra.mxu0 %v3418_v46 }
  0xff   :  { %1915 = vmatpush1.bf16.msra.mxu1 %v3325_v13  ;;  %2400 = vmatprep.subr.bf16.mxu0 %v3423_v53  ;;  %v2470_v13 = vld [vmem:[%s4663_s5 + $0x80] sm:$0xff] }
 0x100   :  { %1925 = vmatprep.subr.bf16.mxu1 %v3330_v36  ;;  %v2471_v36 = vld [vmem:[%s4663_s5 + $0x88] sm:$0xff] }
 0x102   :  { %1917 = vmatmul.mubr.bf16.vlgmr.msra.gmra.mrb[4].mxu1 %v3945_v31  ;;  %v3339_v31 = vld [vmem:[%s4659_s1 + $0x66c] ss:$16 sps:$4 sm:$0xff]   ;;  %2401 = vmatpush1.bf16.msra.mxu0 %v3421_v54 }
 0x103   :  { %1926 = vmatpush1.bf16.msra.mxu1 %v3328_v38  ;;  %1957 = vmatprep.mubr.bf16.mxu1 %v3959_v35  ;;  %v3337_v35 = vld [vmem:[%s4659_s1 + $0x668] ss:$16 sps:$4 sm:$0xff]   ;;  %v2454_v38 = vld [vmem:[%s4663_s5] sm:$0xff] }
 0x104   :  { %1927 = vmatprep.subr.bf16.mxu1 %v3333_v19  ;;  %2411 = vmatprep.subr.bf16.mxu0 %v3426_v57  ;;  %v2925_v19 = vpack.c.bf16 %v2471_v36, %v2470_v13  ;;  %v3438_v54 = vld [vmem:[%s4661_s3 + $0x144] ss:$8 sps:$4 sm:$0xff]   ;;  %v2461_v57 = vld [vmem:[%s4663_s5 + $0x38] sm:$0xff] }
 0x105   :  { %v3465_v13 = vld [vmem:[%s4661_s3 + $0x1d4] ss:$8 sps:$4 sm:$0xff]   ;;  %v3463_v36 = vld [vmem:[%s4661_s3 + $0x1d0] ss:$8 sps:$4 sm:$0xff]  }
 0x107   :  { %1928 = vmatpush1.bf16.msra.mxu1 %v3331_v26  ;;  %v2455_v26 = vld [vmem:[%s4663_s5 + $0x8] sm:$0xff] }
 0x108   :  { %1929 = vmatprep.subr.bf16.mxu1 %v3336_v39  ;;  %v2472_v39 = vld [vmem:[%s4663_s5 + $0x90] sm:$0xff] }
 0x10b   :  { %1930 = vmatpush1.bf16.msra.mxu1 %v3334_v40  ;;  %v2473_v40 = vld [vmem:[%s4663_s5 + $0x98] sm:$0xff] }
 0x10c   :  { %1931 = vmatprep.subr.bf16.mxu1 %v3339_v31  ;;  %v2927_v31 = vpack.c.bf16 %v2455_v26, %v2454_v38  ;;  %v3468_v38 = vld [vmem:[%s4661_s3 + $0x1e4] ss:$8 sps:$4 sm:$0xff]   ;;  %v3471_v26 = vld [vmem:[%s4661_s3 + $0x1f4] ss:$8 sps:$4 sm:$0xff]  }
 0x10f   :  { %1932 = vmatpush1.bf16.msra.mxu1 %v3337_v35  ;;  %v2929_v35 = vpack.c.bf16 %v2473_v40, %v2472_v39  ;;  %v3469_v39 = vld [vmem:[%s4661_s3 + $0x1f0] ss:$8 sps:$4 sm:$0xff]   ;;  %v348_v40 = vsub.s32 2, %v3630_v43 }
 0x110   :  { %1933 = vmatprep.subr.bf16.mxu1 %v3342_v20  ;;  %v2456_v20 = vld [vmem:[%s4663_s5 + $0x10] sm:$0xff] }
 0x113   :  { %1934 = vmatpush1.bf16.msra.mxu1 %v3340_v41  ;;  %v2457_v41 = vld [vmem:[%s4663_s5 + $0x18] sm:$0xff] }
 0x114   :  { %1935 = vmatprep.subr.bf16.mxu1 %v3345_v3  ;;  %v2474_v3 = vld [vmem:[%s4663_s5 + $0xa0] sm:$0xff]  ;;  %v2931_v44 = vpack.c.bf16 %v2457_v41, %v2456_v20 }
 0x115   :  { %v1672_v45 = vpop.f32.mrb[0].mxu1 }
 0x116   :  { %v1674_v47 = vpop.f32.mrb[1].mxu1  ;;  %v1673_v17 = vadd.f32 %v1672_v45, %v341_v15  ;;  %v3435_v45 = vld [vmem:[%s4661_s3 + $0x134] ss:$8 sps:$4 sm:$0xff]  }
 0x117   :  { %v1676_v48 = vpop.f32.mrb[2].mxu1  ;;  %1936 = vmatpush1.bf16.msra.mxu1 %v3343_v25  ;;  %v1675_v18 = vadd.f32 %v1674_v47, %v345_v16  ;;  %v2475_v25 = vld [vmem:[%s4663_s5 + $0xa8] sm:$0xff]  ;;  %v2458_v47 = vld [vmem:[%s4663_s5 + $0x20] sm:$0xff]  ;;  %v2465_v15 = vld [vmem:[%s4663_s5 + $0x58] sm:$0xff] }
 0x118   :  { %v1677_v51 = vpop.f32.mrb[3].mxu1  ;;  %1937 = vmatprep.subr.bf16.mxu1 %v3348_v42  ;;  %v3430_v42 = vld [vmem:[%s4661_s3 + $0x120] ss:$8 sps:$4 sm:$0xff]   ;;  %v2933_v46 = vpack.c.bf16 %v2475_v25, %v2474_v3 }
 0x119   :  { %v2459_v48 = vld [vmem:[%s4663_s5 + $0x28] sm:$0xff]  ;;  %v2477_v51 = vld [vmem:[%s4663_s5 + $0xb8] sm:$0xff]  ;;  %v2482_v16 = vld [vmem:[%s4663_s5 + $0xe0] sm:$0xff] }
 0x11a   :  { %v2935_v53 = vpack.c.bf16 %v2459_v48, %v2458_v47 }
 0x11b   :  { %1938 = vmatpush1.bf16.msra.mxu1 %v3346_v50  ;;  %v2476_v50 = vld [vmem:[%s4663_s5 + $0xb0] sm:$0xff] }
 0x11c   :  { %1939 = vmatprep.subr.bf16.mxu1 %v3351_v52  ;;  %v3433_v52 = vld [vmem:[%s4661_s3 + $0x130] ss:$8 sps:$4 sm:$0xff]  }
 0x11f   :  { %1940 = vmatpush1.bf16.msra.mxu1 %v3349_v55  ;;  %v2937_v55 = vpack.c.bf16 %v2477_v51, %v2476_v50  ;;  %v2466_v51 = vld [vmem:[%s4663_s5 + $0x60] sm:$0xff] }
 0x120   :  { %1941 = vmatprep.subr.bf16.mxu1 %v3354_v56  ;;  %v2460_v56 = vld [vmem:[%s4663_s5 + $0x30] sm:$0xff] }
 0x123   :  { %1942 = vmatpush1.bf16.msra.mxu1 %v3352_v58  ;;  %v2478_v58 = vld [vmem:[%s4663_s5 + $0xc0] sm:$0xff] }
 0x124   :  { %1943 = vmatprep.subr.bf16.mxu1 %v3357_v59  ;;  %v2479_v59 = vld [vmem:[%s4663_s5 + $0xc8] sm:$0xff] }
 0x127   :  { %1944 = vmatpush1.bf16.msra.mxu1 %v3355_v60  ;;  %v3436_v60 = vld [vmem:[%s4661_s3 + $0x140] ss:$8 sps:$4 sm:$0xff]  }
 0x128   :  { %1945 = vmatprep.subr.bf16.mxu1 %v3360_v61  ;;  %v2939_v61 = vpack.c.bf16 %v2461_v57, %v2460_v56  ;;  %v2468_v56 = vld [vmem:[%s4663_s5 + $0x70] sm:$0xff]  ;;  %v2469_v57 = vld [vmem:[%s4663_s5 + $0x78] sm:$0xff] }
 0x12b   :  { %1946 = vmatpush1.bf16.msra.mxu1 %v3358_v62  ;;  %v3441_v62 = vld [vmem:[%s4661_s3 + $0x154] ss:$8 sps:$4 sm:$0xff]  }
 0x12c   :  { %1947 = vmatprep.subr.bf16.mxu1 %v3363_v63  ;;  %v2941_v63 = vpack.c.bf16 %v2479_v59, %v2478_v58  ;;  %v2955_v58 = vpack.c.bf16 %v2469_v57, %v2468_v56  ;;  %v2038_v59 = vld [vmem:[%s4664_s4] sm:$0x3] }
 0x12f   :  { %1948 = vmatpush1.bf16.msra.mxu1 %v3361_v0  ;;  %v2462_v0 = vld [vmem:[%s4663_s5 + $0x40] sm:$0xff] }
 0x130   :  { %1949 = vmatprep.subr.bf16.mxu1 %v3366_v1  ;;  %v2463_v1 = vld [vmem:[%s4663_s5 + $0x48] sm:$0xff] }
 0x133   :  { %1950 = vmatpush1.bf16.msra.mxu1 %v3364_v2  ;;  %v2480_v2 = vld [vmem:[%s4663_s5 + $0xd0] sm:$0xff] }
 0x134   :  { %1951 = vmatprep.subr.bf16.mxu1 %v3369_v4  ;;  %v2481_v4 = vld [vmem:[%s4663_s5 + $0xd8] sm:$0xff] }
 0x137   :  { %1952 = vmatpush1.bf16.msra.mxu1 %v3367_v5  ;;  %v3439_v5 = vld [vmem:[%s4661_s3 + $0x150] ss:$8 sps:$4 sm:$0xff]  }
 0x138   :  { %1953 = vmatprep.subr.bf16.mxu1 %v3372_v6  ;;  %v2943_v6 = vpack.c.bf16 %v2463_v1, %v2462_v0 }
 0x13b   :  { %1954 = vmatpush1.bf16.msra.mxu1 %v3370_v7  ;;  %v3444_v7 = vld [vmem:[%s4661_s3 + $0x164] ss:$8 sps:$4 sm:$0xff]  }
 0x13c   :  { %1955 = vmatprep.subr.bf16.mxu1 %v3375_v9  ;;  %v2945_v9 = vpack.c.bf16 %v2481_v4, %v2480_v2 }
 0x13f   :  { %1956 = vmatpush1.bf16.msra.mxu1 %v3373_v10  ;;  %v2464_v10 = vld [vmem:[%s4663_s5 + $0x50] sm:$0xff] }
 0x140   :  { %2926 = vmatprep.subr.bf16.mxu1 %v2925_v19  ;;  %v3466_v19 = vld [vmem:[%s4661_s3 + $0x1e0] ss:$8 sps:$4 sm:$0xff]  }
 0x142   :  { %1958 = vmatmul.mubr.bf16.vlgmr.msra.gmra.mrb[4].mxu1 %v4144_v37 }
 0x143   :  { %2928 = vmatpush3.bf16.msra.mxu1 %v2927_v31  ;;  %v352_v31 = vsub.s32 3, %v3630_v43 }
 0x144   :  { %2930 = vmatprep.subr.bf16.mxu1 %v2929_v35  ;;  %v349_v35 = vrot.slane %v4444_v12, %v348_v40 }
 0x145   :  { %v353_v20 = vrot.slane %v4444_v12, %v352_v31  ;;  %v2467_v12 = vld [vmem:[%s4663_s5 + $0x68] sm:$0xff] }
 0x147   :  { %2932 = vmatpush3.bf16.msra.mxu1 %v2931_v44 }
 0x148   :  { %2934 = vmatprep.subr.bf16.mxu1 %v2933_v46 }
 0x14b   :  { %2936 = vmatpush3.bf16.msra.mxu1 %v2935_v53  ;;  %v2484_v53 = vld [vmem:[%s4663_s5 + $0xf0] sm:$0xff] }
 0x14c   :  { %2938 = vmatprep.subr.bf16.mxu1 %v2937_v55 }
 0x14f   :  { %2940 = vmatpush3.bf16.msra.mxu1 %v2939_v61  ;;  %v2047_v61 = vrot.slane %v2038_v59, %v344_v14 }
 0x150   :  { %2942 = vmatprep.subr.bf16.mxu1 %v2941_v63 }
 0x153   :  { %2944 = vmatpush3.bf16.msra.mxu1 %v2943_v6 }
 0x154   :  { %2946 = vmatprep.subr.bf16.mxu1 %v2945_v9  ;;  %v2889_v9 = vld [vmem:[%s4665_s6] ss:$0 sm:$0xff] }
 0x196   :  { %v1795_v37 = vpop.f32.mrb[0].mxu0 }
 0x197   :  { %v2958_v21 = vadd.f32 %v1795_v37, %v1673_v17  ;;  %v1797_v22 = vpop.f32.mrb[1].mxu0  ;;  %v2483_v17 = vld [vmem:[%s4663_s5 + $0xe8] sm:$0xff]  ;;  %v2947_v37 = vpack.c.bf16 %v2465_v15, %v2464_v10 }
 0x198   :  { %v2960_v23 = vadd.f32 %v1797_v22, %v1675_v18  ;;  %v1799_v24 = vpop.f32.mrb[2].mxu0  ;;  %v3442_v18 = vld [vmem:[%s4661_s3 + $0x160] ss:$8 sps:$4 sm:$0xff]   ;;  %v2949_v22 = vpack.c.bf16 %v2483_v17, %v2482_v16 }
 0x199   :  { %v1966_v8 = vmax.f32 %v2958_v21, 0.0  ;;  %v1800_v27 = vpop.f32.mrb[3].mxu0  ;;  %v3447_v21 = vld [vmem:[%s4661_s3 + $0x174] ss:$8 sps:$4 sm:$0xff]   ;;  %2948 = vmatpush3.bf16.msra.mxu1 %v2947_v37  ;;  %v3450_v24 = vld [vmem:[%s4661_s3 + $0x184] ss:$8 sps:$4 sm:$0xff]  }
 0x19a   :  { %v1967_v28 = vmax.f32 %v2960_v23, 0.0  ;;  %v3445_v23 = vld [vmem:[%s4661_s3 + $0x170] ss:$8 sps:$4 sm:$0xff]   ;;  %2950 = vmatprep.subr.bf16.mxu1 %v2949_v22  ;;  %v3453_v27 = vld [vmem:[%s4661_s3 + $0x194] ss:$8 sps:$4 sm:$0xff]  }
 0x19b   :  { %v1970_v30 = vpack.c.bf16 %v1966_v8, %v1966_v8  ;;  %v3448_v8 = vld [vmem:[%s4661_s3 + $0x180] ss:$8 sps:$4 sm:$0xff]  }
 0x19c   :  { %v1971_v29 = vpack.c.bf16 %v1967_v28, %v1967_v28  ;;  %v3451_v28 = vld [vmem:[%s4661_s3 + $0x190] ss:$8 sps:$4 sm:$0xff]  }
 0x19e   :  { %2402 = vmatprep.mubr.bf16.mxu0 %v1971_v29  ;;  %v3456_v29 = vld [vmem:[%s4661_s3 + $0x1a4] ss:$8 sps:$4 sm:$0xff]  }
 0x19f   :  { %2403 = vmatmul.mubr.bf16.vlgmr.msra.gmra.mrb[4].mxu0 %v1970_v30  ;;  %v3459_v30 = vld [vmem:[%s4661_s3 + $0x1b4] ss:$8 sps:$4 sm:$0xff]  }
 0x1a0   :  { %2412 = vmatpush1.bf16.msra.mxu0 %v3424_v49  ;;  %v3454_v49 = vld [vmem:[%s4661_s3 + $0x1a0] ss:$8 sps:$4 sm:$0xff]  }
 0x1a1   :  { %2413 = vmatprep.subr.bf16.mxu0 %v3429_v32  ;;  %v3457_v32 = vld [vmem:[%s4661_s3 + $0x1b0] ss:$8 sps:$4 sm:$0xff]  }
 0x1a4   :  { %2414 = vmatpush1.bf16.msra.mxu0 %v3427_v33  ;;  %v3462_v33 = vld [vmem:[%s4661_s3 + $0x1c4] ss:$8 sps:$4 sm:$0xff]  }
 0x1a5   :  { %2415 = vmatprep.subr.bf16.mxu0 %v3432_v34  ;;  %v3460_v34 = vld [vmem:[%s4661_s3 + $0x1c0] ss:$8 sps:$4 sm:$0xff]  }
 0x1a8   :  { %2416 = vmatpush1.bf16.msra.mxu0 %v3430_v42 }
 0x1a9   :  { %2417 = vmatprep.subr.bf16.mxu0 %v3435_v45 }
 0x1ac   :  { %2418 = vmatpush1.bf16.msra.mxu0 %v3433_v52  ;;  %v2951_v52 = vpack.c.bf16 %v2467_v12, %v2466_v51 }
 0x1ad   :  { %2419 = vmatprep.subr.bf16.mxu0 %v3438_v54  ;;  %v2485_v54 = vld [vmem:[%s4663_s5 + $0xf8] sm:$0xff] }
 0x1ae   :  { %2952 = vmatpush3.bf16.msra.mxu1 %v2951_v52  ;;  %v2953_v55 = vpack.c.bf16 %v2485_v54, %v2484_v53 }
 0x1b0   :  { %2420 = vmatpush1.bf16.msra.mxu0 %v3436_v60  ;;  %2954 = vmatprep.subr.bf16.mxu1 %v2953_v55  ;;  %v2043_v60 = vrot.slane %v2038_v59, %v340_v11 }
 0x1b1   :  { %2421 = vmatprep.subr.bf16.mxu0 %v3441_v62 }
 0x1b2   :  { %2956 = vmatpush3.bf16.msra.mxu1 %v2955_v58 }
 0x1b4   :  { %2422 = vmatpush1.bf16.msra.mxu0 %v3439_v5 }
 0x1b5   :  { %2423 = vmatprep.subr.bf16.mxu0 %v3444_v7 }
 0x1b8   :  { %2424 = vmatpush1.bf16.msra.mxu0 %v3442_v18 }
 0x1b9   :  { %2425 = vmatprep.subr.bf16.mxu0 %v3447_v21 }
 0x1bc   :  { %2426 = vmatpush1.bf16.msra.mxu0 %v3445_v23 }
 0x1bd   :  { %2427 = vmatprep.subr.bf16.mxu0 %v3450_v24 }
 0x1c0   :  { %2428 = vmatpush1.bf16.msra.mxu0 %v3448_v8 }
 0x1c1   :  { %2429 = vmatprep.subr.bf16.mxu0 %v3453_v27 }
 0x1c4   :  { %2430 = vmatpush1.bf16.msra.mxu0 %v3451_v28 }
 0x1c5   :  { %2431 = vmatprep.subr.bf16.mxu0 %v3456_v29 }
 0x1c8   :  { %2432 = vmatpush1.bf16.msra.mxu0 %v3454_v49 }
 0x1c9   :  { %2433 = vmatprep.subr.bf16.mxu0 %v3459_v30 }
 0x1cc   :  { %2434 = vmatpush1.bf16.msra.mxu0 %v3457_v32 }
 0x1cd   :  { %2435 = vmatprep.subr.bf16.mxu0 %v3462_v33 }
 0x1d0   :  { %2436 = vmatpush1.bf16.msra.mxu0 %v3460_v34 }
 0x1d1   :  { %2437 = vmatprep.subr.bf16.mxu0 %v3465_v13 }
 0x1d4   :  { %2438 = vmatpush1.bf16.msra.mxu0 %v3463_v36 }
 0x1d5   :  { %2439 = vmatprep.subr.bf16.mxu0 %v3468_v38 }
 0x1d8   :  { %2440 = vmatpush1.bf16.msra.mxu0 %v3466_v19 }
 0x1d9   :  { %2441 = vmatprep.subr.bf16.mxu0 %v3471_v26 }
 0x1dc   :  { %2442 = vmatpush1.bf16.msra.mxu0 %v3469_v39 }
 0x215   :  { %v1959_v41 = vpop.f32.mrb[4].mxu1 }
 0x216   :  { %v2961_v3 = vadd.f32 %v1959_v41, %v349_v35  ;;  %v1961_v25 = vpop.f32.mrb[5].mxu1 }
 0x217   :  { %v2962_v42 = vadd.f32 %v1961_v25, %v353_v20  ;;  %v1963_v44 = vpop.f32.mrb[6].mxu1 }
 0x218   :  { %v1968_v45 = vmax.f32 %v2961_v3, 0.0  ;;  %v1964_v46 = vpop.f32.mrb[7].mxu1 }
 0x219   :  { %v1969_v47 = vmax.f32 %v2962_v42, 0.0 }
 0x21a   :  { %v1972_v50 = vpack.c.bf16 %v1968_v45, %v1968_v45 }
 0x21b   :  { %v1973_v48 = vpack.c.bf16 %v1969_v47, %v1969_v47 }
 0x21d   :  { %2443 = vmatprep.mubr.bf16.mxu0 %v1973_v48 }
 0x21e   :  { %2444 = vmatmul.mubr.bf16.vlgmr.msra.gmra.mrb[4].mxu0 %v1972_v50 }
 0x2f1   :  { %v2445_v62 = vpop.f32.mrb[4].mxu0 }
 0x2f2   :  { %v2963_v63 = vadd.f32 %v2445_v62, %v2043_v60  ;;  %v2447_v0 = vpop.f32.mrb[5].mxu0 }
 0x2f3   :  { %v2964_v1 = vadd.f32 %v2447_v0, %v2047_v61  ;;  %v2449_v2 = vpop.f32.mrb[6].mxu0 }
 0x2f4   :  { %v2450_v4 = vpop.f32.mrb[7].mxu0  ;;  %v2452_v6 = vmax.f32 %v2963_v63, 0.0 }
 0x2f5   :  { %v2453_v5 = vmax.f32 %v2964_v1, 0.0 }
 0x2f7   :  { %2557 = vmatprep.mubr.f32.mxu1 %v2453_v5 }
 0x2f8   :  { %2558 = vmatmul.mubr.f32.vlgmr.msra.gmra.mrb[8].mxu1 %v2452_v6 }
 0x3cb   :  { %v2922_v7 = vpop.f32.mrb[8].mxu1 }
 0x3cc   :  { %v2923_v10 = vpop.f32.mrb[9].mxu1 }
 0x3cd   :  { %v2924_v11 = vadd.f32 %v2923_v10, %v2922_v7 }
 0x3cf   :  { %v2560_v43 = vadd.f32 %v2924_v11, %v2889_v9 }
 0x3d1   :  { %2564 = vst.msk [vmem:[%s4666_s7] sm:$0x3] %vm2563_vm0, %v2560_v43 }

// kernel: pointnetfeat4d_forward.5
= control target key start
LH: loop header
LB: loop body
LE: loop exit
PB: predicated region body
PF: predicated region fallthrough
CT: control target
= control target key end

     0   :  { %s3102_s24 = smov 0   ;;  %s3999_s0 = inlined_call_operand.vmem [shape: f32[2,256,4], index: 0, kind: input, shape index: {}]   ;;  %s4000_s1 = inlined_call_operand.vmem [shape: f32[2,4,64], index: 1, kind: input, shape index: {}]   ;;  %s4001_s2 = inlined_call_operand.vmem [shape: f32[1,64], index: 2, kind: input, shape index: {}]   ;;  %s4002_s3 = inlined_call_operand.vmem [shape: f32[64,128], index: 3, kind: input, shape index: {}]   ;;  %s4003_s4 = inlined_call_operand.vmem [shape: f32[1,128], index: 4, kind: input, shape index: {}]   ;;  %s4004_s5 = inlined_call_operand.vmem [shape: bf16[128,1024], index: 5, kind: input, shape index: {}]   ;;  %s4005_s6 = inlined_call_operand.vmem [shape: f32[1,1024], index: 6, kind: input, shape index: {}]   ;;  %s4006_s7 = inlined_call_operand.vmem [shape: f32[2,1,1024], index: 7, kind: output, shape index: {}]  }
   0x1 LB: > { %s2696_s25 = sadd.s32 4294967295, %s3058_s24   ;;  %p2700_p0 = scmp.ge.s32.totalorder %s3058_s24, 1  ;;  %s3058_s24 = sphi %s3102_s24, %s17_s24  }
   0x2   : > { %p246_p1 = scmp.lt.s32.totalorder %s3058_s24, 3 }
   0x4   : > { %p247_p2 = pnand %p2700_p0, %p246_p1 }
   0x5   : > { %p281_p3 = scmp.lt.s32.totalorder (!%p247_p2), %s2696_s25, 1  ;;  %v693_v0 = vld [vmem:[%s4002_s3] sm:$0xff] (!%p247_p2)  ;;  %v694_v1 = vld [vmem:[%s4002_s3 + $0x8] sm:$0xff] (!%p247_p2)  ;;  %v695_v2 = vld [vmem:[%s4002_s3 + $0x10] sm:$0xff] (!%p247_p2)  ;;  %vm432_vm0 = vcmask (!%p247_p2), 1043456   ;;  %vm335_vm1 = vcmask (!%p247_p2), 31744  }
   0x6   : > { %250 = sbr.rel (%p247_p2) target bundleno = 946 (0x3b2), region = 48  ;;  %v3026_v3 = vpack.c.bf16 (!%p247_p2), %v694_v1, %v693_v0  ;;  %v696_v4 = vld [vmem:[%s4002_s3 + $0x18] sm:$0xff] (!%p247_p2)  ;;  %v697_v6 = vld [vmem:[%s4002_s3 + $0x20] sm:$0xff] (!%p247_p2)  ;;  %v698_v7 = vld [vmem:[%s4002_s3 + $0x28] sm:$0xff] (!%p247_p2)  ;;  %vm708_vm2 = vcmask (!%p247_p2), 523264  }
   0x7   : > { %v3030_v5 = vpack.c.bf16 (!%p247_p2), %v696_v4, %v695_v2  ;;  %v3034_v8 = vpack.c.bf16 (!%p247_p2), %v698_v7, %v697_v6  ;;  %v699_v42 = vld [vmem:[%s4002_s3 + $0x30] sm:$0xff] (!%p247_p2)  ;;  %v700_v43 = vld [vmem:[%s4002_s3 + $0x38] sm:$0xff] (!%p247_p2)  ;;  %v1078_v45 = vld [vmem:[%s4004_s5] sm:$0xff] (!%p247_p2) }
   0x8   : > { %3027 = vmatprep.subr.bf16.mxu1 (!%p247_p2), %v3026_v3  ;;  %v3038_v44 = vpack.c.bf16 (!%p247_p2), %v700_v43, %v699_v42  ;;  %v1082_v46 = vld [vmem:[%s4004_s5 + $0x20] sm:$0xff] (!%p247_p2)  ;;  %v3219_v47 = vld [vmem:[%s4004_s5 + $0x8] sm:$0xff] (!%p247_p2) }
   0x9   : > { %3029 = vmatpush3.bf16.msra.mxu1 (!%p247_p2), %v3026_v3  ;;  %v2772_v48 = vcombine.low (!%p247_p2), %v1078_v45, %v1082_v46  ;;  %v2773_v49 = vcombine.high (!%p247_p2), %v1078_v45, %v1082_v46  ;;  %v3224_v50 = vld [vmem:[%s4004_s5 + $0x28] sm:$0xff] (!%p247_p2)  ;;  %v1086_v51 = vld [vmem:[%s4004_s5 + $0x40] sm:$0xff] (!%p247_p2) }
   0xa   : > { %3031 = vmatprep.subr.bf16.mxu1 (!%p247_p2), %v3030_v5  ;;  %v1090_v52 = vld [vmem:[%s4004_s5 + $0x60] sm:$0xff] (!%p247_p2)  ;;  %v2774_v53 = vcombine.low (!%p247_p2), %v3219_v47, %v3224_v50  ;;  %v2775_v54 = vcombine.high (!%p247_p2), %v3219_v47, %v3224_v50  ;;  %v1107_v42 = vld [vmem:[%s4004_s5 + $0xe8] sm:$0xff] (!%p247_p2) }
   0xb   : > { %v2781_v55 = vcombine.high (!%p247_p2), %v1086_v51, %v1090_v52  ;;  %v1094_v56 = vld [vmem:[%s4004_s5 + $0x80] sm:$0xff] (!%p247_p2)  ;;  %v2780_v58 = vcombine.low (!%p247_p2), %v1086_v51, %v1090_v52  ;;  %v1111_v51 = vld [vmem:[%s4004_s5 + $0x108] sm:$0xff] (!%p247_p2) }
   0xc   : > { %v1098_v57 = vld [vmem:[%s4004_s5 + $0xa0] sm:$0xff] (!%p247_p2)  ;;  %v1115_v52 = vld [vmem:[%s4004_s5 + $0x128] sm:$0xff] (!%p247_p2) }
   0xd   : > { %s4008_s25 = smov (!%p281_p3, %s2696_s25), 1  ;;  %3033 = vmatpush3.bf16.msra.mxu1 %v3030_v5  ;;  %v2789_v59 = vcombine.high %v1094_v56, %v1098_v57  ;;  %v1102_v60 = vld [vmem:[%s4004_s5 + $0xc0] sm:$0xff]  ;;  %v2788_v62 = vcombine.low %v1094_v56, %v1098_v57 }
   0xe   : > { %s2838_s15 = sshll.u32 %s4008_s25, 8  ;;  %s2703_s16 = sshll.u32 %s4008_s25, 2  ;;  %3035 = vmatprep.subr.bf16.mxu1 %v3034_v8  ;;  %v1106_v61 = vld [vmem:[%s4004_s5 + $0xe0] sm:$0xff] }
   0xf   : > { %s3135_s19 = scalar_lea.vmem %s3999_s0, %s2838_s15  ;;  %s289_s22 = scalar_lea.vmem %s4000_s1, %s2703_s16  ;;  %v2797_v63 = vcombine.high %v1102_v60, %v1106_v61  ;;  %v1110_v0 = vld [vmem:[%s4004_s5 + $0x100] sm:$0xff]  ;;  %v2796_v2 = vcombine.low %v1102_v60, %v1106_v61  ;;  %v1119_v61 = vld [vmem:[%s4004_s5 + $0x148] sm:$0xff] }
  0x10   : > { %v327_v9 = vld [vmem:[%s289_s22] sm:$0xf]  ;;  %v296_v11 = vld [vmem:[%s3135_s19 + $0x8] sm:$0xff]  ;;  %v297_v12 = vld [vmem:[%s3135_s19 + $0x10] sm:$0xff]  ;;  %s2704_s14 = sshll.u32 %s4008_s25, 3 }
  0x11   : > { %v295_v10 = vld [vmem:[%s3135_s19] sm:$0xff]  ;;  %2912 = vmatprep.subr.msk.mxu0 %vm432_vm0, %v327_v9  ;;  %v298_v13 = vld [vmem:[%s3135_s19 + $0x18] sm:$0xff]  ;;  %3037 = vmatpush3.bf16.msra.mxu1 %v3034_v8  ;;  %v300_v15 = vld [vmem:[%s3135_s19 + $0x28] sm:$0xff]  ;;  %s293_s17 = scalar_lea.vmem %s4006_s7, %s2704_s14 }
  0x12   : > { %2914 = vmatprep.mubr.msk.f32.mxu0 %vm335_vm1, %v295_v10  ;;  %2913 = vmatpush3.msk.msra.mxu0 %vm432_vm0, %v327_v9  ;;  %v299_v14 = vld [vmem:[%s3135_s19 + $0x20] sm:$0xff]  ;;  %v301_v16 = vld [vmem:[%s3135_s19 + $0x30] sm:$0xff]  ;;  %v302_v17 = vld [vmem:[%s3135_s19 + $0x38] sm:$0xff] }
  0x13   : > { %2915 = vmatmul.mubr.msk.f32.vlgmr.msra.gmra.mrb[0].mxu0 %vm335_vm1, %v296_v11  ;;  %v303_v18 = vld [vmem:[%s3135_s19 + $0x40] sm:$0xff]  ;;  %v304_v19 = vld [vmem:[%s3135_s19 + $0x48] sm:$0xff]  ;;  %v305_v20 = vld [vmem:[%s3135_s19 + $0x50] sm:$0xff]  ;;  %3039 = vmatprep.subr.bf16.mxu1 %v3038_v44 }
  0x14   : > { %2917 = vmatprep.mubr.msk.f32.mxu0 %vm335_vm1, %v297_v12  ;;  %v306_v21 = vld [vmem:[%s3135_s19 + $0x58] sm:$0xff]  ;;  %v307_v22 = vld [vmem:[%s3135_s19 + $0x60] sm:$0xff]  ;;  %v308_v23 = vld [vmem:[%s3135_s19 + $0x68] sm:$0xff]  ;;  %1504 = vmatprep.subr.bf16.mxu0 %v2773_v49 }
  0x15   : > { %v309_v24 = vld [vmem:[%s3135_s19 + $0x70] sm:$0xff]  ;;  %v310_v25 = vld [vmem:[%s3135_s19 + $0x78] sm:$0xff]  ;;  %v311_v26 = vld [vmem:[%s3135_s19 + $0x80] sm:$0xff]  ;;  %3041 = vmatpush3.bf16.msra.mxu1 %v3038_v44  ;;  %1505 = vmatpush1.bf16.msra.mxu0 %v2772_v48 }
  0x16   : > { %v312_v27 = vld [vmem:[%s3135_s19 + $0x88] sm:$0xff]  ;;  %v313_v28 = vld [vmem:[%s3135_s19 + $0x90] sm:$0xff]  ;;  %v314_v29 = vld [vmem:[%s3135_s19 + $0x98] sm:$0xff]  ;;  %1697 = vmatprep.subr.bf16.mxu1 %v2775_v54  ;;  %1506 = vmatprep.subr.bf16.mxu0 %v2781_v55 }
  0x17   : > { %2918 = vmatmul.mubr.msk.f32.gmra.mrb[2].mxu0 %vm335_vm1, %v298_v13  ;;  %v315_v30 = vld [vmem:[%s3135_s19 + $0xa0] sm:$0xff]  ;;  %v316_v31 = vld [vmem:[%s3135_s19 + $0xa8] sm:$0xff]  ;;  %v317_v32 = vld [vmem:[%s3135_s19 + $0xb0] sm:$0xff] }
  0x18   : > { %2920 = vmatprep.mubr.msk.f32.mxu0 %vm335_vm1, %v299_v14  ;;  %v318_v33 = vld [vmem:[%s3135_s19 + $0xb8] sm:$0xff]  ;;  %v319_v34 = vld [vmem:[%s3135_s19 + $0xc0] sm:$0xff]  ;;  %v320_v35 = vld [vmem:[%s3135_s19 + $0xc8] sm:$0xff] }
  0x19   : > { %v321_v36 = vld [vmem:[%s3135_s19 + $0xd0] sm:$0xff]  ;;  %v322_v37 = vld [vmem:[%s3135_s19 + $0xd8] sm:$0xff]  ;;  %v323_v38 = vld [vmem:[%s3135_s19 + $0xe0] sm:$0xff]  ;;  %1507 = vmatpush1.bf16.msra.mxu0 %v2780_v58 }
  0x1a   : > { %v324_v39 = vld [vmem:[%s3135_s19 + $0xe8] sm:$0xff]  ;;  %v325_v40 = vld [vmem:[%s3135_s19 + $0xf0] sm:$0xff]  ;;  %v326_v41 = vld [vmem:[%s3135_s19 + $0xf8] sm:$0xff]  ;;  %1508 = vmatprep.subr.bf16.mxu0 %v2789_v59  ;;  %v2807_v59 = vcombine.high %v1111_v51, %v1115_v52 }
  0x1b   : > { %2921 = vmatmul.mubr.msk.f32.gmra.mrb[4].mxu0 %vm335_vm1, %v300_v15  ;;  %v1114_v1 = vld [vmem:[%s4004_s5 + $0x120] sm:$0xff] }
  0x1c   : > { %2923 = vmatprep.mubr.msk.f32.mxu0 %vm335_vm1, %v301_v16  ;;  %v2805_v3 = vcombine.high %v1110_v0, %v1114_v1  ;;  %v1118_v4 = vld [vmem:[%s4004_s5 + $0x140] sm:$0xff]  ;;  %v2804_v6 = vcombine.low %v1110_v0, %v1114_v1 }
  0x1d   : > { %1509 = vmatpush1.bf16.msra.mxu0 %v2788_v62  ;;  %v1122_v5 = vld [vmem:[%s4004_s5 + $0x160] sm:$0xff]  ;;  %v1123_v62 = vld [vmem:[%s4004_s5 + $0x168] sm:$0xff] }
  0x1e   : > { %1510 = vmatprep.subr.bf16.mxu0 %v2797_v63  ;;  %v2813_v7 = vcombine.high %v1118_v4, %v1122_v5  ;;  %v1126_v8 = vld [vmem:[%s4004_s5 + $0x180] sm:$0xff]  ;;  %v2812_v10 = vcombine.low %v1118_v4, %v1122_v5  ;;  %v2815_v5 = vcombine.high %v1119_v61, %v1123_v62 }
  0x1f   : > { %2924 = vmatmul.mubr.msk.f32.gmra.mrb[6].mxu0 %vm335_vm1, %v302_v17  ;;  %v1130_v9 = vld [vmem:[%s4004_s5 + $0x1a0] sm:$0xff] }
  0x20   : > { %2926 = vmatprep.mubr.msk.f32.mxu0 %vm335_vm1, %v303_v18  ;;  %v2821_v11 = vcombine.high %v1126_v8, %v1130_v9  ;;  %v1134_v12 = vld [vmem:[%s4004_s5 + $0x1c0] sm:$0xff]  ;;  %v2820_v14 = vcombine.low %v1126_v8, %v1130_v9  ;;  %v1131_v8 = vld [vmem:[%s4004_s5 + $0x1a8] sm:$0xff] }
  0x21   : > { %1511 = vmatpush1.bf16.msra.mxu0 %v2796_v2  ;;  %v1138_v13 = vld [vmem:[%s4004_s5 + $0x1e0] sm:$0xff]  ;;  %v2806_v2 = vcombine.low %v1111_v51, %v1115_v52 }
  0x22   : > { %1512 = vmatprep.subr.bf16.mxu0 %v2805_v3  ;;  %v2829_v15 = vcombine.high %v1134_v12, %v1138_v13  ;;  %v2828_v16 = vcombine.low %v1134_v12, %v1138_v13  ;;  %v3275_v17 = vld [vmem:[%s4001_s2] ss:$0 sm:$0xff]  ;;  %v2814_v12 = vcombine.low %v1119_v61, %v1123_v62 }
  0x23   : > { %2927 = vmatmul.mubr.msk.f32.gmra.mrb[8].mxu0 %vm335_vm1, %v304_v19 }
  0x24   : > { %2929 = vmatprep.mubr.msk.f32.mxu0 %vm335_vm1, %v305_v20 }
  0x25   : > { %1513 = vmatpush1.bf16.msra.mxu0 %v2804_v6 }
  0x26   : > { %1514 = vmatprep.subr.bf16.mxu0 %v2813_v7  ;;  %v1127_v7 = vld [vmem:[%s4004_s5 + $0x188] sm:$0xff] }
  0x27   : > { %2930 = vmatmul.mubr.msk.f32.gmra.mrb[10].mxu0 %vm335_vm1, %v306_v21 }
  0x28   : > { %2932 = vmatprep.mubr.msk.f32.mxu0 %vm335_vm1, %v307_v22  ;;  %v1087_v22 = vld [vmem:[%s4004_s5 + $0x48] sm:$0xff] }
  0x29   : > { %1515 = vmatpush1.bf16.msra.mxu0 %v2812_v10 }
  0x2a   : > { %1516 = vmatprep.subr.bf16.mxu0 %v2821_v11 }
  0x2b   : > { %2933 = vmatmul.mubr.msk.f32.gmra.mrb[12].mxu0 %vm335_vm1, %v308_v23  ;;  %v1091_v23 = vld [vmem:[%s4004_s5 + $0x68] sm:$0xff] }
  0x2c   : > { %2935 = vmatprep.mubr.msk.f32.mxu0 %vm335_vm1, %v309_v24 }
  0x2d   : > { %1517 = vmatpush1.bf16.msra.mxu0 %v2820_v14 }
  0x2e   : > { %1518 = vmatprep.subr.bf16.mxu0 %v2829_v15  ;;  %v2823_v15 = vcombine.high %v1127_v7, %v1131_v8 }
  0x2f   : > { %2936 = vmatmul.mubr.msk.f32.gmra.mrb[14].mxu0 %vm335_vm1, %v310_v25 }
  0x30   : > { %2938 = vmatprep.mubr.msk.f32.mxu0 %vm335_vm1, %v311_v26 }
  0x31   : > { %1519 = vmatpush1.bf16.msra.mxu0 %v2828_v16 }
  0x33   : > { %2939 = vmatmul.mubr.msk.f32.gmra.mrb[16].mxu0 %vm335_vm1, %v312_v27 }
  0x34   : > { %2941 = vmatprep.mubr.msk.f32.mxu0 %vm335_vm1, %v313_v28 }
  0x37   : > { %2942 = vmatmul.mubr.msk.f32.gmra.mrb[18].mxu0 %vm335_vm1, %v314_v29  ;;  %v2783_v29 = vcombine.high %v1087_v22, %v1091_v23 }
  0x38   : > { %2944 = vmatprep.mubr.msk.f32.mxu0 %vm335_vm1, %v315_v30 }
  0x3b   : > { %2945 = vmatmul.mubr.msk.f32.gmra.mrb[20].mxu0 %vm335_vm1, %v316_v31  ;;  %v1095_v31 = vld [vmem:[%s4004_s5 + $0x88] sm:$0xff] }
  0x3c   : > { %2947 = vmatprep.mubr.msk.f32.mxu0 %vm335_vm1, %v317_v32  ;;  %v1099_v32 = vld [vmem:[%s4004_s5 + $0xa8] sm:$0xff] }
  0x3d   : > { %v2790_v46 = vcombine.low %v1095_v31, %v1099_v32 }
  0x3f   : > { %2948 = vmatmul.mubr.msk.f32.gmra.mrb[22].mxu0 %vm335_vm1, %v318_v33 }
  0x40   : > { %2950 = vmatprep.mubr.msk.f32.mxu0 %vm335_vm1, %v319_v34 }
  0x43   : > { %2951 = vmatmul.mubr.msk.f32.gmra.mrb[24].mxu0 %vm335_vm1, %v320_v35 }
  0x44   : > { %2953 = vmatprep.mubr.msk.f32.mxu0 %vm335_vm1, %v321_v36  ;;  %v2782_v36 = vcombine.low %v1087_v22, %v1091_v23  ;;  %v2822_v23 = vcombine.low %v1127_v7, %v1131_v8 }
  0x47   : > { %2954 = vmatmul.mubr.msk.f32.gmra.mrb[26].mxu0 %vm335_vm1, %v322_v37 }
  0x48   : > { %2956 = vmatprep.mubr.msk.f32.mxu0 %vm335_vm1, %v323_v38 }
  0x4b   : > { %2957 = vmatmul.mubr.msk.f32.gmra.mrb[28].mxu0 %vm335_vm1, %v324_v39  ;;  %v2791_v39 = vcombine.high %v1095_v31, %v1099_v32 }
  0x4c   : > { %2959 = vmatprep.mubr.msk.f32.mxu0 %vm335_vm1, %v325_v40 }
  0x4f   : > { %2960 = vmatmul.mubr.msk.f32.gmra.mrb[30].mxu0 %vm335_vm1, %v326_v41  ;;  %v1103_v41 = vld [vmem:[%s4004_s5 + $0xc8] sm:$0xff] }
  0x50   : > { %v2799_v49 = vcombine.high %v1103_v41, %v1107_v42  ;;  %v2798_v56 = vcombine.low %v1103_v41, %v1107_v42 }
  0xe6   : > { %v2916_v18 = vpop.f32.mrb[0].mxu0 }
  0xe7   : > { %v508_v19 = vadd.f32 %v2916_v18, %v3275_v17  ;;  %v502_v20 = vpop.f32.mrb[1].mxu0  ;;  %v1135_v18 = vld [vmem:[%s4004_s5 + $0x1c8] sm:$0xff] }
  0xe8   : > { %v503_v21 = vadd.f32 %v3275_v17, %v502_v20 }
  0xe9   : > { %v662_v26 = vmax.f32 %v508_v19, 0.0  ;;  %v1139_v19 = vld [vmem:[%s4004_s5 + $0x1e8] sm:$0xff] }
  0xea   : > { %v661_v24 = vmax.f32 %v503_v21, 0.0  ;;  %v2919_v25 = vpop.f32.mrb[2].mxu0  ;;  %v2830_v31 = vcombine.low %v1135_v18, %v1139_v19 }
  0xeb   : > { %v518_v27 = vadd.f32 %v2919_v25, %v3275_v17  ;;  %v512_v28 = vpop.f32.mrb[3].mxu0 }
  0xec   : > { %v513_v30 = vadd.f32 %v3275_v17, %v512_v28  ;;  %2978 = vmatprep.mubr.msk.f32.mxu1 %vm708_vm2, %v661_v24 }
  0xed   : > { %v664_v33 = vmax.f32 %v518_v27, 0.0  ;;  %2979 = vmatmul.mubr.msk.f32.vlgmr.msra.gmra.mrb[0].mxu1 %vm708_vm2, %v662_v26  ;;  %v2831_v26 = vcombine.high %v1135_v18, %v1139_v19  ;;  %v1081_v18 = vld [vmem:[%s4004_s5 + $0x18] sm:$0xff] }
  0xee   : > { %v663_v34 = vmax.f32 %v513_v30, 0.0  ;;  %v2922_v35 = vpop.f32.mrb[4].mxu0  ;;  %1698 = vmatpush1.bf16.msra.mxu1 %v2774_v53 }
  0xef   : > { %v528_v37 = vadd.f32 %v2922_v35, %v3275_v17  ;;  %v522_v38 = vpop.f32.mrb[5].mxu0  ;;  %1699 = vmatprep.subr.bf16.mxu1 %v2783_v29 }
  0xf0   : > { %2981 = vmatprep.mubr.msk.f32.mxu1 %vm708_vm2, %v663_v34  ;;  %v523_v40 = vadd.f32 %v3275_v17, %v522_v38 }
  0xf1   : > { %2982 = vmatmul.mubr.msk.f32.gmra.mrb[2].mxu1 %vm708_vm2, %v664_v33  ;;  %v666_v43 = vmax.f32 %v528_v37, 0.0 }
  0xf2   : > { %v665_v44 = vmax.f32 %v523_v40, 0.0  ;;  %v2925_v45 = vpop.f32.mrb[6].mxu0  ;;  %1700 = vmatpush1.bf16.msra.mxu1 %v2782_v36 }
  0xf3   : > { %v538_v47 = vadd.f32 %v2925_v45, %v3275_v17  ;;  %v532_v48 = vpop.f32.mrb[7].mxu0  ;;  %1701 = vmatprep.subr.bf16.mxu1 %v2791_v39 }
  0xf4   : > { %2984 = vmatprep.mubr.msk.f32.mxu1 %vm708_vm2, %v665_v44  ;;  %v533_v50 = vadd.f32 %v3275_v17, %v532_v48 }
  0xf5   : > { %2985 = vmatmul.mubr.msk.f32.gmra.mrb[4].mxu1 %vm708_vm2, %v666_v43  ;;  %v668_v53 = vmax.f32 %v538_v47, 0.0 }
  0xf6   : > { %v667_v54 = vmax.f32 %v533_v50, 0.0  ;;  %v2928_v55 = vpop.f32.mrb[8].mxu0  ;;  %1702 = vmatpush1.bf16.msra.mxu1 %v2790_v46 }
  0xf7   : > { %v548_v57 = vadd.f32 %v2928_v55, %v3275_v17  ;;  %v542_v58 = vpop.f32.mrb[9].mxu0  ;;  %1703 = vmatprep.subr.bf16.mxu1 %v2799_v49 }
  0xf8   : > { %2987 = vmatprep.mubr.msk.f32.mxu1 %vm708_vm2, %v667_v54  ;;  %v543_v60 = vadd.f32 %v3275_v17, %v542_v58 }
  0xf9   : > { %2988 = vmatmul.mubr.msk.f32.gmra.mrb[6].mxu1 %vm708_vm2, %v668_v53  ;;  %v670_v63 = vmax.f32 %v548_v57, 0.0 }
  0xfa   : > { %v669_v0 = vmax.f32 %v543_v60, 0.0  ;;  %v2931_v1 = vpop.f32.mrb[10].mxu0  ;;  %1704 = vmatpush1.bf16.msra.mxu1 %v2798_v56 }
  0xfb   : > { %v558_v3 = vadd.f32 %v2931_v1, %v3275_v17  ;;  %v552_v4 = vpop.f32.mrb[11].mxu0  ;;  %1705 = vmatprep.subr.bf16.mxu1 %v2807_v59 }
  0xfc   : > { %2990 = vmatprep.mubr.msk.f32.mxu1 %vm708_vm2, %v669_v0  ;;  %v553_v6 = vadd.f32 %v3275_v17, %v552_v4 }
  0xfd   : > { %2991 = vmatmul.mubr.msk.f32.gmra.mrb[8].mxu1 %vm708_vm2, %v670_v63  ;;  %v672_v9 = vmax.f32 %v558_v3, 0.0 }
  0xfe   : > { %v671_v10 = vmax.f32 %v553_v6, 0.0  ;;  %v2934_v11 = vpop.f32.mrb[12].mxu0  ;;  %1706 = vmatpush1.bf16.msra.mxu1 %v2806_v2 }
  0xff   : > { %v568_v13 = vadd.f32 %v2934_v11, %v3275_v17  ;;  %v562_v14 = vpop.f32.mrb[13].mxu0  ;;  %1707 = vmatprep.subr.bf16.mxu1 %v2815_v5 }
 0x100   : > { %2993 = vmatprep.mubr.msk.f32.mxu1 %vm708_vm2, %v671_v10  ;;  %v563_v16 = vadd.f32 %v3275_v17, %v562_v14 }
 0x101   : > { %2994 = vmatmul.mubr.msk.f32.gmra.mrb[10].mxu1 %vm708_vm2, %v672_v9  ;;  %v674_v20 = vmax.f32 %v568_v13, 0.0 }
 0x102   : > { %v673_v21 = vmax.f32 %v563_v16, 0.0  ;;  %v2937_v22 = vpop.f32.mrb[14].mxu0  ;;  %1708 = vmatpush1.bf16.msra.mxu1 %v2814_v12  ;;  %v1080_v16 = vld [vmem:[%s4004_s5 + $0x10] sm:$0xff] }
 0x103   : > { %v578_v24 = vadd.f32 %v2937_v22, %v3275_v17  ;;  %v572_v25 = vpop.f32.mrb[15].mxu0  ;;  %1709 = vmatprep.subr.bf16.mxu1 %v2823_v15  ;;  %v3060_v15 = vmov 0  }
 0x104   : > { %2996 = vmatprep.mubr.msk.f32.mxu1 %vm708_vm2, %v673_v21  ;;  %v573_v27 = vadd.f32 %v3275_v17, %v572_v25  ;;  %1536 = vmatprep.mubr.bf16.mxu0 %v3060_v15  ;;  %v1085_v21 = vld [vmem:[%s4004_s5 + $0x38] sm:$0xff] }
 0x105   : > { %2997 = vmatmul.mubr.msk.f32.gmra.mrb[12].mxu1 %vm708_vm2, %v674_v20  ;;  %v676_v28 = vmax.f32 %v578_v24, 0.0  ;;  %v2778_v22 = vcombine.low %v1081_v18, %v1085_v21  ;;  %v3403_v24 = vld [vmem:[%s4003_s4] ss:$0 sm:$0xff] }
 0x106   : > { %v675_v29 = vmax.f32 %v573_v27, 0.0  ;;  %v2940_v30 = vpop.f32.mrb[16].mxu0  ;;  %1710 = vmatpush1.bf16.msra.mxu1 %v2822_v23  ;;  %v2779_v23 = vcombine.high %v1081_v18, %v1085_v21 }
 0x107   : > { %v588_v32 = vadd.f32 %v2940_v30, %v3275_v17  ;;  %v582_v33 = vpop.f32.mrb[17].mxu0  ;;  %1711 = vmatprep.subr.bf16.mxu1 %v2831_v26  ;;  %v1088_v30 = vld [vmem:[%s4004_s5 + $0x50] sm:$0xff] }
 0x108   : > { %2999 = vmatprep.mubr.msk.f32.mxu1 %vm708_vm2, %v675_v29  ;;  %v583_v34 = vadd.f32 %v3275_v17, %v582_v33  ;;  %v1092_v33 = vld [vmem:[%s4004_s5 + $0x70] sm:$0xff] }
 0x109   : > { %3000 = vmatmul.mubr.msk.f32.gmra.mrb[14].mxu1 %vm708_vm2, %v676_v28  ;;  %v678_v35 = vmax.f32 %v588_v32, 0.0 }
 0x10a   : > { %v677_v36 = vmax.f32 %v583_v34, 0.0  ;;  %v2943_v37 = vpop.f32.mrb[18].mxu0  ;;  %1712 = vmatpush1.bf16.msra.mxu1 %v2830_v31  ;;  %v1089_v34 = vld [vmem:[%s4004_s5 + $0x58] sm:$0xff] }
 0x10b   : > { %v598_v38 = vadd.f32 %v2943_v37, %v3275_v17  ;;  %v592_v39 = vpop.f32.mrb[19].mxu0  ;;  %2083 = vmatprep.subr.bf16.mxu1 %v2779_v23 }
 0x10c   : > { %3002 = vmatprep.mubr.msk.f32.mxu1 %vm708_vm2, %v677_v36  ;;  %v593_v40 = vadd.f32 %v3275_v17, %v592_v39 }
 0x10d   : > { %3003 = vmatmul.mubr.msk.f32.gmra.mrb[16].mxu1 %vm708_vm2, %v678_v35  ;;  %v680_v41 = vmax.f32 %v598_v38, 0.0  ;;  %v1093_v35 = vld [vmem:[%s4004_s5 + $0x78] sm:$0xff] }
 0x10e   : > { %v679_v42 = vmax.f32 %v593_v40, 0.0  ;;  %v2946_v43 = vpop.f32.mrb[20].mxu0  ;;  %v1096_v40 = vld [vmem:[%s4004_s5 + $0x90] sm:$0xff] }
 0x10f   : > { %v608_v44 = vadd.f32 %v2946_v43, %v3275_v17  ;;  %v602_v45 = vpop.f32.mrb[21].mxu0  ;;  %v2785_v43 = vcombine.high %v1088_v30, %v1092_v33 }
 0x110   : > { %3005 = vmatprep.mubr.msk.f32.mxu1 %vm708_vm2, %v679_v42  ;;  %v603_v46 = vadd.f32 %v3275_v17, %v602_v45  ;;  %v1097_v45 = vld [vmem:[%s4004_s5 + $0x98] sm:$0xff] }
 0x111   : > { %3006 = vmatmul.mubr.msk.f32.gmra.mrb[18].mxu1 %vm708_vm2, %v680_v41  ;;  %v682_v47 = vmax.f32 %v608_v44, 0.0  ;;  %v1100_v41 = vld [vmem:[%s4004_s5 + $0xb0] sm:$0xff]  ;;  %v2787_v44 = vcombine.high %v1089_v34, %v1093_v35 }
 0x112   : > { %v681_v48 = vmax.f32 %v603_v46, 0.0  ;;  %v2949_v49 = vpop.f32.mrb[22].mxu0  ;;  %v1101_v46 = vld [vmem:[%s4004_s5 + $0xb8] sm:$0xff] }
 0x113   : > { %v618_v50 = vadd.f32 %v2949_v49, %v3275_v17  ;;  %v612_v51 = vpop.f32.mrb[23].mxu0  ;;  %v2784_v49 = vcombine.low %v1088_v30, %v1092_v33  ;;  %v1121_v30 = vld [vmem:[%s4004_s5 + $0x158] sm:$0xff] }
 0x114   : > { %3008 = vmatprep.mubr.msk.f32.mxu1 %vm708_vm2, %v681_v48  ;;  %v613_v52 = vadd.f32 %v3275_v17, %v612_v51 }
 0x115   : > { %3009 = vmatmul.mubr.msk.f32.gmra.mrb[20].mxu1 %vm708_vm2, %v682_v47  ;;  %v684_v53 = vmax.f32 %v618_v50, 0.0 }
 0x116   : > { %v683_v54 = vmax.f32 %v613_v52, 0.0  ;;  %v2952_v55 = vpop.f32.mrb[24].mxu0  ;;  %v2786_v52 = vcombine.low %v1089_v34, %v1093_v35 }
 0x117   : > { %v628_v56 = vadd.f32 %v2952_v55, %v3275_v17  ;;  %v622_v57 = vpop.f32.mrb[25].mxu0 }
 0x118   : > { %3011 = vmatprep.mubr.msk.f32.mxu1 %vm708_vm2, %v683_v54  ;;  %v623_v58 = vadd.f32 %v3275_v17, %v622_v57 }
 0x119   : > { %3012 = vmatmul.mubr.msk.f32.gmra.mrb[22].mxu1 %vm708_vm2, %v684_v53  ;;  %v686_v59 = vmax.f32 %v628_v56, 0.0  ;;  %v2793_v53 = vcombine.high %v1096_v40, %v1100_v41  ;;  %v2795_v56 = vcombine.high %v1097_v45, %v1101_v46 }
 0x11a   : > { %v685_v60 = vmax.f32 %v623_v58, 0.0  ;;  %v2955_v61 = vpop.f32.mrb[26].mxu0  ;;  %v1104_v58 = vld [vmem:[%s4004_s5 + $0xd0] sm:$0xff] }
 0x11b   : > { %v638_v62 = vadd.f32 %v2955_v61, %v3275_v17  ;;  %v632_v63 = vpop.f32.mrb[27].mxu0  ;;  %v1108_v61 = vld [vmem:[%s4004_s5 + $0xf0] sm:$0xff] }
 0x11c   : > { %3014 = vmatprep.mubr.msk.f32.mxu1 %vm708_vm2, %v685_v60  ;;  %v633_v0 = vadd.f32 %v3275_v17, %v632_v63  ;;  %v1109_v63 = vld [vmem:[%s4004_s5 + $0xf8] sm:$0xff]  ;;  %v2800_v18 = vcombine.low %v1104_v58, %v1108_v61 }
 0x11d   : > { %3015 = vmatmul.mubr.msk.f32.gmra.mrb[24].mxu1 %vm708_vm2, %v686_v59  ;;  %v688_v1 = vmax.f32 %v638_v62, 0.0  ;;  %v1105_v62 = vld [vmem:[%s4004_s5 + $0xd8] sm:$0xff] }
 0x11e   : > { %v687_v2 = vmax.f32 %v633_v0, 0.0  ;;  %v2958_v3 = vpop.f32.mrb[28].mxu0  ;;  %v2802_v21 = vcombine.low %v1105_v62, %v1109_v63 }
 0x11f   : > { %v648_v4 = vadd.f32 %v2958_v3, %v3275_v17  ;;  %v642_v5 = vpop.f32.mrb[29].mxu0 }
 0x120   : > { %3017 = vmatprep.mubr.msk.f32.mxu1 %vm708_vm2, %v687_v2  ;;  %v643_v6 = vadd.f32 %v3275_v17, %v642_v5  ;;  %v2792_v2 = vcombine.low %v1096_v40, %v1100_v41  ;;  %v2794_v5 = vcombine.low %v1097_v45, %v1101_v46  ;;  %v1132_v45 = vld [vmem:[%s4004_s5 + $0x1b0] sm:$0xff]  ;;  %v1129_v46 = vld [vmem:[%s4004_s5 + $0x198] sm:$0xff] }
 0x121   : > { %3018 = vmatmul.mubr.msk.f32.gmra.mrb[26].mxu1 %vm708_vm2, %v688_v1  ;;  %v690_v7 = vmax.f32 %v648_v4, 0.0 }
 0x122   : > { %v689_v8 = vmax.f32 %v643_v6, 0.0  ;;  %v2961_v9 = vpop.f32.mrb[30].mxu0 }
 0x123   : > { %v658_v10 = vadd.f32 %v2961_v9, %v3275_v17  ;;  %v652_v11 = vpop.f32.mrb[31].mxu0  ;;  %v1112_v9 = vld [vmem:[%s4004_s5 + $0x110] sm:$0xff] }
 0x124   : > { %3020 = vmatprep.mubr.msk.f32.mxu1 %vm708_vm2, %v689_v8  ;;  %v653_v12 = vadd.f32 %v3275_v17, %v652_v11  ;;  %v1084_v17 = vld [vmem:[%s4004_s5 + $0x30] sm:$0xff]  ;;  %v2803_v8 = vcombine.high %v1105_v62, %v1109_v63  ;;  %v1137_v62 = vld [vmem:[%s4004_s5 + $0x1d8] sm:$0xff] }
 0x125   : > { %3021 = vmatmul.mubr.msk.f32.gmra.mrb[28].mxu1 %vm708_vm2, %v690_v7  ;;  %v692_v13 = vmax.f32 %v658_v10, 0.0  ;;  %v2776_v19 = vcombine.low %v1080_v16, %v1084_v17  ;;  %v2777_v20 = vcombine.high %v1080_v16, %v1084_v17  ;;  %v2801_v7 = vcombine.high %v1104_v58, %v1108_v61  ;;  %v1136_v58 = vld [vmem:[%s4004_s5 + $0x1d0] sm:$0xff]  ;;  %v1141_v63 = vld [vmem:[%s4004_s5 + $0x1f8] sm:$0xff] }
 0x126   : > { %v691_v14 = vmax.f32 %v653_v12, 0.0  ;;  %v1116_v12 = vld [vmem:[%s4004_s5 + $0x130] sm:$0xff] }
 0x127   : > { %1890 = vmatprep.subr.bf16.mxu0 %v2777_v20  ;;  %v2809_v23 = vcombine.high %v1112_v9, %v1116_v12  ;;  %v2808_v34 = vcombine.low %v1112_v9, %v1116_v12  ;;  %v1140_v61 = vld [vmem:[%s4004_s5 + $0x1f0] sm:$0xff]  ;;  %v2835_v9 = vcombine.high %v1137_v62, %v1141_v63 }
 0x128   : > { %3023 = vmatprep.mubr.msk.f32.mxu1 %vm708_vm2, %v691_v14  ;;  %v1117_v14 = vld [vmem:[%s4004_s5 + $0x138] sm:$0xff] }
 0x129   : > { %3024 = vmatmul.mubr.msk.f32.gmra.mrb[30].mxu1 %vm708_vm2, %v692_v13  ;;  %v1113_v13 = vld [vmem:[%s4004_s5 + $0x118] sm:$0xff] }
 0x12a   : > { %1729 = vmatprep.mubr.bf16.mxu1 %v3060_v15 }
 0x1c0   : > { %v2980_v25 = vpop.f32.mrb[0].mxu1 }
 0x1c1   : > { %v877_v26 = vadd.f32 %v2980_v25, %v3403_v24  ;;  %v871_v27 = vpop.f32.mrb[1].mxu1  ;;  %v2811_v25 = vcombine.high %v1113_v13, %v1117_v14 }
 0x1c2   : > { %v872_v28 = vadd.f32 %v3403_v24, %v871_v27 }
 0x1c3   : > { %v1031_v29 = vmax.f32 %v877_v26, 0.0  ;;  %v1120_v26 = vld [vmem:[%s4004_s5 + $0x150] sm:$0xff] }
 0x1c4   : > { %v1030_v31 = vmax.f32 %v872_v28, 0.0  ;;  %v2983_v32 = vpop.f32.mrb[2].mxu1 }
 0x1c5   : > { %v887_v36 = vadd.f32 %v2983_v32, %v3403_v24  ;;  %v881_v37 = vpop.f32.mrb[3].mxu1 }
 0x1c6   : > { %v3420_v38 = vpack.c.bf16 %v1031_v29, %v1030_v31  ;;  %v882_v39 = vadd.f32 %v3403_v24, %v881_v37  ;;  %v1124_v29 = vld [vmem:[%s4004_s5 + $0x170] sm:$0xff]  ;;  %v1125_v31 = vld [vmem:[%s4004_s5 + $0x178] sm:$0xff]  ;;  %v2810_v37 = vcombine.low %v1113_v13, %v1117_v14  ;;  %v2832_v14 = vcombine.low %v1136_v58, %v1140_v61 }
 0x1c7   : > { %v1033_v42 = vmax.f32 %v887_v36, 0.0  ;;  %v2817_v40 = vcombine.high %v1120_v26, %v1124_v29  ;;  %v2819_v41 = vcombine.high %v1121_v30, %v1125_v31 }
 0x1c8   : > { %v1032_v47 = vmax.f32 %v882_v39, 0.0  ;;  %1537 = vmatmul.mubr.bf16.vlgmr.msra.gmra.mrb[32].mxu0 %v3420_v38  ;;  %1730 = vmatmul.mubr.bf16.vlgmr.msra.gmra.mrb[32].mxu1 %v3420_v38  ;;  %v2986_v48 = vpop.f32.mrb[4].mxu1 }
 0x1c9   : > { %1891 = vmatpush1.bf16.msra.mxu0 %v2776_v19  ;;  %2084 = vmatpush1.bf16.msra.mxu1 %v2778_v22  ;;  %v897_v50 = vadd.f32 %v2986_v48, %v3403_v24  ;;  %v891_v51 = vpop.f32.mrb[5].mxu1 }
 0x1ca   : > { %v3438_v54 = vpack.c.bf16 %v1033_v42, %v1032_v47  ;;  %v892_v55 = vadd.f32 %v3403_v24, %v891_v51  ;;  %1546 = vmatprep.mubr.bf16.mxu0 %v3060_v15  ;;  %1739 = vmatprep.mubr.bf16.mxu1 %v3060_v15  ;;  %v1128_v42 = vld [vmem:[%s4004_s5 + $0x190] sm:$0xff]  ;;  %v1133_v47 = vld [vmem:[%s4004_s5 + $0x1b8] sm:$0xff] }
 0x1cb   : > { %v1035_v57 = vmax.f32 %v897_v50, 0.0  ;;  %1892 = vmatprep.subr.bf16.mxu0 %v2785_v43  ;;  %2085 = vmatprep.subr.bf16.mxu1 %v2787_v44  ;;  %v2816_v50 = vcombine.low %v1120_v26, %v1124_v29 }
 0x1cc   : > { %v1034_v59 = vmax.f32 %v892_v55, 0.0  ;;  %v2989_v60 = vpop.f32.mrb[6].mxu1 }
 0x1cd   : > { %v907_v0 = vadd.f32 %v2989_v60, %v3403_v24  ;;  %v901_v1 = vpop.f32.mrb[7].mxu1  ;;  %1893 = vmatpush1.bf16.msra.mxu0 %v2784_v49  ;;  %2086 = vmatpush1.bf16.msra.mxu1 %v2786_v52 }
 0x1ce   : > { %v3456_v3 = vpack.c.bf16 %v1035_v57, %v1034_v59  ;;  %v902_v4 = vadd.f32 %v3403_v24, %v901_v1  ;;  %1894 = vmatprep.subr.bf16.mxu0 %v2793_v53  ;;  %2087 = vmatprep.subr.bf16.mxu1 %v2795_v56  ;;  %v2818_v53 = vcombine.low %v1121_v30, %v1125_v31 }
 0x1cf   : > { %v1037_v6 = vmax.f32 %v907_v0, 0.0  ;;  %v2825_v56 = vcombine.high %v1128_v42, %v1132_v45  ;;  %v2827_v57 = vcombine.high %v1129_v46, %v1133_v47 }
 0x1d0   : > { %1547 = vmatmul.mubr.bf16.gmra.mrb[36].mxu0 %v3438_v54  ;;  %1740 = vmatmul.mubr.bf16.gmra.mrb[36].mxu1 %v3438_v54  ;;  %v1036_v10 = vmax.f32 %v902_v4, 0.0  ;;  %v2992_v11 = vpop.f32.mrb[8].mxu1 }
 0x1d1   : > { %1556 = vmatprep.mubr.bf16.mxu0 %v3060_v15  ;;  %1749 = vmatprep.mubr.bf16.mxu1 %v3060_v15  ;;  %v917_v16 = vadd.f32 %v2992_v11, %v3403_v24  ;;  %v911_v17 = vpop.f32.mrb[9].mxu1 }
 0x1d2   : > { %v3476_v19 = vpack.c.bf16 %v1037_v6, %v1036_v10  ;;  %v912_v20 = vadd.f32 %v3403_v24, %v911_v17  ;;  %1895 = vmatpush1.bf16.msra.mxu0 %v2792_v2  ;;  %2088 = vmatpush1.bf16.msra.mxu1 %v2794_v5  ;;  %v2824_v2 = vcombine.low %v1128_v42, %v1132_v45 }
 0x1d3   : > { %v1039_v22 = vmax.f32 %v917_v16, 0.0  ;;  %1896 = vmatprep.subr.bf16.mxu0 %v2801_v7  ;;  %2089 = vmatprep.subr.bf16.mxu1 %v2803_v8  ;;  %v2826_v6 = vcombine.low %v1129_v46, %v1133_v47  ;;  %v2833_v8 = vcombine.high %v1136_v58, %v1140_v61 }
 0x1d4   : > { %v1038_v27 = vmax.f32 %v912_v20, 0.0  ;;  %v2995_v28 = vpop.f32.mrb[10].mxu1 }
 0x1d5   : > { %v927_v32 = vadd.f32 %v2995_v28, %v3403_v24  ;;  %v921_v33 = vpop.f32.mrb[11].mxu1 }
 0x1d6   : > { %v3492_v35 = vpack.c.bf16 %v1039_v22, %v1038_v27  ;;  %v922_v36 = vadd.f32 %v3403_v24, %v921_v33  ;;  %1897 = vmatpush1.bf16.msra.mxu0 %v2800_v18  ;;  %2090 = vmatpush1.bf16.msra.mxu1 %v2802_v21  ;;  %v2834_v18 = vcombine.low %v1137_v62, %v1141_v63 }
 0x1d7   : > { %v1041_v39 = vmax.f32 %v927_v32, 0.0  ;;  %1898 = vmatprep.subr.bf16.mxu0 %v2809_v23  ;;  %2091 = vmatprep.subr.bf16.mxu1 %v2811_v25 }
 0x1d8   : > { %1557 = vmatmul.mubr.bf16.gmra.mrb[40].mxu0 %v3456_v3  ;;  %1750 = vmatmul.mubr.bf16.gmra.mrb[40].mxu1 %v3456_v3  ;;  %v1040_v43 = vmax.f32 %v922_v36, 0.0  ;;  %v2998_v44 = vpop.f32.mrb[12].mxu1 }
 0x1d9   : > { %1566 = vmatprep.mubr.bf16.mxu0 %v3060_v15  ;;  %1759 = vmatprep.mubr.bf16.mxu1 %v3060_v15  ;;  %v937_v48 = vadd.f32 %v2998_v44, %v3403_v24  ;;  %v931_v49 = vpop.f32.mrb[13].mxu1 }
 0x1da   : > { %v3512_v51 = vpack.c.bf16 %v1041_v39, %v1040_v43  ;;  %v932_v52 = vadd.f32 %v3403_v24, %v931_v49  ;;  %1899 = vmatpush1.bf16.msra.mxu0 %v2808_v34  ;;  %2092 = vmatpush1.bf16.msra.mxu1 %v2810_v37 }
 0x1db   : > { %v1043_v55 = vmax.f32 %v937_v48, 0.0  ;;  %1900 = vmatprep.subr.bf16.mxu0 %v2817_v40  ;;  %2093 = vmatprep.subr.bf16.mxu1 %v2819_v41 }
 0x1dc   : > { %v1042_v59 = vmax.f32 %v932_v52, 0.0  ;;  %v3001_v60 = vpop.f32.mrb[14].mxu1 }
 0x1dd   : > { %v947_v0 = vadd.f32 %v3001_v60, %v3403_v24  ;;  %v941_v1 = vpop.f32.mrb[15].mxu1 }
 0x1de   : > { %v3528_v4 = vpack.c.bf16 %v1043_v55, %v1042_v59  ;;  %v942_v5 = vadd.f32 %v3403_v24, %v941_v1  ;;  %1901 = vmatpush1.bf16.msra.mxu0 %v2816_v50  ;;  %2094 = vmatpush1.bf16.msra.mxu1 %v2818_v53 }
 0x1df   : > { %v1045_v7 = vmax.f32 %v947_v0, 0.0  ;;  %1902 = vmatprep.subr.bf16.mxu0 %v2825_v56  ;;  %2095 = vmatprep.subr.bf16.mxu1 %v2827_v57 }
 0x1e0   : > { %1567 = vmatmul.mubr.bf16.gmra.mrb[44].mxu0 %v3476_v19  ;;  %1760 = vmatmul.mubr.bf16.gmra.mrb[44].mxu1 %v3476_v19  ;;  %v1044_v10 = vmax.f32 %v942_v5, 0.0  ;;  %v3004_v11 = vpop.f32.mrb[16].mxu1 }
 0x1e1   : > { %1576 = vmatprep.mubr.bf16.mxu0 %v3060_v15  ;;  %1769 = vmatprep.mubr.bf16.mxu1 %v3060_v15  ;;  %v957_v12 = vadd.f32 %v3004_v11, %v3403_v24  ;;  %v951_v13 = vpop.f32.mrb[17].mxu1 }
 0x1e2   : > { %v3536_v16 = vpack.c.bf16 %v1045_v7, %v1044_v10  ;;  %v952_v17 = vadd.f32 %v3403_v24, %v951_v13  ;;  %1903 = vmatpush1.bf16.msra.mxu0 %v2824_v2  ;;  %2096 = vmatpush1.bf16.msra.mxu1 %v2826_v6 }
 0x1e3   : > { %v1047_v20 = vmax.f32 %v957_v12, 0.0  ;;  %1904 = vmatprep.subr.bf16.mxu0 %v2833_v8  ;;  %2097 = vmatprep.subr.bf16.mxu1 %v2835_v9 }
 0x1e4   : > { %v1046_v21 = vmax.f32 %v952_v17, 0.0  ;;  %v3007_v22 = vpop.f32.mrb[18].mxu1 }
 0x1e5   : > { %v967_v23 = vadd.f32 %v3007_v22, %v3403_v24  ;;  %v961_v25 = vpop.f32.mrb[19].mxu1 }
 0x1e6   : > { %v3540_v26 = vpack.c.bf16 %v1047_v20, %v1046_v21  ;;  %v962_v27 = vadd.f32 %v3403_v24, %v961_v25  ;;  %1905 = vmatpush1.bf16.msra.mxu0 %v2832_v14  ;;  %2098 = vmatpush1.bf16.msra.mxu1 %v2834_v18 }
 0x1e7   : > { %v1049_v28 = vmax.f32 %v967_v23, 0.0 }
 0x1e8   : > { %1577 = vmatmul.mubr.bf16.gmra.mrb[48].mxu0 %v3492_v35  ;;  %1770 = vmatmul.mubr.bf16.gmra.mrb[48].mxu1 %v3492_v35  ;;  %v1048_v29 = vmax.f32 %v962_v27, 0.0  ;;  %v3010_v30 = vpop.f32.mrb[20].mxu1 }
 0x1e9   : > { %1586 = vmatprep.mubr.bf16.mxu0 %v3060_v15  ;;  %1779 = vmatprep.mubr.bf16.mxu1 %v3060_v15  ;;  %v977_v31 = vadd.f32 %v3010_v30, %v3403_v24  ;;  %v971_v32 = vpop.f32.mrb[21].mxu1 }
 0x1ea   : > { %v3548_v33 = vpack.c.bf16 %v1049_v28, %v1048_v29  ;;  %v972_v34 = vadd.f32 %v3403_v24, %v971_v32 }
 0x1eb   : > { %v1051_v36 = vmax.f32 %v977_v31, 0.0 }
 0x1ec   : > { %v1050_v37 = vmax.f32 %v972_v34, 0.0  ;;  %v3013_v39 = vpop.f32.mrb[22].mxu1 }
 0x1ed   : > { %v987_v40 = vadd.f32 %v3013_v39, %v3403_v24  ;;  %v981_v41 = vpop.f32.mrb[23].mxu1 }
 0x1ee   : > { %v3552_v42 = vpack.c.bf16 %v1051_v36, %v1050_v37  ;;  %v982_v43 = vadd.f32 %v3403_v24, %v981_v41 }
 0x1ef   : > { %v1053_v44 = vmax.f32 %v987_v40, 0.0 }
 0x1f0   : > { %1587 = vmatmul.mubr.bf16.gmra.mrb[52].mxu0 %v3512_v51  ;;  %1780 = vmatmul.mubr.bf16.gmra.mrb[52].mxu1 %v3512_v51  ;;  %v1052_v45 = vmax.f32 %v982_v43, 0.0  ;;  %v3016_v46 = vpop.f32.mrb[24].mxu1 }
 0x1f1   : > { %1596 = vmatprep.mubr.bf16.mxu0 %v3060_v15  ;;  %1789 = vmatprep.mubr.bf16.mxu1 %v3060_v15  ;;  %v997_v47 = vadd.f32 %v3016_v46, %v3403_v24  ;;  %v991_v48 = vpop.f32.mrb[25].mxu1 }
 0x1f2   : > { %v3560_v49 = vpack.c.bf16 %v1053_v44, %v1052_v45  ;;  %v992_v50 = vadd.f32 %v3403_v24, %v991_v48 }
 0x1f3   : > { %v1055_v52 = vmax.f32 %v997_v47, 0.0 }
 0x1f4   : > { %v1054_v53 = vmax.f32 %v992_v50, 0.0  ;;  %v3019_v55 = vpop.f32.mrb[26].mxu1 }
 0x1f5   : > { %v1007_v56 = vadd.f32 %v3019_v55, %v3403_v24  ;;  %v1001_v57 = vpop.f32.mrb[27].mxu1 }
 0x1f6   : > { %v3564_v58 = vpack.c.bf16 %v1055_v52, %v1054_v53  ;;  %v1002_v59 = vadd.f32 %v3403_v24, %v1001_v57 }
 0x1f7   : > { %v1057_v60 = vmax.f32 %v1007_v56, 0.0 }
 0x1f8   : > { %1597 = vmatmul.mubr.bf16.gmra.mrb[56].mxu0 %v3528_v4  ;;  %1790 = vmatmul.mubr.bf16.gmra.mrb[56].mxu1 %v3528_v4  ;;  %v1056_v61 = vmax.f32 %v1002_v59, 0.0  ;;  %v3022_v62 = vpop.f32.mrb[28].mxu1 }
 0x1f9   : > { %1606 = vmatprep.mubr.bf16.mxu0 %v3060_v15  ;;  %1799 = vmatprep.mubr.bf16.mxu1 %v3060_v15  ;;  %v1017_v63 = vadd.f32 %v3022_v62, %v3403_v24  ;;  %v1011_v0 = vpop.f32.mrb[29].mxu1 }
 0x1fa   : > { %v3572_v1 = vpack.c.bf16 %v1057_v60, %v1056_v61  ;;  %v1012_v2 = vadd.f32 %v3403_v24, %v1011_v0 }
 0x1fb   : > { %v1059_v5 = vmax.f32 %v1017_v63, 0.0 }
 0x1fc   : > { %v1058_v6 = vmax.f32 %v1012_v2, 0.0  ;;  %v3025_v7 = vpop.f32.mrb[30].mxu1 }
 0x1fd   : > { %v1027_v8 = vadd.f32 %v3025_v7, %v3403_v24  ;;  %v1021_v9 = vpop.f32.mrb[31].mxu1 }
 0x1fe   : > { %v3576_v10 = vpack.c.bf16 %v1059_v5, %v1058_v6  ;;  %v1022_v11 = vadd.f32 %v3403_v24, %v1021_v9  ;;  %v1144_v24 = vlaneseq }
 0x1ff   : > { %v1061_v12 = vmax.f32 %v1027_v8, 0.0 }
 0x200   : > { %1607 = vmatmul.mubr.bf16.gmra.mrb[60].mxu0 %v3536_v16  ;;  %1800 = vmatmul.mubr.bf16.gmra.mrb[60].mxu1 %v3536_v16  ;;  %v1060_v13 = vmax.f32 %v1022_v11, 0.0 }
 0x201   : > { %1616 = vmatprep.mubr.bf16.mxu0 %v3060_v15  ;;  %1809 = vmatprep.mubr.bf16.mxu1 %v3060_v15 }
 0x202   : > { %v3583_v14 = vpack.c.bf16 %v1061_v12, %v1060_v13 }
 0x208   : > { %1617 = vmatmul.mubr.bf16.gmra.mrb[64].mxu0 %v3540_v26  ;;  %1810 = vmatmul.mubr.bf16.gmra.mrb[64].mxu1 %v3540_v26 }
 0x209   : > { %1626 = vmatprep.mubr.bf16.mxu0 %v3060_v15  ;;  %1819 = vmatprep.mubr.bf16.mxu1 %v3060_v15 }
 0x210   : > { %1627 = vmatmul.mubr.bf16.gmra.mrb[68].mxu0 %v3548_v33  ;;  %1820 = vmatmul.mubr.bf16.gmra.mrb[68].mxu1 %v3548_v33 }
 0x211   : > { %1636 = vmatprep.mubr.bf16.mxu0 %v3060_v15  ;;  %1829 = vmatprep.mubr.bf16.mxu1 %v3060_v15 }
 0x218   : > { %1637 = vmatmul.mubr.bf16.gmra.mrb[72].mxu0 %v3552_v42  ;;  %1830 = vmatmul.mubr.bf16.gmra.mrb[72].mxu1 %v3552_v42 }
 0x219   : > { %1646 = vmatprep.mubr.bf16.mxu0 %v3060_v15  ;;  %1839 = vmatprep.mubr.bf16.mxu1 %v3060_v15 }
 0x220   : > { %1647 = vmatmul.mubr.bf16.gmra.mrb[76].mxu0 %v3560_v49  ;;  %1840 = vmatmul.mubr.bf16.gmra.mrb[76].mxu1 %v3560_v49 }
 0x221   : > { %1656 = vmatprep.mubr.bf16.mxu0 %v3060_v15  ;;  %1849 = vmatprep.mubr.bf16.mxu1 %v3060_v15 }
 0x228   : > { %1657 = vmatmul.mubr.bf16.gmra.mrb[80].mxu0 %v3564_v58  ;;  %1850 = vmatmul.mubr.bf16.gmra.mrb[80].mxu1 %v3564_v58 }
 0x229   : > { %1666 = vmatprep.mubr.bf16.mxu0 %v3060_v15  ;;  %1859 = vmatprep.mubr.bf16.mxu1 %v3060_v15 }
 0x230   : > { %1667 = vmatmul.mubr.bf16.gmra.mrb[84].mxu0 %v3572_v1  ;;  %1860 = vmatmul.mubr.bf16.gmra.mrb[84].mxu1 %v3572_v1 }
 0x231   : > { %1676 = vmatprep.mubr.bf16.mxu0 %v3060_v15  ;;  %1869 = vmatprep.mubr.bf16.mxu1 %v3060_v15 }
 0x238   : > { %1677 = vmatmul.mubr.bf16.gmra.mrb[88].mxu0 %v3576_v10  ;;  %1870 = vmatmul.mubr.bf16.gmra.mrb[88].mxu1 %v3576_v10 }
 0x239   : > { %1686 = vmatprep.mubr.bf16.mxu0 %v3060_v15  ;;  %1879 = vmatprep.mubr.bf16.mxu1 %v3060_v15 }
 0x240   : > { %1687 = vmatmul.mubr.bf16.gmra.mrb[92].mxu0 %v3583_v14  ;;  %1880 = vmatmul.mubr.bf16.gmra.mrb[92].mxu1 %v3583_v14 }
 0x241   : > { %1922 = vmatprep.mubr.bf16.mxu0 %v3060_v15  ;;  %2115 = vmatprep.mubr.bf16.mxu1 %v3060_v15 }
 0x248   : > { %1923 = vmatmul.mubr.bf16.vlgmr.msra.gmra.mrb[96].mxu0 %v3420_v38  ;;  %2116 = vmatmul.mubr.bf16.vlgmr.msra.gmra.mrb[96].mxu1 %v3420_v38  ;;  %v3657_v38 = vshrl.u32 %v1144_v24, 7 }
 0x249   : > { %1932 = vmatprep.mubr.bf16.mxu0 %v3060_v15  ;;  %2125 = vmatprep.mubr.bf16.mxu1 %v3060_v15 }
 0x250   : > { %1933 = vmatmul.mubr.bf16.gmra.mrb[100].mxu0 %v3438_v54  ;;  %2126 = vmatmul.mubr.bf16.gmra.mrb[100].mxu1 %v3438_v54  ;;  %v1146_v54 = vsub.s32 0, %v3657_v38 }
 0x251   : > { %1942 = vmatprep.mubr.bf16.mxu0 %v3060_v15  ;;  %2135 = vmatprep.mubr.bf16.mxu1 %v3060_v15 }
 0x258   : > { %1943 = vmatmul.mubr.bf16.gmra.mrb[104].mxu0 %v3456_v3  ;;  %2136 = vmatmul.mubr.bf16.gmra.mrb[104].mxu1 %v3456_v3  ;;  %v1154_v3 = vsub.s32 2, %v3657_v38 }
 0x259   : > { %1952 = vmatprep.mubr.bf16.mxu0 %v3060_v15  ;;  %2145 = vmatprep.mubr.bf16.mxu1 %v3060_v15 }
 0x260   : > { %1953 = vmatmul.mubr.bf16.gmra.mrb[108].mxu0 %v3476_v19  ;;  %2146 = vmatmul.mubr.bf16.gmra.mrb[108].mxu1 %v3476_v19  ;;  %v3664_v19 = vld [vmem:[%s4005_s6] sm:$0xff] }
 0x261   : > { %1962 = vmatprep.mubr.bf16.mxu0 %v3060_v15  ;;  %2155 = vmatprep.mubr.bf16.mxu1 %v3060_v15 }
 0x268   : > { %1963 = vmatmul.mubr.bf16.gmra.mrb[112].mxu0 %v3492_v35  ;;  %2156 = vmatmul.mubr.bf16.gmra.mrb[112].mxu1 %v3492_v35  ;;  %v1150_v35 = vsub.s32 1, %v3657_v38 }
 0x269   : > { %1972 = vmatprep.mubr.bf16.mxu0 %v3060_v15  ;;  %2165 = vmatprep.mubr.bf16.mxu1 %v3060_v15 }
 0x26a   : > { %v3679_v20 = vrot.slane %v3664_v19, %v1150_v35 }
 0x270   : > { %1973 = vmatmul.mubr.bf16.gmra.mrb[116].mxu0 %v3512_v51  ;;  %2166 = vmatmul.mubr.bf16.gmra.mrb[116].mxu1 %v3512_v51  ;;  %v1158_v51 = vsub.s32 3, %v3657_v38 }
 0x271   : > { %1982 = vmatprep.mubr.bf16.mxu0 %v3060_v15  ;;  %2175 = vmatprep.mubr.bf16.mxu1 %v3060_v15 }
 0x272   : > { %v3682_v21 = vrot.slane %v3664_v19, %v1158_v51 }
 0x278   : > { %1983 = vmatmul.mubr.bf16.gmra.mrb[120].mxu0 %v3528_v4  ;;  %2176 = vmatmul.mubr.bf16.gmra.mrb[120].mxu1 %v3528_v4  ;;  %v3673_v4 = vrot.slane %v3664_v19, %v1146_v54 }
 0x279   : > { %1992 = vmatprep.mubr.bf16.mxu0 %v3060_v15  ;;  %2185 = vmatprep.mubr.bf16.mxu1 %v3060_v15 }
 0x280   : > { %1993 = vmatmul.mubr.bf16.gmra.mrb[124].mxu0 %v3536_v16  ;;  %2186 = vmatmul.mubr.bf16.gmra.mrb[124].mxu1 %v3536_v16  ;;  %v3676_v16 = vrot.slane %v3664_v19, %v1154_v3 }
 0x281   : > { %2002 = vmatprep.mubr.bf16.mxu0 %v3060_v15  ;;  %2195 = vmatprep.mubr.bf16.mxu1 %v3060_v15 }
 0x288   : > { %2003 = vmatmul.mubr.bf16.gmra.mrb[128].mxu0 %v3540_v26  ;;  %2196 = vmatmul.mubr.bf16.gmra.mrb[128].mxu1 %v3540_v26 }
 0x289   : > { %2012 = vmatprep.mubr.bf16.mxu0 %v3060_v15  ;;  %2205 = vmatprep.mubr.bf16.mxu1 %v3060_v15 }
 0x290   : > { %2013 = vmatmul.mubr.bf16.gmra.mrb[132].mxu0 %v3548_v33  ;;  %2206 = vmatmul.mubr.bf16.gmra.mrb[132].mxu1 %v3548_v33 }
 0x291   : > { %2022 = vmatprep.mubr.bf16.mxu0 %v3060_v15  ;;  %2215 = vmatprep.mubr.bf16.mxu1 %v3060_v15 }
 0x298   : > { %2023 = vmatmul.mubr.bf16.gmra.mrb[136].mxu0 %v3552_v42  ;;  %2216 = vmatmul.mubr.bf16.gmra.mrb[136].mxu1 %v3552_v42 }
 0x299   : > { %2032 = vmatprep.mubr.bf16.mxu0 %v3060_v15  ;;  %2225 = vmatprep.mubr.bf16.mxu1 %v3060_v15 }
 0x29b   : > { %v1538_v17 = vpop.f32.mrb[32].mxu0  ;;  %v1731_v18 = vpop.f32.mrb[32].mxu1 }
 0x29c   : > { %v1540_v22 = vpop.f32.mrb[33].mxu0  ;;  %v1733_v23 = vpop.f32.mrb[33].mxu1  ;;  %v1539_v27 = vadd.f32 %v1538_v17, %v3673_v4  ;;  %v1732_v28 = vadd.f32 %v1731_v18, %v3676_v16 }
 0x29d   : > { %v1542_v25 = vpop.f32.mrb[34].mxu0  ;;  %v1735_v26 = vpop.f32.mrb[34].mxu1  ;;  %v1541_v33 = vadd.f32 %v1540_v22, %v3679_v20  ;;  %v1734_v34 = vadd.f32 %v1733_v23, %v3682_v21 }
 0x29e   : > { %v1543_v29 = vadd.f32 %v1542_v25, %v3673_v4  ;;  %v1736_v30 = vadd.f32 %v1735_v26, %v3676_v16  ;;  %v1544_v31 = vpop.f32.mrb[35].mxu0  ;;  %v1737_v32 = vpop.f32.mrb[35].mxu1 }
 0x29f   : > { %v1545_v36 = vadd.f32 %v1544_v31, %v3679_v20  ;;  %v1738_v37 = vadd.f32 %v1737_v32, %v3682_v21 }
 0x2a0   : > { %v2276_v39 = vmax.f32 %v1539_v27, %v1543_v29  ;;  %v2350_v40 = vmax.f32 %v1732_v28, %v1736_v30  ;;  %2033 = vmatmul.mubr.bf16.gmra.mrb[140].mxu0 %v3560_v49  ;;  %2226 = vmatmul.mubr.bf16.gmra.mrb[140].mxu1 %v3560_v49 }
 0x2a1   : > { %v2313_v41 = vmax.f32 %v1541_v33, %v1545_v36  ;;  %v2387_v42 = vmax.f32 %v1734_v34, %v1738_v37  ;;  %2042 = vmatprep.mubr.bf16.mxu0 %v3060_v15  ;;  %2235 = vmatprep.mubr.bf16.mxu1 %v3060_v15 }
 0x2a3   : > { %v1548_v43 = vpop.f32.mrb[36].mxu0  ;;  %v1741_v44 = vpop.f32.mrb[36].mxu1 }
 0x2a4   : > { %v1549_v45 = vadd.f32 %v1548_v43, %v3673_v4  ;;  %v1742_v46 = vadd.f32 %v1741_v44, %v3676_v16  ;;  %v1550_v47 = vpop.f32.mrb[37].mxu0  ;;  %v1743_v48 = vpop.f32.mrb[37].mxu1 }
 0x2a5   : > { %v1551_v50 = vadd.f32 %v1550_v47, %v3679_v20  ;;  %v1744_v52 = vadd.f32 %v1743_v48, %v3682_v21  ;;  %v1552_v53 = vpop.f32.mrb[38].mxu0  ;;  %v1745_v49 = vpop.f32.mrb[38].mxu1 }
 0x2a6   : > { %v2277_v55 = vmax.f32 %v2276_v39, %v1549_v45  ;;  %v2351_v56 = vmax.f32 %v2350_v40, %v1742_v46  ;;  %v1553_v57 = vadd.f32 %v1552_v53, %v3673_v4  ;;  %v1746_v59 = vadd.f32 %v1745_v49, %v3676_v16  ;;  %v1554_v60 = vpop.f32.mrb[39].mxu0  ;;  %v1747_v61 = vpop.f32.mrb[39].mxu1 }
 0x2a7   : > { %v2314_v62 = vmax.f32 %v2313_v41, %v1551_v50  ;;  %v2388_v63 = vmax.f32 %v2387_v42, %v1744_v52  ;;  %v1555_v0 = vadd.f32 %v1554_v60, %v3679_v20  ;;  %v1748_v2 = vadd.f32 %v1747_v61, %v3682_v21 }
 0x2a8   : > { %v2278_v5 = vmax.f32 %v2277_v55, %v1553_v57  ;;  %v2352_v6 = vmax.f32 %v2351_v56, %v1746_v59  ;;  %2043 = vmatmul.mubr.bf16.gmra.mrb[144].mxu0 %v3564_v58  ;;  %2236 = vmatmul.mubr.bf16.gmra.mrb[144].mxu1 %v3564_v58 }
 0x2a9   : > { %v2315_v7 = vmax.f32 %v2314_v62, %v1555_v0  ;;  %v2389_v8 = vmax.f32 %v2388_v63, %v1748_v2  ;;  %2052 = vmatprep.mubr.bf16.mxu0 %v3060_v15  ;;  %2245 = vmatprep.mubr.bf16.mxu1 %v3060_v15 }
 0x2ab   : > { %v1558_v9 = vpop.f32.mrb[40].mxu0  ;;  %v1751_v11 = vpop.f32.mrb[40].mxu1 }
 0x2ac   : > { %v1559_v12 = vadd.f32 %v1558_v9, %v3673_v4  ;;  %v1752_v13 = vadd.f32 %v1751_v11, %v3676_v16  ;;  %v1560_v24 = vpop.f32.mrb[41].mxu0  ;;  %v1753_v54 = vpop.f32.mrb[41].mxu1 }
 0x2ad   : > { %v1561_v3 = vadd.f32 %v1560_v24, %v3679_v20  ;;  %v1754_v35 = vadd.f32 %v1753_v54, %v3682_v21  ;;  %v1562_v51 = vpop.f32.mrb[42].mxu0  ;;  %v1755_v58 = vpop.f32.mrb[42].mxu1 }
 0x2ae   : > { %v2279_v17 = vmax.f32 %v2278_v5, %v1559_v12  ;;  %v2353_v18 = vmax.f32 %v2352_v6, %v1752_v13  ;;  %v1563_v22 = vadd.f32 %v1562_v51, %v3673_v4  ;;  %v1756_v23 = vadd.f32 %v1755_v58, %v3676_v16  ;;  %v1564_v25 = vpop.f32.mrb[43].mxu0  ;;  %v1757_v26 = vpop.f32.mrb[43].mxu1 }
 0x2af   : > { %v2316_v27 = vmax.f32 %v2315_v7, %v1561_v3  ;;  %v2390_v28 = vmax.f32 %v2389_v8, %v1754_v35  ;;  %v1565_v29 = vadd.f32 %v1564_v25, %v3679_v20  ;;  %v1758_v30 = vadd.f32 %v1757_v26, %v3682_v21 }
 0x2b0   : > { %v2280_v31 = vmax.f32 %v2279_v17, %v1563_v22  ;;  %v2354_v32 = vmax.f32 %v2353_v18, %v1756_v23  ;;  %2053 = vmatmul.mubr.bf16.gmra.mrb[148].mxu0 %v3572_v1  ;;  %2246 = vmatmul.mubr.bf16.gmra.mrb[148].mxu1 %v3572_v1 }
 0x2b1   : > { %v2317_v33 = vmax.f32 %v2316_v27, %v1565_v29  ;;  %v2391_v34 = vmax.f32 %v2390_v28, %v1758_v30  ;;  %2062 = vmatprep.mubr.bf16.mxu0 %v3060_v15  ;;  %2255 = vmatprep.mubr.bf16.mxu1 %v3060_v15 }
 0x2b3   : > { %v1568_v36 = vpop.f32.mrb[44].mxu0  ;;  %v1761_v37 = vpop.f32.mrb[44].mxu1 }
 0x2b4   : > { %v1569_v39 = vadd.f32 %v1568_v36, %v3673_v4  ;;  %v1762_v40 = vadd.f32 %v1761_v37, %v3676_v16  ;;  %v1570_v41 = vpop.f32.mrb[45].mxu0  ;;  %v1763_v42 = vpop.f32.mrb[45].mxu1 }
 0x2b5   : > { %v1571_v43 = vadd.f32 %v1570_v41, %v3679_v20  ;;  %v1764_v44 = vadd.f32 %v1763_v42, %v3682_v21  ;;  %v1572_v45 = vpop.f32.mrb[46].mxu0  ;;  %v1765_v1 = vpop.f32.mrb[46].mxu1 }
 0x2b6   : > { %v2281_v46 = vmax.f32 %v2280_v31, %v1569_v39  ;;  %v2355_v47 = vmax.f32 %v2354_v32, %v1762_v40  ;;  %v1573_v48 = vadd.f32 %v1572_v45, %v3673_v4  ;;  %v1766_v50 = vadd.f32 %v1765_v1, %v3676_v16  ;;  %v1574_v52 = vpop.f32.mrb[47].mxu0  ;;  %v1767_v53 = vpop.f32.mrb[47].mxu1 }
 0x2b7   : > { %v2318_v49 = vmax.f32 %v2317_v33, %v1571_v43  ;;  %v2392_v55 = vmax.f32 %v2391_v34, %v1764_v44  ;;  %v1575_v56 = vadd.f32 %v1574_v52, %v3679_v20  ;;  %v1768_v57 = vadd.f32 %v1767_v53, %v3682_v21 }
 0x2b8   : > { %v2282_v59 = vmax.f32 %v2281_v46, %v1573_v48  ;;  %v2356_v60 = vmax.f32 %v2355_v47, %v1766_v50  ;;  %2063 = vmatmul.mubr.bf16.gmra.mrb[152].mxu0 %v3576_v10  ;;  %2256 = vmatmul.mubr.bf16.gmra.mrb[152].mxu1 %v3576_v10 }
 0x2b9   : > { %v2319_v61 = vmax.f32 %v2318_v49, %v1575_v56  ;;  %v2393_v62 = vmax.f32 %v2392_v55, %v1768_v57  ;;  %2072 = vmatprep.mubr.bf16.mxu0 %v3060_v15  ;;  %2265 = vmatprep.mubr.bf16.mxu1 %v3060_v15 }
 0x2bb   : > { %v1578_v63 = vpop.f32.mrb[48].mxu0  ;;  %v1771_v0 = vpop.f32.mrb[48].mxu1 }
 0x2bc   : > { %v1579_v2 = vadd.f32 %v1578_v63, %v3673_v4  ;;  %v1772_v5 = vadd.f32 %v1771_v0, %v3676_v16  ;;  %v1580_v6 = vpop.f32.mrb[49].mxu0  ;;  %v1773_v7 = vpop.f32.mrb[49].mxu1 }
 0x2bd   : > { %v1581_v8 = vadd.f32 %v1580_v6, %v3679_v20  ;;  %v1774_v9 = vadd.f32 %v1773_v7, %v3682_v21  ;;  %v1582_v11 = vpop.f32.mrb[50].mxu0  ;;  %v1775_v10 = vpop.f32.mrb[50].mxu1 }
 0x2be   : > { %v2283_v12 = vmax.f32 %v2282_v59, %v1579_v2  ;;  %v2357_v13 = vmax.f32 %v2356_v60, %v1772_v5  ;;  %v1583_v24 = vadd.f32 %v1582_v11, %v3673_v4  ;;  %v1776_v15 = vadd.f32 %v1775_v10, %v3676_v16  ;;  %v1584_v54 = vpop.f32.mrb[51].mxu0  ;;  %v1777_v3 = vpop.f32.mrb[51].mxu1 }
 0x2bf   : > { %v2320_v35 = vmax.f32 %v2319_v61, %v1581_v8  ;;  %v2394_v51 = vmax.f32 %v2393_v62, %v1774_v9  ;;  %v1585_v58 = vadd.f32 %v1584_v54, %v3679_v20  ;;  %v1778_v17 = vadd.f32 %v1777_v3, %v3682_v21 }
 0x2c0   : > { %v2284_v18 = vmax.f32 %v2283_v12, %v1583_v24  ;;  %v2358_v22 = vmax.f32 %v2357_v13, %v1776_v15  ;;  %2073 = vmatmul.mubr.bf16.gmra.mrb[156].mxu0 %v3583_v14  ;;  %2266 = vmatmul.mubr.bf16.gmra.mrb[156].mxu1 %v3583_v14 }
 0x2c1   : > { %v2321_v23 = vmax.f32 %v2320_v35, %v1585_v58  ;;  %v2395_v25 = vmax.f32 %v2394_v51, %v1778_v17 }
 0x2c3   : > { %v1588_v26 = vpop.f32.mrb[52].mxu0  ;;  %v1781_v27 = vpop.f32.mrb[52].mxu1 }
 0x2c4   : > { %v1589_v28 = vadd.f32 %v1588_v26, %v3673_v4  ;;  %v1782_v29 = vadd.f32 %v1781_v27, %v3676_v16  ;;  %v1590_v30 = vpop.f32.mrb[53].mxu0  ;;  %v1783_v31 = vpop.f32.mrb[53].mxu1 }
 0x2c5   : > { %v1591_v32 = vadd.f32 %v1590_v30, %v3679_v20  ;;  %v1784_v33 = vadd.f32 %v1783_v31, %v3682_v21  ;;  %v1592_v34 = vpop.f32.mrb[54].mxu0  ;;  %v1785_v36 = vpop.f32.mrb[54].mxu1 }
 0x2c6   : > { %v2285_v37 = vmax.f32 %v2284_v18, %v1589_v28  ;;  %v2359_v39 = vmax.f32 %v2358_v22, %v1782_v29  ;;  %v1593_v14 = vadd.f32 %v1592_v34, %v3673_v4  ;;  %v1786_v40 = vadd.f32 %v1785_v36, %v3676_v16  ;;  %v1594_v41 = vpop.f32.mrb[55].mxu0  ;;  %v1787_v42 = vpop.f32.mrb[55].mxu1 }
 0x2c7   : > { %v2322_v43 = vmax.f32 %v2321_v23, %v1591_v32  ;;  %v2396_v44 = vmax.f32 %v2395_v25, %v1784_v33  ;;  %v1595_v45 = vadd.f32 %v1594_v41, %v3679_v20  ;;  %v1788_v1 = vadd.f32 %v1787_v42, %v3682_v21 }
 0x2c8   : > { %v2286_v46 = vmax.f32 %v2285_v37, %v1593_v14  ;;  %v2360_v47 = vmax.f32 %v2359_v39, %v1786_v40 }
 0x2c9   : > { %v2323_v48 = vmax.f32 %v2322_v43, %v1595_v45  ;;  %v2397_v50 = vmax.f32 %v2396_v44, %v1788_v1 }
 0x2cb   : > { %v1598_v52 = vpop.f32.mrb[56].mxu0  ;;  %v1791_v53 = vpop.f32.mrb[56].mxu1 }
 0x2cc   : > { %v1599_v49 = vadd.f32 %v1598_v52, %v3673_v4  ;;  %v1792_v55 = vadd.f32 %v1791_v53, %v3676_v16  ;;  %v1600_v56 = vpop.f32.mrb[57].mxu0  ;;  %v1793_v57 = vpop.f32.mrb[57].mxu1 }
 0x2cd   : > { %v1601_v59 = vadd.f32 %v1600_v56, %v3679_v20  ;;  %v1794_v60 = vadd.f32 %v1793_v57, %v3682_v21  ;;  %v1602_v61 = vpop.f32.mrb[58].mxu0  ;;  %v1795_v62 = vpop.f32.mrb[58].mxu1 }
 0x2ce   : > { %v2287_v63 = vmax.f32 %v2286_v46, %v1599_v49  ;;  %v2361_v0 = vmax.f32 %v2360_v47, %v1792_v55  ;;  %v1603_v2 = vadd.f32 %v1602_v61, %v3673_v4  ;;  %v1796_v5 = vadd.f32 %v1795_v62, %v3676_v16  ;;  %v1604_v6 = vpop.f32.mrb[59].mxu0  ;;  %v1797_v7 = vpop.f32.mrb[59].mxu1 }
 0x2cf   : > { %v2324_v8 = vmax.f32 %v2323_v48, %v1601_v59  ;;  %v2398_v9 = vmax.f32 %v2397_v50, %v1794_v60  ;;  %v1605_v11 = vadd.f32 %v1604_v6, %v3679_v20  ;;  %v1798_v10 = vadd.f32 %v1797_v7, %v3682_v21 }
 0x2d0   : > { %v2288_v12 = vmax.f32 %v2287_v63, %v1603_v2  ;;  %v2362_v13 = vmax.f32 %v2361_v0, %v1796_v5 }
 0x2d1   : > { %v2325_v24 = vmax.f32 %v2324_v8, %v1605_v11  ;;  %v2399_v15 = vmax.f32 %v2398_v9, %v1798_v10 }
 0x2d3   : > { %v1608_v54 = vpop.f32.mrb[60].mxu0  ;;  %v1801_v3 = vpop.f32.mrb[60].mxu1 }
 0x2d4   : > { %v1609_v35 = vadd.f32 %v1608_v54, %v3673_v4  ;;  %v1802_v51 = vadd.f32 %v1801_v3, %v3676_v16  ;;  %v1610_v58 = vpop.f32.mrb[61].mxu0  ;;  %v1803_v17 = vpop.f32.mrb[61].mxu1 }
 0x2d5   : > { %v1611_v18 = vadd.f32 %v1610_v58, %v3679_v20  ;;  %v1804_v22 = vadd.f32 %v1803_v17, %v3682_v21  ;;  %v1612_v23 = vpop.f32.mrb[62].mxu0  ;;  %v1805_v25 = vpop.f32.mrb[62].mxu1 }
 0x2d6   : > { %v2289_v26 = vmax.f32 %v2288_v12, %v1609_v35  ;;  %v2363_v27 = vmax.f32 %v2362_v13, %v1802_v51  ;;  %v1613_v28 = vadd.f32 %v1612_v23, %v3673_v4  ;;  %v1806_v29 = vadd.f32 %v1805_v25, %v3676_v16  ;;  %v1614_v30 = vpop.f32.mrb[63].mxu0  ;;  %v1807_v31 = vpop.f32.mrb[63].mxu1 }
 0x2d7   : > { %v2326_v32 = vmax.f32 %v2325_v24, %v1611_v18  ;;  %v2400_v33 = vmax.f32 %v2399_v15, %v1804_v22  ;;  %v1615_v34 = vadd.f32 %v1614_v30, %v3679_v20  ;;  %v1808_v36 = vadd.f32 %v1807_v31, %v3682_v21 }
 0x2d8   : > { %v2290_v37 = vmax.f32 %v2289_v26, %v1613_v28  ;;  %v2364_v39 = vmax.f32 %v2363_v27, %v1806_v29 }
 0x2d9   : > { %v2327_v14 = vmax.f32 %v2326_v32, %v1615_v34  ;;  %v2401_v40 = vmax.f32 %v2400_v33, %v1808_v36 }
 0x2db   : > { %v1618_v41 = vpop.f32.mrb[64].mxu0  ;;  %v1811_v42 = vpop.f32.mrb[64].mxu1 }
 0x2dc   : > { %v1619_v43 = vadd.f32 %v1618_v41, %v3673_v4  ;;  %v1812_v44 = vadd.f32 %v1811_v42, %v3676_v16  ;;  %v1620_v45 = vpop.f32.mrb[65].mxu0  ;;  %v1813_v1 = vpop.f32.mrb[65].mxu1 }
 0x2dd   : > { %v1621_v46 = vadd.f32 %v1620_v45, %v3679_v20  ;;  %v1814_v47 = vadd.f32 %v1813_v1, %v3682_v21  ;;  %v1622_v48 = vpop.f32.mrb[66].mxu0  ;;  %v1815_v50 = vpop.f32.mrb[66].mxu1 }
 0x2de   : > { %v2291_v52 = vmax.f32 %v2290_v37, %v1619_v43  ;;  %v2365_v53 = vmax.f32 %v2364_v39, %v1812_v44  ;;  %v1623_v49 = vadd.f32 %v1622_v48, %v3673_v4  ;;  %v1816_v55 = vadd.f32 %v1815_v50, %v3676_v16  ;;  %v1624_v56 = vpop.f32.mrb[67].mxu0  ;;  %v1817_v57 = vpop.f32.mrb[67].mxu1 }
 0x2df   : > { %v2328_v59 = vmax.f32 %v2327_v14, %v1621_v46  ;;  %v2402_v60 = vmax.f32 %v2401_v40, %v1814_v47  ;;  %v1625_v61 = vadd.f32 %v1624_v56, %v3679_v20  ;;  %v1818_v62 = vadd.f32 %v1817_v57, %v3682_v21 }
 0x2e0   : > { %v2292_v63 = vmax.f32 %v2291_v52, %v1623_v49  ;;  %v2366_v0 = vmax.f32 %v2365_v53, %v1816_v55 }
 0x2e1   : > { %v2329_v2 = vmax.f32 %v2328_v59, %v1625_v61  ;;  %v2403_v5 = vmax.f32 %v2402_v60, %v1818_v62 }
 0x2e3   : > { %v1628_v6 = vpop.f32.mrb[68].mxu0  ;;  %v1821_v7 = vpop.f32.mrb[68].mxu1 }
 0x2e4   : > { %v1629_v8 = vadd.f32 %v1628_v6, %v3673_v4  ;;  %v1822_v9 = vadd.f32 %v1821_v7, %v3676_v16  ;;  %v1630_v11 = vpop.f32.mrb[69].mxu0  ;;  %v1823_v10 = vpop.f32.mrb[69].mxu1 }
 0x2e5   : > { %v1631_v12 = vadd.f32 %v1630_v11, %v3679_v20  ;;  %v1824_v13 = vadd.f32 %v1823_v10, %v3682_v21  ;;  %v1632_v24 = vpop.f32.mrb[70].mxu0  ;;  %v1825_v15 = vpop.f32.mrb[70].mxu1 }
 0x2e6   : > { %v2293_v54 = vmax.f32 %v2292_v63, %v1629_v8  ;;  %v2367_v3 = vmax.f32 %v2366_v0, %v1822_v9  ;;  %v1633_v35 = vadd.f32 %v1632_v24, %v3673_v4  ;;  %v1826_v51 = vadd.f32 %v1825_v15, %v3676_v16  ;;  %v1634_v58 = vpop.f32.mrb[71].mxu0  ;;  %v1827_v17 = vpop.f32.mrb[71].mxu1 }
 0x2e7   : > { %v2330_v18 = vmax.f32 %v2329_v2, %v1631_v12  ;;  %v2404_v22 = vmax.f32 %v2403_v5, %v1824_v13  ;;  %v1635_v23 = vadd.f32 %v1634_v58, %v3679_v20  ;;  %v1828_v25 = vadd.f32 %v1827_v17, %v3682_v21 }
 0x2e8   : > { %v2294_v26 = vmax.f32 %v2293_v54, %v1633_v35  ;;  %v2368_v27 = vmax.f32 %v2367_v3, %v1826_v51 }
 0x2e9   : > { %v2331_v28 = vmax.f32 %v2330_v18, %v1635_v23  ;;  %v2405_v29 = vmax.f32 %v2404_v22, %v1828_v25 }
 0x2eb   : > { %v1638_v30 = vpop.f32.mrb[72].mxu0  ;;  %v1831_v31 = vpop.f32.mrb[72].mxu1 }
 0x2ec   : > { %v1639_v32 = vadd.f32 %v1638_v30, %v3673_v4  ;;  %v1832_v33 = vadd.f32 %v1831_v31, %v3676_v16  ;;  %v1640_v34 = vpop.f32.mrb[73].mxu0  ;;  %v1833_v36 = vpop.f32.mrb[73].mxu1 }
 0x2ed   : > { %v1641_v37 = vadd.f32 %v1640_v34, %v3679_v20  ;;  %v1834_v39 = vadd.f32 %v1833_v36, %v3682_v21  ;;  %v1642_v14 = vpop.f32.mrb[74].mxu0  ;;  %v1835_v40 = vpop.f32.mrb[74].mxu1 }
 0x2ee   : > { %v2295_v41 = vmax.f32 %v2294_v26, %v1639_v32  ;;  %v2369_v42 = vmax.f32 %v2368_v27, %v1832_v33  ;;  %v1643_v43 = vadd.f32 %v1642_v14, %v3673_v4  ;;  %v1836_v44 = vadd.f32 %v1835_v40, %v3676_v16  ;;  %v1644_v45 = vpop.f32.mrb[75].mxu0  ;;  %v1837_v1 = vpop.f32.mrb[75].mxu1 }
 0x2ef   : > { %v2332_v46 = vmax.f32 %v2331_v28, %v1641_v37  ;;  %v2406_v47 = vmax.f32 %v2405_v29, %v1834_v39  ;;  %v1645_v48 = vadd.f32 %v1644_v45, %v3679_v20  ;;  %v1838_v50 = vadd.f32 %v1837_v1, %v3682_v21 }
 0x2f0   : > { %v2296_v52 = vmax.f32 %v2295_v41, %v1643_v43  ;;  %v2370_v53 = vmax.f32 %v2369_v42, %v1836_v44 }
 0x2f1   : > { %v2333_v49 = vmax.f32 %v2332_v46, %v1645_v48  ;;  %v2407_v55 = vmax.f32 %v2406_v47, %v1838_v50 }
 0x2f3   : > { %v1648_v56 = vpop.f32.mrb[76].mxu0  ;;  %v1841_v57 = vpop.f32.mrb[76].mxu1 }
 0x2f4   : > { %v1649_v59 = vadd.f32 %v1648_v56, %v3673_v4  ;;  %v1842_v60 = vadd.f32 %v1841_v57, %v3676_v16  ;;  %v1650_v61 = vpop.f32.mrb[77].mxu0  ;;  %v1843_v62 = vpop.f32.mrb[77].mxu1 }
 0x2f5   : > { %v1651_v63 = vadd.f32 %v1650_v61, %v3679_v20  ;;  %v1844_v0 = vadd.f32 %v1843_v62, %v3682_v21  ;;  %v1652_v2 = vpop.f32.mrb[78].mxu0  ;;  %v1845_v5 = vpop.f32.mrb[78].mxu1 }
 0x2f6   : > { %v2297_v6 = vmax.f32 %v2296_v52, %v1649_v59  ;;  %v2371_v7 = vmax.f32 %v2370_v53, %v1842_v60  ;;  %v1653_v8 = vadd.f32 %v1652_v2, %v3673_v4  ;;  %v1846_v9 = vadd.f32 %v1845_v5, %v3676_v16  ;;  %v1654_v11 = vpop.f32.mrb[79].mxu0  ;;  %v1847_v10 = vpop.f32.mrb[79].mxu1 }
 0x2f7   : > { %v2334_v12 = vmax.f32 %v2333_v49, %v1651_v63  ;;  %v2408_v13 = vmax.f32 %v2407_v55, %v1844_v0  ;;  %v1655_v24 = vadd.f32 %v1654_v11, %v3679_v20  ;;  %v1848_v15 = vadd.f32 %v1847_v10, %v3682_v21 }
 0x2f8   : > { %v2298_v54 = vmax.f32 %v2297_v6, %v1653_v8  ;;  %v2372_v3 = vmax.f32 %v2371_v7, %v1846_v9 }
 0x2f9   : > { %v2335_v35 = vmax.f32 %v2334_v12, %v1655_v24  ;;  %v2409_v51 = vmax.f32 %v2408_v13, %v1848_v15 }
 0x2fb   : > { %v1658_v58 = vpop.f32.mrb[80].mxu0  ;;  %v1851_v17 = vpop.f32.mrb[80].mxu1 }
 0x2fc   : > { %v1659_v18 = vadd.f32 %v1658_v58, %v3673_v4  ;;  %v1852_v22 = vadd.f32 %v1851_v17, %v3676_v16  ;;  %v1660_v23 = vpop.f32.mrb[81].mxu0  ;;  %v1853_v25 = vpop.f32.mrb[81].mxu1 }
 0x2fd   : > { %v1661_v26 = vadd.f32 %v1660_v23, %v3679_v20  ;;  %v1854_v27 = vadd.f32 %v1853_v25, %v3682_v21  ;;  %v1662_v28 = vpop.f32.mrb[82].mxu0  ;;  %v1855_v29 = vpop.f32.mrb[82].mxu1 }
 0x2fe   : > { %v2299_v30 = vmax.f32 %v2298_v54, %v1659_v18  ;;  %v2373_v31 = vmax.f32 %v2372_v3, %v1852_v22  ;;  %v1663_v32 = vadd.f32 %v1662_v28, %v3673_v4  ;;  %v1856_v33 = vadd.f32 %v1855_v29, %v3676_v16  ;;  %v1664_v34 = vpop.f32.mrb[83].mxu0  ;;  %v1857_v36 = vpop.f32.mrb[83].mxu1 }
 0x2ff   : > { %v2336_v37 = vmax.f32 %v2335_v35, %v1661_v26  ;;  %v2410_v39 = vmax.f32 %v2409_v51, %v1854_v27  ;;  %v1665_v14 = vadd.f32 %v1664_v34, %v3679_v20  ;;  %v1858_v40 = vadd.f32 %v1857_v36, %v3682_v21 }
 0x300   : > { %v2300_v41 = vmax.f32 %v2299_v30, %v1663_v32  ;;  %v2374_v42 = vmax.f32 %v2373_v31, %v1856_v33 }
 0x301   : > { %v2337_v43 = vmax.f32 %v2336_v37, %v1665_v14  ;;  %v2411_v44 = vmax.f32 %v2410_v39, %v1858_v40  ;;  %v1162_v37 = vsub.s32 4, %v3657_v38 }
 0x303   : > { %v1668_v45 = vpop.f32.mrb[84].mxu0  ;;  %v1861_v1 = vpop.f32.mrb[84].mxu1 }
 0x304   : > { %v1669_v46 = vadd.f32 %v1668_v45, %v3673_v4  ;;  %v1862_v47 = vadd.f32 %v1861_v1, %v3676_v16  ;;  %v1670_v48 = vpop.f32.mrb[85].mxu0  ;;  %v1863_v50 = vpop.f32.mrb[85].mxu1 }
 0x305   : > { %v1671_v52 = vadd.f32 %v1670_v48, %v3679_v20  ;;  %v1864_v53 = vadd.f32 %v1863_v50, %v3682_v21  ;;  %v1672_v49 = vpop.f32.mrb[86].mxu0  ;;  %v1865_v55 = vpop.f32.mrb[86].mxu1  ;;  %v1174_v50 = vsub.s32 7, %v3657_v38 }
 0x306   : > { %v2301_v56 = vmax.f32 %v2300_v41, %v1669_v46  ;;  %v2375_v57 = vmax.f32 %v2374_v42, %v1862_v47  ;;  %v1673_v59 = vadd.f32 %v1672_v49, %v3673_v4  ;;  %v1866_v60 = vadd.f32 %v1865_v55, %v3676_v16  ;;  %v1674_v61 = vpop.f32.mrb[87].mxu0  ;;  %v1867_v62 = vpop.f32.mrb[87].mxu1 }
 0x307   : > { %v2338_v63 = vmax.f32 %v2337_v43, %v1671_v52  ;;  %v2412_v0 = vmax.f32 %v2411_v44, %v1864_v53  ;;  %v1675_v2 = vadd.f32 %v1674_v61, %v3679_v20  ;;  %v1868_v5 = vadd.f32 %v1867_v62, %v3682_v21 }
 0x308   : > { %v2302_v6 = vmax.f32 %v2301_v56, %v1673_v59  ;;  %v2376_v7 = vmax.f32 %v2375_v57, %v1866_v60  ;;  %v1170_v42 = vsub.s32 6, %v3657_v38  ;;  %v1166_v43 = vsub.s32 5, %v3657_v38 }
 0x309   : > { %v2339_v8 = vmax.f32 %v2338_v63, %v1675_v2  ;;  %v2413_v9 = vmax.f32 %v2412_v0, %v1868_v5  ;;  %v3061_v47 = vmov 1966171168   ;;  %v3835_v2 = vrot.slane %v3664_v19, %v1162_v37 }
 0x30a   : > { %v2585_v48 = vunpack.c.l.s4 %v3061_v47  ;;  %v3838_v5 = vrot.slane %v3664_v19, %v1170_v42 }
 0x30b   : > { %v1678_v11 = vpop.f32.mrb[88].mxu0  ;;  %v1871_v10 = vpop.f32.mrb[88].mxu1 }
 0x30c   : > { %v1679_v12 = vadd.f32 %v1678_v11, %v3673_v4  ;;  %v1872_v13 = vadd.f32 %v1871_v10, %v3676_v16  ;;  %v1680_v24 = vpop.f32.mrb[89].mxu0  ;;  %v1873_v15 = vpop.f32.mrb[89].mxu1 }
 0x30d   : > { %v1681_v54 = vadd.f32 %v1680_v24, %v3679_v20  ;;  %v1874_v3 = vadd.f32 %v1873_v15, %v3682_v21  ;;  %v1682_v35 = vpop.f32.mrb[90].mxu0  ;;  %v1875_v51 = vpop.f32.mrb[90].mxu1 }
 0x30e   : > { %v2303_v58 = vmax.f32 %v2302_v6, %v1679_v12  ;;  %v2377_v17 = vmax.f32 %v2376_v7, %v1872_v13  ;;  %v1683_v18 = vadd.f32 %v1682_v35, %v3673_v4  ;;  %v1876_v22 = vadd.f32 %v1875_v51, %v3676_v16  ;;  %v1684_v23 = vpop.f32.mrb[91].mxu0  ;;  %v1877_v25 = vpop.f32.mrb[91].mxu1 }
 0x30f   : > { %v2340_v26 = vmax.f32 %v2339_v8, %v1681_v54  ;;  %v2414_v27 = vmax.f32 %v2413_v9, %v1874_v3  ;;  %v1685_v28 = vadd.f32 %v1684_v23, %v3679_v20  ;;  %v1878_v29 = vadd.f32 %v1877_v25, %v3682_v21 }
 0x310   : > { %v2304_v30 = vmax.f32 %v2303_v58, %v1683_v18  ;;  %v2378_v31 = vmax.f32 %v2377_v17, %v1876_v22  ;;  %v3844_v7 = vrot.slane %v3664_v19, %v1174_v50 }
 0x311   : > { %v2341_v32 = vmax.f32 %v2340_v26, %v1685_v28  ;;  %v2415_v33 = vmax.f32 %v2414_v27, %v1878_v29 }
 0x313   : > { %v1688_v34 = vpop.f32.mrb[92].mxu0  ;;  %v1881_v36 = vpop.f32.mrb[92].mxu1 }
 0x314   : > { %v1689_v39 = vadd.f32 %v1688_v34, %v3673_v4  ;;  %v1882_v14 = vadd.f32 %v1881_v36, %v3676_v16  ;;  %v1690_v40 = vpop.f32.mrb[93].mxu0  ;;  %v1883_v41 = vpop.f32.mrb[93].mxu1 }
 0x315   : > { %v1691_v44 = vadd.f32 %v1690_v40, %v3679_v20  ;;  %v1884_v45 = vadd.f32 %v1883_v41, %v3682_v21  ;;  %v1692_v1 = vpop.f32.mrb[94].mxu0  ;;  %v1885_v46 = vpop.f32.mrb[94].mxu1 }
 0x316   : > { %v2305_v52 = vmax.f32 %v2304_v30, %v1689_v39  ;;  %v2379_v53 = vmax.f32 %v2378_v31, %v1882_v14  ;;  %v1693_v49 = vadd.f32 %v1692_v1, %v3673_v4  ;;  %v1886_v55 = vadd.f32 %v1885_v46, %v3676_v16  ;;  %v1694_v56 = vpop.f32.mrb[95].mxu0  ;;  %v1887_v57 = vpop.f32.mrb[95].mxu1 }
 0x317   : > { %v2342_v59 = vmax.f32 %v2341_v32, %v1691_v44  ;;  %v2416_v60 = vmax.f32 %v2415_v33, %v1884_v45  ;;  %v1695_v61 = vadd.f32 %v1694_v56, %v3679_v20  ;;  %v1888_v62 = vadd.f32 %v1887_v57, %v3682_v21 }
 0x318   : > { %v2306_v63 = vmax.f32 %v2305_v52, %v1693_v49  ;;  %v2380_v0 = vmax.f32 %v2379_v53, %v1886_v55  ;;  %v3841_v16 = vrot.slane %v3664_v19, %v1166_v43  ;;  %v2586_v21 = vunpack.c.0.s8 %v2585_v48 }
 0x319   : > { %v2343_v6 = vmax.f32 %v2342_v59, %v1695_v61  ;;  %v2417_v4 = vmax.f32 %v2416_v60, %v1888_v62 }
 0x31a   : > { %v2307_v8 = vrot.slane %v2306_v63, 4  ;;  %v2381_v20 = vrot.slane %v2380_v0, 4  ;;  %v3855_v1 = vsub.s32 %v2586_v21, %v3657_v38 }
 0x31b   : > { %v2344_v9 = vrot.slane %v2343_v6, 4  ;;  %v2418_v11 = vrot.slane %v2417_v4, 4  ;;  %v1924_v10 = vpop.f32.mrb[96].mxu0  ;;  %v2117_v12 = vpop.f32.mrb[96].mxu1 }
 0x31c   : > { %v2308_v13 = vmax.f32 %v2306_v63, %v2307_v8  ;;  %v2382_v24 = vmax.f32 %v2380_v0, %v2381_v20  ;;  %v1925_v15 = vadd.f32 %v1924_v10, %v3835_v2  ;;  %v2118_v54 = vadd.f32 %v2117_v12, %v3838_v5  ;;  %v1926_v3 = vpop.f32.mrb[97].mxu0  ;;  %v2119_v35 = vpop.f32.mrb[97].mxu1 }
 0x31d   : > { %v2345_v51 = vmax.f32 %v2343_v6, %v2344_v9  ;;  %v2419_v58 = vmax.f32 %v2417_v4, %v2418_v11  ;;  %v1927_v19 = vadd.f32 %v1926_v3, %v3841_v16  ;;  %v2120_v17 = vadd.f32 %v2119_v35, %v3844_v7  ;;  %v1928_v18 = vpop.f32.mrb[98].mxu0  ;;  %v2121_v22 = vpop.f32.mrb[98].mxu1 }
 0x31e   : > { %v2309_v23 = vrot.slane %v2308_v13, 2  ;;  %v2383_v25 = vrot.slane %v2382_v24, 2  ;;  %v1929_v26 = vadd.f32 %v1928_v18, %v3835_v2  ;;  %v2122_v27 = vadd.f32 %v2121_v22, %v3838_v5  ;;  %v1930_v28 = vpop.f32.mrb[99].mxu0  ;;  %v2123_v29 = vpop.f32.mrb[99].mxu1 }
 0x31f   : > { %v2346_v30 = vrot.slane %v2345_v51, 2  ;;  %v2420_v31 = vrot.slane %v2419_v58, 2  ;;  %v1931_v32 = vadd.f32 %v1930_v28, %v3841_v16  ;;  %v2124_v33 = vadd.f32 %v2123_v29, %v3844_v7 }
 0x320   : > { %v2310_v34 = vmax.f32 %v2308_v13, %v2309_v23  ;;  %v2384_v36 = vmax.f32 %v2382_v24, %v2383_v25  ;;  %v2424_v37 = vmax.f32 %v1925_v15, %v1929_v26  ;;  %v2498_v39 = vmax.f32 %v2118_v54, %v2122_v27 }
 0x321   : > { %v2347_v14 = vmax.f32 %v2345_v51, %v2346_v30  ;;  %v2421_v40 = vmax.f32 %v2419_v58, %v2420_v31  ;;  %v2461_v41 = vmax.f32 %v1927_v19, %v1931_v32  ;;  %v2535_v42 = vmax.f32 %v2120_v17, %v2124_v33 }
 0x322   : > { %v2311_v43 = vrot.slane %v2310_v34, 1  ;;  %v2385_v44 = vrot.slane %v2384_v36, 1 }
 0x323   : > { %v2348_v45 = vrot.slane %v2347_v14, 1  ;;  %v2422_v46 = vrot.slane %v2421_v40, 1  ;;  %v1934_v47 = vpop.f32.mrb[100].mxu0  ;;  %v2127_v48 = vpop.f32.mrb[100].mxu1 }
 0x324   : > { %v2312_v50 = vmax.f32 %v2310_v34, %v2311_v43  ;;  %v2386_v52 = vmax.f32 %v2384_v36, %v2385_v44  ;;  %v1935_v53 = vadd.f32 %v1934_v47, %v3835_v2  ;;  %v2128_v49 = vadd.f32 %v2127_v48, %v3838_v5  ;;  %v1936_v55 = vpop.f32.mrb[101].mxu0  ;;  %v2129_v56 = vpop.f32.mrb[101].mxu1 }
 0x325   : > { %v2349_v57 = vmax.f32 %v2347_v14, %v2348_v45  ;;  %v2423_v59 = vmax.f32 %v2421_v40, %v2422_v46  ;;  %v1937_v60 = vadd.f32 %v1936_v55, %v3841_v16  ;;  %v2130_v61 = vadd.f32 %v2129_v56, %v3844_v7  ;;  %v1938_v62 = vpop.f32.mrb[102].mxu0  ;;  %v2131_v38 = vpop.f32.mrb[102].mxu1 }
 0x326   : > { %v2425_v63 = vmax.f32 %v2424_v37, %v1935_v53  ;;  %v2499_v0 = vmax.f32 %v2498_v39, %v2128_v49  ;;  %v1939_v6 = vadd.f32 %v1938_v62, %v3835_v2  ;;  %v2132_v4 = vadd.f32 %v2131_v38, %v3838_v5  ;;  %v1940_v8 = vpop.f32.mrb[103].mxu0  ;;  %v2133_v20 = vpop.f32.mrb[103].mxu1 }
 0x327   : > { %v2580_v9 = vcombine.low %v2312_v50, %v2349_v57  ;;  %v2581_v21 = vcombine.low %v2386_v52, %v2423_v59  ;;  %v2462_v11 = vmax.f32 %v2461_v41, %v1937_v60  ;;  %v2536_v10 = vmax.f32 %v2535_v42, %v2130_v61 }
 0x328   : > { %v2426_v12 = vmax.f32 %v2425_v63, %v1939_v6  ;;  %v2500_v13 = vmax.f32 %v2499_v0, %v2132_v4  ;;  %v1941_v24 = vadd.f32 %v1940_v8, %v3841_v16  ;;  %v2134_v15 = vadd.f32 %v2133_v20, %v3844_v7 }
 0x329   : > { %v3866_v54 = vrot.slane %v2580_v9, %v3855_v1  ;;  %v3869_v3 = vrot.slane %v2581_v21, %v3855_v1 }
 0x32a   : > { %v2463_v35 = vmax.f32 %v2462_v11, %v1941_v24  ;;  %v2537_v51 = vmax.f32 %v2536_v10, %v2134_v15 }
 0x32b   : > { %v2612_v58 = vcombine.low %v3866_v54, %v3869_v3  ;;  %v1944_v19 = vpop.f32.mrb[104].mxu0  ;;  %v2137_v17 = vpop.f32.mrb[104].mxu1 }
 0x32c   : > { %v1945_v18 = vadd.f32 %v1944_v19, %v3835_v2  ;;  %v2138_v22 = vadd.f32 %v2137_v17, %v3838_v5  ;;  %v1946_v23 = vpop.f32.mrb[105].mxu0  ;;  %v2139_v25 = vpop.f32.mrb[105].mxu1 }
 0x32d   : > { %v1947_v26 = vadd.f32 %v1946_v23, %v3841_v16  ;;  %v2140_v27 = vadd.f32 %v2139_v25, %v3844_v7  ;;  %v1948_v28 = vpop.f32.mrb[106].mxu0  ;;  %v2141_v29 = vpop.f32.mrb[106].mxu1 }
 0x32e   : > { %v2427_v30 = vmax.f32 %v2426_v12, %v1945_v18  ;;  %v2501_v31 = vmax.f32 %v2500_v13, %v2138_v22  ;;  %v1949_v32 = vadd.f32 %v1948_v28, %v3835_v2  ;;  %v2142_v33 = vadd.f32 %v2141_v29, %v3838_v5  ;;  %v1950_v34 = vpop.f32.mrb[107].mxu0  ;;  %v2143_v36 = vpop.f32.mrb[107].mxu1 }
 0x32f   : > { %v2464_v37 = vmax.f32 %v2463_v35, %v1947_v26  ;;  %v2538_v39 = vmax.f32 %v2537_v51, %v2140_v27  ;;  %v1951_v14 = vadd.f32 %v1950_v34, %v3841_v16  ;;  %v2144_v40 = vadd.f32 %v2143_v36, %v3844_v7 }
 0x330   : > { %v2428_v41 = vmax.f32 %v2427_v30, %v1949_v32  ;;  %v2502_v42 = vmax.f32 %v2501_v31, %v2142_v33 }
 0x331   : > { %v2465_v43 = vmax.f32 %v2464_v37, %v1951_v14  ;;  %v2539_v44 = vmax.f32 %v2538_v39, %v2144_v40 }
 0x333   : > { %v1954_v45 = vpop.f32.mrb[108].mxu0  ;;  %v2147_v46 = vpop.f32.mrb[108].mxu1 }
 0x334   : > { %v1955_v47 = vadd.f32 %v1954_v45, %v3835_v2  ;;  %v2148_v48 = vadd.f32 %v2147_v46, %v3838_v5  ;;  %v1956_v50 = vpop.f32.mrb[109].mxu0  ;;  %v2149_v52 = vpop.f32.mrb[109].mxu1 }
 0x335   : > { %v1957_v53 = vadd.f32 %v1956_v50, %v3841_v16  ;;  %v2150_v49 = vadd.f32 %v2149_v52, %v3844_v7  ;;  %v1958_v55 = vpop.f32.mrb[110].mxu0  ;;  %v2151_v56 = vpop.f32.mrb[110].mxu1 }
 0x336   : > { %v2429_v57 = vmax.f32 %v2428_v41, %v1955_v47  ;;  %v2503_v59 = vmax.f32 %v2502_v42, %v2148_v48  ;;  %v1959_v60 = vadd.f32 %v1958_v55, %v3835_v2  ;;  %v2152_v61 = vadd.f32 %v2151_v56, %v3838_v5  ;;  %v1960_v62 = vpop.f32.mrb[111].mxu0  ;;  %v2153_v38 = vpop.f32.mrb[111].mxu1 }
 0x337   : > { %v2466_v63 = vmax.f32 %v2465_v43, %v1957_v53  ;;  %v2540_v0 = vmax.f32 %v2539_v44, %v2150_v49  ;;  %v1961_v6 = vadd.f32 %v1960_v62, %v3841_v16  ;;  %v2154_v4 = vadd.f32 %v2153_v38, %v3844_v7 }
 0x338   : > { %v2430_v8 = vmax.f32 %v2429_v57, %v1959_v60  ;;  %v2504_v20 = vmax.f32 %v2503_v59, %v2152_v61 }
 0x339   : > { %v2467_v9 = vmax.f32 %v2466_v63, %v1961_v6  ;;  %v2541_v21 = vmax.f32 %v2540_v0, %v2154_v4 }
 0x33b   : > { %v1964_v11 = vpop.f32.mrb[112].mxu0  ;;  %v2157_v10 = vpop.f32.mrb[112].mxu1 }
 0x33c   : > { %v1965_v12 = vadd.f32 %v1964_v11, %v3835_v2  ;;  %v2158_v13 = vadd.f32 %v2157_v10, %v3838_v5  ;;  %v1966_v24 = vpop.f32.mrb[113].mxu0  ;;  %v2159_v15 = vpop.f32.mrb[113].mxu1 }
 0x33d   : > { %v1967_v35 = vadd.f32 %v1966_v24, %v3841_v16  ;;  %v2160_v51 = vadd.f32 %v2159_v15, %v3844_v7  ;;  %v1968_v19 = vpop.f32.mrb[114].mxu0  ;;  %v2161_v17 = vpop.f32.mrb[114].mxu1 }
 0x33e   : > { %v2431_v18 = vmax.f32 %v2430_v8, %v1965_v12  ;;  %v2505_v22 = vmax.f32 %v2504_v20, %v2158_v13  ;;  %v1969_v23 = vadd.f32 %v1968_v19, %v3835_v2  ;;  %v2162_v25 = vadd.f32 %v2161_v17, %v3838_v5  ;;  %v1970_v26 = vpop.f32.mrb[115].mxu0  ;;  %v2163_v27 = vpop.f32.mrb[115].mxu1 }
 0x33f   : > { %v2468_v28 = vmax.f32 %v2467_v9, %v1967_v35  ;;  %v2542_v29 = vmax.f32 %v2541_v21, %v2160_v51  ;;  %v1971_v30 = vadd.f32 %v1970_v26, %v3841_v16  ;;  %v2164_v31 = vadd.f32 %v2163_v27, %v3844_v7 }
 0x340   : > { %v2432_v32 = vmax.f32 %v2431_v18, %v1969_v23  ;;  %v2506_v33 = vmax.f32 %v2505_v22, %v2162_v25 }
 0x341   : > { %v2469_v34 = vmax.f32 %v2468_v28, %v1971_v30  ;;  %v2543_v36 = vmax.f32 %v2542_v29, %v2164_v31 }
 0x343   : > { %v1974_v37 = vpop.f32.mrb[116].mxu0  ;;  %v2167_v39 = vpop.f32.mrb[116].mxu1 }
 0x344   : > { %v1975_v14 = vadd.f32 %v1974_v37, %v3835_v2  ;;  %v2168_v40 = vadd.f32 %v2167_v39, %v3838_v5  ;;  %v1976_v41 = vpop.f32.mrb[117].mxu0  ;;  %v2169_v42 = vpop.f32.mrb[117].mxu1 }
 0x345   : > { %v1977_v43 = vadd.f32 %v1976_v41, %v3841_v16  ;;  %v2170_v44 = vadd.f32 %v2169_v42, %v3844_v7  ;;  %v1978_v45 = vpop.f32.mrb[118].mxu0  ;;  %v2171_v46 = vpop.f32.mrb[118].mxu1 }
 0x346   : > { %v2433_v47 = vmax.f32 %v2432_v32, %v1975_v14  ;;  %v2507_v48 = vmax.f32 %v2506_v33, %v2168_v40  ;;  %v1979_v50 = vadd.f32 %v1978_v45, %v3835_v2  ;;  %v2172_v52 = vadd.f32 %v2171_v46, %v3838_v5  ;;  %v1980_v53 = vpop.f32.mrb[119].mxu0  ;;  %v2173_v49 = vpop.f32.mrb[119].mxu1 }
 0x347   : > { %v2470_v55 = vmax.f32 %v2469_v34, %v1977_v43  ;;  %v2544_v56 = vmax.f32 %v2543_v36, %v2170_v44  ;;  %v1981_v57 = vadd.f32 %v1980_v53, %v3841_v16  ;;  %v2174_v59 = vadd.f32 %v2173_v49, %v3844_v7 }
 0x348   : > { %v2434_v60 = vmax.f32 %v2433_v47, %v1979_v50  ;;  %v2508_v61 = vmax.f32 %v2507_v48, %v2172_v52 }
 0x349   : > { %v2471_v62 = vmax.f32 %v2470_v55, %v1981_v57  ;;  %v2545_v38 = vmax.f32 %v2544_v56, %v2174_v59 }
 0x34b   : > { %v1984_v63 = vpop.f32.mrb[120].mxu0  ;;  %v2177_v0 = vpop.f32.mrb[120].mxu1 }
 0x34c   : > { %v1985_v6 = vadd.f32 %v1984_v63, %v3835_v2  ;;  %v2178_v4 = vadd.f32 %v2177_v0, %v3838_v5  ;;  %v1986_v8 = vpop.f32.mrb[121].mxu0  ;;  %v2179_v20 = vpop.f32.mrb[121].mxu1 }
 0x34d   : > { %v1987_v9 = vadd.f32 %v1986_v8, %v3841_v16  ;;  %v2180_v21 = vadd.f32 %v2179_v20, %v3844_v7  ;;  %v1988_v11 = vpop.f32.mrb[122].mxu0  ;;  %v2181_v10 = vpop.f32.mrb[122].mxu1 }
 0x34e   : > { %v2435_v12 = vmax.f32 %v2434_v60, %v1985_v6  ;;  %v2509_v13 = vmax.f32 %v2508_v61, %v2178_v4  ;;  %v1989_v24 = vadd.f32 %v1988_v11, %v3835_v2  ;;  %v2182_v15 = vadd.f32 %v2181_v10, %v3838_v5  ;;  %v1990_v35 = vpop.f32.mrb[123].mxu0  ;;  %v2183_v51 = vpop.f32.mrb[123].mxu1 }
 0x34f   : > { %v2472_v19 = vmax.f32 %v2471_v62, %v1987_v9  ;;  %v2546_v17 = vmax.f32 %v2545_v38, %v2180_v21  ;;  %v1991_v18 = vadd.f32 %v1990_v35, %v3841_v16  ;;  %v2184_v22 = vadd.f32 %v2183_v51, %v3844_v7 }
 0x350   : > { %v2436_v23 = vmax.f32 %v2435_v12, %v1989_v24  ;;  %v2510_v25 = vmax.f32 %v2509_v13, %v2182_v15 }
 0x351   : > { %v2473_v26 = vmax.f32 %v2472_v19, %v1991_v18  ;;  %v2547_v27 = vmax.f32 %v2546_v17, %v2184_v22 }
 0x353   : > { %v1994_v28 = vpop.f32.mrb[124].mxu0  ;;  %v2187_v29 = vpop.f32.mrb[124].mxu1 }
 0x354   : > { %v1995_v30 = vadd.f32 %v1994_v28, %v3835_v2  ;;  %v2188_v31 = vadd.f32 %v2187_v29, %v3838_v5  ;;  %v1996_v32 = vpop.f32.mrb[125].mxu0  ;;  %v2189_v33 = vpop.f32.mrb[125].mxu1 }
 0x355   : > { %v1997_v34 = vadd.f32 %v1996_v32, %v3841_v16  ;;  %v2190_v36 = vadd.f32 %v2189_v33, %v3844_v7  ;;  %v1998_v37 = vpop.f32.mrb[126].mxu0  ;;  %v2191_v39 = vpop.f32.mrb[126].mxu1 }
 0x356   : > { %v2437_v14 = vmax.f32 %v2436_v23, %v1995_v30  ;;  %v2511_v40 = vmax.f32 %v2510_v25, %v2188_v31  ;;  %v1999_v41 = vadd.f32 %v1998_v37, %v3835_v2  ;;  %v2192_v42 = vadd.f32 %v2191_v39, %v3838_v5  ;;  %v2000_v43 = vpop.f32.mrb[127].mxu0  ;;  %v2193_v44 = vpop.f32.mrb[127].mxu1 }
 0x357   : > { %v2474_v45 = vmax.f32 %v2473_v26, %v1997_v34  ;;  %v2548_v46 = vmax.f32 %v2547_v27, %v2190_v36  ;;  %v2001_v47 = vadd.f32 %v2000_v43, %v3841_v16  ;;  %v2194_v48 = vadd.f32 %v2193_v44, %v3844_v7 }
 0x358   : > { %v2438_v50 = vmax.f32 %v2437_v14, %v1999_v41  ;;  %v2512_v52 = vmax.f32 %v2511_v40, %v2192_v42 }
 0x359   : > { %v2475_v53 = vmax.f32 %v2474_v45, %v2001_v47  ;;  %v2549_v49 = vmax.f32 %v2548_v46, %v2194_v48 }
 0x35b   : > { %v2004_v55 = vpop.f32.mrb[128].mxu0  ;;  %v2197_v56 = vpop.f32.mrb[128].mxu1 }
 0x35c   : > { %v2005_v57 = vadd.f32 %v2004_v55, %v3835_v2  ;;  %v2198_v59 = vadd.f32 %v2197_v56, %v3838_v5  ;;  %v2006_v60 = vpop.f32.mrb[129].mxu0  ;;  %v2199_v61 = vpop.f32.mrb[129].mxu1 }
 0x35d   : > { %v2007_v62 = vadd.f32 %v2006_v60, %v3841_v16  ;;  %v2200_v38 = vadd.f32 %v2199_v61, %v3844_v7  ;;  %v2008_v63 = vpop.f32.mrb[130].mxu0  ;;  %v2201_v0 = vpop.f32.mrb[130].mxu1 }
 0x35e   : > { %v2439_v6 = vmax.f32 %v2438_v50, %v2005_v57  ;;  %v2513_v4 = vmax.f32 %v2512_v52, %v2198_v59  ;;  %v2009_v8 = vadd.f32 %v2008_v63, %v3835_v2  ;;  %v2202_v20 = vadd.f32 %v2201_v0, %v3838_v5  ;;  %v2010_v9 = vpop.f32.mrb[131].mxu0  ;;  %v2203_v21 = vpop.f32.mrb[131].mxu1 }
 0x35f   : > { %v2476_v11 = vmax.f32 %v2475_v53, %v2007_v62  ;;  %v2550_v10 = vmax.f32 %v2549_v49, %v2200_v38  ;;  %v2011_v12 = vadd.f32 %v2010_v9, %v3841_v16  ;;  %v2204_v13 = vadd.f32 %v2203_v21, %v3844_v7 }
 0x360   : > { %v2440_v24 = vmax.f32 %v2439_v6, %v2009_v8  ;;  %v2514_v15 = vmax.f32 %v2513_v4, %v2202_v20 }
 0x361   : > { %v2477_v35 = vmax.f32 %v2476_v11, %v2011_v12  ;;  %v2551_v51 = vmax.f32 %v2550_v10, %v2204_v13 }
 0x363   : > { %v2014_v19 = vpop.f32.mrb[132].mxu0  ;;  %v2207_v17 = vpop.f32.mrb[132].mxu1 }
 0x364   : > { %v2015_v18 = vadd.f32 %v2014_v19, %v3835_v2  ;;  %v2208_v22 = vadd.f32 %v2207_v17, %v3838_v5  ;;  %v2016_v23 = vpop.f32.mrb[133].mxu0  ;;  %v2209_v25 = vpop.f32.mrb[133].mxu1 }
 0x365   : > { %v2017_v26 = vadd.f32 %v2016_v23, %v3841_v16  ;;  %v2210_v27 = vadd.f32 %v2209_v25, %v3844_v7  ;;  %v2018_v28 = vpop.f32.mrb[134].mxu0  ;;  %v2211_v29 = vpop.f32.mrb[134].mxu1 }
 0x366   : > { %v2441_v30 = vmax.f32 %v2440_v24, %v2015_v18  ;;  %v2515_v31 = vmax.f32 %v2514_v15, %v2208_v22  ;;  %v2019_v32 = vadd.f32 %v2018_v28, %v3835_v2  ;;  %v2212_v33 = vadd.f32 %v2211_v29, %v3838_v5  ;;  %v2020_v34 = vpop.f32.mrb[135].mxu0  ;;  %v2213_v36 = vpop.f32.mrb[135].mxu1 }
 0x367   : > { %v2478_v37 = vmax.f32 %v2477_v35, %v2017_v26  ;;  %v2552_v39 = vmax.f32 %v2551_v51, %v2210_v27  ;;  %v2021_v14 = vadd.f32 %v2020_v34, %v3841_v16  ;;  %v2214_v40 = vadd.f32 %v2213_v36, %v3844_v7 }
 0x368   : > { %v2442_v41 = vmax.f32 %v2441_v30, %v2019_v32  ;;  %v2516_v42 = vmax.f32 %v2515_v31, %v2212_v33 }
 0x369   : > { %v2479_v43 = vmax.f32 %v2478_v37, %v2021_v14  ;;  %v2553_v44 = vmax.f32 %v2552_v39, %v2214_v40 }
 0x36b   : > { %v2024_v45 = vpop.f32.mrb[136].mxu0  ;;  %v2217_v46 = vpop.f32.mrb[136].mxu1 }
 0x36c   : > { %v2025_v47 = vadd.f32 %v2024_v45, %v3835_v2  ;;  %v2218_v48 = vadd.f32 %v2217_v46, %v3838_v5  ;;  %v2026_v50 = vpop.f32.mrb[137].mxu0  ;;  %v2219_v52 = vpop.f32.mrb[137].mxu1 }
 0x36d   : > { %v2027_v53 = vadd.f32 %v2026_v50, %v3841_v16  ;;  %v2220_v49 = vadd.f32 %v2219_v52, %v3844_v7  ;;  %v2028_v55 = vpop.f32.mrb[138].mxu0  ;;  %v2221_v56 = vpop.f32.mrb[138].mxu1 }
 0x36e   : > { %v2443_v57 = vmax.f32 %v2442_v41, %v2025_v47  ;;  %v2517_v59 = vmax.f32 %v2516_v42, %v2218_v48  ;;  %v2029_v60 = vadd.f32 %v2028_v55, %v3835_v2  ;;  %v2222_v61 = vadd.f32 %v2221_v56, %v3838_v5  ;;  %v2030_v62 = vpop.f32.mrb[139].mxu0  ;;  %v2223_v38 = vpop.f32.mrb[139].mxu1 }
 0x36f   : > { %v2480_v63 = vmax.f32 %v2479_v43, %v2027_v53  ;;  %v2554_v0 = vmax.f32 %v2553_v44, %v2220_v49  ;;  %v2031_v6 = vadd.f32 %v2030_v62, %v3841_v16  ;;  %v2224_v4 = vadd.f32 %v2223_v38, %v3844_v7 }
 0x370   : > { %v2444_v8 = vmax.f32 %v2443_v57, %v2029_v60  ;;  %v2518_v20 = vmax.f32 %v2517_v59, %v2222_v61 }
 0x371   : > { %v2481_v9 = vmax.f32 %v2480_v63, %v2031_v6  ;;  %v2555_v21 = vmax.f32 %v2554_v0, %v2224_v4 }
 0x373   : > { %v2034_v11 = vpop.f32.mrb[140].mxu0  ;;  %v2227_v10 = vpop.f32.mrb[140].mxu1 }
 0x374   : > { %v2035_v12 = vadd.f32 %v2034_v11, %v3835_v2  ;;  %v2228_v13 = vadd.f32 %v2227_v10, %v3838_v5  ;;  %v2036_v24 = vpop.f32.mrb[141].mxu0  ;;  %v2229_v15 = vpop.f32.mrb[141].mxu1 }
 0x375   : > { %v2037_v35 = vadd.f32 %v2036_v24, %v3841_v16  ;;  %v2230_v51 = vadd.f32 %v2229_v15, %v3844_v7  ;;  %v2038_v19 = vpop.f32.mrb[142].mxu0  ;;  %v2231_v17 = vpop.f32.mrb[142].mxu1 }
 0x376   : > { %v2445_v18 = vmax.f32 %v2444_v8, %v2035_v12  ;;  %v2519_v22 = vmax.f32 %v2518_v20, %v2228_v13  ;;  %v2039_v23 = vadd.f32 %v2038_v19, %v3835_v2  ;;  %v2232_v25 = vadd.f32 %v2231_v17, %v3838_v5  ;;  %v2040_v26 = vpop.f32.mrb[143].mxu0  ;;  %v2233_v27 = vpop.f32.mrb[143].mxu1 }
 0x377   : > { %v2482_v28 = vmax.f32 %v2481_v9, %v2037_v35  ;;  %v2556_v29 = vmax.f32 %v2555_v21, %v2230_v51  ;;  %v2041_v30 = vadd.f32 %v2040_v26, %v3841_v16  ;;  %v2234_v31 = vadd.f32 %v2233_v27, %v3844_v7 }
 0x378   : > { %v2446_v32 = vmax.f32 %v2445_v18, %v2039_v23  ;;  %v2520_v33 = vmax.f32 %v2519_v22, %v2232_v25 }
 0x379   : > { %v2483_v34 = vmax.f32 %v2482_v28, %v2041_v30  ;;  %v2557_v36 = vmax.f32 %v2556_v29, %v2234_v31 }
 0x37b   : > { %v2044_v37 = vpop.f32.mrb[144].mxu0  ;;  %v2237_v39 = vpop.f32.mrb[144].mxu1 }
 0x37c   : > { %v2045_v14 = vadd.f32 %v2044_v37, %v3835_v2  ;;  %v2238_v40 = vadd.f32 %v2237_v39, %v3838_v5  ;;  %v2046_v41 = vpop.f32.mrb[145].mxu0  ;;  %v2239_v42 = vpop.f32.mrb[145].mxu1 }
 0x37d   : > { %v2047_v43 = vadd.f32 %v2046_v41, %v3841_v16  ;;  %v2240_v44 = vadd.f32 %v2239_v42, %v3844_v7  ;;  %v2048_v45 = vpop.f32.mrb[146].mxu0  ;;  %v2241_v46 = vpop.f32.mrb[146].mxu1 }
 0x37e   : > { %v2447_v47 = vmax.f32 %v2446_v32, %v2045_v14  ;;  %v2521_v48 = vmax.f32 %v2520_v33, %v2238_v40  ;;  %v2049_v50 = vadd.f32 %v2048_v45, %v3835_v2  ;;  %v2242_v52 = vadd.f32 %v2241_v46, %v3838_v5  ;;  %v2050_v53 = vpop.f32.mrb[147].mxu0  ;;  %v2243_v49 = vpop.f32.mrb[147].mxu1 }
 0x37f   : > { %v2484_v55 = vmax.f32 %v2483_v34, %v2047_v43  ;;  %v2558_v56 = vmax.f32 %v2557_v36, %v2240_v44  ;;  %v2051_v57 = vadd.f32 %v2050_v53, %v3841_v16  ;;  %v2244_v59 = vadd.f32 %v2243_v49, %v3844_v7 }
 0x380   : > { %v2448_v60 = vmax.f32 %v2447_v47, %v2049_v50  ;;  %v2522_v61 = vmax.f32 %v2521_v48, %v2242_v52 }
 0x381   : > { %v2485_v62 = vmax.f32 %v2484_v55, %v2051_v57  ;;  %v2559_v38 = vmax.f32 %v2558_v56, %v2244_v59 }
 0x383   : > { %v2054_v63 = vpop.f32.mrb[148].mxu0  ;;  %v2247_v0 = vpop.f32.mrb[148].mxu1 }
 0x384   : > { %v2055_v6 = vadd.f32 %v2054_v63, %v3835_v2  ;;  %v2248_v4 = vadd.f32 %v2247_v0, %v3838_v5  ;;  %v2056_v8 = vpop.f32.mrb[149].mxu0  ;;  %v2249_v20 = vpop.f32.mrb[149].mxu1 }
 0x385   : > { %v2057_v9 = vadd.f32 %v2056_v8, %v3841_v16  ;;  %v2250_v21 = vadd.f32 %v2249_v20, %v3844_v7  ;;  %v2058_v11 = vpop.f32.mrb[150].mxu0  ;;  %v2251_v10 = vpop.f32.mrb[150].mxu1 }
 0x386   : > { %v2449_v12 = vmax.f32 %v2448_v60, %v2055_v6  ;;  %v2523_v13 = vmax.f32 %v2522_v61, %v2248_v4  ;;  %v2059_v24 = vadd.f32 %v2058_v11, %v3835_v2  ;;  %v2252_v15 = vadd.f32 %v2251_v10, %v3838_v5  ;;  %v2060_v35 = vpop.f32.mrb[151].mxu0  ;;  %v2253_v51 = vpop.f32.mrb[151].mxu1 }
 0x387   : > { %v2486_v19 = vmax.f32 %v2485_v62, %v2057_v9  ;;  %v2560_v17 = vmax.f32 %v2559_v38, %v2250_v21  ;;  %v2061_v18 = vadd.f32 %v2060_v35, %v3841_v16  ;;  %v2254_v22 = vadd.f32 %v2253_v51, %v3844_v7 }
 0x388   : > { %v2450_v23 = vmax.f32 %v2449_v12, %v2059_v24  ;;  %v2524_v25 = vmax.f32 %v2523_v13, %v2252_v15 }
 0x389   : > { %v2487_v26 = vmax.f32 %v2486_v19, %v2061_v18  ;;  %v2561_v27 = vmax.f32 %v2560_v17, %v2254_v22 }
 0x38b   : > { %v2064_v28 = vpop.f32.mrb[152].mxu0  ;;  %v2257_v29 = vpop.f32.mrb[152].mxu1 }
 0x38c   : > { %v2065_v30 = vadd.f32 %v2064_v28, %v3835_v2  ;;  %v2258_v31 = vadd.f32 %v2257_v29, %v3838_v5  ;;  %v2066_v32 = vpop.f32.mrb[153].mxu0  ;;  %v2259_v33 = vpop.f32.mrb[153].mxu1 }
 0x38d   : > { %v2067_v34 = vadd.f32 %v2066_v32, %v3841_v16  ;;  %v2260_v36 = vadd.f32 %v2259_v33, %v3844_v7  ;;  %v2068_v37 = vpop.f32.mrb[154].mxu0  ;;  %v2261_v39 = vpop.f32.mrb[154].mxu1 }
 0x38e   : > { %v2451_v14 = vmax.f32 %v2450_v23, %v2065_v30  ;;  %v2525_v40 = vmax.f32 %v2524_v25, %v2258_v31  ;;  %v2069_v41 = vadd.f32 %v2068_v37, %v3835_v2  ;;  %v2262_v42 = vadd.f32 %v2261_v39, %v3838_v5  ;;  %v2070_v43 = vpop.f32.mrb[155].mxu0  ;;  %v2263_v44 = vpop.f32.mrb[155].mxu1 }
 0x38f   : > { %v2488_v45 = vmax.f32 %v2487_v26, %v2067_v34  ;;  %v2562_v46 = vmax.f32 %v2561_v27, %v2260_v36  ;;  %v2071_v47 = vadd.f32 %v2070_v43, %v3841_v16  ;;  %v2264_v48 = vadd.f32 %v2263_v44, %v3844_v7 }
 0x390   : > { %v2452_v50 = vmax.f32 %v2451_v14, %v2069_v41  ;;  %v2526_v52 = vmax.f32 %v2525_v40, %v2262_v42 }
 0x391   : > { %v2489_v53 = vmax.f32 %v2488_v45, %v2071_v47  ;;  %v2563_v49 = vmax.f32 %v2562_v46, %v2264_v48  ;;  %v2620_v46 = vrot.slane %v2612_v58, %v3855_v1 }
 0x393   : > { %v2074_v55 = vpop.f32.mrb[156].mxu0  ;;  %v2267_v56 = vpop.f32.mrb[156].mxu1 }
 0x394   : > { %v2075_v57 = vadd.f32 %v2074_v55, %v3835_v2  ;;  %v2268_v59 = vadd.f32 %v2267_v56, %v3838_v5  ;;  %v2076_v60 = vpop.f32.mrb[157].mxu0  ;;  %v2269_v61 = vpop.f32.mrb[157].mxu1 }
 0x395   : > { %v2077_v62 = vadd.f32 %v2076_v60, %v3841_v16  ;;  %v2270_v38 = vadd.f32 %v2269_v61, %v3844_v7  ;;  %v2078_v63 = vpop.f32.mrb[158].mxu0  ;;  %v2271_v0 = vpop.f32.mrb[158].mxu1 }
 0x396   : > { %v2453_v6 = vmax.f32 %v2452_v50, %v2075_v57  ;;  %v2527_v4 = vmax.f32 %v2526_v52, %v2268_v59  ;;  %v2079_v8 = vadd.f32 %v2078_v63, %v3835_v2  ;;  %v2272_v20 = vadd.f32 %v2271_v0, %v3838_v5  ;;  %v2080_v9 = vpop.f32.mrb[159].mxu0  ;;  %v2273_v21 = vpop.f32.mrb[159].mxu1 }
 0x397   : > { %v2490_v11 = vmax.f32 %v2489_v53, %v2077_v62  ;;  %v2564_v10 = vmax.f32 %v2563_v49, %v2270_v38  ;;  %v2081_v12 = vadd.f32 %v2080_v9, %v3841_v16  ;;  %v2274_v13 = vadd.f32 %v2273_v21, %v3844_v7 }
 0x398   : > { %v2454_v24 = vmax.f32 %v2453_v6, %v2079_v8  ;;  %v2528_v15 = vmax.f32 %v2527_v4, %v2272_v20 }
 0x399   : > { %v2491_v35 = vmax.f32 %v2490_v11, %v2081_v12  ;;  %v2565_v51 = vmax.f32 %v2564_v10, %v2274_v13 }
 0x39a   : > { %v2455_v19 = vrot.slane %v2454_v24, 4  ;;  %v2529_v17 = vrot.slane %v2528_v15, 4 }
 0x39b   : > { %v2492_v18 = vrot.slane %v2491_v35, 4  ;;  %v2566_v22 = vrot.slane %v2565_v51, 4 }
 0x39c   : > { %v2456_v23 = vmax.f32 %v2454_v24, %v2455_v19  ;;  %v2530_v2 = vmax.f32 %v2528_v15, %v2529_v17 }
 0x39d   : > { %v2493_v25 = vmax.f32 %v2491_v35, %v2492_v18  ;;  %v2567_v5 = vmax.f32 %v2565_v51, %v2566_v22 }
 0x39e   : > { %v2457_v26 = vrot.slane %v2456_v23, 2  ;;  %v2531_v27 = vrot.slane %v2530_v2, 2 }
 0x39f   : > { %v2494_v28 = vrot.slane %v2493_v25, 2  ;;  %v2568_v29 = vrot.slane %v2567_v5, 2 }
 0x3a0   : > { %v2458_v30 = vmax.f32 %v2456_v23, %v2457_v26  ;;  %v2532_v16 = vmax.f32 %v2530_v2, %v2531_v27 }
 0x3a1   : > { %v2495_v7 = vmax.f32 %v2493_v25, %v2494_v28  ;;  %v2569_v31 = vmax.f32 %v2567_v5, %v2568_v29 }
 0x3a2   : > { %v2459_v32 = vrot.slane %v2458_v30, 1  ;;  %v2533_v33 = vrot.slane %v2532_v16, 1 }
 0x3a3   : > { %v2496_v34 = vrot.slane %v2495_v7, 1  ;;  %v2570_v36 = vrot.slane %v2569_v31, 1 }
 0x3a4   : > { %v2460_v37 = vmax.f32 %v2458_v30, %v2459_v32  ;;  %v2534_v39 = vmax.f32 %v2532_v16, %v2533_v33 }
 0x3a5   : > { %v2497_v14 = vmax.f32 %v2495_v7, %v2496_v34  ;;  %v2571_v40 = vmax.f32 %v2569_v31, %v2570_v36 }
 0x3a7   : > { %v2582_v41 = vcombine.low %v2460_v37, %v2497_v14  ;;  %v2583_v42 = vcombine.low %v2534_v39, %v2571_v40 }
 0x3a9   : > { %v2604_v43 = vrot.slane %v2582_v41, %v3855_v1  ;;  %v2611_v44 = vrot.slane %v2583_v42, %v3855_v1 }
 0x3ab   : > { %v2613_v45 = vcombine.low %v2604_v43, %v2611_v44 }
 0x3ad   : > { %v2627_v47 = vrot.slane %v2613_v45, %v3855_v1 }
 0x3af   : > { %v2628_v48 = vcombine.low %v2620_v46, %v2627_v47 }
 0x3b1   : > { %2630 = vst [vmem:[%s293_s17] sm:$0xff] %v2628_v48 }
 0x3b2 PF: > { %s17_s24 = sadd.s32 1, %s3058_s24  }
 0x3b3   : > { %p14_p4 = scmp.ge.s32.totalorder %s17_s24, 4  }
 0x3b5   :  { %16 = sbr.rel (!%p14_p4) target bundleno = 1 (0x1), region = 81 }

</bundles_post_ra>
